<compile_context>
chip_gen: v7x
topology: tpu7x:2x2x1
jax: 0.10.0
libtpu: 0.0.40
codegen_flags: <defaults>
</compile_context>

<pallas_src>
import functools

import numpy as np

import jax
import jax.numpy as jnp
from jax.experimental import pallas as pl
from jax.experimental.pallas import tpu as pltpu


# ----------------------------------------------------------------------------
# In-kernel math helpers
# ----------------------------------------------------------------------------
def _gelu(x):
    # tanh-based GELU (tanh lowers to the EUP slot).
    c = 0.7978845608028654  # sqrt(2/pi)
    return 0.5 * x * (1.0 + jnp.tanh(c * (x + 0.044715 * x * x * x)))


def _apply_act(y, act):
    if act == "gelu":
        return _gelu(y)
    if act == "sigmoid":
        return 1.0 / (1.0 + jnp.exp(-y))
    return y


def _row_tile(m, cap=256):
    """Largest row-tile <= cap that divides m and is sublane aligned."""
    for t in (256, 128, 64, 32, 16, 8):
        if t <= cap and t <= m and m % t == 0:
            return t
    return m


def _parallel(n):
    return pltpu.CompilerParams(dimension_semantics=("parallel",) * n)


# ----------------------------------------------------------------------------
# Kernels
# ----------------------------------------------------------------------------
def _mm_kernel(a_ref, w_ref, s_ref, t_ref, o_ref, *, act):
    # y = act((A @ W) * scale + shift)  -- bf16 MXU inputs, f32 accumulate.
    y = jnp.dot(a_ref[...].astype(jnp.bfloat16),
                w_ref[...].astype(jnp.bfloat16),
                preferred_element_type=jnp.float32)
    o_ref[...] = _apply_act(y * s_ref[...] + t_ref[...], act)


def _mm_res_kernel(a_ref, w_ref, t_ref, r_ref, o_ref):
    # y = A @ W + bias + residual  (fused FF residual).
    y = jnp.dot(a_ref[...].astype(jnp.bfloat16),
                w_ref[...].astype(jnp.bfloat16),
                preferred_element_type=jnp.float32)
    o_ref[...] = y + t_ref[...] + r_ref[...]


def _ln_mm_kernel(a_ref, g_ref, b_ref, w_ref, bias_ref, o_ref, *, act):
    # Fused LayerNorm -> matmul -> bias -> activation.
    x = a_ref[...]
    mu = jnp.mean(x, axis=-1, keepdims=True)
    var = jnp.mean(jnp.square(x - mu), axis=-1, keepdims=True)
    xn = (x - mu) * jax.lax.rsqrt(var + 1e-5) * g_ref[...] + b_ref[...]
    y = jnp.dot(xn.astype(jnp.bfloat16), w_ref[...].astype(jnp.bfloat16),
                preferred_element_type=jnp.float32) + bias_ref[...]
    o_ref[...] = _apply_act(y, act)


def _ln_qkv_kernel(a_ref, g_ref, b_ref, w_ref, o_ref, xn_ref):
    # grid = (row tiles, 3*heads).  LayerNorm computed once per row tile
    # (cached in a bf16 VMEM scratch) and re-used for every q/k/v head group,
    # writing the output pre-split by head: (3*heads, M, dim_head).
    @pl.when(pl.program_id(1) == 0)
    def _():
        x = a_ref[...]
        mu = jnp.mean(x, axis=-1, keepdims=True)
        var = jnp.mean(jnp.square(x - mu), axis=-1, keepdims=True)
        xn_ref[...] = ((x - mu) * jax.lax.rsqrt(var + 1e-5) * g_ref[...]
                       + b_ref[...]).astype(jnp.bfloat16)

    y = jnp.dot(xn_ref[...], w_ref[0].astype(jnp.bfloat16),
                preferred_element_type=jnp.float32)
    o_ref[...] = y[None]


def _attn_kernel(q_ref, k_ref, v_ref, b_ref, o_ref, *, scale):
    # One (batch, head) tile: softmax(q k^T * scale + rel_bias) @ v.
    _, _, ntok, d = q_ref.shape
    q = q_ref[...].reshape(ntok, d).astype(jnp.bfloat16)
    k = k_ref[...].reshape(ntok, d).astype(jnp.bfloat16)
    v = v_ref[...].reshape(ntok, d).astype(jnp.bfloat16)
    bias = b_ref[...].reshape(ntok, ntok)
    s = jax.lax.dot_general(q, k, (((1,), (1,)), ((), ())),
                            preferred_element_type=jnp.float32)
    s = s * scale + bias
    m = jnp.max(s, axis=-1, keepdims=True)
    e = jnp.exp(s - m)
    p = e * pl.reciprocal(jnp.sum(e, axis=-1, keepdims=True), approx=True)
    out = jnp.dot(p.astype(jnp.bfloat16), v, preferred_element_type=jnp.float32)
    o_ref[...] = out.reshape(1, 1, ntok, d)


def _hm_kernel(o_ref, w_ref, b_ref, r_ref, out_ref, acc_ref):
    # Attention output projection fused with the head merge AND the residual:
    # out = residual + sum_h o[h] @ Wout[h] + bias   (heads = reduction axis).
    h = pl.program_id(1)

    @pl.when(h == 0)
    def _():
        acc_ref[...] = jnp.zeros_like(acc_ref)

    acc_ref[...] += jnp.dot(o_ref[0].astype(jnp.bfloat16),
                            w_ref[0].astype(jnp.bfloat16),
                            preferred_element_type=jnp.float32)

    @pl.when(h == pl.num_programs(1) - 1)
    def _():
        out_ref[...] = acc_ref[...] + b_ref[...] + r_ref[...]


def _se_proj_kernel(a_ref, y_ref, w_ref, s_ref, t_ref, r_ref, o_ref):
    # SE channel re-scale fused with 1x1 projection conv + BatchNorm + residual.
    a = a_ref[0] * y_ref[0]
    y = jnp.dot(a.astype(jnp.bfloat16), w_ref[...].astype(jnp.bfloat16),
                preferred_element_type=jnp.float32)
    o_ref[...] = (y * s_ref[...] + t_ref[...] + r_ref[0])[None]


def _dwconv_kernel(x_ref, w_ref, s_ref, t_ref, o_ref):
    # Depthwise 3x3 conv (+BN+GELU): taps built in-kernel from one padded
    # image block (no 9x HBM expansion).
    _, hh, ww, _ = o_ref.shape
    x = x_ref[...]           # (1, H+2, W+2, C)
    wv = w_ref[...]          # (3, 3, 1, C)
    acc = None
    for ki in range(3):
        for kj in range(3):
            tap = x[0, ki:ki + hh, kj:kj + ww, :] * wv[ki, kj, 0]
            acc = tap if acc is None else acc + tap
    y = acc * s_ref[...] + t_ref[...]
    o_ref[...] = _gelu(y)[None]


def _maxpool_kernel(x_ref, o_ref):
    r = x_ref[0]
    for tap in range(1, 9):
        r = jnp.maximum(r, x_ref[tap])
    o_ref[...] = r


def _maxpool_proj_kernel(x_ref, w_ref, o_ref):
    # MaxPool3x3s2 fused with the 1x1 projection conv of the shortcut branch.
    r = x_ref[0]
    for tap in range(1, 9):
        r = jnp.maximum(r, x_ref[tap])
    o_ref[...] = jnp.dot(r.astype(jnp.bfloat16), w_ref[...].astype(jnp.bfloat16),
                         preferred_element_type=jnp.float32)


def _avgpool_kernel(x_ref, o_ref):
    o_ref[...] = jnp.mean(x_ref[...], axis=1, keepdims=True)


# ----------------------------------------------------------------------------
# pallas_call wrappers (gridded)
# ----------------------------------------------------------------------------
def pallas_matmul(a, w, scale=None, shift=None, act="none"):
    a = a.astype(jnp.float32)
    w = w.astype(jnp.float32)
    m, k = a.shape
    n = w.shape[1]
    scale = jnp.ones((1, n), jnp.float32) if scale is None else scale.reshape(1, n).astype(jnp.float32)
    shift = jnp.zeros((1, n), jnp.float32) if shift is None else shift.reshape(1, n).astype(jnp.float32)
    tm = _row_tile(m)
    return pl.pallas_call(
        functools.partial(_mm_kernel, act=act),
        out_shape=jax.ShapeDtypeStruct((m, n), jnp.float32),
        grid=(m // tm,),
        in_specs=[pl.BlockSpec((tm, k), lambda i: (i, 0)),
                  pl.BlockSpec((k, n), lambda i: (0, 0)),
                  pl.BlockSpec((1, n), lambda i: (0, 0)),
                  pl.BlockSpec((1, n), lambda i: (0, 0))],
        out_specs=pl.BlockSpec((tm, n), lambda i: (i, 0)),
        compiler_params=_parallel(1),
    )(a, w, scale, shift)


def pallas_matmul_res(a, w, bias, res):
    m, k = a.shape
    n = w.shape[1]
    bias = bias.reshape(1, n).astype(jnp.float32)
    tm = _row_tile(m)
    return pl.pallas_call(
        _mm_res_kernel,
        out_shape=jax.ShapeDtypeStruct((m, n), jnp.float32),
        grid=(m // tm,),
        in_specs=[pl.BlockSpec((tm, k), lambda i: (i, 0)),
                  pl.BlockSpec((k, n), lambda i: (0, 0)),
                  pl.BlockSpec((1, n), lambda i: (0, 0)),
                  pl.BlockSpec((tm, n), lambda i: (i, 0))],
        out_specs=pl.BlockSpec((tm, n), lambda i: (i, 0)),
        compiler_params=_parallel(1),
    )(a, w, bias, res)


def pallas_ln_matmul(a, gamma, beta, w, bias, act="none"):
    m, c = a.shape
    n = w.shape[1]
    tm = _row_tile(m)
    return pl.pallas_call(
        functools.partial(_ln_mm_kernel, act=act),
        out_shape=jax.ShapeDtypeStruct((m, n), jnp.float32),
        grid=(m // tm,),
        in_specs=[pl.BlockSpec((tm, c), lambda i: (i, 0)),
                  pl.BlockSpec((1, c), lambda i: (0, 0)),
                  pl.BlockSpec((1, c), lambda i: (0, 0)),
                  pl.BlockSpec((c, n), lambda i: (0, 0)),
                  pl.BlockSpec((1, n), lambda i: (0, 0))],
        out_specs=pl.BlockSpec((tm, n), lambda i: (i, 0)),
        compiler_params=_parallel(1),
    )(a, gamma, beta, w, bias)


def pallas_ln_qkv(a, gamma, beta, w3hd):
    m, c = a.shape
    gdim, _, d = w3hd.shape
    tm = _row_tile(m)
    return pl.pallas_call(
        _ln_qkv_kernel,
        out_shape=jax.ShapeDtypeStruct((gdim, m, d), jnp.float32),
        grid_spec=pltpu.PrefetchScalarGridSpec(
            num_scalar_prefetch=0,
            grid=(m // tm, gdim),
            in_specs=[pl.BlockSpec((tm, c), lambda i, g: (i, 0)),
                      pl.BlockSpec((1, c), lambda i, g: (0, 0)),
                      pl.BlockSpec((1, c), lambda i, g: (0, 0)),
                      pl.BlockSpec((1, c, d), lambda i, g: (g, 0, 0))],
            out_specs=pl.BlockSpec((1, tm, d), lambda i, g: (g, i, 0)),
            scratch_shapes=[pltpu.VMEM((tm, c), jnp.bfloat16)]),
        compiler_params=pltpu.CompilerParams(
            dimension_semantics=("parallel", "arbitrary")),
    )(a, gamma, beta, w3hd)


def pallas_attention(qkv4, bias, heads, scale):
    # qkv4: (3*heads, B, ntok, d), bias: (heads, ntok, ntok).
    _, nb, ntok, d = qkv4.shape
    return pl.pallas_call(
        functools.partial(_attn_kernel, scale=scale),
        out_shape=jax.ShapeDtypeStruct((heads, nb, ntok, d), jnp.float32),
        grid=(nb, heads),
        in_specs=[pl.BlockSpec((1, 1, ntok, d), lambda b, h: (h, b, 0, 0)),
                  pl.BlockSpec((1, 1, ntok, d), lambda b, h: (h + heads, b, 0, 0)),
                  pl.BlockSpec((1, 1, ntok, d), lambda b, h: (h + 2 * heads, b, 0, 0)),
                  pl.BlockSpec((1, ntok, ntok), lambda b, h: (h, 0, 0))],
        out_specs=pl.BlockSpec((1, 1, ntok, d), lambda b, h: (h, b, 0, 0)),
        compiler_params=_parallel(2),
    )(qkv4, qkv4, qkv4, bias)
    # TODO(synk): flash-style kv blocking for real (n>=196) token counts on v7x.


def pallas_headmerge_proj(o, w_hd, bias, res):
    heads, m, d = o.shape
    oup = w_hd.shape[2]
    tm = _row_tile(m)
    return pl.pallas_call(
        _hm_kernel,
        out_shape=jax.ShapeDtypeStruct((m, oup), jnp.float32),
        grid_spec=pltpu.PrefetchScalarGridSpec(
            num_scalar_prefetch=0,
            grid=(m // tm, heads),
            in_specs=[pl.BlockSpec((1, tm, d), lambda i, h: (h, i, 0)),
                      pl.BlockSpec((1, d, oup), lambda i, h: (h, 0, 0)),
                      pl.BlockSpec((1, oup), lambda i, h: (0, 0)),
                      pl.BlockSpec((tm, oup), lambda i, h: (i, 0))],
            out_specs=pl.BlockSpec((tm, oup), lambda i, h: (i, 0)),
            scratch_shapes=[pltpu.VMEM((tm, oup), jnp.float32)]),
        compiler_params=pltpu.CompilerParams(
            dimension_semantics=("parallel", "arbitrary")),
    )(o, w_hd, bias, res)


def pallas_se_proj(a3, y3, w, scale, shift, res3):
    n, hw, ch = a3.shape
    oup = w.shape[1]
    tm = _row_tile(hw)
    return pl.pallas_call(
        _se_proj_kernel,
        out_shape=jax.ShapeDtypeStruct((n, hw, oup), jnp.float32),
        grid=(n, hw // tm),
        in_specs=[pl.BlockSpec((1, tm, ch), lambda b, i: (b, i, 0)),
                  pl.BlockSpec((1, 1, ch), lambda b, i: (b, 0, 0)),
                  pl.BlockSpec((ch, oup), lambda b, i: (0, 0)),
                  pl.BlockSpec((1, oup), lambda b, i: (0, 0)),
                  pl.BlockSpec((1, oup), lambda b, i: (0, 0)),
                  pl.BlockSpec((1, tm, oup), lambda b, i: (b, i, 0))],
        out_specs=pl.BlockSpec((1, tm, oup), lambda b, i: (b, i, 0)),
        compiler_params=_parallel(2),
    )(a3, y3, w, scale, shift, res3)


def pallas_dwconv(xpad, w33, scale, shift):
    n, hp, wp, c = xpad.shape
    h, w = hp - 2, wp - 2
    return pl.pallas_call(
        _dwconv_kernel,
        out_shape=jax.ShapeDtypeStruct((n, h, w, c), jnp.float32),
        grid=(n,),
        in_specs=[pl.BlockSpec((1, hp, wp, c), lambda i: (i, 0, 0, 0)),
                  pl.BlockSpec((3, 3, 1, c), lambda i: (0, 0, 0, 0)),
                  pl.BlockSpec((1, c), lambda i: (0, 0)),
                  pl.BlockSpec((1, c), lambda i: (0, 0))],
        out_specs=pl.BlockSpec((1, h, w, c), lambda i: (i, 0, 0, 0)),
        compiler_params=_parallel(1),
    )(xpad, w33, scale, shift)


def pallas_tap_max(taps):
    _, m, c = taps.shape
    tm = _row_tile(m)
    return pl.pallas_call(
        _maxpool_kernel,
        out_shape=jax.ShapeDtypeStruct((m, c), jnp.float32),
        grid=(m // tm,),
        in_specs=[pl.BlockSpec((9, tm, c), lambda i: (0, i, 0))],
        out_specs=pl.BlockSpec((tm, c), lambda i: (i, 0)),
        compiler_params=_parallel(1),
    )(taps)


def pallas_maxpool_proj(taps, w):
    _, m, c = taps.shape
    oup = w.shape[1]
    tm = _row_tile(m)
    return pl.pallas_call(
        _maxpool_proj_kernel,
        out_shape=jax.ShapeDtypeStruct((m, oup), jnp.float32),
        grid=(m // tm,),
        in_specs=[pl.BlockSpec((9, tm, c), lambda i: (0, i, 0)),
                  pl.BlockSpec((c, oup), lambda i: (0, 0))],
        out_specs=pl.BlockSpec((tm, oup), lambda i: (i, 0)),
        compiler_params=_parallel(1),
    )(taps, w)


def pallas_avgpool(x3):
    n, l, c = x3.shape
    return pl.pallas_call(
        _avgpool_kernel,
        out_shape=jax.ShapeDtypeStruct((n, 1, c), jnp.float32),
        grid=(n,),
        in_specs=[pl.BlockSpec((1, l, c), lambda i: (i, 0, 0))],
        out_specs=pl.BlockSpec((1, 1, c), lambda i: (i, 0, 0)),
        compiler_params=_parallel(1),
    )(x3)


# ----------------------------------------------------------------------------
# Conv / pool glue (JAX-level layout, compute in the kernels above)
# ----------------------------------------------------------------------------
def conv3x3_im2col(x, wm, stride, scale, shift, act):
    """Regular 3x3 conv (pad=1, no bias) + folded BN + act via im2col matmul."""
    n, h, w, c = x.shape
    ho = (h + 2 - 3) // stride + 1
    wo = (w + 2 - 3) // stride + 1
    xp = jnp.pad(x, ((0, 0), (1, 1), (1, 1), (0, 0)))
    pats = [xp[:, ki:ki + stride * (ho - 1) + 1:stride,
               kj:kj + stride * (wo - 1) + 1:stride, :]
            for ki in range(3) for kj in range(3)]
    a = jnp.stack(pats, axis=3).reshape(n * ho * wo, 9 * c)
    y = pallas_matmul(a, wm, scale, shift, act)
    return y.reshape(n, ho, wo, wm.shape[1])


def conv1x1(x, wm, scale=None, shift=None, act="none"):
    n, h, w, c = x.shape
    y = pallas_matmul(x.reshape(n * h * w, c), wm, scale, shift, act)
    return y.reshape(n, h, w, wm.shape[1])


def _maxpool_taps(x):
    """Build the 9-tap stack for MaxPool2d(3, 2, 1)."""
    n, h, w, c = x.shape
    ho = (h - 1) // 2 + 1
    wo = (w - 1) // 2 + 1
    xp = jnp.pad(x, ((0, 0), (1, 1), (1, 1), (0, 0)), constant_values=-np.inf)
    taps = jnp.stack([xp[:, ki:ki + 2 * (ho - 1) + 1:2, kj:kj + 2 * (wo - 1) + 1:2, :]
                      for ki in range(3) for kj in range(3)], axis=0)
    return taps.reshape(9, n * ho * wo, c), (n, ho, wo, c)


def maxpool3x3s2(x):
    taps, (n, ho, wo, c) = _maxpool_taps(x)
    return pallas_tap_max(taps).reshape(n, ho, wo, c)


# ----------------------------------------------------------------------------
# Blocks
# ----------------------------------------------------------------------------
def mbconv_forward(x, p, downsample):
    stride = 2 if downsample else 1
    xs = x[:, ::stride, ::stride, :] if stride > 1 else x
    n, h, w, cin = xs.shape
    hid = p["w1"].shape[1]
    oup = p["w2"].shape[1]
    # 1x1 expand (pre-BN folded into w1/shift1) + BN + GELU
    b = pallas_matmul(xs.reshape(n * h * w, cin), p["w1"], p["scale1"], p["shift1"], act="gelu")
    b = b.reshape(n, h, w, hid)
    # depthwise 3x3 + BN + GELU (taps built in-kernel)
    b = pallas_dwconv(jnp.pad(b, ((0, 0), (1, 1), (1, 1), (0, 0))),
                      p["wdw"], p["scale2"], p["shift2"])
    # Squeeze-and-excite
    b3 = b.reshape(n, h * w, hid)
    pooled = pallas_avgpool(b3).reshape(n, hid)
    y = pallas_matmul(pooled, p["se_w1"], act="gelu")
    y = pallas_matmul(y, p["se_w2"], act="sigmoid")
    # Shortcut branch
    if downsample:
        taps, _ = _maxpool_taps(x)                      # MaxPool3x3s2 + 1x1 proj,
        main3 = pallas_maxpool_proj(taps, p["proj"])    # fused, never hits HBM pooled
        main3 = main3.reshape(n, h * w, oup)
    else:
        main3 = x.reshape(n, h * w, oup)
    # SE re-scale fused with 1x1 project + BN + residual add
    out = pallas_se_proj(b3, y.reshape(n, 1, hid), p["w2"], p["scale3"], p["shift3"], main3)
    return out.reshape(n, h, w, oup)


def transformer_forward(x, p, downsample, heads=8, dim_head=32):
    if downsample:
        xpool = maxpool3x3s2(x)          # pool1 == pool2 numerically
        main = conv1x1(xpool, p["proj"])
        xa = xpool
    else:
        xa, main = x, x
    na, ha, wa, ca = xa.shape
    ntok = ha * wa
    cout = p["wout"].shape[2]
    tokens = xa.reshape(na * ntok, ca)

    # --- Attention: fused LN + qkv (head-split output), per-(batch,head) grid ---
    qkv = pallas_ln_qkv(tokens, p["ln1_g"], p["ln1_b"], p["wqkv"])   # (3H, M, d)
    qkv4 = qkv.reshape(3 * heads, na, ntok, dim_head)
    o = pallas_attention(qkv4, p["attn_bias"], heads, float(dim_head) ** -0.5)
    o2 = o.reshape(heads, na * ntok, dim_head)
    # Head-merge + output projection + bias + residual in one kernel.
    x_tok = pallas_headmerge_proj(o2, p["wout"], p["bout"],
                                  main.reshape(na * ntok, cout))     # (M, oup)
    x = x_tok.reshape(na, ha, wa, cout)

    # --- FeedForward: fused LN + fc1 + GELU, then fc2 + bias + residual ---
    h1 = pallas_ln_matmul(x_tok, p["ln2_g"], p["ln2_b"], p["ff_w1"], p["ff_b1"], act="gelu")
    out = pallas_matmul_res(h1, p["ff_w2"], p["ff_b2"], x_tok)
    return out.reshape(na, ha, wa, cout)


def coatnet_forward(x_nchw, params):
    x = jnp.transpose(x_nchw, (0, 2, 3, 1)).astype(jnp.float32)      # NCHW -> NHWC
    for i, p in enumerate(params["s0"]):
        x = conv3x3_im2col(x, p["w"], 2 if i == 0 else 1, p["scale"], p["shift"], "gelu")
    for i, p in enumerate(params["s1"]):
        x = mbconv_forward(x, p, downsample=(i == 0))
    for i, p in enumerate(params["s2"]):
        x = mbconv_forward(x, p, downsample=(i == 0))
    for i, p in enumerate(params["s3"]):
        x = transformer_forward(x, p, downsample=(i == 0))
    for i, p in enumerate(params["s4"]):
        x = transformer_forward(x, p, downsample=(i == 0))
    n, h, w, c = x.shape
    pooled = pallas_avgpool(x.reshape(n, h * w, c)).reshape(n, c)    # AvgPool2d(ih//32)
    return pallas_matmul(pooled, params["fc"])                       # Linear(ch[-1], classes, bias=False)


# ----------------------------------------------------------------------------
# Deterministic parameter construction (shapes from the module __init__)
# ----------------------------------------------------------------------------
class KeyGen:
    def __init__(self, seed):
        self.key = jax.random.PRNGKey(seed)

    def __call__(self):
        self.key, k = jax.random.split(self.key)
        return k


def bn_params(key, c, eps=1e-5):
    k1, k2, k3, k4 = jax.random.split(key, 4)
    gamma = 1.0 + 0.1 * jax.random.normal(k1, (c,), jnp.float32)
    beta = 0.1 * jax.random.normal(k2, (c,), jnp.float32)
    rmean = 0.1 * jax.random.normal(k3, (c,), jnp.float32)
    rvar = 0.5 + jax.random.uniform(k4, (c,), jnp.float32)
    s = gamma / jnp.sqrt(rvar + eps)
    return dict(scale=s.reshape(1, c), shift=(beta - rmean * s).reshape(1, c))


def compute_relative_index(ih, iw):
    coords = np.stack(np.meshgrid(np.arange(ih), np.arange(iw), indexing="ij"))
    coords = coords.reshape(2, -1)
    rel = coords[:, :, None] - coords[:, None, :]
    rel[0] += ih - 1
    rel[1] += iw - 1
    rel[0] *= 2 * iw - 1
    rel = rel.transpose(1, 2, 0)
    return rel.sum(-1).astype(np.int32)               # (n, n)


def build_params(cfg, kg):
    ih, iw = cfg["image_size"]
    ch = cfg["channels"]
    nb = cfg["num_blocks"]
    rnd = lambda shape, s=0.2: s * jax.random.normal(kg(), shape, jnp.float32)

    params = {"s0": []}
    for i in range(nb[0]):
        inp = cfg["in_channels"] if i == 0 else ch[0]
        params["s0"].append(dict(w=rnd((ch[0], inp, 3, 3)), bn=bn_params(kg(), ch[0])))

    def mb_params(inp, oup, downsample):
        hidden = inp * 4
        se_dim = int(inp * 0.25)
        p = dict(
            pre_bn=bn_params(kg(), inp),
            w1=rnd((inp, hidden)),
            bn1=bn_params(kg(), hidden),
            wdw=rnd((hidden, 1, 3, 3)),
            bn2=bn_params(kg(), hidden),
            se_w1=rnd((hidden, se_dim)),
            se_w2=rnd((se_dim, hidden)),
            w2=rnd((hidden, oup)),
            bn3=bn_params(kg(), oup),
        )
        if downsample:
            p["proj"] = rnd((inp, oup))
        return p

    params["s1"] = [mb_params(ch[0] if i == 0 else ch[1], ch[1], i == 0) for i in range(nb[1])]
    params["s2"] = [mb_params(ch[1] if i == 0 else ch[2], ch[2], i == 0) for i in range(nb[2])]

    def tf_params(inp, oup, isz, downsample, heads=8, dim_head=32):
        tih, tiw = isz
        inner = heads * dim_head
        p = dict(
            ln1_g=1.0 + 0.1 * jax.random.normal(kg(), (inp,), jnp.float32),
            ln1_b=0.1 * jax.random.normal(kg(), (inp,), jnp.float32),
            wqkv=rnd((inp, 3 * inner)),
            wout=rnd((inner, oup)),
            bout=0.1 * jax.random.normal(kg(), (oup,), jnp.float32),
            rel_table=0.1 * jax.random.normal(kg(), ((2 * tih - 1) * (2 * tiw - 1), heads), jnp.float32),
            rel_index=jnp.asarray(compute_relative_index(tih, tiw)),
            ln2_g=1.0 + 0.1 * jax.random.normal(kg(), (oup,), jnp.float32),
            ln2_b=0.1 * jax.random.normal(kg(), (oup,), jnp.float32),
            ff_w1=rnd((oup, inp * 4)),
            ff_b1=0.1 * jax.random.normal(kg(), (inp * 4,), jnp.float32),
            ff_w2=rnd((inp * 4, oup)),
            ff_b2=0.1 * jax.random.normal(kg(), (oup,), jnp.float32),
        )
        if downsample:
            p["proj"] = rnd((inp, oup))
        return p

    isz3, isz4 = (ih // 16, iw // 16), (ih // 32, iw // 32)
    params["s3"] = [tf_params(ch[2] if i == 0 else ch[3], ch[3], isz3, i == 0) for i in range(nb[3])]
    params["s4"] = [tf_params(ch[3] if i == 0 else ch[4], ch[4], isz4, i == 0) for i in range(nb[4])]
    params["fc"] = rnd((ch[4], cfg["num_classes"]))
    return params


def prepare_params(params, heads=8, dim_head=32):
    """One-time reorganisation: fold BNs, reshape weights for kernel layouts,
    precompute the relative-position bias."""
    pp = {"s0": [], "s1": [], "s2": [], "s3": [], "s4": [], "fc": params["fc"]}

    for p in params["s0"]:
        w = p["w"]  # (Cout, Cin, 3, 3)
        wm = jnp.transpose(w, (2, 3, 1, 0)).reshape(-1, w.shape[0])   # (9*Cin, Cout)
        pp["s0"].append(dict(w=wm, scale=p["bn"]["scale"], shift=p["bn"]["shift"]))

    def prep_mb(p):
        s0 = p["pre_bn"]["scale"].reshape(-1)
        t0 = p["pre_bn"]["shift"].reshape(-1)
        w1 = p["w1"]
        s1 = p["bn1"]["scale"]
        t1 = p["bn1"]["shift"]
        q = dict(
            w1=w1 * s0[:, None],                              # pre_bn scale folded
            scale1=s1,
            shift1=(t0 @ w1).reshape(1, -1) * s1 + t1,        # pre_bn shift folded
            wdw=jnp.transpose(p["wdw"], (2, 3, 1, 0)),        # (3, 3, 1, hidden)
            scale2=p["bn2"]["scale"], shift2=p["bn2"]["shift"],
            se_w1=p["se_w1"], se_w2=p["se_w2"],
            w2=p["w2"],
            scale3=p["bn3"]["scale"], shift3=p["bn3"]["shift"],
        )
        if "proj" in p:
            q["proj"] = p["proj"]
        return q

    pp["s1"] = [prep_mb(p) for p in params["s1"]]
    pp["s2"] = [prep_mb(p) for p in params["s2"]]

    def prep_tf(p):
        inp = p["wqkv"].shape[0]
        wqkv = p["wqkv"].reshape(inp, 3, heads, dim_head)
        wqkv = jnp.transpose(wqkv, (1, 2, 0, 3)).reshape(3 * heads, inp, dim_head)
        wout = p["wout"].reshape(heads, dim_head, -1)
        bias = jnp.transpose(p["rel_table"][p["rel_index"]], (2, 0, 1))  # (heads, n, n)
        q = dict(
            ln1_g=p["ln1_g"].reshape(1, -1), ln1_b=p["ln1_b"].reshape(1, -1),
            wqkv=wqkv, wout=wout, bout=p["bout"].reshape(1, -1),
            attn_bias=bias,
            ln2_g=p["ln2_g"].reshape(1, -1), ln2_b=p["ln2_b"].reshape(1, -1),
            ff_w1=p["ff_w1"], ff_b1=p["ff_b1"].reshape(1, -1),
            ff_w2=p["ff_w2"], ff_b2=p["ff_b2"].reshape(1, -1),
        )
        if "proj" in p:
            q["proj"] = p["proj"]
        return q

    pp["s3"] = [prep_tf(p) for p in params["s3"]]
    pp["s4"] = [prep_tf(p) for p in params["s4"]]
    return pp


# ----------------------------------------------------------------------------
# Main
# ----------------------------------------------------------------------------
if __name__ == "__main__":
    cfg = dict(image_size=(32, 32), in_channels=3, num_blocks=[1, 1, 1, 1, 1],
               channels=[8, 16, 16, 32, 64], num_classes=10, block_types=["C", "C", "T", "T"])
    raw = build_params(cfg, KeyGen(42))
    params = prepare_params(raw)
    x = jax.random.normal(jax.random.PRNGKey(0),
                          (2, cfg["in_channels"], cfg["image_size"][0], cfg["image_size"][1]),
                          dtype=jnp.float32)
    fwd = jax.jit(coatnet_forward)
    out = fwd(x, params)
    jax.block_until_ready(out)
    assert out.shape == (2, cfg["num_classes"]), out.shape
    print("KERNEL_OK")
</pallas_src>

<mosaic_0001>
module attributes {stable_mosaic.version = 11 : i64} {
  func.func @_mm_kernel(%arg0: i32, %arg1: memref<256x27xf32, #tpu.memory_space<vmem>>, %arg2: memref<27x8xf32, #tpu.memory_space<vmem>>, %arg3: memref<1x8xf32, #tpu.memory_space<vmem>>, %arg4: memref<1x8xf32, #tpu.memory_space<vmem>>, %arg5: memref<256x8xf32, #tpu.memory_space<vmem>>) attributes {dimension_semantics = [#tpu.dimension_semantics<parallel>], iteration_bounds = array<i64: 2>, scalar_prefetch = 0 : i64, scratch_operands = 0 : i64, tpu.core_type = #tpu.core_type<tc>, window_params = [{transform_indices = @transform_0, window_bounds = array<i64: 256, 27>}, {pipeline_mode = #tpu.pipeline_mode<synchronous>, transform_indices = @transform_1, window_bounds = array<i64: 27, 8>}, {pipeline_mode = #tpu.pipeline_mode<synchronous>, transform_indices = @transform_2, window_bounds = array<i64: 1, 8>}, {pipeline_mode = #tpu.pipeline_mode<synchronous>, transform_indices = @transform_3, window_bounds = array<i64: 1, 8>}, {transform_indices = @transform_4, window_bounds = array<i64: 256, 8>}]} {
    %c0 = arith.constant 0 : index
    %c0_0 = arith.constant 0 : index
    %0 = vector.load %arg1[%c0, %c0_0] : memref<256x27xf32, #tpu.memory_space<vmem>>, vector<256x27xf32>
    %1 = arith.truncf %0 : vector<256x27xf32> to vector<256x27xbf16>
    %c0_1 = arith.constant 0 : index
    %c0_2 = arith.constant 0 : index
    %2 = vector.load %arg2[%c0_1, %c0_2] : memref<27x8xf32, #tpu.memory_space<vmem>>, vector<27x8xf32>
    %3 = arith.truncf %2 : vector<27x8xf32> to vector<27x8xbf16>
    %cst = arith.constant dense<0.000000e+00> : vector<256x8xf32>
    %4 = tpu.matmul %1, %3, %cst {dimension_numbers = #tpu.dot_dimension_numbers<[1], [0], [0], [1], [0, 0, 1, 1], [], []>} : vector<256x27xbf16>, vector<27x8xbf16>, vector<256x8xf32> -> vector<256x8xf32>
    %c0_3 = arith.constant 0 : index
    %c0_4 = arith.constant 0 : index
    %5 = vector.load %arg3[%c0_3, %c0_4] : memref<1x8xf32, #tpu.memory_space<vmem>>, vector<1x8xf32>
    %6 = vector.broadcast %5 : vector<1x8xf32> to vector<256x8xf32>
    %7 = arith.mulf %4, %6 : vector<256x8xf32>
    %c0_5 = arith.constant 0 : index
    %c0_6 = arith.constant 0 : index
    %8 = vector.load %arg4[%c0_5, %c0_6] : memref<1x8xf32, #tpu.memory_space<vmem>>, vector<1x8xf32>
    %9 = vector.broadcast %8 : vector<1x8xf32> to vector<256x8xf32>
    %10 = arith.addf %7, %9 : vector<256x8xf32>
    %cst_7 = arith.constant 5.000000e-01 : f32
    %11 = vector.broadcast %cst_7 : f32 to vector<256x8xf32>
    %12 = arith.mulf %11, %10 : vector<256x8xf32>
    %cst_8 = arith.constant 4.471500e-02 : f32
    %13 = vector.broadcast %cst_8 : f32 to vector<256x8xf32>
    %14 = arith.mulf %13, %10 : vector<256x8xf32>
    %15 = arith.mulf %14, %10 : vector<256x8xf32>
    %16 = arith.mulf %15, %10 : vector<256x8xf32>
    %17 = arith.addf %10, %16 : vector<256x8xf32>
    %cst_9 = arith.constant 0.797884583 : f32
    %18 = vector.broadcast %cst_9 : f32 to vector<256x8xf32>
    %19 = arith.mulf %18, %17 : vector<256x8xf32>
    %20 = math.tanh %19 : vector<256x8xf32>
    %cst_10 = arith.constant 1.000000e+00 : f32
    %21 = vector.broadcast %cst_10 : f32 to vector<256x8xf32>
    %22 = arith.addf %21, %20 : vector<256x8xf32>
    %23 = arith.mulf %12, %22 : vector<256x8xf32>
    %c0_11 = arith.constant 0 : index
    %c0_12 = arith.constant 0 : index
    %24 = vector.load %arg5[%c0_11, %c0_12] : memref<256x8xf32, #tpu.memory_space<vmem>>, vector<256x8xf32>
    tpu.vector_store %arg5[%c0_11, %c0_12], %23 {strides = array<i32>} : memref<256x8xf32, #tpu.memory_space<vmem>>, vector<256x8xf32>,
    return
  }
  func.func @transform_0(%arg0: i32) -> (i32, i32) {
    %c0_i32 = arith.constant 0 : i32
    %c0_i32_0 = arith.constant 0 : i32
    return %arg0, %c0_i32 : i32, i32
  }
  func.func @transform_1(%arg0: i32) -> (i32, i32) {
    %c0_i32 = arith.constant 0 : i32
    %c0_i32_0 = arith.constant 0 : i32
    %c0_i32_1 = arith.constant 0 : i32
    return %c0_i32, %c0_i32_0 : i32, i32
  }
  func.func @transform_2(%arg0: i32) -> (i32, i32) {
    %c0_i32 = arith.constant 0 : i32
    %c0_i32_0 = arith.constant 0 : i32
    %c0_i32_1 = arith.constant 0 : i32
    return %c0_i32, %c0_i32_0 : i32, i32
  }
  func.func @transform_3(%arg0: i32) -> (i32, i32) {
    %c0_i32 = arith.constant 0 : i32
    %c0_i32_0 = arith.constant 0 : i32
    %c0_i32_1 = arith.constant 0 : i32
    return %c0_i32, %c0_i32_0 : i32, i32
  }
  func.func @transform_4(%arg0: i32) -> (i32, i32) {
    %c0_i32 = arith.constant 0 : i32
    %c0_i32_0 = arith.constant 0 : i32
    return %arg0, %c0_i32 : i32, i32
  }
}

module attributes {stable_mosaic.version = 11 : i64} {
  func.func @_maxpool_proj_kernel(%arg0: i32, %arg1: memref<9x128x8xf32, #tpu.memory_space<vmem>>, %arg2: memref<8x16xf32, #tpu.memory_space<vmem>>, %arg3: memref<128x16xf32, #tpu.memory_space<vmem>>) attributes {dimension_semantics = [#tpu.dimension_semantics<parallel>], iteration_bounds = array<i64: 1>, scalar_prefetch = 0 : i64, scratch_operands = 0 : i64, tpu.core_type = #tpu.core_type<tc>, window_params = [{transform_indices = @transform_0, window_bounds = array<i64: 9, 128, 8>}, {pipeline_mode = #tpu.pipeline_mode<synchronous>, transform_indices = @transform_1, window_bounds = array<i64: 8, 16>}, {transform_indices = @transform_2, window_bounds = array<i64: 128, 16>}]} {
    %c0 = arith.constant 0 : index
    %c0_0 = arith.constant 0 : index
    %c0_1 = arith.constant 0 : index
    %0 = vector.load %arg1[%c0, %c0_0, %c0_1] : memref<9x128x8xf32, #tpu.memory_space<vmem>>, vector<1x128x8xf32>
    %1 = vector.shape_cast %0 : vector<1x128x8xf32> to vector<128x8xf32>
    %c1 = arith.constant 1 : index
    %c0_2 = arith.constant 0 : index
    %c0_3 = arith.constant 0 : index
    %2 = vector.load %arg1[%c1, %c0_2, %c0_3] : memref<9x128x8xf32, #tpu.memory_space<vmem>>, vector<1x128x8xf32>
    %3 = vector.shape_cast %2 : vector<1x128x8xf32> to vector<128x8xf32>
    %4 = arith.maximumf %1, %3 : vector<128x8xf32>
    %c2 = arith.constant 2 : index
    %c0_4 = arith.constant 0 : index
    %c0_5 = arith.constant 0 : index
    %5 = vector.load %arg1[%c2, %c0_4, %c0_5] : memref<9x128x8xf32, #tpu.memory_space<vmem>>, vector<1x128x8xf32>
    %6 = vector.shape_cast %5 : vector<1x128x8xf32> to vector<128x8xf32>
    %7 = arith.maximumf %4, %6 : vector<128x8xf32>
    %c3 = arith.constant 3 : index
    %c0_6 = arith.constant 0 : index
    %c0_7 = arith.constant 0 : index
    %8 = vector.load %arg1[%c3, %c0_6, %c0_7] : memref<9x128x8xf32, #tpu.memory_space<vmem>>, vector<1x128x8xf32>
    %9 = vector.shape_cast %8 : vector<1x128x8xf32> to vector<128x8xf32>
    %10 = arith.maximumf %7, %9 : vector<128x8xf32>
    %c4 = arith.constant 4 : index
    %c0_8 = arith.constant 0 : index
    %c0_9 = arith.constant 0 : index
    %11 = vector.load %arg1[%c4, %c0_8, %c0_9] : memref<9x128x8xf32, #tpu.memory_space<vmem>>, vector<1x128x8xf32>
    %12 = vector.shape_cast %11 : vector<1x128x8xf32> to vector<128x8xf32>
    %13 = arith.maximumf %10, %12 : vector<128x8xf32>
    %c5 = arith.constant 5 : index
    %c0_10 = arith.constant 0 : index
    %c0_11 = arith.constant 0 : index
    %14 = vector.load %arg1[%c5, %c0_10, %c0_11] : memref<9x128x8xf32, #tpu.memory_space<vmem>>, vector<1x128x8xf32>
    %15 = vector.shape_cast %14 : vector<1x128x8xf32> to vector<128x8xf32>
    %16 = arith.maximumf %13, %15 : vector<128x8xf32>
    %c6 = arith.constant 6 : index
    %c0_12 = arith.constant 0 : index
    %c0_13 = arith.constant 0 : index
    %17 = vector.load %arg1[%c6, %c0_12, %c0_13] : memref<9x128x8xf32, #tpu.memory_space<vmem>>, vector<1x128x8xf32>
    %18 = vector.shape_cast %17 : vector<1x128x8xf32> to vector<128x8xf32>
    %19 = arith.maximumf %16, %18 : vector<128x8xf32>
    %c7 = arith.constant 7 : index
    %c0_14 = arith.constant 0 : index
    %c0_15 = arith.constant 0 : index
    %20 = vector.load %arg1[%c7, %c0_14, %c0_15] : memref<9x128x8xf32, #tpu.memory_space<vmem>>, vector<1x128x8xf32>
    %21 = vector.shape_cast %20 : vector<1x128x8xf32> to vector<128x8xf32>
    %22 = arith.maximumf %19, %21 : vector<128x8xf32>
    %c8 = arith.constant 8 : index
    %c0_16 = arith.constant 0 : index
    %c0_17 = arith.constant 0 : index
    %23 = vector.load %arg1[%c8, %c0_16, %c0_17] : memref<9x128x8xf32, #tpu.memory_space<vmem>>, vector<1x128x8xf32>
    %24 = vector.shape_cast %23 : vector<1x128x8xf32> to vector<128x8xf32>
    %25 = arith.maximumf %22, %24 : vector<128x8xf32>
    %26 = arith.truncf %25 : vector<128x8xf32> to vector<128x8xbf16>
    %c0_18 = arith.constant 0 : index
    %c0_19 = arith.constant 0 : index
    %27 = vector.load %arg2[%c0_18, %c0_19] : memref<8x16xf32, #tpu.memory_space<vmem>>, vector<8x16xf32>
    %28 = arith.truncf %27 : vector<8x16xf32> to vector<8x16xbf16>
    %cst = arith.constant dense<0.000000e+00> : vector<128x16xf32>
    %29 = tpu.matmul %26, %28, %cst {dimension_numbers = #tpu.dot_dimension_numbers<[1], [0], [0], [1], [0, 0, 1, 1], [], []>} : vector<128x8xbf16>, vector<8x16xbf16>, vector<128x16xf32> -> vector<128x16xf32>
    %c0_20 = arith.constant 0 : index
    %c0_21 = arith.constant 0 : index
    %30 = vector.load %arg3[%c0_20, %c0_21] : memref<128x16xf32, #tpu.memory_space<vmem>>, vector<128x16xf32>
    tpu.vector_store %arg3[%c0_20, %c0_21], %29 {strides = array<i32>} : memref<128x16xf32, #tpu.memory_space<vmem>>, vector<128x16xf32>,
    return
  }
  func.func @transform_0(%arg0: i32) -> (i32, i32, i32) {
    %c0_i32 = arith.constant 0 : i32
    %c0_i32_0 = arith.constant 0 : i32
    %c0_i32_1 = arith.constant 0 : i32
    return %c0_i32, %arg0, %c0_i32_0 : i32, i32, i32
  }
  func.func @transform_1(%arg0: i32) -> (i32, i32) {
    %c0_i32 = arith.constant 0 : i32
    %c0_i32_0 = arith.constant 0 : i32
    %c0_i32_1 = arith.constant 0 : i32
    return %c0_i32, %c0_i32_0 : i32, i32
  }
  func.func @transform_2(%arg0: i32) -> (i32, i32) {
    %c0_i32 = arith.constant 0 : i32
    %c0_i32_0 = arith.constant 0 : i32
    return %arg0, %c0_i32 : i32, i32
  }
}

module attributes {stable_mosaic.version = 11 : i64} {
  func.func @_mm_kernel(%arg0: i32, %arg1: memref<128x8xf32, #tpu.memory_space<vmem>>, %arg2: memref<8x32xf32, #tpu.memory_space<vmem>>, %arg3: memref<1x32xf32, #tpu.memory_space<vmem>>, %arg4: memref<1x32xf32, #tpu.memory_space<vmem>>, %arg5: memref<128x32xf32, #tpu.memory_space<vmem>>) attributes {dimension_semantics = [#tpu.dimension_semantics<parallel>], iteration_bounds = array<i64: 1>, scalar_prefetch = 0 : i64, scratch_operands = 0 : i64, tpu.core_type = #tpu.core_type<tc>, window_params = [{transform_indices = @transform_0, window_bounds = array<i64: 128, 8>}, {pipeline_mode = #tpu.pipeline_mode<synchronous>, transform_indices = @transform_1, window_bounds = array<i64: 8, 32>}, {pipeline_mode = #tpu.pipeline_mode<synchronous>, transform_indices = @transform_2, window_bounds = array<i64: 1, 32>}, {pipeline_mode = #tpu.pipeline_mode<synchronous>, transform_indices = @transform_3, window_bounds = array<i64: 1, 32>}, {transform_indices = @transform_4, window_bounds = array<i64: 128, 32>}]} {
    %c0 = arith.constant 0 : index
    %c0_0 = arith.constant 0 : index
    %0 = vector.load %arg1[%c0, %c0_0] : memref<128x8xf32, #tpu.memory_space<vmem>>, vector<128x8xf32>
    %1 = arith.truncf %0 : vector<128x8xf32> to vector<128x8xbf16>
    %c0_1 = arith.constant 0 : index
    %c0_2 = arith.constant 0 : index
    %2 = vector.load %arg2[%c0_1, %c0_2] : memref<8x32xf32, #tpu.memory_space<vmem>>, vector<8x32xf32>
    %3 = arith.truncf %2 : vector<8x32xf32> to vector<8x32xbf16>
    %cst = arith.constant dense<0.000000e+00> : vector<128x32xf32>
    %4 = tpu.matmul %1, %3, %cst {dimension_numbers = #tpu.dot_dimension_numbers<[1], [0], [0], [1], [0, 0, 1, 1], [], []>} : vector<128x8xbf16>, vector<8x32xbf16>, vector<128x32xf32> -> vector<128x32xf32>
    %c0_3 = arith.constant 0 : index
    %c0_4 = arith.constant 0 : index
    %5 = vector.load %arg3[%c0_3, %c0_4] : memref<1x32xf32, #tpu.memory_space<vmem>>, vector<1x32xf32>
    %6 = vector.broadcast %5 : vector<1x32xf32> to vector<128x32xf32>
    %7 = arith.mulf %4, %6 : vector<128x32xf32>
    %c0_5 = arith.constant 0 : index
    %c0_6 = arith.constant 0 : index
    %8 = vector.load %arg4[%c0_5, %c0_6] : memref<1x32xf32, #tpu.memory_space<vmem>>, vector<1x32xf32>
    %9 = vector.broadcast %8 : vector<1x32xf32> to vector<128x32xf32>
    %10 = arith.addf %7, %9 : vector<128x32xf32>
    %cst_7 = arith.constant 5.000000e-01 : f32
    %11 = vector.broadcast %cst_7 : f32 to vector<128x32xf32>
    %12 = arith.mulf %11, %10 : vector<128x32xf32>
    %cst_8 = arith.constant 4.471500e-02 : f32
    %13 = vector.broadcast %cst_8 : f32 to vector<128x32xf32>
    %14 = arith.mulf %13, %10 : vector<128x32xf32>
    %15 = arith.mulf %14, %10 : vector<128x32xf32>
    %16 = arith.mulf %15, %10 : vector<128x32xf32>
    %17 = arith.addf %10, %16 : vector<128x32xf32>
    %cst_9 = arith.constant 0.797884583 : f32
    %18 = vector.broadcast %cst_9 : f32 to vector<128x32xf32>
    %19 = arith.mulf %18, %17 : vector<128x32xf32>
    %20 = math.tanh %19 : vector<128x32xf32>
    %cst_10 = arith.constant 1.000000e+00 : f32
    %21 = vector.broadcast %cst_10 : f32 to vector<128x32xf32>
    %22 = arith.addf %21, %20 : vector<128x32xf32>
    %23 = arith.mulf %12, %22 : vector<128x32xf32>
    %c0_11 = arith.constant 0 : index
    %c0_12 = arith.constant 0 : index
    %24 = vector.load %arg5[%c0_11, %c0_12] : memref<128x32xf32, #tpu.memory_space<vmem>>, vector<128x32xf32>
    tpu.vector_store %arg5[%c0_11, %c0_12], %23 {strides = array<i32>} : memref<128x32xf32, #tpu.memory_space<vmem>>, vector<128x32xf32>,
    return
  }
  func.func @transform_0(%arg0: i32) -> (i32, i32) {
    %c0_i32 = arith.constant 0 : i32
    %c0_i32_0 = arith.constant 0 : i32
    return %arg0, %c0_i32 : i32, i32
  }
  func.func @transform_1(%arg0: i32) -> (i32, i32) {
    %c0_i32 = arith.constant 0 : i32
    %c0_i32_0 = arith.constant 0 : i32
    %c0_i32_1 = arith.constant 0 : i32
    return %c0_i32, %c0_i32_0 : i32, i32
  }
  func.func @transform_2(%arg0: i32) -> (i32, i32) {
    %c0_i32 = arith.constant 0 : i32
    %c0_i32_0 = arith.constant 0 : i32
    %c0_i32_1 = arith.constant 0 : i32
    return %c0_i32, %c0_i32_0 : i32, i32
  }
  func.func @transform_3(%arg0: i32) -> (i32, i32) {
    %c0_i32 = arith.constant 0 : i32
    %c0_i32_0 = arith.constant 0 : i32
    %c0_i32_1 = arith.constant 0 : i32
    return %c0_i32, %c0_i32_0 : i32, i32
  }
  func.func @transform_4(%arg0: i32) -> (i32, i32) {
    %c0_i32 = arith.constant 0 : i32
    %c0_i32_0 = arith.constant 0 : i32
    return %arg0, %c0_i32 : i32, i32
  }
}

module attributes {stable_mosaic.version = 11 : i64} {
  func.func @_dwconv_kernel(%arg0: i32, %arg1: memref<1x10x10x32xf32, #tpu.memory_space<vmem>>, %arg2: memref<3x3x1x32xf32, #tpu.memory_space<vmem>>, %arg3: memref<1x32xf32, #tpu.memory_space<vmem>>, %arg4: memref<1x32xf32, #tpu.memory_space<vmem>>, %arg5: memref<1x8x8x32xf32, #tpu.memory_space<vmem>>) attributes {dimension_semantics = [#tpu.dimension_semantics<parallel>], iteration_bounds = array<i64: 2>, scalar_prefetch = 0 : i64, scratch_operands = 0 : i64, tpu.core_type = #tpu.core_type<tc>, window_params = [{transform_indices = @transform_0, window_bounds = array<i64: 1, 10, 10, 32>}, {pipeline_mode = #tpu.pipeline_mode<synchronous>, transform_indices = @transform_1, window_bounds = array<i64: 3, 3, 1, 32>}, {pipeline_mode = #tpu.pipeline_mode<synchronous>, transform_indices = @transform_2, window_bounds = array<i64: 1, 32>}, {pipeline_mode = #tpu.pipeline_mode<synchronous>, transform_indices = @transform_3, window_bounds = array<i64: 1, 32>}, {transform_indices = @transform_4, window_bounds = array<i64: 1, 8, 8, 32>}]} {
    %c0 = arith.constant 0 : index
    %c0_0 = arith.constant 0 : index
    %c0_1 = arith.constant 0 : index
    %c0_2 = arith.constant 0 : index
    %0 = vector.load %arg1[%c0, %c0_0, %c0_1, %c0_2] : memref<1x10x10x32xf32, #tpu.memory_space<vmem>>, vector<1x10x10x32xf32>
    %c0_3 = arith.constant 0 : index
    %c0_4 = arith.constant 0 : index
    %c0_5 = arith.constant 0 : index
    %c0_6 = arith.constant 0 : index
    %1 = vector.load %arg2[%c0_3, %c0_4, %c0_5, %c0_6] : memref<3x3x1x32xf32, #tpu.memory_space<vmem>>, vector<3x3x1x32xf32>
    %2 = vector.extract_strided_slice %0 {offsets = [0, 0, 0, 0], sizes = [1, 8, 8, 32], strides = [1, 1, 1, 1]} : vector<1x10x10x32xf32> to vector<1x8x8x32xf32>
    %3 = vector.shape_cast %2 : vector<1x8x8x32xf32> to vector<8x8x32xf32>
    %4 = vector.extract_strided_slice %1 {offsets = [0, 0, 0, 0], sizes = [1, 1, 1, 32], strides = [1, 1, 1, 1]} : vector<3x3x1x32xf32> to vector<1x1x1x32xf32>
    %5 = vector.shape_cast %4 : vector<1x1x1x32xf32> to vector<32xf32>
    %6 = vector.shape_cast %5 : vector<32xf32> to vector<1x1x32xf32>
    %7 = vector.broadcast %6 : vector<1x1x32xf32> to vector<8x8x32xf32>
    %8 = arith.mulf %3, %7 : vector<8x8x32xf32>
    %9 = vector.extract_strided_slice %0 {offsets = [0, 0, 1, 0], sizes = [1, 8, 8, 32], strides = [1, 1, 1, 1]} : vector<1x10x10x32xf32> to vector<1x8x8x32xf32>
    %10 = vector.shape_cast %9 : vector<1x8x8x32xf32> to vector<8x8x32xf32>
    %11 = vector.extract_strided_slice %1 {offsets = [0, 1, 0, 0], sizes = [1, 1, 1, 32], strides = [1, 1, 1, 1]} : vector<3x3x1x32xf32> to vector<1x1x1x32xf32>
    %12 = vector.shape_cast %11 : vector<1x1x1x32xf32> to vector<32xf32>
    %13 = vector.shape_cast %12 : vector<32xf32> to vector<1x1x32xf32>
    %14 = vector.broadcast %13 : vector<1x1x32xf32> to vector<8x8x32xf32>
    %15 = arith.mulf %10, %14 : vector<8x8x32xf32>
    %16 = arith.addf %8, %15 : vector<8x8x32xf32>
    %17 = vector.extract_strided_slice %0 {offsets = [0, 0, 2, 0], sizes = [1, 8, 8, 32], strides = [1, 1, 1, 1]} : vector<1x10x10x32xf32> to vector<1x8x8x32xf32>
    %18 = vector.shape_cast %17 : vector<1x8x8x32xf32> to vector<8x8x32xf32>
    %19 = vector.extract_strided_slice %1 {offsets = [0, 2, 0, 0], sizes = [1, 1, 1, 32], strides = [1, 1, 1, 1]} : vector<3x3x1x32xf32> to vector<1x1x1x32xf32>
    %20 = vector.shape_cast %19 : vector<1x1x1x32xf32> to vector<32xf32>
    %21 = vector.shape_cast %20 : vector<32xf32> to vector<1x1x32xf32>
    %22 = vector.broadcast %21 : vector<1x1x32xf32> to vector<8x8x32xf32>
    %23 = arith.mulf %18, %22 : vector<8x8x32xf32>
    %24 = arith.addf %16, %23 : vector<8x8x32xf32>
    %25 = vector.extract_strided_slice %0 {offsets = [0, 1, 0, 0], sizes = [1, 8, 8, 32], strides = [1, 1, 1, 1]} : vector<1x10x10x32xf32> to vector<1x8x8x32xf32>
    %26 = vector.shape_cast %25 : vector<1x8x8x32xf32> to vector<8x8x32xf32>
    %27 = vector.extract_strided_slice %1 {offsets = [1, 0, 0, 0], sizes = [1, 1, 1, 32], strides = [1, 1, 1, 1]} : vector<3x3x1x32xf32> to vector<1x1x1x32xf32>
    %28 = vector.shape_cast %27 : vector<1x1x1x32xf32> to vector<32xf32>
    %29 = vector.shape_cast %28 : vector<32xf32> to vector<1x1x32xf32>
    %30 = vector.broadcast %29 : vector<1x1x32xf32> to vector<8x8x32xf32>
    %31 = arith.mulf %26, %30 : vector<8x8x32xf32>
    %32 = arith.addf %24, %31 : vector<8x8x32xf32>
    %33 = vector.extract_strided_slice %0 {offsets = [0, 1, 1, 0], sizes = [1, 8, 8, 32], strides = [1, 1, 1, 1]} : vector<1x10x10x32xf32> to vector<1x8x8x32xf32>
    %34 = vector.shape_cast %33 : vector<1x8x8x32xf32> to vector<8x8x32xf32>
    %35 = vector.extract_strided_slice %1 {offsets = [1, 1, 0, 0], sizes = [1, 1, 1, 32], strides = [1, 1, 1, 1]} : vector<3x3x1x32xf32> to vector<1x1x1x32xf32>
    %36 = vector.shape_cast %35 : vector<1x1x1x32xf32> to vector<32xf32>
    %37 = vector.shape_cast %36 : vector<32xf32> to vector<1x1x32xf32>
    %38 = vector.broadcast %37 : vector<1x1x32xf32> to vector<8x8x32xf32>
    %39 = arith.mulf %34, %38 : vector<8x8x32xf32>
    %40 = arith.addf %32, %39 : vector<8x8x32xf32>
    %41 = vector.extract_strided_slice %0 {offsets = [0, 1, 2, 0], sizes = [1, 8, 8, 32], strides = [1, 1, 1, 1]} : vector<1x10x10x32xf32> to vector<1x8x8x32xf32>
    %42 = vector.shape_cast %41 : vector<1x8x8x32xf32> to vector<8x8x32xf32>
    %43 = vector.extract_strided_slice %1 {offsets = [1, 2, 0, 0], sizes = [1, 1, 1, 32], strides = [1, 1, 1, 1]} : vector<3x3x1x32xf32> to vector<1x1x1x32xf32>
    %44 = vector.shape_cast %43 : vector<1x1x1x32xf32> to vector<32xf32>
    %45 = vector.shape_cast %44 : vector<32xf32> to vector<1x1x32xf32>
    %46 = vector.broadcast %45 : vector<1x1x32xf32> to vector<8x8x32xf32>
    %47 = arith.mulf %42, %46 : vector<8x8x32xf32>
    %48 = arith.addf %40, %47 : vector<8x8x32xf32>
    %49 = vector.extract_strided_slice %0 {offsets = [0, 2, 0, 0], sizes = [1, 8, 8, 32], strides = [1, 1, 1, 1]} : vector<1x10x10x32xf32> to vector<1x8x8x32xf32>
    %50 = vector.shape_cast %49 : vector<1x8x8x32xf32> to vector<8x8x32xf32>
    %51 = vector.extract_strided_slice %1 {offsets = [2, 0, 0, 0], sizes = [1, 1, 1, 32], strides = [1, 1, 1, 1]} : vector<3x3x1x32xf32> to vector<1x1x1x32xf32>
    %52 = vector.shape_cast %51 : vector<1x1x1x32xf32> to vector<32xf32>
    %53 = vector.shape_cast %52 : vector<32xf32> to vector<1x1x32xf32>
    %54 = vector.broadcast %53 : vector<1x1x32xf32> to vector<8x8x32xf32>
    %55 = arith.mulf %50, %54 : vector<8x8x32xf32>
    %56 = arith.addf %48, %55 : vector<8x8x32xf32>
    %57 = vector.extract_strided_slice %0 {offsets = [0, 2, 1, 0], sizes = [1, 8, 8, 32], strides = [1, 1, 1, 1]} : vector<1x10x10x32xf32> to vector<1x8x8x32xf32>
    %58 = vector.shape_cast %57 : vector<1x8x8x32xf32> to vector<8x8x32xf32>
    %59 = vector.extract_strided_slice %1 {offsets = [2, 1, 0, 0], sizes = [1, 1, 1, 32], strides = [1, 1, 1, 1]} : vector<3x3x1x32xf32> to vector<1x1x1x32xf32>
    %60 = vector.shape_cast %59 : vector<1x1x1x32xf32> to vector<32xf32>
    %61 = vector.shape_cast %60 : vector<32xf32> to vector<1x1x32xf32>
    %62 = vector.broadcast %61 : vector<1x1x32xf32> to vector<8x8x32xf32>
    %63 = arith.mulf %58, %62 : vector<8x8x32xf32>
    %64 = arith.addf %56, %63 : vector<8x8x32xf32>
    %65 = vector.extract_strided_slice %0 {offsets = [0, 2, 2, 0], sizes = [1, 8, 8, 32], strides = [1, 1, 1, 1]} : vector<1x10x10x32xf32> to vector<1x8x8x32xf32>
    %66 = vector.shape_cast %65 : vector<1x8x8x32xf32> to vector<8x8x32xf32>
    %67 = vector.extract_strided_slice %1 {offsets = [2, 2, 0, 0], sizes = [1, 1, 1, 32], strides = [1, 1, 1, 1]} : vector<3x3x1x32xf32> to vector<1x1x1x32xf32>
    %68 = vector.shape_cast %67 : vector<1x1x1x32xf32> to vector<32xf32>
    %69 = vector.shape_cast %68 : vector<32xf32> to vector<1x1x32xf32>
    %70 = vector.broadcast %69 : vector<1x1x32xf32> to vector<8x8x32xf32>
    %71 = arith.mulf %66, %70 : vector<8x8x32xf32>
    %72 = arith.addf %64, %71 : vector<8x8x32xf32>
    %c0_7 = arith.constant 0 : index
    %c0_8 = arith.constant 0 : index
    %73 = vector.load %arg3[%c0_7, %c0_8] : memref<1x32xf32, #tpu.memory_space<vmem>>, vector<1x32xf32>
    %74 = vector.shape_cast %73 : vector<1x32xf32> to vector<1x1x32xf32>
    %75 = vector.broadcast %74 : vector<1x1x32xf32> to vector<8x8x32xf32>
    %76 = arith.mulf %72, %75 : vector<8x8x32xf32>
    %c0_9 = arith.constant 0 : index
    %c0_10 = arith.constant 0 : index
    %77 = vector.load %arg4[%c0_9, %c0_10] : memref<1x32xf32, #tpu.memory_space<vmem>>, vector<1x32xf32>
    %78 = vector.shape_cast %77 : vector<1x32xf32> to vector<1x1x32xf32>
    %79 = vector.broadcast %78 : vector<1x1x32xf32> to vector<8x8x32xf32>
    %80 = arith.addf %76, %79 : vector<8x8x32xf32>
    %cst = arith.constant 5.000000e-01 : f32
    %81 = vector.broadcast %cst : f32 to vector<8x8x32xf32>
    %82 = arith.mulf %81, %80 : vector<8x8x32xf32>
    %cst_11 = arith.constant 4.471500e-02 : f32
    %83 = vector.broadcast %cst_11 : f32 to vector<8x8x32xf32>
    %84 = arith.mulf %83, %80 : vector<8x8x32xf32>
    %85 = arith.mulf %84, %80 : vector<8x8x32xf32>
    %86 = arith.mulf %85, %80 : vector<8x8x32xf32>
    %87 = arith.addf %80, %86 : vector<8x8x32xf32>
    %cst_12 = arith.constant 0.797884583 : f32
    %88 = vector.broadcast %cst_12 : f32 to vector<8x8x32xf32>
    %89 = arith.mulf %88, %87 : vector<8x8x32xf32>
    %90 = math.tanh %89 : vector<8x8x32xf32>
    %cst_13 = arith.constant 1.000000e+00 : f32
    %91 = vector.broadcast %cst_13 : f32 to vector<8x8x32xf32>
    %92 = arith.addf %91, %90 : vector<8x8x32xf32>
    %93 = arith.mulf %82, %92 : vector<8x8x32xf32>
    %94 = vector.shape_cast %93 : vector<8x8x32xf32> to vector<1x8x8x32xf32>
    %c0_14 = arith.constant 0 : index
    %c0_15 = arith.constant 0 : index
    %c0_16 = arith.constant 0 : index
    %c0_17 = arith.constant 0 : index
    %95 = vector.load %arg5[%c0_14, %c0_15, %c0_16, %c0_17] : memref<1x8x8x32xf32, #tpu.memory_space<vmem>>, vector<1x8x8x32xf32>
    tpu.vector_store %arg5[%c0_14, %c0_15, %c0_16, %c0_17], %94 {strides = array<i32>} : memref<1x8x8x32xf32, #tpu.memory_space<vmem>>, vector<1x8x8x32xf32>,
    return
  }
  func.func @transform_0(%arg0: i32) -> (i32, i32, i32, i32) {
    %c0_i32 = arith.constant 0 : i32
    %c0_i32_0 = arith.constant 0 : i32
    %c0_i32_1 = arith.constant 0 : i32
    %c0_i32_2 = arith.constant 0 : i32
    return %arg0, %c0_i32, %c0_i32_0, %c0_i32_1 : i32, i32, i32, i32
  }
  func.func @transform_1(%arg0: i32) -> (i32, i32, i32, i32) {
    %c0_i32 = arith.constant 0 : i32
    %c0_i32_0 = arith.constant 0 : i32
    %c0_i32_1 = arith.constant 0 : i32
    %c0_i32_2 = arith.constant 0 : i32
    %c0_i32_3 = arith.constant 0 : i32
    return %c0_i32, %c0_i32_0, %c0_i32_1, %c0_i32_2 : i32, i32, i32, i32
  }
  func.func @transform_2(%arg0: i32) -> (i32, i32) {
    %c0_i32 = arith.constant 0 : i32
    %c0_i32_0 = arith.constant 0 : i32
    %c0_i32_1 = arith.constant 0 : i32
    return %c0_i32, %c0_i32_0 : i32, i32
  }
  func.func @transform_3(%arg0: i32) -> (i32, i32) {
    %c0_i32 = arith.constant 0 : i32
    %c0_i32_0 = arith.constant 0 : i32
    %c0_i32_1 = arith.constant 0 : i32
    return %c0_i32, %c0_i32_0 : i32, i32
  }
  func.func @transform_4(%arg0: i32) -> (i32, i32, i32, i32) {
    %c0_i32 = arith.constant 0 : i32
    %c0_i32_0 = arith.constant 0 : i32
    %c0_i32_1 = arith.constant 0 : i32
    %c0_i32_2 = arith.constant 0 : i32
    return %arg0, %c0_i32, %c0_i32_0, %c0_i32_1 : i32, i32, i32, i32
  }
}

module attributes {stable_mosaic.version = 11 : i64} {
  func.func @_avgpool_kernel(%arg0: i32, %arg1: memref<1x64x32xf32, #tpu.memory_space<vmem>>, %arg2: memref<1x1x32xf32, #tpu.memory_space<vmem>>) attributes {dimension_semantics = [#tpu.dimension_semantics<parallel>], iteration_bounds = array<i64: 2>, scalar_prefetch = 0 : i64, scratch_operands = 0 : i64, tpu.core_type = #tpu.core_type<tc>, window_params = [{transform_indices = @transform_0, window_bounds = array<i64: 1, 64, 32>}, {transform_indices = @transform_1, window_bounds = array<i64: 1, 1, 32>}]} {
    %c0 = arith.constant 0 : index
    %c0_0 = arith.constant 0 : index
    %c0_1 = arith.constant 0 : index
    %0 = vector.load %arg1[%c0, %c0_0, %c0_1] : memref<1x64x32xf32, #tpu.memory_space<vmem>>, vector<1x64x32xf32>
    %cst = arith.constant dense<0.000000e+00> : vector<1x32xf32>
    %1 = vector.multi_reduction <add>, %0, %cst [1] : vector<1x64x32xf32> to vector<1x32xf32>
    %2 = vector.shape_cast %1 : vector<1x32xf32> to vector<1x1x32xf32>
    %cst_2 = arith.constant 6.400000e+01 : f32
    %3 = vector.broadcast %cst_2 : f32 to vector<1x1x32xf32>
    %4 = arith.divf %2, %3 : vector<1x1x32xf32>
    %c0_3 = arith.constant 0 : index
    %c0_4 = arith.constant 0 : index
    %c0_5 = arith.constant 0 : index
    %5 = vector.load %arg2[%c0_3, %c0_4, %c0_5] : memref<1x1x32xf32, #tpu.memory_space<vmem>>, vector<1x1x32xf32>
    tpu.vector_store %arg2[%c0_3, %c0_4, %c0_5], %4 {strides = array<i32>} : memref<1x1x32xf32, #tpu.memory_space<vmem>>, vector<1x1x32xf32>,
    return
  }
  func.func @transform_0(%arg0: i32) -> (i32, i32, i32) {
    %c0_i32 = arith.constant 0 : i32
    %c0_i32_0 = arith.constant 0 : i32
    %c0_i32_1 = arith.constant 0 : i32
    return %arg0, %c0_i32, %c0_i32_0 : i32, i32, i32
  }
  func.func @transform_1(%arg0: i32) -> (i32, i32, i32) {
    %c0_i32 = arith.constant 0 : i32
    %c0_i32_0 = arith.constant 0 : i32
    %c0_i32_1 = arith.constant 0 : i32
    return %arg0, %c0_i32, %c0_i32_0 : i32, i32, i32
  }
}

module attributes {stable_mosaic.version = 11 : i64} {
  func.func @_mm_kernel(%arg0: i32, %arg1: memref<2x2xf32, #tpu.memory_space<vmem>>, %arg2: memref<2x32xf32, #tpu.memory_space<vmem>>, %arg3: memref<1x32xf32, #tpu.memory_space<vmem>>, %arg4: memref<1x32xf32, #tpu.memory_space<vmem>>, %arg5: memref<2x32xf32, #tpu.memory_space<vmem>>) attributes {dimension_semantics = [#tpu.dimension_semantics<parallel>], iteration_bounds = array<i64: 1>, scalar_prefetch = 0 : i64, scratch_operands = 0 : i64, tpu.core_type = #tpu.core_type<tc>, window_params = [{transform_indices = @transform_0, window_bounds = array<i64: 2, 2>}, {pipeline_mode = #tpu.pipeline_mode<synchronous>, transform_indices = @transform_1, window_bounds = array<i64: 2, 32>}, {pipeline_mode = #tpu.pipeline_mode<synchronous>, transform_indices = @transform_2, window_bounds = array<i64: 1, 32>}, {pipeline_mode = #tpu.pipeline_mode<synchronous>, transform_indices = @transform_3, window_bounds = array<i64: 1, 32>}, {transform_indices = @transform_4, window_bounds = array<i64: 2, 32>}]} {
    %c0 = arith.constant 0 : index
    %c0_0 = arith.constant 0 : index
    %0 = vector.load %arg1[%c0, %c0_0] : memref<2x2xf32, #tpu.memory_space<vmem>>, vector<2x2xf32>
    %1 = arith.truncf %0 : vector<2x2xf32> to vector<2x2xbf16>
    %c0_1 = arith.constant 0 : index
    %c0_2 = arith.constant 0 : index
    %2 = vector.load %arg2[%c0_1, %c0_2] : memref<2x32xf32, #tpu.memory_space<vmem>>, vector<2x32xf32>
    %3 = arith.truncf %2 : vector<2x32xf32> to vector<2x32xbf16>
    %cst = arith.constant dense<0.000000e+00> : vector<2x32xf32>
    %4 = tpu.matmul %1, %3, %cst {dimension_numbers = #tpu.dot_dimension_numbers<[1], [0], [0], [1], [0, 0, 1, 1], [], []>} : vector<2x2xbf16>, vector<2x32xbf16>, vector<2x32xf32> -> vector<2x32xf32>
    %c0_3 = arith.constant 0 : index
    %c0_4 = arith.constant 0 : index
    %5 = vector.load %arg3[%c0_3, %c0_4] : memref<1x32xf32, #tpu.memory_space<vmem>>, vector<1x32xf32>
    %6 = vector.broadcast %5 : vector<1x32xf32> to vector<2x32xf32>
    %7 = arith.mulf %4, %6 : vector<2x32xf32>
    %c0_5 = arith.constant 0 : index
    %c0_6 = arith.constant 0 : index
    %8 = vector.load %arg4[%c0_5, %c0_6] : memref<1x32xf32, #tpu.memory_space<vmem>>, vector<1x32xf32>
    %9 = vector.broadcast %8 : vector<1x32xf32> to vector<2x32xf32>
    %10 = arith.addf %7, %9 : vector<2x32xf32>
    %cst_7 = arith.constant 0.000000e+00 : f32
    %11 = vector.broadcast %cst_7 : f32 to vector<2x32xf32>
    %12 = arith.subf %11, %10 : vector<2x32xf32>
    %13 = math.exp %12 : vector<2x32xf32>
    %cst_8 = arith.constant 1.000000e+00 : f32
    %14 = vector.broadcast %cst_8 : f32 to vector<2x32xf32>
    %15 = arith.addf %14, %13 : vector<2x32xf32>
    %cst_9 = arith.constant 1.000000e+00 : f32
    %16 = vector.broadcast %cst_9 : f32 to vector<2x32xf32>
    %17 = arith.divf %16, %15 : vector<2x32xf32>
    %c0_10 = arith.constant 0 : index
    %c0_11 = arith.constant 0 : index
    %18 = vector.load %arg5[%c0_10, %c0_11] : memref<2x32xf32, #tpu.memory_space<vmem>>, vector<2x32xf32>
    tpu.vector_store %arg5[%c0_10, %c0_11], %17 {strides = array<i32>} : memref<2x32xf32, #tpu.memory_space<vmem>>, vector<2x32xf32>,
    return
  }
  func.func @transform_0(%arg0: i32) -> (i32, i32) {
    %c0_i32 = arith.constant 0 : i32
    %c0_i32_0 = arith.constant 0 : i32
    return %arg0, %c0_i32 : i32, i32
  }
  func.func @transform_1(%arg0: i32) -> (i32, i32) {
    %c0_i32 = arith.constant 0 : i32
    %c0_i32_0 = arith.constant 0 : i32
    %c0_i32_1 = arith.constant 0 : i32
    return %c0_i32, %c0_i32_0 : i32, i32
  }
  func.func @transform_2(%arg0: i32) -> (i32, i32) {
    %c0_i32 = arith.constant 0 : i32
    %c0_i32_0 = arith.constant 0 : i32
    %c0_i32_1 = arith.constant 0 : i32
    return %c0_i32, %c0_i32_0 : i32, i32
  }
  func.func @transform_3(%arg0: i32) -> (i32, i32) {
    %c0_i32 = arith.constant 0 : i32
    %c0_i32_0 = arith.constant 0 : i32
    %c0_i32_1 = arith.constant 0 : i32
    return %c0_i32, %c0_i32_0 : i32, i32
  }
  func.func @transform_4(%arg0: i32) -> (i32, i32) {
    %c0_i32 = arith.constant 0 : i32
    %c0_i32_0 = arith.constant 0 : i32
    return %arg0, %c0_i32 : i32, i32
  }
}

module attributes {stable_mosaic.version = 11 : i64} {
  func.func @_mm_kernel(%arg0: i32, %arg1: memref<2x32xf32, #tpu.memory_space<vmem>>, %arg2: memref<32x2xf32, #tpu.memory_space<vmem>>, %arg3: memref<1x2xf32, #tpu.memory_space<vmem>>, %arg4: memref<1x2xf32, #tpu.memory_space<vmem>>, %arg5: memref<2x2xf32, #tpu.memory_space<vmem>>) attributes {dimension_semantics = [#tpu.dimension_semantics<parallel>], iteration_bounds = array<i64: 1>, scalar_prefetch = 0 : i64, scratch_operands = 0 : i64, tpu.core_type = #tpu.core_type<tc>, window_params = [{transform_indices = @transform_0, window_bounds = array<i64: 2, 32>}, {pipeline_mode = #tpu.pipeline_mode<synchronous>, transform_indices = @transform_1, window_bounds = array<i64: 32, 2>}, {pipeline_mode = #tpu.pipeline_mode<synchronous>, transform_indices = @transform_2, window_bounds = array<i64: 1, 2>}, {pipeline_mode = #tpu.pipeline_mode<synchronous>, transform_indices = @transform_3, window_bounds = array<i64: 1, 2>}, {transform_indices = @transform_4, window_bounds = array<i64: 2, 2>}]} {
    %c0 = arith.constant 0 : index
    %c0_0 = arith.constant 0 : index
    %0 = vector.load %arg1[%c0, %c0_0] : memref<2x32xf32, #tpu.memory_space<vmem>>, vector<2x32xf32>
    %1 = arith.truncf %0 : vector<2x32xf32> to vector<2x32xbf16>
    %c0_1 = arith.constant 0 : index
    %c0_2 = arith.constant 0 : index
    %2 = vector.load %arg2[%c0_1, %c0_2] : memref<32x2xf32, #tpu.memory_space<vmem>>, vector<32x2xf32>
    %3 = arith.truncf %2 : vector<32x2xf32> to vector<32x2xbf16>
    %cst = arith.constant dense<0.000000e+00> : vector<2x2xf32>
    %4 = tpu.matmul %1, %3, %cst {dimension_numbers = #tpu.dot_dimension_numbers<[1], [0], [0], [1], [0, 0, 1, 1], [], []>} : vector<2x32xbf16>, vector<32x2xbf16>, vector<2x2xf32> -> vector<2x2xf32>
    %c0_3 = arith.constant 0 : index
    %c0_4 = arith.constant 0 : index
    %5 = vector.load %arg3[%c0_3, %c0_4] : memref<1x2xf32, #tpu.memory_space<vmem>>, vector<1x2xf32>
    %6 = vector.broadcast %5 : vector<1x2xf32> to vector<2x2xf32>
    %7 = arith.mulf %4, %6 : vector<2x2xf32>
    %c0_5 = arith.constant 0 : index
    %c0_6 = arith.constant 0 : index
    %8 = vector.load %arg4[%c0_5, %c0_6] : memref<1x2xf32, #tpu.memory_space<vmem>>, vector<1x2xf32>
    %9 = vector.broadcast %8 : vector<1x2xf32> to vector<2x2xf32>
    %10 = arith.addf %7, %9 : vector<2x2xf32>
    %cst_7 = arith.constant 5.000000e-01 : f32
    %11 = vector.broadcast %cst_7 : f32 to vector<2x2xf32>
    %12 = arith.mulf %11, %10 : vector<2x2xf32>
    %cst_8 = arith.constant 4.471500e-02 : f32
    %13 = vector.broadcast %cst_8 : f32 to vector<2x2xf32>
    %14 = arith.mulf %13, %10 : vector<2x2xf32>
    %15 = arith.mulf %14, %10 : vector<2x2xf32>
    %16 = arith.mulf %15, %10 : vector<2x2xf32>
    %17 = arith.addf %10, %16 : vector<2x2xf32>
    %cst_9 = arith.constant 0.797884583 : f32
    %18 = vector.broadcast %cst_9 : f32 to vector<2x2xf32>
    %19 = arith.mulf %18, %17 : vector<2x2xf32>
    %20 = math.tanh %19 : vector<2x2xf32>
    %cst_10 = arith.constant 1.000000e+00 : f32
    %21 = vector.broadcast %cst_10 : f32 to vector<2x2xf32>
    %22 = arith.addf %21, %20 : vector<2x2xf32>
    %23 = arith.mulf %12, %22 : vector<2x2xf32>
    %c0_11 = arith.constant 0 : index
    %c0_12 = arith.constant 0 : index
    %24 = vector.load %arg5[%c0_11, %c0_12] : memref<2x2xf32, #tpu.memory_space<vmem>>, vector<2x2xf32>
    tpu.vector_store %arg5[%c0_11, %c0_12], %23 {strides = array<i32>} : memref<2x2xf32, #tpu.memory_space<vmem>>, vector<2x2xf32>,
    return
  }
  func.func @transform_0(%arg0: i32) -> (i32, i32) {
    %c0_i32 = arith.constant 0 : i32
    %c0_i32_0 = arith.constant 0 : i32
    return %arg0, %c0_i32 : i32, i32
  }
  func.func @transform_1(%arg0: i32) -> (i32, i32) {
    %c0_i32 = arith.constant 0 : i32
    %c0_i32_0 = arith.constant 0 : i32
    %c0_i32_1 = arith.constant 0 : i32
    return %c0_i32, %c0_i32_0 : i32, i32
  }
  func.func @transform_2(%arg0: i32) -> (i32, i32) {
    %c0_i32 = arith.constant 0 : i32
    %c0_i32_0 = arith.constant 0 : i32
    %c0_i32_1 = arith.constant 0 : i32
    return %c0_i32, %c0_i32_0 : i32, i32
  }
  func.func @transform_3(%arg0: i32) -> (i32, i32) {
    %c0_i32 = arith.constant 0 : i32
    %c0_i32_0 = arith.constant 0 : i32
    %c0_i32_1 = arith.constant 0 : i32
    return %c0_i32, %c0_i32_0 : i32, i32
  }
  func.func @transform_4(%arg0: i32) -> (i32, i32) {
    %c0_i32 = arith.constant 0 : i32
    %c0_i32_0 = arith.constant 0 : i32
    return %arg0, %c0_i32 : i32, i32
  }
}

module attributes {stable_mosaic.version = 11 : i64} {
  func.func @_se_proj_kernel(%arg0: i32, %arg1: i32, %arg2: memref<1x64x32xf32, #tpu.memory_space<vmem>>, %arg3: memref<1x1x32xf32, #tpu.memory_space<vmem>>, %arg4: memref<32x16xf32, #tpu.memory_space<vmem>>, %arg5: memref<1x16xf32, #tpu.memory_space<vmem>>, %arg6: memref<1x16xf32, #tpu.memory_space<vmem>>, %arg7: memref<1x64x16xf32, #tpu.memory_space<vmem>>, %arg8: memref<1x64x16xf32, #tpu.memory_space<vmem>>) attributes {dimension_semantics = [#tpu.dimension_semantics<parallel>, #tpu.dimension_semantics<parallel>], iteration_bounds = array<i64: 2, 1>, scalar_prefetch = 0 : i64, scratch_operands = 0 : i64, tpu.core_type = #tpu.core_type<tc>, window_params = [{transform_indices = @transform_0, window_bounds = array<i64: 1, 64, 32>}, {transform_indices = @transform_1, window_bounds = array<i64: 1, 1, 32>}, {pipeline_mode = #tpu.pipeline_mode<synchronous>, transform_indices = @transform_2, window_bounds = array<i64: 32, 16>}, {pipeline_mode = #tpu.pipeline_mode<synchronous>, transform_indices = @transform_3, window_bounds = array<i64: 1, 16>}, {pipeline_mode = #tpu.pipeline_mode<synchronous>, transform_indices = @transform_4, window_bounds = array<i64: 1, 16>}, {transform_indices = @transform_5, window_bounds = array<i64: 1, 64, 16>}, {transform_indices = @transform_6, window_bounds = array<i64: 1, 64, 16>}]} {
    %c0 = arith.constant 0 : index
    %c0_0 = arith.constant 0 : index
    %c0_1 = arith.constant 0 : index
    %0 = vector.load %arg2[%c0, %c0_0, %c0_1] : memref<1x64x32xf32, #tpu.memory_space<vmem>>, vector<1x64x32xf32>
    %1 = vector.shape_cast %0 : vector<1x64x32xf32> to vector<64x32xf32>
    %c0_2 = arith.constant 0 : index
    %c0_3 = arith.constant 0 : index
    %c0_4 = arith.constant 0 : index
    %2 = vector.load %arg3[%c0_2, %c0_3, %c0_4] : memref<1x1x32xf32, #tpu.memory_space<vmem>>, vector<1x1x32xf32>
    %3 = vector.shape_cast %2 : vector<1x1x32xf32> to vector<1x32xf32>
    %4 = vector.broadcast %3 : vector<1x32xf32> to vector<64x32xf32>
    %5 = arith.mulf %1, %4 : vector<64x32xf32>
    %6 = arith.truncf %5 : vector<64x32xf32> to vector<64x32xbf16>
    %c0_5 = arith.constant 0 : index
    %c0_6 = arith.constant 0 : index
    %7 = vector.load %arg4[%c0_5, %c0_6] : memref<32x16xf32, #tpu.memory_space<vmem>>, vector<32x16xf32>
    %8 = arith.truncf %7 : vector<32x16xf32> to vector<32x16xbf16>
    %cst = arith.constant dense<0.000000e+00> : vector<64x16xf32>
    %9 = tpu.matmul %6, %8, %cst {dimension_numbers = #tpu.dot_dimension_numbers<[1], [0], [0], [1], [0, 0, 1, 1], [], []>} : vector<64x32xbf16>, vector<32x16xbf16>, vector<64x16xf32> -> vector<64x16xf32>
    %c0_7 = arith.constant 0 : index
    %c0_8 = arith.constant 0 : index
    %10 = vector.load %arg5[%c0_7, %c0_8] : memref<1x16xf32, #tpu.memory_space<vmem>>, vector<1x16xf32>
    %11 = vector.broadcast %10 : vector<1x16xf32> to vector<64x16xf32>
    %12 = arith.mulf %9, %11 : vector<64x16xf32>
    %c0_9 = arith.constant 0 : index
    %c0_10 = arith.constant 0 : index
    %13 = vector.load %arg6[%c0_9, %c0_10] : memref<1x16xf32, #tpu.memory_space<vmem>>, vector<1x16xf32>
    %14 = vector.broadcast %13 : vector<1x16xf32> to vector<64x16xf32>
    %15 = arith.addf %12, %14 : vector<64x16xf32>
    %c0_11 = arith.constant 0 : index
    %c0_12 = arith.constant 0 : index
    %c0_13 = arith.constant 0 : index
    %16 = vector.load %arg7[%c0_11, %c0_12, %c0_13] : memref<1x64x16xf32, #tpu.memory_space<vmem>>, vector<1x64x16xf32>
    %17 = vector.shape_cast %16 : vector<1x64x16xf32> to vector<64x16xf32>
    %18 = arith.addf %15, %17 : vector<64x16xf32>
    %19 = vector.shape_cast %18 : vector<64x16xf32> to vector<1x64x16xf32>
    %c0_14 = arith.constant 0 : index
    %c0_15 = arith.constant 0 : index
    %c0_16 = arith.constant 0 : index
    %20 = vector.load %arg8[%c0_14, %c0_15, %c0_16] : memref<1x64x16xf32, #tpu.memory_space<vmem>>, vector<1x64x16xf32>
    tpu.vector_store %arg8[%c0_14, %c0_15, %c0_16], %19 {strides = array<i32>} : memref<1x64x16xf32, #tpu.memory_space<vmem>>, vector<1x64x16xf32>,
    return
  }
  func.func @transform_0(%arg0: i32, %arg1: i32) -> (i32, i32, i32) {
    %c0_i32 = arith.constant 0 : i32
    %c0_i32_0 = arith.constant 0 : i32
    return %arg0, %arg1, %c0_i32 : i32, i32, i32
  }
  func.func @transform_1(%arg0: i32, %arg1: i32) -> (i32, i32, i32) {
    %c0_i32 = arith.constant 0 : i32
    %c0_i32_0 = arith.constant 0 : i32
    %c0_i32_1 = arith.constant 0 : i32
    return %arg0, %c0_i32, %c0_i32_0 : i32, i32, i32
  }
  func.func @transform_2(%arg0: i32, %arg1: i32) -> (i32, i32) {
    %c0_i32 = arith.constant 0 : i32
    %c0_i32_0 = arith.constant 0 : i32
    %c0_i32_1 = arith.constant 0 : i32
    return %c0_i32, %c0_i32_0 : i32, i32
  }
  func.func @transform_3(%arg0: i32, %arg1: i32) -> (i32, i32) {
    %c0_i32 = arith.constant 0 : i32
    %c0_i32_0 = arith.constant 0 : i32
    %c0_i32_1 = arith.constant 0 : i32
    return %c0_i32, %c0_i32_0 : i32, i32
  }
  func.func @transform_4(%arg0: i32, %arg1: i32) -> (i32, i32) {
    %c0_i32 = arith.constant 0 : i32
    %c0_i32_0 = arith.constant 0 : i32
    %c0_i32_1 = arith.constant 0 : i32
    return %c0_i32, %c0_i32_0 : i32, i32
  }
  func.func @transform_5(%arg0: i32, %arg1: i32) -> (i32, i32, i32) {
    %c0_i32 = arith.constant 0 : i32
    %c0_i32_0 = arith.constant 0 : i32
    return %arg0, %arg1, %c0_i32 : i32, i32, i32
  }
  func.func @transform_6(%arg0: i32, %arg1: i32) -> (i32, i32, i32) {
    %c0_i32 = arith.constant 0 : i32
    %c0_i32_0 = arith.constant 0 : i32
    return %arg0, %arg1, %c0_i32 : i32, i32, i32
  }
}

module attributes {stable_mosaic.version = 11 : i64} {
  func.func @_maxpool_proj_kernel(%arg0: i32, %arg1: memref<9x32x16xf32, #tpu.memory_space<vmem>>, %arg2: memref<16x16xf32, #tpu.memory_space<vmem>>, %arg3: memref<32x16xf32, #tpu.memory_space<vmem>>) attributes {dimension_semantics = [#tpu.dimension_semantics<parallel>], iteration_bounds = array<i64: 1>, scalar_prefetch = 0 : i64, scratch_operands = 0 : i64, tpu.core_type = #tpu.core_type<tc>, window_params = [{transform_indices = @transform_0, window_bounds = array<i64: 9, 32, 16>}, {pipeline_mode = #tpu.pipeline_mode<synchronous>, transform_indices = @transform_1, window_bounds = array<i64: 16, 16>}, {transform_indices = @transform_2, window_bounds = array<i64: 32, 16>}]} {
    %c0 = arith.constant 0 : index
    %c0_0 = arith.constant 0 : index
    %c0_1 = arith.constant 0 : index
    %0 = vector.load %arg1[%c0, %c0_0, %c0_1] : memref<9x32x16xf32, #tpu.memory_space<vmem>>, vector<1x32x16xf32>
    %1 = vector.shape_cast %0 : vector<1x32x16xf32> to vector<32x16xf32>
    %c1 = arith.constant 1 : index
    %c0_2 = arith.constant 0 : index
    %c0_3 = arith.constant 0 : index
    %2 = vector.load %arg1[%c1, %c0_2, %c0_3] : memref<9x32x16xf32, #tpu.memory_space<vmem>>, vector<1x32x16xf32>
    %3 = vector.shape_cast %2 : vector<1x32x16xf32> to vector<32x16xf32>
    %4 = arith.maximumf %1, %3 : vector<32x16xf32>
    %c2 = arith.constant 2 : index
    %c0_4 = arith.constant 0 : index
    %c0_5 = arith.constant 0 : index
    %5 = vector.load %arg1[%c2, %c0_4, %c0_5] : memref<9x32x16xf32, #tpu.memory_space<vmem>>, vector<1x32x16xf32>
    %6 = vector.shape_cast %5 : vector<1x32x16xf32> to vector<32x16xf32>
    %7 = arith.maximumf %4, %6 : vector<32x16xf32>
    %c3 = arith.constant 3 : index
    %c0_6 = arith.constant 0 : index
    %c0_7 = arith.constant 0 : index
    %8 = vector.load %arg1[%c3, %c0_6, %c0_7] : memref<9x32x16xf32, #tpu.memory_space<vmem>>, vector<1x32x16xf32>
    %9 = vector.shape_cast %8 : vector<1x32x16xf32> to vector<32x16xf32>
    %10 = arith.maximumf %7, %9 : vector<32x16xf32>
    %c4 = arith.constant 4 : index
    %c0_8 = arith.constant 0 : index
    %c0_9 = arith.constant 0 : index
    %11 = vector.load %arg1[%c4, %c0_8, %c0_9] : memref<9x32x16xf32, #tpu.memory_space<vmem>>, vector<1x32x16xf32>
    %12 = vector.shape_cast %11 : vector<1x32x16xf32> to vector<32x16xf32>
    %13 = arith.maximumf %10, %12 : vector<32x16xf32>
    %c5 = arith.constant 5 : index
    %c0_10 = arith.constant 0 : index
    %c0_11 = arith.constant 0 : index
    %14 = vector.load %arg1[%c5, %c0_10, %c0_11] : memref<9x32x16xf32, #tpu.memory_space<vmem>>, vector<1x32x16xf32>
    %15 = vector.shape_cast %14 : vector<1x32x16xf32> to vector<32x16xf32>
    %16 = arith.maximumf %13, %15 : vector<32x16xf32>
    %c6 = arith.constant 6 : index
    %c0_12 = arith.constant 0 : index
    %c0_13 = arith.constant 0 : index
    %17 = vector.load %arg1[%c6, %c0_12, %c0_13] : memref<9x32x16xf32, #tpu.memory_space<vmem>>, vector<1x32x16xf32>
    %18 = vector.shape_cast %17 : vector<1x32x16xf32> to vector<32x16xf32>
    %19 = arith.maximumf %16, %18 : vector<32x16xf32>
    %c7 = arith.constant 7 : index
    %c0_14 = arith.constant 0 : index
    %c0_15 = arith.constant 0 : index
    %20 = vector.load %arg1[%c7, %c0_14, %c0_15] : memref<9x32x16xf32, #tpu.memory_space<vmem>>, vector<1x32x16xf32>
    %21 = vector.shape_cast %20 : vector<1x32x16xf32> to vector<32x16xf32>
    %22 = arith.maximumf %19, %21 : vector<32x16xf32>
    %c8 = arith.constant 8 : index
    %c0_16 = arith.constant 0 : index
    %c0_17 = arith.constant 0 : index
    %23 = vector.load %arg1[%c8, %c0_16, %c0_17] : memref<9x32x16xf32, #tpu.memory_space<vmem>>, vector<1x32x16xf32>
    %24 = vector.shape_cast %23 : vector<1x32x16xf32> to vector<32x16xf32>
    %25 = arith.maximumf %22, %24 : vector<32x16xf32>
    %26 = arith.truncf %25 : vector<32x16xf32> to vector<32x16xbf16>
    %c0_18 = arith.constant 0 : index
    %c0_19 = arith.constant 0 : index
    %27 = vector.load %arg2[%c0_18, %c0_19] : memref<16x16xf32, #tpu.memory_space<vmem>>, vector<16x16xf32>
    %28 = arith.truncf %27 : vector<16x16xf32> to vector<16x16xbf16>
    %cst = arith.constant dense<0.000000e+00> : vector<32x16xf32>
    %29 = tpu.matmul %26, %28, %cst {dimension_numbers = #tpu.dot_dimension_numbers<[1], [0], [0], [1], [0, 0, 1, 1], [], []>} : vector<32x16xbf16>, vector<16x16xbf16>, vector<32x16xf32> -> vector<32x16xf32>
    %c0_20 = arith.constant 0 : index
    %c0_21 = arith.constant 0 : index
    %30 = vector.load %arg3[%c0_20, %c0_21] : memref<32x16xf32, #tpu.memory_space<vmem>>, vector<32x16xf32>
    tpu.vector_store %arg3[%c0_20, %c0_21], %29 {strides = array<i32>} : memref<32x16xf32, #tpu.memory_space<vmem>>, vector<32x16xf32>,
    return
  }
  func.func @transform_0(%arg0: i32) -> (i32, i32, i32) {
    %c0_i32 = arith.constant 0 : i32
    %c0_i32_0 = arith.constant 0 : i32
    %c0_i32_1 = arith.constant 0 : i32
    return %c0_i32, %arg0, %c0_i32_0 : i32, i32, i32
  }
  func.func @transform_1(%arg0: i32) -> (i32, i32) {
    %c0_i32 = arith.constant 0 : i32
    %c0_i32_0 = arith.constant 0 : i32
    %c0_i32_1 = arith.constant 0 : i32
    return %c0_i32, %c0_i32_0 : i32, i32
  }
  func.func @transform_2(%arg0: i32) -> (i32, i32) {
    %c0_i32 = arith.constant 0 : i32
    %c0_i32_0 = arith.constant 0 : i32
    return %arg0, %c0_i32 : i32, i32
  }
}

module attributes {stable_mosaic.version = 11 : i64} {
  func.func @_mm_kernel(%arg0: i32, %arg1: memref<32x16xf32, #tpu.memory_space<vmem>>, %arg2: memref<16x64xf32, #tpu.memory_space<vmem>>, %arg3: memref<1x64xf32, #tpu.memory_space<vmem>>, %arg4: memref<1x64xf32, #tpu.memory_space<vmem>>, %arg5: memref<32x64xf32, #tpu.memory_space<vmem>>) attributes {dimension_semantics = [#tpu.dimension_semantics<parallel>], iteration_bounds = array<i64: 1>, scalar_prefetch = 0 : i64, scratch_operands = 0 : i64, tpu.core_type = #tpu.core_type<tc>, window_params = [{transform_indices = @transform_0, window_bounds = array<i64: 32, 16>}, {pipeline_mode = #tpu.pipeline_mode<synchronous>, transform_indices = @transform_1, window_bounds = array<i64: 16, 64>}, {pipeline_mode = #tpu.pipeline_mode<synchronous>, transform_indices = @transform_2, window_bounds = array<i64: 1, 64>}, {pipeline_mode = #tpu.pipeline_mode<synchronous>, transform_indices = @transform_3, window_bounds = array<i64: 1, 64>}, {transform_indices = @transform_4, window_bounds = array<i64: 32, 64>}]} {
    %c0 = arith.constant 0 : index
    %c0_0 = arith.constant 0 : index
    %0 = vector.load %arg1[%c0, %c0_0] : memref<32x16xf32, #tpu.memory_space<vmem>>, vector<32x16xf32>
    %1 = arith.truncf %0 : vector<32x16xf32> to vector<32x16xbf16>
    %c0_1 = arith.constant 0 : index
    %c0_2 = arith.constant 0 : index
    %2 = vector.load %arg2[%c0_1, %c0_2] : memref<16x64xf32, #tpu.memory_space<vmem>>, vector<16x64xf32>
    %3 = arith.truncf %2 : vector<16x64xf32> to vector<16x64xbf16>
    %cst = arith.constant dense<0.000000e+00> : vector<32x64xf32>
    %4 = tpu.matmul %1, %3, %cst {dimension_numbers = #tpu.dot_dimension_numbers<[1], [0], [0], [1], [0, 0, 1, 1], [], []>} : vector<32x16xbf16>, vector<16x64xbf16>, vector<32x64xf32> -> vector<32x64xf32>
    %c0_3 = arith.constant 0 : index
    %c0_4 = arith.constant 0 : index
    %5 = vector.load %arg3[%c0_3, %c0_4] : memref<1x64xf32, #tpu.memory_space<vmem>>, vector<1x64xf32>
    %6 = vector.broadcast %5 : vector<1x64xf32> to vector<32x64xf32>
    %7 = arith.mulf %4, %6 : vector<32x64xf32>
    %c0_5 = arith.constant 0 : index
    %c0_6 = arith.constant 0 : index
    %8 = vector.load %arg4[%c0_5, %c0_6] : memref<1x64xf32, #tpu.memory_space<vmem>>, vector<1x64xf32>
    %9 = vector.broadcast %8 : vector<1x64xf32> to vector<32x64xf32>
    %10 = arith.addf %7, %9 : vector<32x64xf32>
    %cst_7 = arith.constant 5.000000e-01 : f32
    %11 = vector.broadcast %cst_7 : f32 to vector<32x64xf32>
    %12 = arith.mulf %11, %10 : vector<32x64xf32>
    %cst_8 = arith.constant 4.471500e-02 : f32
    %13 = vector.broadcast %cst_8 : f32 to vector<32x64xf32>
    %14 = arith.mulf %13, %10 : vector<32x64xf32>
    %15 = arith.mulf %14, %10 : vector<32x64xf32>
    %16 = arith.mulf %15, %10 : vector<32x64xf32>
    %17 = arith.addf %10, %16 : vector<32x64xf32>
    %cst_9 = arith.constant 0.797884583 : f32
    %18 = vector.broadcast %cst_9 : f32 to vector<32x64xf32>
    %19 = arith.mulf %18, %17 : vector<32x64xf32>
    %20 = math.tanh %19 : vector<32x64xf32>
    %cst_10 = arith.constant 1.000000e+00 : f32
    %21 = vector.broadcast %cst_10 : f32 to vector<32x64xf32>
    %22 = arith.addf %21, %20 : vector<32x64xf32>
    %23 = arith.mulf %12, %22 : vector<32x64xf32>
    %c0_11 = arith.constant 0 : index
    %c0_12 = arith.constant 0 : index
    %24 = vector.load %arg5[%c0_11, %c0_12] : memref<32x64xf32, #tpu.memory_space<vmem>>, vector<32x64xf32>
    tpu.vector_store %arg5[%c0_11, %c0_12], %23 {strides = array<i32>} : memref<32x64xf32, #tpu.memory_space<vmem>>, vector<32x64xf32>,
    return
  }
  func.func @transform_0(%arg0: i32) -> (i32, i32) {
    %c0_i32 = arith.constant 0 : i32
    %c0_i32_0 = arith.constant 0 : i32
    return %arg0, %c0_i32 : i32, i32
  }
  func.func @transform_1(%arg0: i32) -> (i32, i32) {
    %c0_i32 = arith.constant 0 : i32
    %c0_i32_0 = arith.constant 0 : i32
    %c0_i32_1 = arith.constant 0 : i32
    return %c0_i32, %c0_i32_0 : i32, i32
  }
  func.func @transform_2(%arg0: i32) -> (i32, i32) {
    %c0_i32 = arith.constant 0 : i32
    %c0_i32_0 = arith.constant 0 : i32
    %c0_i32_1 = arith.constant 0 : i32
    return %c0_i32, %c0_i32_0 : i32, i32
  }
  func.func @transform_3(%arg0: i32) -> (i32, i32) {
    %c0_i32 = arith.constant 0 : i32
    %c0_i32_0 = arith.constant 0 : i32
    %c0_i32_1 = arith.constant 0 : i32
    return %c0_i32, %c0_i32_0 : i32, i32
  }
  func.func @transform_4(%arg0: i32) -> (i32, i32) {
    %c0_i32 = arith.constant 0 : i32
    %c0_i32_0 = arith.constant 0 : i32
    return %arg0, %c0_i32 : i32, i32
  }
}

module attributes {stable_mosaic.version = 11 : i64} {
  func.func @_dwconv_kernel(%arg0: i32, %arg1: memref<1x6x6x64xf32, #tpu.memory_space<vmem>>, %arg2: memref<3x3x1x64xf32, #tpu.memory_space<vmem>>, %arg3: memref<1x64xf32, #tpu.memory_space<vmem>>, %arg4: memref<1x64xf32, #tpu.memory_space<vmem>>, %arg5: memref<1x4x4x64xf32, #tpu.memory_space<vmem>>) attributes {dimension_semantics = [#tpu.dimension_semantics<parallel>], iteration_bounds = array<i64: 2>, scalar_prefetch = 0 : i64, scratch_operands = 0 : i64, tpu.core_type = #tpu.core_type<tc>, window_params = [{transform_indices = @transform_0, window_bounds = array<i64: 1, 6, 6, 64>}, {pipeline_mode = #tpu.pipeline_mode<synchronous>, transform_indices = @transform_1, window_bounds = array<i64: 3, 3, 1, 64>}, {pipeline_mode = #tpu.pipeline_mode<synchronous>, transform_indices = @transform_2, window_bounds = array<i64: 1, 64>}, {pipeline_mode = #tpu.pipeline_mode<synchronous>, transform_indices = @transform_3, window_bounds = array<i64: 1, 64>}, {transform_indices = @transform_4, window_bounds = array<i64: 1, 4, 4, 64>}]} {
    %c0 = arith.constant 0 : index
    %c0_0 = arith.constant 0 : index
    %c0_1 = arith.constant 0 : index
    %c0_2 = arith.constant 0 : index
    %0 = vector.load %arg1[%c0, %c0_0, %c0_1, %c0_2] : memref<1x6x6x64xf32, #tpu.memory_space<vmem>>, vector<1x6x6x64xf32>
    %c0_3 = arith.constant 0 : index
    %c0_4 = arith.constant 0 : index
    %c0_5 = arith.constant 0 : index
    %c0_6 = arith.constant 0 : index
    %1 = vector.load %arg2[%c0_3, %c0_4, %c0_5, %c0_6] : memref<3x3x1x64xf32, #tpu.memory_space<vmem>>, vector<3x3x1x64xf32>
    %2 = vector.extract_strided_slice %0 {offsets = [0, 0, 0, 0], sizes = [1, 4, 4, 64], strides = [1, 1, 1, 1]} : vector<1x6x6x64xf32> to vector<1x4x4x64xf32>
    %3 = vector.shape_cast %2 : vector<1x4x4x64xf32> to vector<4x4x64xf32>
    %4 = vector.extract_strided_slice %1 {offsets = [0, 0, 0, 0], sizes = [1, 1, 1, 64], strides = [1, 1, 1, 1]} : vector<3x3x1x64xf32> to vector<1x1x1x64xf32>
    %5 = vector.shape_cast %4 : vector<1x1x1x64xf32> to vector<64xf32>
    %6 = vector.shape_cast %5 : vector<64xf32> to vector<1x1x64xf32>
    %7 = vector.broadcast %6 : vector<1x1x64xf32> to vector<4x4x64xf32>
    %8 = arith.mulf %3, %7 : vector<4x4x64xf32>
    %9 = vector.extract_strided_slice %0 {offsets = [0, 0, 1, 0], sizes = [1, 4, 4, 64], strides = [1, 1, 1, 1]} : vector<1x6x6x64xf32> to vector<1x4x4x64xf32>
    %10 = vector.shape_cast %9 : vector<1x4x4x64xf32> to vector<4x4x64xf32>
    %11 = vector.extract_strided_slice %1 {offsets = [0, 1, 0, 0], sizes = [1, 1, 1, 64], strides = [1, 1, 1, 1]} : vector<3x3x1x64xf32> to vector<1x1x1x64xf32>
    %12 = vector.shape_cast %11 : vector<1x1x1x64xf32> to vector<64xf32>
    %13 = vector.shape_cast %12 : vector<64xf32> to vector<1x1x64xf32>
    %14 = vector.broadcast %13 : vector<1x1x64xf32> to vector<4x4x64xf32>
    %15 = arith.mulf %10, %14 : vector<4x4x64xf32>
    %16 = arith.addf %8, %15 : vector<4x4x64xf32>
    %17 = vector.extract_strided_slice %0 {offsets = [0, 0, 2, 0], sizes = [1, 4, 4, 64], strides = [1, 1, 1, 1]} : vector<1x6x6x64xf32> to vector<1x4x4x64xf32>
    %18 = vector.shape_cast %17 : vector<1x4x4x64xf32> to vector<4x4x64xf32>
    %19 = vector.extract_strided_slice %1 {offsets = [0, 2, 0, 0], sizes = [1, 1, 1, 64], strides = [1, 1, 1, 1]} : vector<3x3x1x64xf32> to vector<1x1x1x64xf32>
    %20 = vector.shape_cast %19 : vector<1x1x1x64xf32> to vector<64xf32>
    %21 = vector.shape_cast %20 : vector<64xf32> to vector<1x1x64xf32>
    %22 = vector.broadcast %21 : vector<1x1x64xf32> to vector<4x4x64xf32>
    %23 = arith.mulf %18, %22 : vector<4x4x64xf32>
    %24 = arith.addf %16, %23 : vector<4x4x64xf32>
    %25 = vector.extract_strided_slice %0 {offsets = [0, 1, 0, 0], sizes = [1, 4, 4, 64], strides = [1, 1, 1, 1]} : vector<1x6x6x64xf32> to vector<1x4x4x64xf32>
    %26 = vector.shape_cast %25 : vector<1x4x4x64xf32> to vector<4x4x64xf32>
    %27 = vector.extract_strided_slice %1 {offsets = [1, 0, 0, 0], sizes = [1, 1, 1, 64], strides = [1, 1, 1, 1]} : vector<3x3x1x64xf32> to vector<1x1x1x64xf32>
    %28 = vector.shape_cast %27 : vector<1x1x1x64xf32> to vector<64xf32>
    %29 = vector.shape_cast %28 : vector<64xf32> to vector<1x1x64xf32>
    %30 = vector.broadcast %29 : vector<1x1x64xf32> to vector<4x4x64xf32>
    %31 = arith.mulf %26, %30 : vector<4x4x64xf32>
    %32 = arith.addf %24, %31 : vector<4x4x64xf32>
    %33 = vector.extract_strided_slice %0 {offsets = [0, 1, 1, 0], sizes = [1, 4, 4, 64], strides = [1, 1, 1, 1]} : vector<1x6x6x64xf32> to vector<1x4x4x64xf32>
    %34 = vector.shape_cast %33 : vector<1x4x4x64xf32> to vector<4x4x64xf32>
    %35 = vector.extract_strided_slice %1 {offsets = [1, 1, 0, 0], sizes = [1, 1, 1, 64], strides = [1, 1, 1, 1]} : vector<3x3x1x64xf32> to vector<1x1x1x64xf32>
    %36 = vector.shape_cast %35 : vector<1x1x1x64xf32> to vector<64xf32>
    %37 = vector.shape_cast %36 : vector<64xf32> to vector<1x1x64xf32>
    %38 = vector.broadcast %37 : vector<1x1x64xf32> to vector<4x4x64xf32>
    %39 = arith.mulf %34, %38 : vector<4x4x64xf32>
    %40 = arith.addf %32, %39 : vector<4x4x64xf32>
    %41 = vector.extract_strided_slice %0 {offsets = [0, 1, 2, 0], sizes = [1, 4, 4, 64], strides = [1, 1, 1, 1]} : vector<1x6x6x64xf32> to vector<1x4x4x64xf32>
    %42 = vector.shape_cast %41 : vector<1x4x4x64xf32> to vector<4x4x64xf32>
    %43 = vector.extract_strided_slice %1 {offsets = [1, 2, 0, 0], sizes = [1, 1, 1, 64], strides = [1, 1, 1, 1]} : vector<3x3x1x64xf32> to vector<1x1x1x64xf32>
    %44 = vector.shape_cast %43 : vector<1x1x1x64xf32> to vector<64xf32>
    %45 = vector.shape_cast %44 : vector<64xf32> to vector<1x1x64xf32>
    %46 = vector.broadcast %45 : vector<1x1x64xf32> to vector<4x4x64xf32>
    %47 = arith.mulf %42, %46 : vector<4x4x64xf32>
    %48 = arith.addf %40, %47 : vector<4x4x64xf32>
    %49 = vector.extract_strided_slice %0 {offsets = [0, 2, 0, 0], sizes = [1, 4, 4, 64], strides = [1, 1, 1, 1]} : vector<1x6x6x64xf32> to vector<1x4x4x64xf32>
    %50 = vector.shape_cast %49 : vector<1x4x4x64xf32> to vector<4x4x64xf32>
    %51 = vector.extract_strided_slice %1 {offsets = [2, 0, 0, 0], sizes = [1, 1, 1, 64], strides = [1, 1, 1, 1]} : vector<3x3x1x64xf32> to vector<1x1x1x64xf32>
    %52 = vector.shape_cast %51 : vector<1x1x1x64xf32> to vector<64xf32>
    %53 = vector.shape_cast %52 : vector<64xf32> to vector<1x1x64xf32>
    %54 = vector.broadcast %53 : vector<1x1x64xf32> to vector<4x4x64xf32>
    %55 = arith.mulf %50, %54 : vector<4x4x64xf32>
    %56 = arith.addf %48, %55 : vector<4x4x64xf32>
    %57 = vector.extract_strided_slice %0 {offsets = [0, 2, 1, 0], sizes = [1, 4, 4, 64], strides = [1, 1, 1, 1]} : vector<1x6x6x64xf32> to vector<1x4x4x64xf32>
    %58 = vector.shape_cast %57 : vector<1x4x4x64xf32> to vector<4x4x64xf32>
    %59 = vector.extract_strided_slice %1 {offsets = [2, 1, 0, 0], sizes = [1, 1, 1, 64], strides = [1, 1, 1, 1]} : vector<3x3x1x64xf32> to vector<1x1x1x64xf32>
    %60 = vector.shape_cast %59 : vector<1x1x1x64xf32> to vector<64xf32>
    %61 = vector.shape_cast %60 : vector<64xf32> to vector<1x1x64xf32>
    %62 = vector.broadcast %61 : vector<1x1x64xf32> to vector<4x4x64xf32>
    %63 = arith.mulf %58, %62 : vector<4x4x64xf32>
    %64 = arith.addf %56, %63 : vector<4x4x64xf32>
    %65 = vector.extract_strided_slice %0 {offsets = [0, 2, 2, 0], sizes = [1, 4, 4, 64], strides = [1, 1, 1, 1]} : vector<1x6x6x64xf32> to vector<1x4x4x64xf32>
    %66 = vector.shape_cast %65 : vector<1x4x4x64xf32> to vector<4x4x64xf32>
    %67 = vector.extract_strided_slice %1 {offsets = [2, 2, 0, 0], sizes = [1, 1, 1, 64], strides = [1, 1, 1, 1]} : vector<3x3x1x64xf32> to vector<1x1x1x64xf32>
    %68 = vector.shape_cast %67 : vector<1x1x1x64xf32> to vector<64xf32>
    %69 = vector.shape_cast %68 : vector<64xf32> to vector<1x1x64xf32>
    %70 = vector.broadcast %69 : vector<1x1x64xf32> to vector<4x4x64xf32>
    %71 = arith.mulf %66, %70 : vector<4x4x64xf32>
    %72 = arith.addf %64, %71 : vector<4x4x64xf32>
    %c0_7 = arith.constant 0 : index
    %c0_8 = arith.constant 0 : index
    %73 = vector.load %arg3[%c0_7, %c0_8] : memref<1x64xf32, #tpu.memory_space<vmem>>, vector<1x64xf32>
    %74 = vector.shape_cast %73 : vector<1x64xf32> to vector<1x1x64xf32>
    %75 = vector.broadcast %74 : vector<1x1x64xf32> to vector<4x4x64xf32>
    %76 = arith.mulf %72, %75 : vector<4x4x64xf32>
    %c0_9 = arith.constant 0 : index
    %c0_10 = arith.constant 0 : index
    %77 = vector.load %arg4[%c0_9, %c0_10] : memref<1x64xf32, #tpu.memory_space<vmem>>, vector<1x64xf32>
    %78 = vector.shape_cast %77 : vector<1x64xf32> to vector<1x1x64xf32>
    %79 = vector.broadcast %78 : vector<1x1x64xf32> to vector<4x4x64xf32>
    %80 = arith.addf %76, %79 : vector<4x4x64xf32>
    %cst = arith.constant 5.000000e-01 : f32
    %81 = vector.broadcast %cst : f32 to vector<4x4x64xf32>
    %82 = arith.mulf %81, %80 : vector<4x4x64xf32>
    %cst_11 = arith.constant 4.471500e-02 : f32
    %83 = vector.broadcast %cst_11 : f32 to vector<4x4x64xf32>
    %84 = arith.mulf %83, %80 : vector<4x4x64xf32>
    %85 = arith.mulf %84, %80 : vector<4x4x64xf32>
    %86 = arith.mulf %85, %80 : vector<4x4x64xf32>
    %87 = arith.addf %80, %86 : vector<4x4x64xf32>
    %cst_12 = arith.constant 0.797884583 : f32
    %88 = vector.broadcast %cst_12 : f32 to vector<4x4x64xf32>
    %89 = arith.mulf %88, %87 : vector<4x4x64xf32>
    %90 = math.tanh %89 : vector<4x4x64xf32>
    %cst_13 = arith.constant 1.000000e+00 : f32
    %91 = vector.broadcast %cst_13 : f32 to vector<4x4x64xf32>
    %92 = arith.addf %91, %90 : vector<4x4x64xf32>
    %93 = arith.mulf %82, %92 : vector<4x4x64xf32>
    %94 = vector.shape_cast %93 : vector<4x4x64xf32> to vector<1x4x4x64xf32>
    %c0_14 = arith.constant 0 : index
    %c0_15 = arith.constant 0 : index
    %c0_16 = arith.constant 0 : index
    %c0_17 = arith.constant 0 : index
    %95 = vector.load %arg5[%c0_14, %c0_15, %c0_16, %c0_17] : memref<1x4x4x64xf32, #tpu.memory_space<vmem>>, vector<1x4x4x64xf32>
    tpu.vector_store %arg5[%c0_14, %c0_15, %c0_16, %c0_17], %94 {strides = array<i32>} : memref<1x4x4x64xf32, #tpu.memory_space<vmem>>, vector<1x4x4x64xf32>,
    return
  }
  func.func @transform_0(%arg0: i32) -> (i32, i32, i32, i32) {
    %c0_i32 = arith.constant 0 : i32
    %c0_i32_0 = arith.constant 0 : i32
    %c0_i32_1 = arith.constant 0 : i32
    %c0_i32_2 = arith.constant 0 : i32
    return %arg0, %c0_i32, %c0_i32_0, %c0_i32_1 : i32, i32, i32, i32
  }
  func.func @transform_1(%arg0: i32) -> (i32, i32, i32, i32) {
    %c0_i32 = arith.constant 0 : i32
    %c0_i32_0 = arith.constant 0 : i32
    %c0_i32_1 = arith.constant 0 : i32
    %c0_i32_2 = arith.constant 0 : i32
    %c0_i32_3 = arith.constant 0 : i32
    return %c0_i32, %c0_i32_0, %c0_i32_1, %c0_i32_2 : i32, i32, i32, i32
  }
  func.func @transform_2(%arg0: i32) -> (i32, i32) {
    %c0_i32 = arith.constant 0 : i32
    %c0_i32_0 = arith.constant 0 : i32
    %c0_i32_1 = arith.constant 0 : i32
    return %c0_i32, %c0_i32_0 : i32, i32
  }
  func.func @transform_3(%arg0: i32) -> (i32, i32) {
    %c0_i32 = arith.constant 0 : i32
    %c0_i32_0 = arith.constant 0 : i32
    %c0_i32_1 = arith.constant 0 : i32
    return %c0_i32, %c0_i32_0 : i32, i32
  }
  func.func @transform_4(%arg0: i32) -> (i32, i32, i32, i32) {
    %c0_i32 = arith.constant 0 : i32
    %c0_i32_0 = arith.constant 0 : i32
    %c0_i32_1 = arith.constant 0 : i32
    %c0_i32_2 = arith.constant 0 : i32
    return %arg0, %c0_i32, %c0_i32_0, %c0_i32_1 : i32, i32, i32, i32
  }
}

module attributes {stable_mosaic.version = 11 : i64} {
  func.func @_avgpool_kernel(%arg0: i32, %arg1: memref<1x16x64xf32, #tpu.memory_space<vmem>>, %arg2: memref<1x1x64xf32, #tpu.memory_space<vmem>>) attributes {dimension_semantics = [#tpu.dimension_semantics<parallel>], iteration_bounds = array<i64: 2>, scalar_prefetch = 0 : i64, scratch_operands = 0 : i64, tpu.core_type = #tpu.core_type<tc>, window_params = [{transform_indices = @transform_0, window_bounds = array<i64: 1, 16, 64>}, {transform_indices = @transform_1, window_bounds = array<i64: 1, 1, 64>}]} {
    %c0 = arith.constant 0 : index
    %c0_0 = arith.constant 0 : index
    %c0_1 = arith.constant 0 : index
    %0 = vector.load %arg1[%c0, %c0_0, %c0_1] : memref<1x16x64xf32, #tpu.memory_space<vmem>>, vector<1x16x64xf32>
    %cst = arith.constant dense<0.000000e+00> : vector<1x64xf32>
    %1 = vector.multi_reduction <add>, %0, %cst [1] : vector<1x16x64xf32> to vector<1x64xf32>
    %2 = vector.shape_cast %1 : vector<1x64xf32> to vector<1x1x64xf32>
    %cst_2 = arith.constant 1.600000e+01 : f32
    %3 = vector.broadcast %cst_2 : f32 to vector<1x1x64xf32>
    %4 = arith.divf %2, %3 : vector<1x1x64xf32>
    %c0_3 = arith.constant 0 : index
    %c0_4 = arith.constant 0 : index
    %c0_5 = arith.constant 0 : index
    %5 = vector.load %arg2[%c0_3, %c0_4, %c0_5] : memref<1x1x64xf32, #tpu.memory_space<vmem>>, vector<1x1x64xf32>
    tpu.vector_store %arg2[%c0_3, %c0_4, %c0_5], %4 {strides = array<i32>} : memref<1x1x64xf32, #tpu.memory_space<vmem>>, vector<1x1x64xf32>,
    return
  }
  func.func @transform_0(%arg0: i32) -> (i32, i32, i32) {
    %c0_i32 = arith.constant 0 : i32
    %c0_i32_0 = arith.constant 0 : i32
    %c0_i32_1 = arith.constant 0 : i32
    return %arg0, %c0_i32, %c0_i32_0 : i32, i32, i32
  }
  func.func @transform_1(%arg0: i32) -> (i32, i32, i32) {
    %c0_i32 = arith.constant 0 : i32
    %c0_i32_0 = arith.constant 0 : i32
    %c0_i32_1 = arith.constant 0 : i32
    return %arg0, %c0_i32, %c0_i32_0 : i32, i32, i32
  }
}

module attributes {stable_mosaic.version = 11 : i64} {
  func.func @_mm_kernel(%arg0: i32, %arg1: memref<2x64xf32, #tpu.memory_space<vmem>>, %arg2: memref<64x4xf32, #tpu.memory_space<vmem>>, %arg3: memref<1x4xf32, #tpu.memory_space<vmem>>, %arg4: memref<1x4xf32, #tpu.memory_space<vmem>>, %arg5: memref<2x4xf32, #tpu.memory_space<vmem>>) attributes {dimension_semantics = [#tpu.dimension_semantics<parallel>], iteration_bounds = array<i64: 1>, scalar_prefetch = 0 : i64, scratch_operands = 0 : i64, tpu.core_type = #tpu.core_type<tc>, window_params = [{transform_indices = @transform_0, window_bounds = array<i64: 2, 64>}, {pipeline_mode = #tpu.pipeline_mode<synchronous>, transform_indices = @transform_1, window_bounds = array<i64: 64, 4>}, {pipeline_mode = #tpu.pipeline_mode<synchronous>, transform_indices = @transform_2, window_bounds = array<i64: 1, 4>}, {pipeline_mode = #tpu.pipeline_mode<synchronous>, transform_indices = @transform_3, window_bounds = array<i64: 1, 4>}, {transform_indices = @transform_4, window_bounds = array<i64: 2, 4>}]} {
    %c0 = arith.constant 0 : index
    %c0_0 = arith.constant 0 : index
    %0 = vector.load %arg1[%c0, %c0_0] : memref<2x64xf32, #tpu.memory_space<vmem>>, vector<2x64xf32>
    %1 = arith.truncf %0 : vector<2x64xf32> to vector<2x64xbf16>
    %c0_1 = arith.constant 0 : index
    %c0_2 = arith.constant 0 : index
    %2 = vector.load %arg2[%c0_1, %c0_2] : memref<64x4xf32, #tpu.memory_space<vmem>>, vector<64x4xf32>
    %3 = arith.truncf %2 : vector<64x4xf32> to vector<64x4xbf16>
    %cst = arith.constant dense<0.000000e+00> : vector<2x4xf32>
    %4 = tpu.matmul %1, %3, %cst {dimension_numbers = #tpu.dot_dimension_numbers<[1], [0], [0], [1], [0, 0, 1, 1], [], []>} : vector<2x64xbf16>, vector<64x4xbf16>, vector<2x4xf32> -> vector<2x4xf32>
    %c0_3 = arith.constant 0 : index
    %c0_4 = arith.constant 0 : index
    %5 = vector.load %arg3[%c0_3, %c0_4] : memref<1x4xf32, #tpu.memory_space<vmem>>, vector<1x4xf32>
    %6 = vector.broadcast %5 : vector<1x4xf32> to vector<2x4xf32>
    %7 = arith.mulf %4, %6 : vector<2x4xf32>
    %c0_5 = arith.constant 0 : index
    %c0_6 = arith.constant 0 : index
    %8 = vector.load %arg4[%c0_5, %c0_6] : memref<1x4xf32, #tpu.memory_space<vmem>>, vector<1x4xf32>
    %9 = vector.broadcast %8 : vector<1x4xf32> to vector<2x4xf32>
    %10 = arith.addf %7, %9 : vector<2x4xf32>
    %cst_7 = arith.constant 5.000000e-01 : f32
    %11 = vector.broadcast %cst_7 : f32 to vector<2x4xf32>
    %12 = arith.mulf %11, %10 : vector<2x4xf32>
    %cst_8 = arith.constant 4.471500e-02 : f32
    %13 = vector.broadcast %cst_8 : f32 to vector<2x4xf32>
    %14 = arith.mulf %13, %10 : vector<2x4xf32>
    %15 = arith.mulf %14, %10 : vector<2x4xf32>
    %16 = arith.mulf %15, %10 : vector<2x4xf32>
    %17 = arith.addf %10, %16 : vector<2x4xf32>
    %cst_9 = arith.constant 0.797884583 : f32
    %18 = vector.broadcast %cst_9 : f32 to vector<2x4xf32>
    %19 = arith.mulf %18, %17 : vector<2x4xf32>
    %20 = math.tanh %19 : vector<2x4xf32>
    %cst_10 = arith.constant 1.000000e+00 : f32
    %21 = vector.broadcast %cst_10 : f32 to vector<2x4xf32>
    %22 = arith.addf %21, %20 : vector<2x4xf32>
    %23 = arith.mulf %12, %22 : vector<2x4xf32>
    %c0_11 = arith.constant 0 : index
    %c0_12 = arith.constant 0 : index
    %24 = vector.load %arg5[%c0_11, %c0_12] : memref<2x4xf32, #tpu.memory_space<vmem>>, vector<2x4xf32>
    tpu.vector_store %arg5[%c0_11, %c0_12], %23 {strides = array<i32>} : memref<2x4xf32, #tpu.memory_space<vmem>>, vector<2x4xf32>,
    return
  }
  func.func @transform_0(%arg0: i32) -> (i32, i32) {
    %c0_i32 = arith.constant 0 : i32
    %c0_i32_0 = arith.constant 0 : i32
    return %arg0, %c0_i32 : i32, i32
  }
  func.func @transform_1(%arg0: i32) -> (i32, i32) {
    %c0_i32 = arith.constant 0 : i32
    %c0_i32_0 = arith.constant 0 : i32
    %c0_i32_1 = arith.constant 0 : i32
    return %c0_i32, %c0_i32_0 : i32, i32
  }
  func.func @transform_2(%arg0: i32) -> (i32, i32) {
    %c0_i32 = arith.constant 0 : i32
    %c0_i32_0 = arith.constant 0 : i32
    %c0_i32_1 = arith.constant 0 : i32
    return %c0_i32, %c0_i32_0 : i32, i32
  }
  func.func @transform_3(%arg0: i32) -> (i32, i32) {
    %c0_i32 = arith.constant 0 : i32
    %c0_i32_0 = arith.constant 0 : i32
    %c0_i32_1 = arith.constant 0 : i32
    return %c0_i32, %c0_i32_0 : i32, i32
  }
  func.func @transform_4(%arg0: i32) -> (i32, i32) {
    %c0_i32 = arith.constant 0 : i32
    %c0_i32_0 = arith.constant 0 : i32
    return %arg0, %c0_i32 : i32, i32
  }
}

module attributes {stable_mosaic.version = 11 : i64} {
  func.func @_mm_kernel(%arg0: i32, %arg1: memref<2x4xf32, #tpu.memory_space<vmem>>, %arg2: memref<4x64xf32, #tpu.memory_space<vmem>>, %arg3: memref<1x64xf32, #tpu.memory_space<vmem>>, %arg4: memref<1x64xf32, #tpu.memory_space<vmem>>, %arg5: memref<2x64xf32, #tpu.memory_space<vmem>>) attributes {dimension_semantics = [#tpu.dimension_semantics<parallel>], iteration_bounds = array<i64: 1>, scalar_prefetch = 0 : i64, scratch_operands = 0 : i64, tpu.core_type = #tpu.core_type<tc>, window_params = [{transform_indices = @transform_0, window_bounds = array<i64: 2, 4>}, {pipeline_mode = #tpu.pipeline_mode<synchronous>, transform_indices = @transform_1, window_bounds = array<i64: 4, 64>}, {pipeline_mode = #tpu.pipeline_mode<synchronous>, transform_indices = @transform_2, window_bounds = array<i64: 1, 64>}, {pipeline_mode = #tpu.pipeline_mode<synchronous>, transform_indices = @transform_3, window_bounds = array<i64: 1, 64>}, {transform_indices = @transform_4, window_bounds = array<i64: 2, 64>}]} {
    %c0 = arith.constant 0 : index
    %c0_0 = arith.constant 0 : index
    %0 = vector.load %arg1[%c0, %c0_0] : memref<2x4xf32, #tpu.memory_space<vmem>>, vector<2x4xf32>
    %1 = arith.truncf %0 : vector<2x4xf32> to vector<2x4xbf16>
    %c0_1 = arith.constant 0 : index
    %c0_2 = arith.constant 0 : index
    %2 = vector.load %arg2[%c0_1, %c0_2] : memref<4x64xf32, #tpu.memory_space<vmem>>, vector<4x64xf32>
    %3 = arith.truncf %2 : vector<4x64xf32> to vector<4x64xbf16>
    %cst = arith.constant dense<0.000000e+00> : vector<2x64xf32>
    %4 = tpu.matmul %1, %3, %cst {dimension_numbers = #tpu.dot_dimension_numbers<[1], [0], [0], [1], [0, 0, 1, 1], [], []>} : vector<2x4xbf16>, vector<4x64xbf16>, vector<2x64xf32> -> vector<2x64xf32>
    %c0_3 = arith.constant 0 : index
    %c0_4 = arith.constant 0 : index
    %5 = vector.load %arg3[%c0_3, %c0_4] : memref<1x64xf32, #tpu.memory_space<vmem>>, vector<1x64xf32>
    %6 = vector.broadcast %5 : vector<1x64xf32> to vector<2x64xf32>
    %7 = arith.mulf %4, %6 : vector<2x64xf32>
    %c0_5 = arith.constant 0 : index
    %c0_6 = arith.constant 0 : index
    %8 = vector.load %arg4[%c0_5, %c0_6] : memref<1x64xf32, #tpu.memory_space<vmem>>, vector<1x64xf32>
    %9 = vector.broadcast %8 : vector<1x64xf32> to vector<2x64xf32>
    %10 = arith.addf %7, %9 : vector<2x64xf32>
    %cst_7 = arith.constant 0.000000e+00 : f32
    %11 = vector.broadcast %cst_7 : f32 to vector<2x64xf32>
    %12 = arith.subf %11, %10 : vector<2x64xf32>
    %13 = math.exp %12 : vector<2x64xf32>
    %cst_8 = arith.constant 1.000000e+00 : f32
    %14 = vector.broadcast %cst_8 : f32 to vector<2x64xf32>
    %15 = arith.addf %14, %13 : vector<2x64xf32>
    %cst_9 = arith.constant 1.000000e+00 : f32
    %16 = vector.broadcast %cst_9 : f32 to vector<2x64xf32>
    %17 = arith.divf %16, %15 : vector<2x64xf32>
    %c0_10 = arith.constant 0 : index
    %c0_11 = arith.constant 0 : index
    %18 = vector.load %arg5[%c0_10, %c0_11] : memref<2x64xf32, #tpu.memory_space<vmem>>, vector<2x64xf32>
    tpu.vector_store %arg5[%c0_10, %c0_11], %17 {strides = array<i32>} : memref<2x64xf32, #tpu.memory_space<vmem>>, vector<2x64xf32>,
    return
  }
  func.func @transform_0(%arg0: i32) -> (i32, i32) {
    %c0_i32 = arith.constant 0 : i32
    %c0_i32_0 = arith.constant 0 : i32
    return %arg0, %c0_i32 : i32, i32
  }
  func.func @transform_1(%arg0: i32) -> (i32, i32) {
    %c0_i32 = arith.constant 0 : i32
    %c0_i32_0 = arith.constant 0 : i32
    %c0_i32_1 = arith.constant 0 : i32
    return %c0_i32, %c0_i32_0 : i32, i32
  }
  func.func @transform_2(%arg0: i32) -> (i32, i32) {
    %c0_i32 = arith.constant 0 : i32
    %c0_i32_0 = arith.constant 0 : i32
    %c0_i32_1 = arith.constant 0 : i32
    return %c0_i32, %c0_i32_0 : i32, i32
  }
  func.func @transform_3(%arg0: i32) -> (i32, i32) {
    %c0_i32 = arith.constant 0 : i32
    %c0_i32_0 = arith.constant 0 : i32
    %c0_i32_1 = arith.constant 0 : i32
    return %c0_i32, %c0_i32_0 : i32, i32
  }
  func.func @transform_4(%arg0: i32) -> (i32, i32) {
    %c0_i32 = arith.constant 0 : i32
    %c0_i32_0 = arith.constant 0 : i32
    return %arg0, %c0_i32 : i32, i32
  }
}

module attributes {stable_mosaic.version = 11 : i64} {
  func.func @_se_proj_kernel(%arg0: i32, %arg1: i32, %arg2: memref<1x16x64xf32, #tpu.memory_space<vmem>>, %arg3: memref<1x1x64xf32, #tpu.memory_space<vmem>>, %arg4: memref<64x16xf32, #tpu.memory_space<vmem>>, %arg5: memref<1x16xf32, #tpu.memory_space<vmem>>, %arg6: memref<1x16xf32, #tpu.memory_space<vmem>>, %arg7: memref<1x16x16xf32, #tpu.memory_space<vmem>>, %arg8: memref<1x16x16xf32, #tpu.memory_space<vmem>>) attributes {dimension_semantics = [#tpu.dimension_semantics<parallel>, #tpu.dimension_semantics<parallel>], iteration_bounds = array<i64: 2, 1>, scalar_prefetch = 0 : i64, scratch_operands = 0 : i64, tpu.core_type = #tpu.core_type<tc>, window_params = [{transform_indices = @transform_0, window_bounds = array<i64: 1, 16, 64>}, {transform_indices = @transform_1, window_bounds = array<i64: 1, 1, 64>}, {pipeline_mode = #tpu.pipeline_mode<synchronous>, transform_indices = @transform_2, window_bounds = array<i64: 64, 16>}, {pipeline_mode = #tpu.pipeline_mode<synchronous>, transform_indices = @transform_3, window_bounds = array<i64: 1, 16>}, {pipeline_mode = #tpu.pipeline_mode<synchronous>, transform_indices = @transform_4, window_bounds = array<i64: 1, 16>}, {transform_indices = @transform_5, window_bounds = array<i64: 1, 16, 16>}, {transform_indices = @transform_6, window_bounds = array<i64: 1, 16, 16>}]} {
    %c0 = arith.constant 0 : index
    %c0_0 = arith.constant 0 : index
    %c0_1 = arith.constant 0 : index
    %0 = vector.load %arg2[%c0, %c0_0, %c0_1] : memref<1x16x64xf32, #tpu.memory_space<vmem>>, vector<1x16x64xf32>
    %1 = vector.shape_cast %0 : vector<1x16x64xf32> to vector<16x64xf32>
    %c0_2 = arith.constant 0 : index
    %c0_3 = arith.constant 0 : index
    %c0_4 = arith.constant 0 : index
    %2 = vector.load %arg3[%c0_2, %c0_3, %c0_4] : memref<1x1x64xf32, #tpu.memory_space<vmem>>, vector<1x1x64xf32>
    %3 = vector.shape_cast %2 : vector<1x1x64xf32> to vector<1x64xf32>
    %4 = vector.broadcast %3 : vector<1x64xf32> to vector<16x64xf32>
    %5 = arith.mulf %1, %4 : vector<16x64xf32>
    %6 = arith.truncf %5 : vector<16x64xf32> to vector<16x64xbf16>
    %c0_5 = arith.constant 0 : index
    %c0_6 = arith.constant 0 : index
    %7 = vector.load %arg4[%c0_5, %c0_6] : memref<64x16xf32, #tpu.memory_space<vmem>>, vector<64x16xf32>
    %8 = arith.truncf %7 : vector<64x16xf32> to vector<64x16xbf16>
    %cst = arith.constant dense<0.000000e+00> : vector<16x16xf32>
    %9 = tpu.matmul %6, %8, %cst {dimension_numbers = #tpu.dot_dimension_numbers<[1], [0], [0], [1], [0, 0, 1, 1], [], []>} : vector<16x64xbf16>, vector<64x16xbf16>, vector<16x16xf32> -> vector<16x16xf32>
    %c0_7 = arith.constant 0 : index
    %c0_8 = arith.constant 0 : index
    %10 = vector.load %arg5[%c0_7, %c0_8] : memref<1x16xf32, #tpu.memory_space<vmem>>, vector<1x16xf32>
    %11 = vector.broadcast %10 : vector<1x16xf32> to vector<16x16xf32>
    %12 = arith.mulf %9, %11 : vector<16x16xf32>
    %c0_9 = arith.constant 0 : index
    %c0_10 = arith.constant 0 : index
    %13 = vector.load %arg6[%c0_9, %c0_10] : memref<1x16xf32, #tpu.memory_space<vmem>>, vector<1x16xf32>
    %14 = vector.broadcast %13 : vector<1x16xf32> to vector<16x16xf32>
    %15 = arith.addf %12, %14 : vector<16x16xf32>
    %c0_11 = arith.constant 0 : index
    %c0_12 = arith.constant 0 : index
    %c0_13 = arith.constant 0 : index
    %16 = vector.load %arg7[%c0_11, %c0_12, %c0_13] : memref<1x16x16xf32, #tpu.memory_space<vmem>>, vector<1x16x16xf32>
    %17 = vector.shape_cast %16 : vector<1x16x16xf32> to vector<16x16xf32>
    %18 = arith.addf %15, %17 : vector<16x16xf32>
    %19 = vector.shape_cast %18 : vector<16x16xf32> to vector<1x16x16xf32>
    %c0_14 = arith.constant 0 : index
    %c0_15 = arith.constant 0 : index
    %c0_16 = arith.constant 0 : index
    %20 = vector.load %arg8[%c0_14, %c0_15, %c0_16] : memref<1x16x16xf32, #tpu.memory_space<vmem>>, vector<1x16x16xf32>
    tpu.vector_store %arg8[%c0_14, %c0_15, %c0_16], %19 {strides = array<i32>} : memref<1x16x16xf32, #tpu.memory_space<vmem>>, vector<1x16x16xf32>,
    return
  }
  func.func @transform_0(%arg0: i32, %arg1: i32) -> (i32, i32, i32) {
    %c0_i32 = arith.constant 0 : i32
    %c0_i32_0 = arith.constant 0 : i32
    return %arg0, %arg1, %c0_i32 : i32, i32, i32
  }
  func.func @transform_1(%arg0: i32, %arg1: i32) -> (i32, i32, i32) {
    %c0_i32 = arith.constant 0 : i32
    %c0_i32_0 = arith.constant 0 : i32
    %c0_i32_1 = arith.constant 0 : i32
    return %arg0, %c0_i32, %c0_i32_0 : i32, i32, i32
  }
  func.func @transform_2(%arg0: i32, %arg1: i32) -> (i32, i32) {
    %c0_i32 = arith.constant 0 : i32
    %c0_i32_0 = arith.constant 0 : i32
    %c0_i32_1 = arith.constant 0 : i32
    return %c0_i32, %c0_i32_0 : i32, i32
  }
  func.func @transform_3(%arg0: i32, %arg1: i32) -> (i32, i32) {
    %c0_i32 = arith.constant 0 : i32
    %c0_i32_0 = arith.constant 0 : i32
    %c0_i32_1 = arith.constant 0 : i32
    return %c0_i32, %c0_i32_0 : i32, i32
  }
  func.func @transform_4(%arg0: i32, %arg1: i32) -> (i32, i32) {
    %c0_i32 = arith.constant 0 : i32
    %c0_i32_0 = arith.constant 0 : i32
    %c0_i32_1 = arith.constant 0 : i32
    return %c0_i32, %c0_i32_0 : i32, i32
  }
  func.func @transform_5(%arg0: i32, %arg1: i32) -> (i32, i32, i32) {
    %c0_i32 = arith.constant 0 : i32
    %c0_i32_0 = arith.constant 0 : i32
    return %arg0, %arg1, %c0_i32 : i32, i32, i32
  }
  func.func @transform_6(%arg0: i32, %arg1: i32) -> (i32, i32, i32) {
    %c0_i32 = arith.constant 0 : i32
    %c0_i32_0 = arith.constant 0 : i32
    return %arg0, %arg1, %c0_i32 : i32, i32, i32
  }
}

module attributes {stable_mosaic.version = 11 : i64} {
  func.func @_ln_qkv_kernel(%arg0: i32, %arg1: i32, %arg2: memref<8x16xf32, #tpu.memory_space<vmem>>, %arg3: memref<1x16xf32, #tpu.memory_space<vmem>>, %arg4: memref<1x16xf32, #tpu.memory_space<vmem>>, %arg5: memref<1x16x32xf32, #tpu.memory_space<vmem>>, %arg6: memref<1x8x32xf32, #tpu.memory_space<vmem>>, %arg7: memref<8x16xbf16, #tpu.memory_space<vmem>>) attributes {dimension_semantics = [#tpu.dimension_semantics<parallel>, #tpu.dimension_semantics<arbitrary>], iteration_bounds = array<i64: 1, 24>, scalar_prefetch = 0 : i64, scratch_operands = 1 : i64, tpu.core_type = #tpu.core_type<tc>, window_params = [{transform_indices = @transform_0, window_bounds = array<i64: 8, 16>}, {pipeline_mode = #tpu.pipeline_mode<synchronous>, transform_indices = @transform_1, window_bounds = array<i64: 1, 16>}, {pipeline_mode = #tpu.pipeline_mode<synchronous>, transform_indices = @transform_2, window_bounds = array<i64: 1, 16>}, {transform_indices = @transform_3, window_bounds = array<i64: 1, 16, 32>}, {transform_indices = @transform_4, window_bounds = array<i64: 1, 8, 32>}]} {
    %c0_i32 = arith.constant 0 : i32
    %0 = arith.cmpi eq, %arg1, %c0_i32 : i32
    %1 = arith.extui %0 : i1 to i32
    %c0_i32_0 = arith.constant 0 : i32
    %2 = arith.cmpi ne, %1, %c0_i32_0 : i32
    scf.if %2 {
      %c0_8 = arith.constant 0 : index
      %c0_9 = arith.constant 0 : index
      %10 = vector.load %arg2[%c0_8, %c0_9] : memref<8x16xf32, #tpu.memory_space<vmem>>, vector<8x16xf32>
      %cst_10 = arith.constant dense<0.000000e+00> : vector<8xf32>
      %11 = vector.multi_reduction <add>, %10, %cst_10 [1] : vector<8x16xf32> to vector<8xf32>
      %12 = vector.shape_cast %11 : vector<8xf32> to vector<8x1xf32>
      %cst_11 = arith.constant 1.600000e+01 : f32
      %13 = vector.broadcast %cst_11 : f32 to vector<8x1xf32>
      %14 = arith.divf %12, %13 : vector<8x1xf32>
      %15 = vector.broadcast %14 : vector<8x1xf32> to vector<8x16xf32>
      %16 = arith.subf %10, %15 : vector<8x16xf32>
      %17 = arith.mulf %16, %16 : vector<8x16xf32>
      %cst_12 = arith.constant dense<0.000000e+00> : vector<8xf32>
      %18 = vector.multi_reduction <add>, %17, %cst_12 [1] : vector<8x16xf32> to vector<8xf32>
      %19 = vector.shape_cast %18 : vector<8xf32> to vector<8x1xf32>
      %cst_13 = arith.constant 1.600000e+01 : f32
      %20 = vector.broadcast %cst_13 : f32 to vector<8x1xf32>
      %21 = arith.divf %19, %20 : vector<8x1xf32>
      %22 = vector.broadcast %14 : vector<8x1xf32> to vector<8x16xf32>
      %23 = arith.subf %10, %22 : vector<8x16xf32>
      %cst_14 = arith.constant 9.99999974E-6 : f32
      %24 = vector.broadcast %cst_14 : f32 to vector<8x1xf32>
      %25 = arith.addf %21, %24 : vector<8x1xf32>
      %26 = math.rsqrt %25 : vector<8x1xf32>
      %27 = vector.broadcast %26 : vector<8x1xf32> to vector<8x16xf32>
      %28 = arith.mulf %23, %27 : vector<8x16xf32>
      %c0_15 = arith.constant 0 : index
      %c0_16 = arith.constant 0 : index
      %29 = vector.load %arg3[%c0_15, %c0_16] : memref<1x16xf32, #tpu.memory_space<vmem>>, vector<1x16xf32>
      %30 = vector.broadcast %29 : vector<1x16xf32> to vector<8x16xf32>
      %31 = arith.mulf %28, %30 : vector<8x16xf32>
      %c0_17 = arith.constant 0 : index
      %c0_18 = arith.constant 0 : index
      %32 = vector.load %arg4[%c0_17, %c0_18] : memref<1x16xf32, #tpu.memory_space<vmem>>, vector<1x16xf32>
      %33 = vector.broadcast %32 : vector<1x16xf32> to vector<8x16xf32>
      %34 = arith.addf %31, %33 : vector<8x16xf32>
      %35 = arith.truncf %34 : vector<8x16xf32> to vector<8x16xbf16>
      %c0_19 = arith.constant 0 : index
      %c0_20 = arith.constant 0 : index
      %36 = vector.load %arg7[%c0_19, %c0_20] : memref<8x16xbf16, #tpu.memory_space<vmem>>, vector<8x16xbf16>
      tpu.vector_store %arg7[%c0_19, %c0_20], %35 {strides = array<i32>} : memref<8x16xbf16, #tpu.memory_space<vmem>>, vector<8x16xbf16>,
    } else {
    }
    %c0 = arith.constant 0 : index
    %c0_1 = arith.constant 0 : index
    %3 = vector.load %arg7[%c0, %c0_1] : memref<8x16xbf16, #tpu.memory_space<vmem>>, vector<8x16xbf16>
    %c0_2 = arith.constant 0 : index
    %c0_3 = arith.constant 0 : index
    %c0_4 = arith.constant 0 : index
    %4 = vector.load %arg5[%c0_2, %c0_3, %c0_4] : memref<1x16x32xf32, #tpu.memory_space<vmem>>, vector<1x16x32xf32>
    %5 = vector.shape_cast %4 : vector<1x16x32xf32> to vector<16x32xf32>
    %6 = arith.truncf %5 : vector<16x32xf32> to vector<16x32xbf16>
    %cst = arith.constant dense<0.000000e+00> : vector<8x32xf32>
    %7 = tpu.matmul %3, %6, %cst {dimension_numbers = #tpu.dot_dimension_numbers<[1], [0], [0], [1], [0, 0, 1, 1], [], []>} : vector<8x16xbf16>, vector<16x32xbf16>, vector<8x32xf32> -> vector<8x32xf32>
    %8 = vector.shape_cast %7 : vector<8x32xf32> to vector<1x8x32xf32>
    %c0_5 = arith.constant 0 : index
    %c0_6 = arith.constant 0 : index
    %c0_7 = arith.constant 0 : index
    %9 = vector.load %arg6[%c0_5, %c0_6, %c0_7] : memref<1x8x32xf32, #tpu.memory_space<vmem>>, vector<1x8x32xf32>
    tpu.vector_store %arg6[%c0_5, %c0_6, %c0_7], %8 {strides = array<i32>} : memref<1x8x32xf32, #tpu.memory_space<vmem>>, vector<1x8x32xf32>,
    return
  }
  func.func @transform_0(%arg0: i32, %arg1: i32) -> (i32, i32) {
    %c0_i32 = arith.constant 0 : i32
    %c0_i32_0 = arith.constant 0 : i32
    return %arg0, %c0_i32 : i32, i32
  }
  func.func @transform_1(%arg0: i32, %arg1: i32) -> (i32, i32) {
    %c0_i32 = arith.constant 0 : i32
    %c0_i32_0 = arith.constant 0 : i32
    %c0_i32_1 = arith.constant 0 : i32
    return %c0_i32, %c0_i32_0 : i32, i32
  }
  func.func @transform_2(%arg0: i32, %arg1: i32) -> (i32, i32) {
    %c0_i32 = arith.constant 0 : i32
    %c0_i32_0 = arith.constant 0 : i32
    %c0_i32_1 = arith.constant 0 : i32
    return %c0_i32, %c0_i32_0 : i32, i32
  }
  func.func @transform_3(%arg0: i32, %arg1: i32) -> (i32, i32, i32) {
    %c0_i32 = arith.constant 0 : i32
    %c0_i32_0 = arith.constant 0 : i32
    %c0_i32_1 = arith.constant 0 : i32
    return %arg1, %c0_i32, %c0_i32_0 : i32, i32, i32
  }
  func.func @transform_4(%arg0: i32, %arg1: i32) -> (i32, i32, i32) {
    %c0_i32 = arith.constant 0 : i32
    %c0_i32_0 = arith.constant 0 : i32
    return %arg1, %arg0, %c0_i32 : i32, i32, i32
  }
}

module attributes {stable_mosaic.version = 11 : i64} {
  func.func @_maxpool_kernel(%arg0: i32, %arg1: memref<9x8x16xf32, #tpu.memory_space<vmem>>, %arg2: memref<8x16xf32, #tpu.memory_space<vmem>>) attributes {dimension_semantics = [#tpu.dimension_semantics<parallel>], iteration_bounds = array<i64: 1>, scalar_prefetch = 0 : i64, scratch_operands = 0 : i64, tpu.core_type = #tpu.core_type<tc>, window_params = [{transform_indices = @transform_0, window_bounds = array<i64: 9, 8, 16>}, {transform_indices = @transform_1, window_bounds = array<i64: 8, 16>}]} {
    %c0 = arith.constant 0 : index
    %c0_0 = arith.constant 0 : index
    %c0_1 = arith.constant 0 : index
    %0 = vector.load %arg1[%c0, %c0_0, %c0_1] : memref<9x8x16xf32, #tpu.memory_space<vmem>>, vector<1x8x16xf32>
    %1 = vector.shape_cast %0 : vector<1x8x16xf32> to vector<8x16xf32>
    %c1 = arith.constant 1 : index
    %c0_2 = arith.constant 0 : index
    %c0_3 = arith.constant 0 : index
    %2 = vector.load %arg1[%c1, %c0_2, %c0_3] : memref<9x8x16xf32, #tpu.memory_space<vmem>>, vector<1x8x16xf32>
    %3 = vector.shape_cast %2 : vector<1x8x16xf32> to vector<8x16xf32>
    %4 = arith.maximumf %1, %3 : vector<8x16xf32>
    %c2 = arith.constant 2 : index
    %c0_4 = arith.constant 0 : index
    %c0_5 = arith.constant 0 : index
    %5 = vector.load %arg1[%c2, %c0_4, %c0_5] : memref<9x8x16xf32, #tpu.memory_space<vmem>>, vector<1x8x16xf32>
    %6 = vector.shape_cast %5 : vector<1x8x16xf32> to vector<8x16xf32>
    %7 = arith.maximumf %4, %6 : vector<8x16xf32>
    %c3 = arith.constant 3 : index
    %c0_6 = arith.constant 0 : index
    %c0_7 = arith.constant 0 : index
    %8 = vector.load %arg1[%c3, %c0_6, %c0_7] : memref<9x8x16xf32, #tpu.memory_space<vmem>>, vector<1x8x16xf32>
    %9 = vector.shape_cast %8 : vector<1x8x16xf32> to vector<8x16xf32>
    %10 = arith.maximumf %7, %9 : vector<8x16xf32>
    %c4 = arith.constant 4 : index
    %c0_8 = arith.constant 0 : index
    %c0_9 = arith.constant 0 : index
    %11 = vector.load %arg1[%c4, %c0_8, %c0_9] : memref<9x8x16xf32, #tpu.memory_space<vmem>>, vector<1x8x16xf32>
    %12 = vector.shape_cast %11 : vector<1x8x16xf32> to vector<8x16xf32>
    %13 = arith.maximumf %10, %12 : vector<8x16xf32>
    %c5 = arith.constant 5 : index
    %c0_10 = arith.constant 0 : index
    %c0_11 = arith.constant 0 : index
    %14 = vector.load %arg1[%c5, %c0_10, %c0_11] : memref<9x8x16xf32, #tpu.memory_space<vmem>>, vector<1x8x16xf32>
    %15 = vector.shape_cast %14 : vector<1x8x16xf32> to vector<8x16xf32>
    %16 = arith.maximumf %13, %15 : vector<8x16xf32>
    %c6 = arith.constant 6 : index
    %c0_12 = arith.constant 0 : index
    %c0_13 = arith.constant 0 : index
    %17 = vector.load %arg1[%c6, %c0_12, %c0_13] : memref<9x8x16xf32, #tpu.memory_space<vmem>>, vector<1x8x16xf32>
    %18 = vector.shape_cast %17 : vector<1x8x16xf32> to vector<8x16xf32>
    %19 = arith.maximumf %16, %18 : vector<8x16xf32>
    %c7 = arith.constant 7 : index
    %c0_14 = arith.constant 0 : index
    %c0_15 = arith.constant 0 : index
    %20 = vector.load %arg1[%c7, %c0_14, %c0_15] : memref<9x8x16xf32, #tpu.memory_space<vmem>>, vector<1x8x16xf32>
    %21 = vector.shape_cast %20 : vector<1x8x16xf32> to vector<8x16xf32>
    %22 = arith.maximumf %19, %21 : vector<8x16xf32>
    %c8 = arith.constant 8 : index
    %c0_16 = arith.constant 0 : index
    %c0_17 = arith.constant 0 : index
    %23 = vector.load %arg1[%c8, %c0_16, %c0_17] : memref<9x8x16xf32, #tpu.memory_space<vmem>>, vector<1x8x16xf32>
    %24 = vector.shape_cast %23 : vector<1x8x16xf32> to vector<8x16xf32>
    %25 = arith.maximumf %22, %24 : vector<8x16xf32>
    %c0_18 = arith.constant 0 : index
    %c0_19 = arith.constant 0 : index
    %26 = vector.load %arg2[%c0_18, %c0_19] : memref<8x16xf32, #tpu.memory_space<vmem>>, vector<8x16xf32>
    tpu.vector_store %arg2[%c0_18, %c0_19], %25 {strides = array<i32>} : memref<8x16xf32, #tpu.memory_space<vmem>>, vector<8x16xf32>,
    return
  }
  func.func @transform_0(%arg0: i32) -> (i32, i32, i32) {
    %c0_i32 = arith.constant 0 : i32
    %c0_i32_0 = arith.constant 0 : i32
    %c0_i32_1 = arith.constant 0 : i32
    return %c0_i32, %arg0, %c0_i32_0 : i32, i32, i32
  }
  func.func @transform_1(%arg0: i32) -> (i32, i32) {
    %c0_i32 = arith.constant 0 : i32
    %c0_i32_0 = arith.constant 0 : i32
    return %arg0, %c0_i32 : i32, i32
  }
}

module attributes {stable_mosaic.version = 11 : i64} {
  func.func @_attn_kernel(%arg0: i32, %arg1: i32, %arg2: memref<1x1x4x32xf32, #tpu.memory_space<vmem>>, %arg3: memref<1x1x4x32xf32, #tpu.memory_space<vmem>>, %arg4: memref<1x1x4x32xf32, #tpu.memory_space<vmem>>, %arg5: memref<1x4x4xf32, #tpu.memory_space<vmem>>, %arg6: memref<1x1x4x32xf32, #tpu.memory_space<vmem>>) attributes {dimension_semantics = [#tpu.dimension_semantics<parallel>, #tpu.dimension_semantics<parallel>], iteration_bounds = array<i64: 2, 8>, scalar_prefetch = 0 : i64, scratch_operands = 0 : i64, tpu.core_type = #tpu.core_type<tc>, window_params = [{transform_indices = @transform_0, window_bounds = array<i64: 1, 1, 4, 32>}, {transform_indices = @transform_1, window_bounds = array<i64: 1, 1, 4, 32>}, {transform_indices = @transform_2, window_bounds = array<i64: 1, 1, 4, 32>}, {transform_indices = @transform_3, window_bounds = array<i64: 1, 4, 4>}, {transform_indices = @transform_4, window_bounds = array<i64: 1, 1, 4, 32>}]} {
    %c0 = arith.constant 0 : index
    %c0_0 = arith.constant 0 : index
    %c0_1 = arith.constant 0 : index
    %c0_2 = arith.constant 0 : index
    %0 = vector.load %arg2[%c0, %c0_0, %c0_1, %c0_2] : memref<1x1x4x32xf32, #tpu.memory_space<vmem>>, vector<1x1x4x32xf32>
    %1 = vector.shape_cast %0 : vector<1x1x4x32xf32> to vector<4x32xf32>
    %2 = arith.truncf %1 : vector<4x32xf32> to vector<4x32xbf16>
    %c0_3 = arith.constant 0 : index
    %c0_4 = arith.constant 0 : index
    %c0_5 = arith.constant 0 : index
    %c0_6 = arith.constant 0 : index
    %3 = vector.load %arg3[%c0_3, %c0_4, %c0_5, %c0_6] : memref<1x1x4x32xf32, #tpu.memory_space<vmem>>, vector<1x1x4x32xf32>
    %4 = vector.shape_cast %3 : vector<1x1x4x32xf32> to vector<4x32xf32>
    %5 = arith.truncf %4 : vector<4x32xf32> to vector<4x32xbf16>
    %c0_7 = arith.constant 0 : index
    %c0_8 = arith.constant 0 : index
    %c0_9 = arith.constant 0 : index
    %c0_10 = arith.constant 0 : index
    %6 = vector.load %arg4[%c0_7, %c0_8, %c0_9, %c0_10] : memref<1x1x4x32xf32, #tpu.memory_space<vmem>>, vector<1x1x4x32xf32>
    %7 = vector.shape_cast %6 : vector<1x1x4x32xf32> to vector<4x32xf32>
    %8 = arith.truncf %7 : vector<4x32xf32> to vector<4x32xbf16>
    %c0_11 = arith.constant 0 : index
    %c0_12 = arith.constant 0 : index
    %c0_13 = arith.constant 0 : index
    %9 = vector.load %arg5[%c0_11, %c0_12, %c0_13] : memref<1x4x4xf32, #tpu.memory_space<vmem>>, vector<1x4x4xf32>
    %10 = vector.shape_cast %9 : vector<1x4x4xf32> to vector<4x4xf32>
    %cst = arith.constant dense<0.000000e+00> : vector<4x4xf32>
    %11 = tpu.matmul %2, %5, %cst {dimension_numbers = #tpu.dot_dimension_numbers<[1], [1], [0], [0], [0, 0, 1, 0], [], []>} : vector<4x32xbf16>, vector<4x32xbf16>, vector<4x4xf32> -> vector<4x4xf32>
    %cst_14 = arith.constant 0.176776692 : f32
    %12 = vector.broadcast %cst_14 : f32 to vector<4x4xf32>
    %13 = arith.mulf %11, %12 : vector<4x4xf32>
    %14 = arith.addf %13, %10 : vector<4x4xf32>
    %cst_15 = arith.constant dense<0xFF800000> : vector<4xf32>
    %15 = vector.multi_reduction <maximumf>, %14, %cst_15 [1] : vector<4x4xf32> to vector<4xf32>
    %16 = vector.shape_cast %15 : vector<4xf32> to vector<4x1xf32>
    %17 = vector.broadcast %16 : vector<4x1xf32> to vector<4x4xf32>
    %18 = arith.subf %14, %17 : vector<4x4xf32>
    %19 = math.exp %18 : vector<4x4xf32>
    %cst_16 = arith.constant dense<0.000000e+00> : vector<4xf32>
    %20 = vector.multi_reduction <add>, %19, %cst_16 [1] : vector<4x4xf32> to vector<4xf32>
    %21 = vector.shape_cast %20 : vector<4xf32> to vector<4x1xf32>
    %22 = tpu.reciprocal %21 {approx = true} : vector<4x1xf32> -> vector<4x1xf32>
    %23 = vector.broadcast %22 : vector<4x1xf32> to vector<4x4xf32>
    %24 = arith.mulf %19, %23 : vector<4x4xf32>
    %25 = arith.truncf %24 : vector<4x4xf32> to vector<4x4xbf16>
    %cst_17 = arith.constant dense<0.000000e+00> : vector<4x32xf32>
    %26 = tpu.matmul %25, %8, %cst_17 {dimension_numbers = #tpu.dot_dimension_numbers<[1], [0], [0], [1], [0, 0, 1, 1], [], []>} : vector<4x4xbf16>, vector<4x32xbf16>, vector<4x32xf32> -> vector<4x32xf32>
    %27 = vector.shape_cast %26 : vector<4x32xf32> to vector<1x1x4x32xf32>
    %c0_18 = arith.constant 0 : index
    %c0_19 = arith.constant 0 : index
    %c0_20 = arith.constant 0 : index
    %c0_21 = arith.constant 0 : index
    %28 = vector.load %arg6[%c0_18, %c0_19, %c0_20, %c0_21] : memref<1x1x4x32xf32, #tpu.memory_space<vmem>>, vector<1x1x4x32xf32>
    tpu.vector_store %arg6[%c0_18, %c0_19, %c0_20, %c0_21], %27 {strides = array<i32>} : memref<1x1x4x32xf32, #tpu.memory_space<vmem>>, vector<1x1x4x32xf32>,
    return
  }
  func.func @transform_0(%arg0: i32, %arg1: i32) -> (i32, i32, i32, i32) {
    %c0_i32 = arith.constant 0 : i32
    %c0_i32_0 = arith.constant 0 : i32
    %c0_i32_1 = arith.constant 0 : i32
    return %arg1, %arg0, %c0_i32, %c0_i32_0 : i32, i32, i32, i32
  }
  func.func @transform_1(%arg0: i32, %arg1: i32) -> (i32, i32, i32, i32) {
    %c8_i32 = arith.constant 8 : i32
    %0 = arith.addi %arg1, %c8_i32 : i32
    %c0_i32 = arith.constant 0 : i32
    %c0_i32_0 = arith.constant 0 : i32
    %c0_i32_1 = arith.constant 0 : i32
    return %0, %arg0, %c0_i32, %c0_i32_0 : i32, i32, i32, i32
  }
  func.func @transform_2(%arg0: i32, %arg1: i32) -> (i32, i32, i32, i32) {
    %c16_i32 = arith.constant 16 : i32
    %0 = arith.addi %arg1, %c16_i32 : i32
    %c0_i32 = arith.constant 0 : i32
    %c0_i32_0 = arith.constant 0 : i32
    %c0_i32_1 = arith.constant 0 : i32
    return %0, %arg0, %c0_i32, %c0_i32_0 : i32, i32, i32, i32
  }
  func.func @transform_3(%arg0: i32, %arg1: i32) -> (i32, i32, i32) {
    %c0_i32 = arith.constant 0 : i32
    %c0_i32_0 = arith.constant 0 : i32
    %c0_i32_1 = arith.constant 0 : i32
    return %arg1, %c0_i32, %c0_i32_0 : i32, i32, i32
  }
  func.func @transform_4(%arg0: i32, %arg1: i32) -> (i32, i32, i32, i32) {
    %c0_i32 = arith.constant 0 : i32
    %c0_i32_0 = arith.constant 0 : i32
    %c0_i32_1 = arith.constant 0 : i32
    return %arg1, %arg0, %c0_i32, %c0_i32_0 : i32, i32, i32, i32
  }
}

module attributes {stable_mosaic.version = 11 : i64} {
  func.func @_mm_kernel(%arg0: i32, %arg1: memref<8x16xf32, #tpu.memory_space<vmem>>, %arg2: memref<16x32xf32, #tpu.memory_space<vmem>>, %arg3: memref<1x32xf32, #tpu.memory_space<vmem>>, %arg4: memref<1x32xf32, #tpu.memory_space<vmem>>, %arg5: memref<8x32xf32, #tpu.memory_space<vmem>>) attributes {dimension_semantics = [#tpu.dimension_semantics<parallel>], iteration_bounds = array<i64: 1>, scalar_prefetch = 0 : i64, scratch_operands = 0 : i64, tpu.core_type = #tpu.core_type<tc>, window_params = [{transform_indices = @transform_0, window_bounds = array<i64: 8, 16>}, {pipeline_mode = #tpu.pipeline_mode<synchronous>, transform_indices = @transform_1, window_bounds = array<i64: 16, 32>}, {pipeline_mode = #tpu.pipeline_mode<synchronous>, transform_indices = @transform_2, window_bounds = array<i64: 1, 32>}, {pipeline_mode = #tpu.pipeline_mode<synchronous>, transform_indices = @transform_3, window_bounds = array<i64: 1, 32>}, {transform_indices = @transform_4, window_bounds = array<i64: 8, 32>}]} {
    %c0 = arith.constant 0 : index
    %c0_0 = arith.constant 0 : index
    %0 = vector.load %arg1[%c0, %c0_0] : memref<8x16xf32, #tpu.memory_space<vmem>>, vector<8x16xf32>
    %1 = arith.truncf %0 : vector<8x16xf32> to vector<8x16xbf16>
    %c0_1 = arith.constant 0 : index
    %c0_2 = arith.constant 0 : index
    %2 = vector.load %arg2[%c0_1, %c0_2] : memref<16x32xf32, #tpu.memory_space<vmem>>, vector<16x32xf32>
    %3 = arith.truncf %2 : vector<16x32xf32> to vector<16x32xbf16>
    %cst = arith.constant dense<0.000000e+00> : vector<8x32xf32>
    %4 = tpu.matmul %1, %3, %cst {dimension_numbers = #tpu.dot_dimension_numbers<[1], [0], [0], [1], [0, 0, 1, 1], [], []>} : vector<8x16xbf16>, vector<16x32xbf16>, vector<8x32xf32> -> vector<8x32xf32>
    %c0_3 = arith.constant 0 : index
    %c0_4 = arith.constant 0 : index
    %5 = vector.load %arg3[%c0_3, %c0_4] : memref<1x32xf32, #tpu.memory_space<vmem>>, vector<1x32xf32>
    %6 = vector.broadcast %5 : vector<1x32xf32> to vector<8x32xf32>
    %7 = arith.mulf %4, %6 : vector<8x32xf32>
    %c0_5 = arith.constant 0 : index
    %c0_6 = arith.constant 0 : index
    %8 = vector.load %arg4[%c0_5, %c0_6] : memref<1x32xf32, #tpu.memory_space<vmem>>, vector<1x32xf32>
    %9 = vector.broadcast %8 : vector<1x32xf32> to vector<8x32xf32>
    %10 = arith.addf %7, %9 : vector<8x32xf32>
    %c0_7 = arith.constant 0 : index
    %c0_8 = arith.constant 0 : index
    %11 = vector.load %arg5[%c0_7, %c0_8] : memref<8x32xf32, #tpu.memory_space<vmem>>, vector<8x32xf32>
    tpu.vector_store %arg5[%c0_7, %c0_8], %10 {strides = array<i32>} : memref<8x32xf32, #tpu.memory_space<vmem>>, vector<8x32xf32>,
    return
  }
  func.func @transform_0(%arg0: i32) -> (i32, i32) {
    %c0_i32 = arith.constant 0 : i32
    %c0_i32_0 = arith.constant 0 : i32
    return %arg0, %c0_i32 : i32, i32
  }
  func.func @transform_1(%arg0: i32) -> (i32, i32) {
    %c0_i32 = arith.constant 0 : i32
    %c0_i32_0 = arith.constant 0 : i32
    %c0_i32_1 = arith.constant 0 : i32
    return %c0_i32, %c0_i32_0 : i32, i32
  }
  func.func @transform_2(%arg0: i32) -> (i32, i32) {
    %c0_i32 = arith.constant 0 : i32
    %c0_i32_0 = arith.constant 0 : i32
    %c0_i32_1 = arith.constant 0 : i32
    return %c0_i32, %c0_i32_0 : i32, i32
  }
  func.func @transform_3(%arg0: i32) -> (i32, i32) {
    %c0_i32 = arith.constant 0 : i32
    %c0_i32_0 = arith.constant 0 : i32
    %c0_i32_1 = arith.constant 0 : i32
    return %c0_i32, %c0_i32_0 : i32, i32
  }
  func.func @transform_4(%arg0: i32) -> (i32, i32) {
    %c0_i32 = arith.constant 0 : i32
    %c0_i32_0 = arith.constant 0 : i32
    return %arg0, %c0_i32 : i32, i32
  }
}

module attributes {stable_mosaic.version = 11 : i64} {
  func.func @_hm_kernel(%arg0: i32, %arg1: i32, %arg2: memref<1x8x32xf32, #tpu.memory_space<vmem>>, %arg3: memref<1x32x32xf32, #tpu.memory_space<vmem>>, %arg4: memref<1x32xf32, #tpu.memory_space<vmem>>, %arg5: memref<8x32xf32, #tpu.memory_space<vmem>>, %arg6: memref<8x32xf32, #tpu.memory_space<vmem>>, %arg7: memref<8x32xf32, #tpu.memory_space<vmem>>) attributes {dimension_semantics = [#tpu.dimension_semantics<parallel>, #tpu.dimension_semantics<arbitrary>], iteration_bounds = array<i64: 1, 8>, scalar_prefetch = 0 : i64, scratch_operands = 1 : i64, tpu.core_type = #tpu.core_type<tc>, window_params = [{transform_indices = @transform_0, window_bounds = array<i64: 1, 8, 32>}, {transform_indices = @transform_1, window_bounds = array<i64: 1, 32, 32>}, {pipeline_mode = #tpu.pipeline_mode<synchronous>, transform_indices = @transform_2, window_bounds = array<i64: 1, 32>}, {transform_indices = @transform_3, window_bounds = array<i64: 8, 32>}, {transform_indices = @transform_4, window_bounds = array<i64: 8, 32>}]} {
    %c0_i32 = arith.constant 0 : i32
    %0 = arith.cmpi eq, %arg1, %c0_i32 : i32
    %1 = arith.extui %0 : i1 to i32
    %c0_i32_0 = arith.constant 0 : i32
    %2 = arith.cmpi ne, %1, %c0_i32_0 : i32
    scf.if %2 {
      %cst_11 = arith.constant 0.000000e+00 : f32
      %16 = vector.broadcast %cst_11 : f32 to vector<8x32xf32>
      %c0_12 = arith.constant 0 : index
      %c0_13 = arith.constant 0 : index
      %17 = vector.load %arg7[%c0_12, %c0_13] : memref<8x32xf32, #tpu.memory_space<vmem>>, vector<8x32xf32>
      tpu.vector_store %arg7[%c0_12, %c0_13], %16 {strides = array<i32>} : memref<8x32xf32, #tpu.memory_space<vmem>>, vector<8x32xf32>,
    } else {
    }
    %c0 = arith.constant 0 : index
    %c0_1 = arith.constant 0 : index
    %3 = vector.load %arg7[%c0, %c0_1] : memref<8x32xf32, #tpu.memory_space<vmem>>, vector<8x32xf32>
    %c0_2 = arith.constant 0 : index
    %c0_3 = arith.constant 0 : index
    %c0_4 = arith.constant 0 : index
    %4 = vector.load %arg2[%c0_2, %c0_3, %c0_4] : memref<1x8x32xf32, #tpu.memory_space<vmem>>, vector<1x8x32xf32>
    %5 = vector.shape_cast %4 : vector<1x8x32xf32> to vector<8x32xf32>
    %6 = arith.truncf %5 : vector<8x32xf32> to vector<8x32xbf16>
    %c0_5 = arith.constant 0 : index
    %c0_6 = arith.constant 0 : index
    %c0_7 = arith.constant 0 : index
    %7 = vector.load %arg3[%c0_5, %c0_6, %c0_7] : memref<1x32x32xf32, #tpu.memory_space<vmem>>, vector<1x32x32xf32>
    %8 = vector.shape_cast %7 : vector<1x32x32xf32> to vector<32x32xf32>
    %9 = arith.truncf %8 : vector<32x32xf32> to vector<32x32xbf16>
    %cst = arith.constant dense<0.000000e+00> : vector<8x32xf32>
    %10 = tpu.matmul %6, %9, %cst {dimension_numbers = #tpu.dot_dimension_numbers<[1], [0], [0], [1], [0, 0, 1, 1], [], []>} : vector<8x32xbf16>, vector<32x32xbf16>, vector<8x32xf32> -> vector<8x32xf32>
    %11 = arith.addf %3, %10 : vector<8x32xf32>
    %c0_8 = arith.constant 0 : index
    %c0_9 = arith.constant 0 : index
    %12 = vector.load %arg7[%c0_8, %c0_9] : memref<8x32xf32, #tpu.memory_space<vmem>>, vector<8x32xf32>
    tpu.vector_store %arg7[%c0_8, %c0_9], %11 {strides = array<i32>} : memref<8x32xf32, #tpu.memory_space<vmem>>, vector<8x32xf32>,
    %c7_i32 = arith.constant 7 : i32
    %13 = arith.cmpi eq, %arg1, %c7_i32 : i32
    %14 = arith.extui %13 : i1 to i32
    %c0_i32_10 = arith.constant 0 : i32
    %15 = arith.cmpi ne, %14, %c0_i32_10 : i32
    scf.if %15 {
      %c0_11 = arith.constant 0 : index
      %c0_12 = arith.constant 0 : index
      %16 = vector.load %arg7[%c0_11, %c0_12] : memref<8x32xf32, #tpu.memory_space<vmem>>, vector<8x32xf32>
      %c0_13 = arith.constant 0 : index
      %c0_14 = arith.constant 0 : index
      %17 = vector.load %arg4[%c0_13, %c0_14] : memref<1x32xf32, #tpu.memory_space<vmem>>, vector<1x32xf32>
      %18 = vector.broadcast %17 : vector<1x32xf32> to vector<8x32xf32>
      %19 = arith.addf %16, %18 : vector<8x32xf32>
      %c0_15 = arith.constant 0 : index
      %c0_16 = arith.constant 0 : index
      %20 = vector.load %arg5[%c0_15, %c0_16] : memref<8x32xf32, #tpu.memory_space<vmem>>, vector<8x32xf32>
      %21 = arith.addf %19, %20 : vector<8x32xf32>
      %c0_17 = arith.constant 0 : index
      %c0_18 = arith.constant 0 : index
      %22 = vector.load %arg6[%c0_17, %c0_18] : memref<8x32xf32, #tpu.memory_space<vmem>>, vector<8x32xf32>
      tpu.vector_store %arg6[%c0_17, %c0_18], %21 {strides = array<i32>} : memref<8x32xf32, #tpu.memory_space<vmem>>, vector<8x32xf32>,
    } else {
    }
    return
  }
  func.func @transform_0(%arg0: i32, %arg1: i32) -> (i32, i32, i32) {
    %c0_i32 = arith.constant 0 : i32
    %c0_i32_0 = arith.constant 0 : i32
    return %arg1, %arg0, %c0_i32 : i32, i32, i32
  }
  func.func @transform_1(%arg0: i32, %arg1: i32) -> (i32, i32, i32) {
    %c0_i32 = arith.constant 0 : i32
    %c0_i32_0 = arith.constant 0 : i32
    %c0_i32_1 = arith.constant 0 : i32
    return %arg1, %c0_i32, %c0_i32_0 : i32, i32, i32
  }
  func.func @transform_2(%arg0: i32, %arg1: i32) -> (i32, i32) {
    %c0_i32 = arith.constant 0 : i32
    %c0_i32_0 = arith.constant 0 : i32
    %c0_i32_1 = arith.constant 0 : i32
    return %c0_i32, %c0_i32_0 : i32, i32
  }
  func.func @transform_3(%arg0: i32, %arg1: i32) -> (i32, i32) {
    %c0_i32 = arith.constant 0 : i32
    %c0_i32_0 = arith.constant 0 : i32
    return %arg0, %c0_i32 : i32, i32
  }
  func.func @transform_4(%arg0: i32, %arg1: i32) -> (i32, i32) {
    %c0_i32 = arith.constant 0 : i32
    %c0_i32_0 = arith.constant 0 : i32
    return %arg0, %c0_i32 : i32, i32
  }
}

module attributes {stable_mosaic.version = 11 : i64} {
  func.func @_ln_mm_kernel(%arg0: i32, %arg1: memref<8x32xf32, #tpu.memory_space<vmem>>, %arg2: memref<1x32xf32, #tpu.memory_space<vmem>>, %arg3: memref<1x32xf32, #tpu.memory_space<vmem>>, %arg4: memref<32x64xf32, #tpu.memory_space<vmem>>, %arg5: memref<1x64xf32, #tpu.memory_space<vmem>>, %arg6: memref<8x64xf32, #tpu.memory_space<vmem>>) attributes {dimension_semantics = [#tpu.dimension_semantics<parallel>], iteration_bounds = array<i64: 1>, scalar_prefetch = 0 : i64, scratch_operands = 0 : i64, tpu.core_type = #tpu.core_type<tc>, window_params = [{transform_indices = @transform_0, window_bounds = array<i64: 8, 32>}, {pipeline_mode = #tpu.pipeline_mode<synchronous>, transform_indices = @transform_1, window_bounds = array<i64: 1, 32>}, {pipeline_mode = #tpu.pipeline_mode<synchronous>, transform_indices = @transform_2, window_bounds = array<i64: 1, 32>}, {pipeline_mode = #tpu.pipeline_mode<synchronous>, transform_indices = @transform_3, window_bounds = array<i64: 32, 64>}, {pipeline_mode = #tpu.pipeline_mode<synchronous>, transform_indices = @transform_4, window_bounds = array<i64: 1, 64>}, {transform_indices = @transform_5, window_bounds = array<i64: 8, 64>}]} {
    %c0 = arith.constant 0 : index
    %c0_0 = arith.constant 0 : index
    %0 = vector.load %arg1[%c0, %c0_0] : memref<8x32xf32, #tpu.memory_space<vmem>>, vector<8x32xf32>
    %cst = arith.constant dense<0.000000e+00> : vector<8xf32>
    %1 = vector.multi_reduction <add>, %0, %cst [1] : vector<8x32xf32> to vector<8xf32>
    %2 = vector.shape_cast %1 : vector<8xf32> to vector<8x1xf32>
    %cst_1 = arith.constant 3.200000e+01 : f32
    %3 = vector.broadcast %cst_1 : f32 to vector<8x1xf32>
    %4 = arith.divf %2, %3 : vector<8x1xf32>
    %5 = vector.broadcast %4 : vector<8x1xf32> to vector<8x32xf32>
    %6 = arith.subf %0, %5 : vector<8x32xf32>
    %7 = arith.mulf %6, %6 : vector<8x32xf32>
    %cst_2 = arith.constant dense<0.000000e+00> : vector<8xf32>
    %8 = vector.multi_reduction <add>, %7, %cst_2 [1] : vector<8x32xf32> to vector<8xf32>
    %9 = vector.shape_cast %8 : vector<8xf32> to vector<8x1xf32>
    %cst_3 = arith.constant 3.200000e+01 : f32
    %10 = vector.broadcast %cst_3 : f32 to vector<8x1xf32>
    %11 = arith.divf %9, %10 : vector<8x1xf32>
    %12 = vector.broadcast %4 : vector<8x1xf32> to vector<8x32xf32>
    %13 = arith.subf %0, %12 : vector<8x32xf32>
    %cst_4 = arith.constant 9.99999974E-6 : f32
    %14 = vector.broadcast %cst_4 : f32 to vector<8x1xf32>
    %15 = arith.addf %11, %14 : vector<8x1xf32>
    %16 = math.rsqrt %15 : vector<8x1xf32>
    %17 = vector.broadcast %16 : vector<8x1xf32> to vector<8x32xf32>
    %18 = arith.mulf %13, %17 : vector<8x32xf32>
    %c0_5 = arith.constant 0 : index
    %c0_6 = arith.constant 0 : index
    %19 = vector.load %arg2[%c0_5, %c0_6] : memref<1x32xf32, #tpu.memory_space<vmem>>, vector<1x32xf32>
    %20 = vector.broadcast %19 : vector<1x32xf32> to vector<8x32xf32>
    %21 = arith.mulf %18, %20 : vector<8x32xf32>
    %c0_7 = arith.constant 0 : index
    %c0_8 = arith.constant 0 : index
    %22 = vector.load %arg3[%c0_7, %c0_8] : memref<1x32xf32, #tpu.memory_space<vmem>>, vector<1x32xf32>
    %23 = vector.broadcast %22 : vector<1x32xf32> to vector<8x32xf32>
    %24 = arith.addf %21, %23 : vector<8x32xf32>
    %25 = arith.truncf %24 : vector<8x32xf32> to vector<8x32xbf16>
    %c0_9 = arith.constant 0 : index
    %c0_10 = arith.constant 0 : index
    %26 = vector.load %arg4[%c0_9, %c0_10] : memref<32x64xf32, #tpu.memory_space<vmem>>, vector<32x64xf32>
    %27 = arith.truncf %26 : vector<32x64xf32> to vector<32x64xbf16>
    %cst_11 = arith.constant dense<0.000000e+00> : vector<8x64xf32>
    %28 = tpu.matmul %25, %27, %cst_11 {dimension_numbers = #tpu.dot_dimension_numbers<[1], [0], [0], [1], [0, 0, 1, 1], [], []>} : vector<8x32xbf16>, vector<32x64xbf16>, vector<8x64xf32> -> vector<8x64xf32>
    %c0_12 = arith.constant 0 : index
    %c0_13 = arith.constant 0 : index
    %29 = vector.load %arg5[%c0_12, %c0_13] : memref<1x64xf32, #tpu.memory_space<vmem>>, vector<1x64xf32>
    %30 = vector.broadcast %29 : vector<1x64xf32> to vector<8x64xf32>
    %31 = arith.addf %28, %30 : vector<8x64xf32>
    %cst_14 = arith.constant 5.000000e-01 : f32
    %32 = vector.broadcast %cst_14 : f32 to vector<8x64xf32>
    %33 = arith.mulf %32, %31 : vector<8x64xf32>
    %cst_15 = arith.constant 4.471500e-02 : f32
    %34 = vector.broadcast %cst_15 : f32 to vector<8x64xf32>
    %35 = arith.mulf %34, %31 : vector<8x64xf32>
    %36 = arith.mulf %35, %31 : vector<8x64xf32>
    %37 = arith.mulf %36, %31 : vector<8x64xf32>
    %38 = arith.addf %31, %37 : vector<8x64xf32>
    %cst_16 = arith.constant 0.797884583 : f32
    %39 = vector.broadcast %cst_16 : f32 to vector<8x64xf32>
    %40 = arith.mulf %39, %38 : vector<8x64xf32>
    %41 = math.tanh %40 : vector<8x64xf32>
    %cst_17 = arith.constant 1.000000e+00 : f32
    %42 = vector.broadcast %cst_17 : f32 to vector<8x64xf32>
    %43 = arith.addf %42, %41 : vector<8x64xf32>
    %44 = arith.mulf %33, %43 : vector<8x64xf32>
    %c0_18 = arith.constant 0 : index
    %c0_19 = arith.constant 0 : index
    %45 = vector.load %arg6[%c0_18, %c0_19] : memref<8x64xf32, #tpu.memory_space<vmem>>, vector<8x64xf32>
    tpu.vector_store %arg6[%c0_18, %c0_19], %44 {strides = array<i32>} : memref<8x64xf32, #tpu.memory_space<vmem>>, vector<8x64xf32>,
    return
  }
  func.func @transform_0(%arg0: i32) -> (i32, i32) {
    %c0_i32 = arith.constant 0 : i32
    %c0_i32_0 = arith.constant 0 : i32
    return %arg0, %c0_i32 : i32, i32
  }
  func.func @transform_1(%arg0: i32) -> (i32, i32) {
    %c0_i32 = arith.constant 0 : i32
    %c0_i32_0 = arith.constant 0 : i32
    %c0_i32_1 = arith.constant 0 : i32
    return %c0_i32, %c0_i32_0 : i32, i32
  }
  func.func @transform_2(%arg0: i32) -> (i32, i32) {
    %c0_i32 = arith.constant 0 : i32
    %c0_i32_0 = arith.constant 0 : i32
    %c0_i32_1 = arith.constant 0 : i32
    return %c0_i32, %c0_i32_0 : i32, i32
  }
  func.func @transform_3(%arg0: i32) -> (i32, i32) {
    %c0_i32 = arith.constant 0 : i32
    %c0_i32_0 = arith.constant 0 : i32
    %c0_i32_1 = arith.constant 0 : i32
    return %c0_i32, %c0_i32_0 : i32, i32
  }
  func.func @transform_4(%arg0: i32) -> (i32, i32) {
    %c0_i32 = arith.constant 0 : i32
    %c0_i32_0 = arith.constant 0 : i32
    %c0_i32_1 = arith.constant 0 : i32
    return %c0_i32, %c0_i32_0 : i32, i32
  }
  func.func @transform_5(%arg0: i32) -> (i32, i32) {
    %c0_i32 = arith.constant 0 : i32
    %c0_i32_0 = arith.constant 0 : i32
    return %arg0, %c0_i32 : i32, i32
  }
}

module attributes {stable_mosaic.version = 11 : i64} {
  func.func @_mm_res_kernel(%arg0: i32, %arg1: memref<8x64xf32, #tpu.memory_space<vmem>>, %arg2: memref<64x32xf32, #tpu.memory_space<vmem>>, %arg3: memref<1x32xf32, #tpu.memory_space<vmem>>, %arg4: memref<8x32xf32, #tpu.memory_space<vmem>>, %arg5: memref<8x32xf32, #tpu.memory_space<vmem>>) attributes {dimension_semantics = [#tpu.dimension_semantics<parallel>], iteration_bounds = array<i64: 1>, scalar_prefetch = 0 : i64, scratch_operands = 0 : i64, tpu.core_type = #tpu.core_type<tc>, window_params = [{transform_indices = @transform_0, window_bounds = array<i64: 8, 64>}, {pipeline_mode = #tpu.pipeline_mode<synchronous>, transform_indices = @transform_1, window_bounds = array<i64: 64, 32>}, {pipeline_mode = #tpu.pipeline_mode<synchronous>, transform_indices = @transform_2, window_bounds = array<i64: 1, 32>}, {transform_indices = @transform_3, window_bounds = array<i64: 8, 32>}, {transform_indices = @transform_4, window_bounds = array<i64: 8, 32>}]} {
    %c0 = arith.constant 0 : index
    %c0_0 = arith.constant 0 : index
    %0 = vector.load %arg1[%c0, %c0_0] : memref<8x64xf32, #tpu.memory_space<vmem>>, vector<8x64xf32>
    %1 = arith.truncf %0 : vector<8x64xf32> to vector<8x64xbf16>
    %c0_1 = arith.constant 0 : index
    %c0_2 = arith.constant 0 : index
    %2 = vector.load %arg2[%c0_1, %c0_2] : memref<64x32xf32, #tpu.memory_space<vmem>>, vector<64x32xf32>
    %3 = arith.truncf %2 : vector<64x32xf32> to vector<64x32xbf16>
    %cst = arith.constant dense<0.000000e+00> : vector<8x32xf32>
    %4 = tpu.matmul %1, %3, %cst {dimension_numbers = #tpu.dot_dimension_numbers<[1], [0], [0], [1], [0, 0, 1, 1], [], []>} : vector<8x64xbf16>, vector<64x32xbf16>, vector<8x32xf32> -> vector<8x32xf32>
    %c0_3 = arith.constant 0 : index
    %c0_4 = arith.constant 0 : index
    %5 = vector.load %arg3[%c0_3, %c0_4] : memref<1x32xf32, #tpu.memory_space<vmem>>, vector<1x32xf32>
    %6 = vector.broadcast %5 : vector<1x32xf32> to vector<8x32xf32>
    %7 = arith.addf %4, %6 : vector<8x32xf32>
    %c0_5 = arith.constant 0 : index
    %c0_6 = arith.constant 0 : index
    %8 = vector.load %arg4[%c0_5, %c0_6] : memref<8x32xf32, #tpu.memory_space<vmem>>, vector<8x32xf32>
    %9 = arith.addf %7, %8 : vector<8x32xf32>
    %c0_7 = arith.constant 0 : index
    %c0_8 = arith.constant 0 : index
    %10 = vector.load %arg5[%c0_7, %c0_8] : memref<8x32xf32, #tpu.memory_space<vmem>>, vector<8x32xf32>
    tpu.vector_store %arg5[%c0_7, %c0_8], %9 {strides = array<i32>} : memref<8x32xf32, #tpu.memory_space<vmem>>, vector<8x32xf32>,
    return
  }
  func.func @transform_0(%arg0: i32) -> (i32, i32) {
    %c0_i32 = arith.constant 0 : i32
    %c0_i32_0 = arith.constant 0 : i32
    return %arg0, %c0_i32 : i32, i32
  }
  func.func @transform_1(%arg0: i32) -> (i32, i32) {
    %c0_i32 = arith.constant 0 : i32
    %c0_i32_0 = arith.constant 0 : i32
    %c0_i32_1 = arith.constant 0 : i32
    return %c0_i32, %c0_i32_0 : i32, i32
  }
  func.func @transform_2(%arg0: i32) -> (i32, i32) {
    %c0_i32 = arith.constant 0 : i32
    %c0_i32_0 = arith.constant 0 : i32
    %c0_i32_1 = arith.constant 0 : i32
    return %c0_i32, %c0_i32_0 : i32, i32
  }
  func.func @transform_3(%arg0: i32) -> (i32, i32) {
    %c0_i32 = arith.constant 0 : i32
    %c0_i32_0 = arith.constant 0 : i32
    return %arg0, %c0_i32 : i32, i32
  }
  func.func @transform_4(%arg0: i32) -> (i32, i32) {
    %c0_i32 = arith.constant 0 : i32
    %c0_i32_0 = arith.constant 0 : i32
    return %arg0, %c0_i32 : i32, i32
  }
}

module attributes {stable_mosaic.version = 11 : i64} {
  func.func @_maxpool_kernel(%arg0: i32, %arg1: memref<9x2x32xf32, #tpu.memory_space<vmem>>, %arg2: memref<2x32xf32, #tpu.memory_space<vmem>>) attributes {dimension_semantics = [#tpu.dimension_semantics<parallel>], iteration_bounds = array<i64: 1>, scalar_prefetch = 0 : i64, scratch_operands = 0 : i64, tpu.core_type = #tpu.core_type<tc>, window_params = [{transform_indices = @transform_0, window_bounds = array<i64: 9, 2, 32>}, {transform_indices = @transform_1, window_bounds = array<i64: 2, 32>}]} {
    %c0 = arith.constant 0 : index
    %c0_0 = arith.constant 0 : index
    %c0_1 = arith.constant 0 : index
    %0 = vector.load %arg1[%c0, %c0_0, %c0_1] : memref<9x2x32xf32, #tpu.memory_space<vmem>>, vector<1x2x32xf32>
    %1 = vector.shape_cast %0 : vector<1x2x32xf32> to vector<2x32xf32>
    %c1 = arith.constant 1 : index
    %c0_2 = arith.constant 0 : index
    %c0_3 = arith.constant 0 : index
    %2 = vector.load %arg1[%c1, %c0_2, %c0_3] : memref<9x2x32xf32, #tpu.memory_space<vmem>>, vector<1x2x32xf32>
    %3 = vector.shape_cast %2 : vector<1x2x32xf32> to vector<2x32xf32>
    %4 = arith.maximumf %1, %3 : vector<2x32xf32>
    %c2 = arith.constant 2 : index
    %c0_4 = arith.constant 0 : index
    %c0_5 = arith.constant 0 : index
    %5 = vector.load %arg1[%c2, %c0_4, %c0_5] : memref<9x2x32xf32, #tpu.memory_space<vmem>>, vector<1x2x32xf32>
    %6 = vector.shape_cast %5 : vector<1x2x32xf32> to vector<2x32xf32>
    %7 = arith.maximumf %4, %6 : vector<2x32xf32>
    %c3 = arith.constant 3 : index
    %c0_6 = arith.constant 0 : index
    %c0_7 = arith.constant 0 : index
    %8 = vector.load %arg1[%c3, %c0_6, %c0_7] : memref<9x2x32xf32, #tpu.memory_space<vmem>>, vector<1x2x32xf32>
    %9 = vector.shape_cast %8 : vector<1x2x32xf32> to vector<2x32xf32>
    %10 = arith.maximumf %7, %9 : vector<2x32xf32>
    %c4 = arith.constant 4 : index
    %c0_8 = arith.constant 0 : index
    %c0_9 = arith.constant 0 : index
    %11 = vector.load %arg1[%c4, %c0_8, %c0_9] : memref<9x2x32xf32, #tpu.memory_space<vmem>>, vector<1x2x32xf32>
    %12 = vector.shape_cast %11 : vector<1x2x32xf32> to vector<2x32xf32>
    %13 = arith.maximumf %10, %12 : vector<2x32xf32>
    %c5 = arith.constant 5 : index
    %c0_10 = arith.constant 0 : index
    %c0_11 = arith.constant 0 : index
    %14 = vector.load %arg1[%c5, %c0_10, %c0_11] : memref<9x2x32xf32, #tpu.memory_space<vmem>>, vector<1x2x32xf32>
    %15 = vector.shape_cast %14 : vector<1x2x32xf32> to vector<2x32xf32>
    %16 = arith.maximumf %13, %15 : vector<2x32xf32>
    %c6 = arith.constant 6 : index
    %c0_12 = arith.constant 0 : index
    %c0_13 = arith.constant 0 : index
    %17 = vector.load %arg1[%c6, %c0_12, %c0_13] : memref<9x2x32xf32, #tpu.memory_space<vmem>>, vector<1x2x32xf32>
    %18 = vector.shape_cast %17 : vector<1x2x32xf32> to vector<2x32xf32>
    %19 = arith.maximumf %16, %18 : vector<2x32xf32>
    %c7 = arith.constant 7 : index
    %c0_14 = arith.constant 0 : index
    %c0_15 = arith.constant 0 : index
    %20 = vector.load %arg1[%c7, %c0_14, %c0_15] : memref<9x2x32xf32, #tpu.memory_space<vmem>>, vector<1x2x32xf32>
    %21 = vector.shape_cast %20 : vector<1x2x32xf32> to vector<2x32xf32>
    %22 = arith.maximumf %19, %21 : vector<2x32xf32>
    %c8 = arith.constant 8 : index
    %c0_16 = arith.constant 0 : index
    %c0_17 = arith.constant 0 : index
    %23 = vector.load %arg1[%c8, %c0_16, %c0_17] : memref<9x2x32xf32, #tpu.memory_space<vmem>>, vector<1x2x32xf32>
    %24 = vector.shape_cast %23 : vector<1x2x32xf32> to vector<2x32xf32>
    %25 = arith.maximumf %22, %24 : vector<2x32xf32>
    %c0_18 = arith.constant 0 : index
    %c0_19 = arith.constant 0 : index
    %26 = vector.load %arg2[%c0_18, %c0_19] : memref<2x32xf32, #tpu.memory_space<vmem>>, vector<2x32xf32>
    tpu.vector_store %arg2[%c0_18, %c0_19], %25 {strides = array<i32>} : memref<2x32xf32, #tpu.memory_space<vmem>>, vector<2x32xf32>,
    return
  }
  func.func @transform_0(%arg0: i32) -> (i32, i32, i32) {
    %c0_i32 = arith.constant 0 : i32
    %c0_i32_0 = arith.constant 0 : i32
    %c0_i32_1 = arith.constant 0 : i32
    return %c0_i32, %arg0, %c0_i32_0 : i32, i32, i32
  }
  func.func @transform_1(%arg0: i32) -> (i32, i32) {
    %c0_i32 = arith.constant 0 : i32
    %c0_i32_0 = arith.constant 0 : i32
    return %arg0, %c0_i32 : i32, i32
  }
}

module attributes {stable_mosaic.version = 11 : i64} {
  func.func @_ln_qkv_kernel(%arg0: i32, %arg1: i32, %arg2: memref<2x32xf32, #tpu.memory_space<vmem>>, %arg3: memref<1x32xf32, #tpu.memory_space<vmem>>, %arg4: memref<1x32xf32, #tpu.memory_space<vmem>>, %arg5: memref<1x32x32xf32, #tpu.memory_space<vmem>>, %arg6: memref<1x2x32xf32, #tpu.memory_space<vmem>>, %arg7: memref<2x32xbf16, #tpu.memory_space<vmem>>) attributes {dimension_semantics = [#tpu.dimension_semantics<parallel>, #tpu.dimension_semantics<arbitrary>], iteration_bounds = array<i64: 1, 24>, scalar_prefetch = 0 : i64, scratch_operands = 1 : i64, tpu.core_type = #tpu.core_type<tc>, window_params = [{transform_indices = @transform_0, window_bounds = array<i64: 2, 32>}, {pipeline_mode = #tpu.pipeline_mode<synchronous>, transform_indices = @transform_1, window_bounds = array<i64: 1, 32>}, {pipeline_mode = #tpu.pipeline_mode<synchronous>, transform_indices = @transform_2, window_bounds = array<i64: 1, 32>}, {transform_indices = @transform_3, window_bounds = array<i64: 1, 32, 32>}, {transform_indices = @transform_4, window_bounds = array<i64: 1, 2, 32>}]} {
    %c0_i32 = arith.constant 0 : i32
    %0 = arith.cmpi eq, %arg1, %c0_i32 : i32
    %1 = arith.extui %0 : i1 to i32
    %c0_i32_0 = arith.constant 0 : i32
    %2 = arith.cmpi ne, %1, %c0_i32_0 : i32
    scf.if %2 {
      %c0_8 = arith.constant 0 : index
      %c0_9 = arith.constant 0 : index
      %10 = vector.load %arg2[%c0_8, %c0_9] : memref<2x32xf32, #tpu.memory_space<vmem>>, vector<2x32xf32>
      %cst_10 = arith.constant dense<0.000000e+00> : vector<2xf32>
      %11 = vector.multi_reduction <add>, %10, %cst_10 [1] : vector<2x32xf32> to vector<2xf32>
      %12 = vector.shape_cast %11 : vector<2xf32> to vector<2x1xf32>
      %cst_11 = arith.constant 3.200000e+01 : f32
      %13 = vector.broadcast %cst_11 : f32 to vector<2x1xf32>
      %14 = arith.divf %12, %13 : vector<2x1xf32>
      %15 = vector.broadcast %14 : vector<2x1xf32> to vector<2x32xf32>
      %16 = arith.subf %10, %15 : vector<2x32xf32>
      %17 = arith.mulf %16, %16 : vector<2x32xf32>
      %cst_12 = arith.constant dense<0.000000e+00> : vector<2xf32>
      %18 = vector.multi_reduction <add>, %17, %cst_12 [1] : vector<2x32xf32> to vector<2xf32>
      %19 = vector.shape_cast %18 : vector<2xf32> to vector<2x1xf32>
      %cst_13 = arith.constant 3.200000e+01 : f32
      %20 = vector.broadcast %cst_13 : f32 to vector<2x1xf32>
      %21 = arith.divf %19, %20 : vector<2x1xf32>
      %22 = vector.broadcast %14 : vector<2x1xf32> to vector<2x32xf32>
      %23 = arith.subf %10, %22 : vector<2x32xf32>
      %cst_14 = arith.constant 9.99999974E-6 : f32
      %24 = vector.broadcast %cst_14 : f32 to vector<2x1xf32>
      %25 = arith.addf %21, %24 : vector<2x1xf32>
      %26 = math.rsqrt %25 : vector<2x1xf32>
      %27 = vector.broadcast %26 : vector<2x1xf32> to vector<2x32xf32>
      %28 = arith.mulf %23, %27 : vector<2x32xf32>
      %c0_15 = arith.constant 0 : index
      %c0_16 = arith.constant 0 : index
      %29 = vector.load %arg3[%c0_15, %c0_16] : memref<1x32xf32, #tpu.memory_space<vmem>>, vector<1x32xf32>
      %30 = vector.broadcast %29 : vector<1x32xf32> to vector<2x32xf32>
      %31 = arith.mulf %28, %30 : vector<2x32xf32>
      %c0_17 = arith.constant 0 : index
      %c0_18 = arith.constant 0 : index
      %32 = vector.load %arg4[%c0_17, %c0_18] : memref<1x32xf32, #tpu.memory_space<vmem>>, vector<1x32xf32>
      %33 = vector.broadcast %32 : vector<1x32xf32> to vector<2x32xf32>
      %34 = arith.addf %31, %33 : vector<2x32xf32>
      %35 = arith.truncf %34 : vector<2x32xf32> to vector<2x32xbf16>
      %c0_19 = arith.constant 0 : index
      %c0_20 = arith.constant 0 : index
      %36 = vector.load %arg7[%c0_19, %c0_20] : memref<2x32xbf16, #tpu.memory_space<vmem>>, vector<2x32xbf16>
      tpu.vector_store %arg7[%c0_19, %c0_20], %35 {strides = array<i32>} : memref<2x32xbf16, #tpu.memory_space<vmem>>, vector<2x32xbf16>,
    } else {
    }
    %c0 = arith.constant 0 : index
    %c0_1 = arith.constant 0 : index
    %3 = vector.load %arg7[%c0, %c0_1] : memref<2x32xbf16, #tpu.memory_space<vmem>>, vector<2x32xbf16>
    %c0_2 = arith.constant 0 : index
    %c0_3 = arith.constant 0 : index
    %c0_4 = arith.constant 0 : index
    %4 = vector.load %arg5[%c0_2, %c0_3, %c0_4] : memref<1x32x32xf32, #tpu.memory_space<vmem>>, vector<1x32x32xf32>
    %5 = vector.shape_cast %4 : vector<1x32x32xf32> to vector<32x32xf32>
    %6 = arith.truncf %5 : vector<32x32xf32> to vector<32x32xbf16>
    %cst = arith.constant dense<0.000000e+00> : vector<2x32xf32>
    %7 = tpu.matmul %3, %6, %cst {dimension_numbers = #tpu.dot_dimension_numbers<[1], [0], [0], [1], [0, 0, 1, 1], [], []>} : vector<2x32xbf16>, vector<32x32xbf16>, vector<2x32xf32> -> vector<2x32xf32>
    %8 = vector.shape_cast %7 : vector<2x32xf32> to vector<1x2x32xf32>
    %c0_5 = arith.constant 0 : index
    %c0_6 = arith.constant 0 : index
    %c0_7 = arith.constant 0 : index
    %9 = vector.load %arg6[%c0_5, %c0_6, %c0_7] : memref<1x2x32xf32, #tpu.memory_space<vmem>>, vector<1x2x32xf32>
    tpu.vector_store %arg6[%c0_5, %c0_6, %c0_7], %8 {strides = array<i32>} : memref<1x2x32xf32, #tpu.memory_space<vmem>>, vector<1x2x32xf32>,
    return
  }
  func.func @transform_0(%arg0: i32, %arg1: i32) -> (i32, i32) {
    %c0_i32 = arith.constant 0 : i32
    %c0_i32_0 = arith.constant 0 : i32
    return %arg0, %c0_i32 : i32, i32
  }
  func.func @transform_1(%arg0: i32, %arg1: i32) -> (i32, i32) {
    %c0_i32 = arith.constant 0 : i32
    %c0_i32_0 = arith.constant 0 : i32
    %c0_i32_1 = arith.constant 0 : i32
    return %c0_i32, %c0_i32_0 : i32, i32
  }
  func.func @transform_2(%arg0: i32, %arg1: i32) -> (i32, i32) {
    %c0_i32 = arith.constant 0 : i32
    %c0_i32_0 = arith.constant 0 : i32
    %c0_i32_1 = arith.constant 0 : i32
    return %c0_i32, %c0_i32_0 : i32, i32
  }
  func.func @transform_3(%arg0: i32, %arg1: i32) -> (i32, i32, i32) {
    %c0_i32 = arith.constant 0 : i32
    %c0_i32_0 = arith.constant 0 : i32
    %c0_i32_1 = arith.constant 0 : i32
    return %arg1, %c0_i32, %c0_i32_0 : i32, i32, i32
  }
  func.func @transform_4(%arg0: i32, %arg1: i32) -> (i32, i32, i32) {
    %c0_i32 = arith.constant 0 : i32
    %c0_i32_0 = arith.constant 0 : i32
    return %arg1, %arg0, %c0_i32 : i32, i32, i32
  }
}

module attributes {stable_mosaic.version = 11 : i64} {
  func.func @_mm_kernel(%arg0: i32, %arg1: memref<2x32xf32, #tpu.memory_space<vmem>>, %arg2: memref<32x64xf32, #tpu.memory_space<vmem>>, %arg3: memref<1x64xf32, #tpu.memory_space<vmem>>, %arg4: memref<1x64xf32, #tpu.memory_space<vmem>>, %arg5: memref<2x64xf32, #tpu.memory_space<vmem>>) attributes {dimension_semantics = [#tpu.dimension_semantics<parallel>], iteration_bounds = array<i64: 1>, scalar_prefetch = 0 : i64, scratch_operands = 0 : i64, tpu.core_type = #tpu.core_type<tc>, window_params = [{transform_indices = @transform_0, window_bounds = array<i64: 2, 32>}, {pipeline_mode = #tpu.pipeline_mode<synchronous>, transform_indices = @transform_1, window_bounds = array<i64: 32, 64>}, {pipeline_mode = #tpu.pipeline_mode<synchronous>, transform_indices = @transform_2, window_bounds = array<i64: 1, 64>}, {pipeline_mode = #tpu.pipeline_mode<synchronous>, transform_indices = @transform_3, window_bounds = array<i64: 1, 64>}, {transform_indices = @transform_4, window_bounds = array<i64: 2, 64>}]} {
    %c0 = arith.constant 0 : index
    %c0_0 = arith.constant 0 : index
    %0 = vector.load %arg1[%c0, %c0_0] : memref<2x32xf32, #tpu.memory_space<vmem>>, vector<2x32xf32>
    %1 = arith.truncf %0 : vector<2x32xf32> to vector<2x32xbf16>
    %c0_1 = arith.constant 0 : index
    %c0_2 = arith.constant 0 : index
    %2 = vector.load %arg2[%c0_1, %c0_2] : memref<32x64xf32, #tpu.memory_space<vmem>>, vector<32x64xf32>
    %3 = arith.truncf %2 : vector<32x64xf32> to vector<32x64xbf16>
    %cst = arith.constant dense<0.000000e+00> : vector<2x64xf32>
    %4 = tpu.matmul %1, %3, %cst {dimension_numbers = #tpu.dot_dimension_numbers<[1], [0], [0], [1], [0, 0, 1, 1], [], []>} : vector<2x32xbf16>, vector<32x64xbf16>, vector<2x64xf32> -> vector<2x64xf32>
    %c0_3 = arith.constant 0 : index
    %c0_4 = arith.constant 0 : index
    %5 = vector.load %arg3[%c0_3, %c0_4] : memref<1x64xf32, #tpu.memory_space<vmem>>, vector<1x64xf32>
    %6 = vector.broadcast %5 : vector<1x64xf32> to vector<2x64xf32>
    %7 = arith.mulf %4, %6 : vector<2x64xf32>
    %c0_5 = arith.constant 0 : index
    %c0_6 = arith.constant 0 : index
    %8 = vector.load %arg4[%c0_5, %c0_6] : memref<1x64xf32, #tpu.memory_space<vmem>>, vector<1x64xf32>
    %9 = vector.broadcast %8 : vector<1x64xf32> to vector<2x64xf32>
    %10 = arith.addf %7, %9 : vector<2x64xf32>
    %c0_7 = arith.constant 0 : index
    %c0_8 = arith.constant 0 : index
    %11 = vector.load %arg5[%c0_7, %c0_8] : memref<2x64xf32, #tpu.memory_space<vmem>>, vector<2x64xf32>
    tpu.vector_store %arg5[%c0_7, %c0_8], %10 {strides = array<i32>} : memref<2x64xf32, #tpu.memory_space<vmem>>, vector<2x64xf32>,
    return
  }
  func.func @transform_0(%arg0: i32) -> (i32, i32) {
    %c0_i32 = arith.constant 0 : i32
    %c0_i32_0 = arith.constant 0 : i32
    return %arg0, %c0_i32 : i32, i32
  }
  func.func @transform_1(%arg0: i32) -> (i32, i32) {
    %c0_i32 = arith.constant 0 : i32
    %c0_i32_0 = arith.constant 0 : i32
    %c0_i32_1 = arith.constant 0 : i32
    return %c0_i32, %c0_i32_0 : i32, i32
  }
  func.func @transform_2(%arg0: i32) -> (i32, i32) {
    %c0_i32 = arith.constant 0 : i32
    %c0_i32_0 = arith.constant 0 : i32
    %c0_i32_1 = arith.constant 0 : i32
    return %c0_i32, %c0_i32_0 : i32, i32
  }
  func.func @transform_3(%arg0: i32) -> (i32, i32) {
    %c0_i32 = arith.constant 0 : i32
    %c0_i32_0 = arith.constant 0 : i32
    %c0_i32_1 = arith.constant 0 : i32
    return %c0_i32, %c0_i32_0 : i32, i32
  }
  func.func @transform_4(%arg0: i32) -> (i32, i32) {
    %c0_i32 = arith.constant 0 : i32
    %c0_i32_0 = arith.constant 0 : i32
    return %arg0, %c0_i32 : i32, i32
  }
}

module attributes {stable_mosaic.version = 11 : i64} {
  func.func @_attn_kernel(%arg0: i32, %arg1: i32, %arg2: memref<1x1x1x32xf32, #tpu.memory_space<vmem>>, %arg3: memref<1x1x1x32xf32, #tpu.memory_space<vmem>>, %arg4: memref<1x1x1x32xf32, #tpu.memory_space<vmem>>, %arg5: memref<1x1x1xf32, #tpu.memory_space<vmem>>, %arg6: memref<1x1x1x32xf32, #tpu.memory_space<vmem>>) attributes {dimension_semantics = [#tpu.dimension_semantics<parallel>, #tpu.dimension_semantics<parallel>], iteration_bounds = array<i64: 2, 8>, scalar_prefetch = 0 : i64, scratch_operands = 0 : i64, tpu.core_type = #tpu.core_type<tc>, window_params = [{transform_indices = @transform_0, window_bounds = array<i64: 1, 1, 1, 32>}, {transform_indices = @transform_1, window_bounds = array<i64: 1, 1, 1, 32>}, {transform_indices = @transform_2, window_bounds = array<i64: 1, 1, 1, 32>}, {transform_indices = @transform_3, window_bounds = array<i64: 1, 1, 1>}, {transform_indices = @transform_4, window_bounds = array<i64: 1, 1, 1, 32>}]} {
    %c0 = arith.constant 0 : index
    %c0_0 = arith.constant 0 : index
    %c0_1 = arith.constant 0 : index
    %c0_2 = arith.constant 0 : index
    %0 = vector.load %arg2[%c0, %c0_0, %c0_1, %c0_2] : memref<1x1x1x32xf32, #tpu.memory_space<vmem>>, vector<1x1x1x32xf32>
    %1 = vector.shape_cast %0 : vector<1x1x1x32xf32> to vector<1x32xf32>
    %2 = arith.truncf %1 : vector<1x32xf32> to vector<1x32xbf16>
    %c0_3 = arith.constant 0 : index
    %c0_4 = arith.constant 0 : index
    %c0_5 = arith.constant 0 : index
    %c0_6 = arith.constant 0 : index
    %3 = vector.load %arg3[%c0_3, %c0_4, %c0_5, %c0_6] : memref<1x1x1x32xf32, #tpu.memory_space<vmem>>, vector<1x1x1x32xf32>
    %4 = vector.shape_cast %3 : vector<1x1x1x32xf32> to vector<1x32xf32>
    %5 = arith.truncf %4 : vector<1x32xf32> to vector<1x32xbf16>
    %c0_7 = arith.constant 0 : index
    %c0_8 = arith.constant 0 : index
    %c0_9 = arith.constant 0 : index
    %c0_10 = arith.constant 0 : index
    %6 = vector.load %arg4[%c0_7, %c0_8, %c0_9, %c0_10] : memref<1x1x1x32xf32, #tpu.memory_space<vmem>>, vector<1x1x1x32xf32>
    %7 = vector.shape_cast %6 : vector<1x1x1x32xf32> to vector<1x32xf32>
    %8 = arith.truncf %7 : vector<1x32xf32> to vector<1x32xbf16>
    %c0_11 = arith.constant 0 : index
    %c0_12 = arith.constant 0 : index
    %c0_13 = arith.constant 0 : index
    %9 = vector.load %arg5[%c0_11, %c0_12, %c0_13] : memref<1x1x1xf32, #tpu.memory_space<vmem>>, vector<1x1x1xf32>
    %10 = vector.shape_cast %9 : vector<1x1x1xf32> to vector<1x1xf32>
    %11 = arith.extf %2 : vector<1x32xbf16> to vector<1x32xf32>
    %12 = arith.extf %5 : vector<1x32xbf16> to vector<1x32xf32>
    %cst = arith.constant dense<0.000000e+00> : vector<1xf32>
    %13 = arith.mulf %11, %12 : vector<1x32xf32>
    %14 = vector.multi_reduction <add>, %13, %cst [1] : vector<1x32xf32> to vector<1xf32>
    %15 = vector.shape_cast %14 : vector<1xf32> to vector<1x1xf32>
    %cst_14 = arith.constant 0.176776692 : f32
    %16 = vector.broadcast %cst_14 : f32 to vector<1x1xf32>
    %17 = arith.mulf %15, %16 : vector<1x1xf32>
    %18 = arith.addf %17, %10 : vector<1x1xf32>
    %cst_15 = arith.constant dense<0xFF800000> : vector<1xf32>
    %19 = vector.multi_reduction <maximumf>, %18, %cst_15 [1] : vector<1x1xf32> to vector<1xf32>
    %20 = vector.shape_cast %19 : vector<1xf32> to vector<1x1xf32>
    %21 = arith.subf %18, %20 : vector<1x1xf32>
    %22 = math.exp %21 : vector<1x1xf32>
    %cst_16 = arith.constant dense<0.000000e+00> : vector<1xf32>
    %23 = vector.multi_reduction <add>, %22, %cst_16 [1] : vector<1x1xf32> to vector<1xf32>
    %24 = vector.shape_cast %23 : vector<1xf32> to vector<1x1xf32>
    %25 = tpu.reciprocal %24 {approx = true} : vector<1x1xf32> -> vector<1x1xf32>
    %26 = arith.mulf %22, %25 : vector<1x1xf32>
    %27 = arith.truncf %26 : vector<1x1xf32> to vector<1x1xbf16>
    %cst_17 = arith.constant dense<0.000000e+00> : vector<1x32xf32>
    %28 = tpu.matmul %27, %8, %cst_17 {dimension_numbers = #tpu.dot_dimension_numbers<[1], [0], [0], [1], [0, 0, 1, 1], [], []>} : vector<1x1xbf16>, vector<1x32xbf16>, vector<1x32xf32> -> vector<1x32xf32>
    %29 = vector.shape_cast %28 : vector<1x32xf32> to vector<1x1x1x32xf32>
    %c0_18 = arith.constant 0 : index
    %c0_19 = arith.constant 0 : index
    %c0_20 = arith.constant 0 : index
    %c0_21 = arith.constant 0 : index
    %30 = vector.load %arg6[%c0_18, %c0_19, %c0_20, %c0_21] : memref<1x1x1x32xf32, #tpu.memory_space<vmem>>, vector<1x1x1x32xf32>
    tpu.vector_store %arg6[%c0_18, %c0_19, %c0_20, %c0_21], %29 {strides = array<i32>} : memref<1x1x1x32xf32, #tpu.memory_space<vmem>>, vector<1x1x1x32xf32>,
    return
  }
  func.func @transform_0(%arg0: i32, %arg1: i32) -> (i32, i32, i32, i32) {
    %c0_i32 = arith.constant 0 : i32
    %c0_i32_0 = arith.constant 0 : i32
    %c0_i32_1 = arith.constant 0 : i32
    return %arg1, %arg0, %c0_i32, %c0_i32_0 : i32, i32, i32, i32
  }
  func.func @transform_1(%arg0: i32, %arg1: i32) -> (i32, i32, i32, i32) {
    %c8_i32 = arith.constant 8 : i32
    %0 = arith.addi %arg1, %c8_i32 : i32
    %c0_i32 = arith.constant 0 : i32
    %c0_i32_0 = arith.constant 0 : i32
    %c0_i32_1 = arith.constant 0 : i32
    return %0, %arg0, %c0_i32, %c0_i32_0 : i32, i32, i32, i32
  }
  func.func @transform_2(%arg0: i32, %arg1: i32) -> (i32, i32, i32, i32) {
    %c16_i32 = arith.constant 16 : i32
    %0 = arith.addi %arg1, %c16_i32 : i32
    %c0_i32 = arith.constant 0 : i32
    %c0_i32_0 = arith.constant 0 : i32
    %c0_i32_1 = arith.constant 0 : i32
    return %0, %arg0, %c0_i32, %c0_i32_0 : i32, i32, i32, i32
  }
  func.func @transform_3(%arg0: i32, %arg1: i32) -> (i32, i32, i32) {
    %c0_i32 = arith.constant 0 : i32
    %c0_i32_0 = arith.constant 0 : i32
    %c0_i32_1 = arith.constant 0 : i32
    return %arg1, %c0_i32, %c0_i32_0 : i32, i32, i32
  }
  func.func @transform_4(%arg0: i32, %arg1: i32) -> (i32, i32, i32, i32) {
    %c0_i32 = arith.constant 0 : i32
    %c0_i32_0 = arith.constant 0 : i32
    %c0_i32_1 = arith.constant 0 : i32
    return %arg1, %arg0, %c0_i32, %c0_i32_0 : i32, i32, i32, i32
  }
}

module attributes {stable_mosaic.version = 11 : i64} {
  func.func @_hm_kernel(%arg0: i32, %arg1: i32, %arg2: memref<1x2x32xf32, #tpu.memory_space<vmem>>, %arg3: memref<1x32x64xf32, #tpu.memory_space<vmem>>, %arg4: memref<1x64xf32, #tpu.memory_space<vmem>>, %arg5: memref<2x64xf32, #tpu.memory_space<vmem>>, %arg6: memref<2x64xf32, #tpu.memory_space<vmem>>, %arg7: memref<2x64xf32, #tpu.memory_space<vmem>>) attributes {dimension_semantics = [#tpu.dimension_semantics<parallel>, #tpu.dimension_semantics<arbitrary>], iteration_bounds = array<i64: 1, 8>, scalar_prefetch = 0 : i64, scratch_operands = 1 : i64, tpu.core_type = #tpu.core_type<tc>, window_params = [{transform_indices = @transform_0, window_bounds = array<i64: 1, 2, 32>}, {transform_indices = @transform_1, window_bounds = array<i64: 1, 32, 64>}, {pipeline_mode = #tpu.pipeline_mode<synchronous>, transform_indices = @transform_2, window_bounds = array<i64: 1, 64>}, {transform_indices = @transform_3, window_bounds = array<i64: 2, 64>}, {transform_indices = @transform_4, window_bounds = array<i64: 2, 64>}]} {
    %c0_i32 = arith.constant 0 : i32
    %0 = arith.cmpi eq, %arg1, %c0_i32 : i32
    %1 = arith.extui %0 : i1 to i32
    %c0_i32_0 = arith.constant 0 : i32
    %2 = arith.cmpi ne, %1, %c0_i32_0 : i32
    scf.if %2 {
      %cst_11 = arith.constant 0.000000e+00 : f32
      %16 = vector.broadcast %cst_11 : f32 to vector<2x64xf32>
      %c0_12 = arith.constant 0 : index
      %c0_13 = arith.constant 0 : index
      %17 = vector.load %arg7[%c0_12, %c0_13] : memref<2x64xf32, #tpu.memory_space<vmem>>, vector<2x64xf32>
      tpu.vector_store %arg7[%c0_12, %c0_13], %16 {strides = array<i32>} : memref<2x64xf32, #tpu.memory_space<vmem>>, vector<2x64xf32>,
    } else {
    }
    %c0 = arith.constant 0 : index
    %c0_1 = arith.constant 0 : index
    %3 = vector.load %arg7[%c0, %c0_1] : memref<2x64xf32, #tpu.memory_space<vmem>>, vector<2x64xf32>
    %c0_2 = arith.constant 0 : index
    %c0_3 = arith.constant 0 : index
    %c0_4 = arith.constant 0 : index
    %4 = vector.load %arg2[%c0_2, %c0_3, %c0_4] : memref<1x2x32xf32, #tpu.memory_space<vmem>>, vector<1x2x32xf32>
    %5 = vector.shape_cast %4 : vector<1x2x32xf32> to vector<2x32xf32>
    %6 = arith.truncf %5 : vector<2x32xf32> to vector<2x32xbf16>
    %c0_5 = arith.constant 0 : index
    %c0_6 = arith.constant 0 : index
    %c0_7 = arith.constant 0 : index
    %7 = vector.load %arg3[%c0_5, %c0_6, %c0_7] : memref<1x32x64xf32, #tpu.memory_space<vmem>>, vector<1x32x64xf32>
    %8 = vector.shape_cast %7 : vector<1x32x64xf32> to vector<32x64xf32>
    %9 = arith.truncf %8 : vector<32x64xf32> to vector<32x64xbf16>
    %cst = arith.constant dense<0.000000e+00> : vector<2x64xf32>
    %10 = tpu.matmul %6, %9, %cst {dimension_numbers = #tpu.dot_dimension_numbers<[1], [0], [0], [1], [0, 0, 1, 1], [], []>} : vector<2x32xbf16>, vector<32x64xbf16>, vector<2x64xf32> -> vector<2x64xf32>
    %11 = arith.addf %3, %10 : vector<2x64xf32>
    %c0_8 = arith.constant 0 : index
    %c0_9 = arith.constant 0 : index
    %12 = vector.load %arg7[%c0_8, %c0_9] : memref<2x64xf32, #tpu.memory_space<vmem>>, vector<2x64xf32>
    tpu.vector_store %arg7[%c0_8, %c0_9], %11 {strides = array<i32>} : memref<2x64xf32, #tpu.memory_space<vmem>>, vector<2x64xf32>,
    %c7_i32 = arith.constant 7 : i32
    %13 = arith.cmpi eq, %arg1, %c7_i32 : i32
    %14 = arith.extui %13 : i1 to i32
    %c0_i32_10 = arith.constant 0 : i32
    %15 = arith.cmpi ne, %14, %c0_i32_10 : i32
    scf.if %15 {
      %c0_11 = arith.constant 0 : index
      %c0_12 = arith.constant 0 : index
      %16 = vector.load %arg7[%c0_11, %c0_12] : memref<2x64xf32, #tpu.memory_space<vmem>>, vector<2x64xf32>
      %c0_13 = arith.constant 0 : index
      %c0_14 = arith.constant 0 : index
      %17 = vector.load %arg4[%c0_13, %c0_14] : memref<1x64xf32, #tpu.memory_space<vmem>>, vector<1x64xf32>
      %18 = vector.broadcast %17 : vector<1x64xf32> to vector<2x64xf32>
      %19 = arith.addf %16, %18 : vector<2x64xf32>
      %c0_15 = arith.constant 0 : index
      %c0_16 = arith.constant 0 : index
      %20 = vector.load %arg5[%c0_15, %c0_16] : memref<2x64xf32, #tpu.memory_space<vmem>>, vector<2x64xf32>
      %21 = arith.addf %19, %20 : vector<2x64xf32>
      %c0_17 = arith.constant 0 : index
      %c0_18 = arith.constant 0 : index
      %22 = vector.load %arg6[%c0_17, %c0_18] : memref<2x64xf32, #tpu.memory_space<vmem>>, vector<2x64xf32>
      tpu.vector_store %arg6[%c0_17, %c0_18], %21 {strides = array<i32>} : memref<2x64xf32, #tpu.memory_space<vmem>>, vector<2x64xf32>,
    } else {
    }
    return
  }
  func.func @transform_0(%arg0: i32, %arg1: i32) -> (i32, i32, i32) {
    %c0_i32 = arith.constant 0 : i32
    %c0_i32_0 = arith.constant 0 : i32
    return %arg1, %arg0, %c0_i32 : i32, i32, i32
  }
  func.func @transform_1(%arg0: i32, %arg1: i32) -> (i32, i32, i32) {
    %c0_i32 = arith.constant 0 : i32
    %c0_i32_0 = arith.constant 0 : i32
    %c0_i32_1 = arith.constant 0 : i32
    return %arg1, %c0_i32, %c0_i32_0 : i32, i32, i32
  }
  func.func @transform_2(%arg0: i32, %arg1: i32) -> (i32, i32) {
    %c0_i32 = arith.constant 0 : i32
    %c0_i32_0 = arith.constant 0 : i32
    %c0_i32_1 = arith.constant 0 : i32
    return %c0_i32, %c0_i32_0 : i32, i32
  }
  func.func @transform_3(%arg0: i32, %arg1: i32) -> (i32, i32) {
    %c0_i32 = arith.constant 0 : i32
    %c0_i32_0 = arith.constant 0 : i32
    return %arg0, %c0_i32 : i32, i32
  }
  func.func @transform_4(%arg0: i32, %arg1: i32) -> (i32, i32) {
    %c0_i32 = arith.constant 0 : i32
    %c0_i32_0 = arith.constant 0 : i32
    return %arg0, %c0_i32 : i32, i32
  }
}

module attributes {stable_mosaic.version = 11 : i64} {
  func.func @_ln_mm_kernel(%arg0: i32, %arg1: memref<2x64xf32, #tpu.memory_space<vmem>>, %arg2: memref<1x64xf32, #tpu.memory_space<vmem>>, %arg3: memref<1x64xf32, #tpu.memory_space<vmem>>, %arg4: memref<64x128xf32, #tpu.memory_space<vmem>>, %arg5: memref<1x128xf32, #tpu.memory_space<vmem>>, %arg6: memref<2x128xf32, #tpu.memory_space<vmem>>) attributes {dimension_semantics = [#tpu.dimension_semantics<parallel>], iteration_bounds = array<i64: 1>, scalar_prefetch = 0 : i64, scratch_operands = 0 : i64, tpu.core_type = #tpu.core_type<tc>, window_params = [{transform_indices = @transform_0, window_bounds = array<i64: 2, 64>}, {pipeline_mode = #tpu.pipeline_mode<synchronous>, transform_indices = @transform_1, window_bounds = array<i64: 1, 64>}, {pipeline_mode = #tpu.pipeline_mode<synchronous>, transform_indices = @transform_2, window_bounds = array<i64: 1, 64>}, {pipeline_mode = #tpu.pipeline_mode<synchronous>, transform_indices = @transform_3, window_bounds = array<i64: 64, 128>}, {pipeline_mode = #tpu.pipeline_mode<synchronous>, transform_indices = @transform_4, window_bounds = array<i64: 1, 128>}, {transform_indices = @transform_5, window_bounds = array<i64: 2, 128>}]} {
    %c0 = arith.constant 0 : index
    %c0_0 = arith.constant 0 : index
    %0 = vector.load %arg1[%c0, %c0_0] : memref<2x64xf32, #tpu.memory_space<vmem>>, vector<2x64xf32>
    %cst = arith.constant dense<0.000000e+00> : vector<2xf32>
    %1 = vector.multi_reduction <add>, %0, %cst [1] : vector<2x64xf32> to vector<2xf32>
    %2 = vector.shape_cast %1 : vector<2xf32> to vector<2x1xf32>
    %cst_1 = arith.constant 6.400000e+01 : f32
    %3 = vector.broadcast %cst_1 : f32 to vector<2x1xf32>
    %4 = arith.divf %2, %3 : vector<2x1xf32>
    %5 = vector.broadcast %4 : vector<2x1xf32> to vector<2x64xf32>
    %6 = arith.subf %0, %5 : vector<2x64xf32>
    %7 = arith.mulf %6, %6 : vector<2x64xf32>
    %cst_2 = arith.constant dense<0.000000e+00> : vector<2xf32>
    %8 = vector.multi_reduction <add>, %7, %cst_2 [1] : vector<2x64xf32> to vector<2xf32>
    %9 = vector.shape_cast %8 : vector<2xf32> to vector<2x1xf32>
    %cst_3 = arith.constant 6.400000e+01 : f32
    %10 = vector.broadcast %cst_3 : f32 to vector<2x1xf32>
    %11 = arith.divf %9, %10 : vector<2x1xf32>
    %12 = vector.broadcast %4 : vector<2x1xf32> to vector<2x64xf32>
    %13 = arith.subf %0, %12 : vector<2x64xf32>
    %cst_4 = arith.constant 9.99999974E-6 : f32
    %14 = vector.broadcast %cst_4 : f32 to vector<2x1xf32>
    %15 = arith.addf %11, %14 : vector<2x1xf32>
    %16 = math.rsqrt %15 : vector<2x1xf32>
    %17 = vector.broadcast %16 : vector<2x1xf32> to vector<2x64xf32>
    %18 = arith.mulf %13, %17 : vector<2x64xf32>
    %c0_5 = arith.constant 0 : index
    %c0_6 = arith.constant 0 : index
    %19 = vector.load %arg2[%c0_5, %c0_6] : memref<1x64xf32, #tpu.memory_space<vmem>>, vector<1x64xf32>
    %20 = vector.broadcast %19 : vector<1x64xf32> to vector<2x64xf32>
    %21 = arith.mulf %18, %20 : vector<2x64xf32>
    %c0_7 = arith.constant 0 : index
    %c0_8 = arith.constant 0 : index
    %22 = vector.load %arg3[%c0_7, %c0_8] : memref<1x64xf32, #tpu.memory_space<vmem>>, vector<1x64xf32>
    %23 = vector.broadcast %22 : vector<1x64xf32> to vector<2x64xf32>
    %24 = arith.addf %21, %23 : vector<2x64xf32>
    %25 = arith.truncf %24 : vector<2x64xf32> to vector<2x64xbf16>
    %c0_9 = arith.constant 0 : index
    %c0_10 = arith.constant 0 : index
    %26 = vector.load %arg4[%c0_9, %c0_10] : memref<64x128xf32, #tpu.memory_space<vmem>>, vector<64x128xf32>
    %27 = arith.truncf %26 : vector<64x128xf32> to vector<64x128xbf16>
    %cst_11 = arith.constant dense<0.000000e+00> : vector<2x128xf32>
    %28 = tpu.matmul %25, %27, %cst_11 {dimension_numbers = #tpu.dot_dimension_numbers<[1], [0], [0], [1], [0, 0, 1, 1], [], []>} : vector<2x64xbf16>, vector<64x128xbf16>, vector<2x128xf32> -> vector<2x128xf32>
    %c0_12 = arith.constant 0 : index
    %c0_13 = arith.constant 0 : index
    %29 = vector.load %arg5[%c0_12, %c0_13] : memref<1x128xf32, #tpu.memory_space<vmem>>, vector<1x128xf32>
    %30 = vector.broadcast %29 : vector<1x128xf32> to vector<2x128xf32>
    %31 = arith.addf %28, %30 : vector<2x128xf32>
    %cst_14 = arith.constant 5.000000e-01 : f32
    %32 = vector.broadcast %cst_14 : f32 to vector<2x128xf32>
    %33 = arith.mulf %32, %31 : vector<2x128xf32>
    %cst_15 = arith.constant 4.471500e-02 : f32
    %34 = vector.broadcast %cst_15 : f32 to vector<2x128xf32>
    %35 = arith.mulf %34, %31 : vector<2x128xf32>
    %36 = arith.mulf %35, %31 : vector<2x128xf32>
    %37 = arith.mulf %36, %31 : vector<2x128xf32>
    %38 = arith.addf %31, %37 : vector<2x128xf32>
    %cst_16 = arith.constant 0.797884583 : f32
    %39 = vector.broadcast %cst_16 : f32 to vector<2x128xf32>
    %40 = arith.mulf %39, %38 : vector<2x128xf32>
    %41 = math.tanh %40 : vector<2x128xf32>
    %cst_17 = arith.constant 1.000000e+00 : f32
    %42 = vector.broadcast %cst_17 : f32 to vector<2x128xf32>
    %43 = arith.addf %42, %41 : vector<2x128xf32>
    %44 = arith.mulf %33, %43 : vector<2x128xf32>
    %c0_18 = arith.constant 0 : index
    %c0_19 = arith.constant 0 : index
    %45 = vector.load %arg6[%c0_18, %c0_19] : memref<2x128xf32, #tpu.memory_space<vmem>>, vector<2x128xf32>
    tpu.vector_store %arg6[%c0_18, %c0_19], %44 {strides = array<i32>} : memref<2x128xf32, #tpu.memory_space<vmem>>, vector<2x128xf32>,
    return
  }
  func.func @transform_0(%arg0: i32) -> (i32, i32) {
    %c0_i32 = arith.constant 0 : i32
    %c0_i32_0 = arith.constant 0 : i32
    return %arg0, %c0_i32 : i32, i32
  }
  func.func @transform_1(%arg0: i32) -> (i32, i32) {
    %c0_i32 = arith.constant 0 : i32
    %c0_i32_0 = arith.constant 0 : i32
    %c0_i32_1 = arith.constant 0 : i32
    return %c0_i32, %c0_i32_0 : i32, i32
  }
  func.func @transform_2(%arg0: i32) -> (i32, i32) {
    %c0_i32 = arith.constant 0 : i32
    %c0_i32_0 = arith.constant 0 : i32
    %c0_i32_1 = arith.constant 0 : i32
    return %c0_i32, %c0_i32_0 : i32, i32
  }
  func.func @transform_3(%arg0: i32) -> (i32, i32) {
    %c0_i32 = arith.constant 0 : i32
    %c0_i32_0 = arith.constant 0 : i32
    %c0_i32_1 = arith.constant 0 : i32
    return %c0_i32, %c0_i32_0 : i32, i32
  }
  func.func @transform_4(%arg0: i32) -> (i32, i32) {
    %c0_i32 = arith.constant 0 : i32
    %c0_i32_0 = arith.constant 0 : i32
    %c0_i32_1 = arith.constant 0 : i32
    return %c0_i32, %c0_i32_0 : i32, i32
  }
  func.func @transform_5(%arg0: i32) -> (i32, i32) {
    %c0_i32 = arith.constant 0 : i32
    %c0_i32_0 = arith.constant 0 : i32
    return %arg0, %c0_i32 : i32, i32
  }
}

module attributes {stable_mosaic.version = 11 : i64} {
  func.func @_mm_res_kernel(%arg0: i32, %arg1: memref<2x128xf32, #tpu.memory_space<vmem>>, %arg2: memref<128x64xf32, #tpu.memory_space<vmem>>, %arg3: memref<1x64xf32, #tpu.memory_space<vmem>>, %arg4: memref<2x64xf32, #tpu.memory_space<vmem>>, %arg5: memref<2x64xf32, #tpu.memory_space<vmem>>) attributes {dimension_semantics = [#tpu.dimension_semantics<parallel>], iteration_bounds = array<i64: 1>, scalar_prefetch = 0 : i64, scratch_operands = 0 : i64, tpu.core_type = #tpu.core_type<tc>, window_params = [{transform_indices = @transform_0, window_bounds = array<i64: 2, 128>}, {pipeline_mode = #tpu.pipeline_mode<synchronous>, transform_indices = @transform_1, window_bounds = array<i64: 128, 64>}, {pipeline_mode = #tpu.pipeline_mode<synchronous>, transform_indices = @transform_2, window_bounds = array<i64: 1, 64>}, {transform_indices = @transform_3, window_bounds = array<i64: 2, 64>}, {transform_indices = @transform_4, window_bounds = array<i64: 2, 64>}]} {
    %c0 = arith.constant 0 : index
    %c0_0 = arith.constant 0 : index
    %0 = vector.load %arg1[%c0, %c0_0] : memref<2x128xf32, #tpu.memory_space<vmem>>, vector<2x128xf32>
    %1 = arith.truncf %0 : vector<2x128xf32> to vector<2x128xbf16>
    %c0_1 = arith.constant 0 : index
    %c0_2 = arith.constant 0 : index
    %2 = vector.load %arg2[%c0_1, %c0_2] : memref<128x64xf32, #tpu.memory_space<vmem>>, vector<128x64xf32>
    %3 = arith.truncf %2 : vector<128x64xf32> to vector<128x64xbf16>
    %cst = arith.constant dense<0.000000e+00> : vector<2x64xf32>
    %4 = tpu.matmul %1, %3, %cst {dimension_numbers = #tpu.dot_dimension_numbers<[1], [0], [0], [1], [0, 0, 1, 1], [], []>} : vector<2x128xbf16>, vector<128x64xbf16>, vector<2x64xf32> -> vector<2x64xf32>
    %c0_3 = arith.constant 0 : index
    %c0_4 = arith.constant 0 : index
    %5 = vector.load %arg3[%c0_3, %c0_4] : memref<1x64xf32, #tpu.memory_space<vmem>>, vector<1x64xf32>
    %6 = vector.broadcast %5 : vector<1x64xf32> to vector<2x64xf32>
    %7 = arith.addf %4, %6 : vector<2x64xf32>
    %c0_5 = arith.constant 0 : index
    %c0_6 = arith.constant 0 : index
    %8 = vector.load %arg4[%c0_5, %c0_6] : memref<2x64xf32, #tpu.memory_space<vmem>>, vector<2x64xf32>
    %9 = arith.addf %7, %8 : vector<2x64xf32>
    %c0_7 = arith.constant 0 : index
    %c0_8 = arith.constant 0 : index
    %10 = vector.load %arg5[%c0_7, %c0_8] : memref<2x64xf32, #tpu.memory_space<vmem>>, vector<2x64xf32>
    tpu.vector_store %arg5[%c0_7, %c0_8], %9 {strides = array<i32>} : memref<2x64xf32, #tpu.memory_space<vmem>>, vector<2x64xf32>,
    return
  }
  func.func @transform_0(%arg0: i32) -> (i32, i32) {
    %c0_i32 = arith.constant 0 : i32
    %c0_i32_0 = arith.constant 0 : i32
    return %arg0, %c0_i32 : i32, i32
  }
  func.func @transform_1(%arg0: i32) -> (i32, i32) {
    %c0_i32 = arith.constant 0 : i32
    %c0_i32_0 = arith.constant 0 : i32
    %c0_i32_1 = arith.constant 0 : i32
    return %c0_i32, %c0_i32_0 : i32, i32
  }
  func.func @transform_2(%arg0: i32) -> (i32, i32) {
    %c0_i32 = arith.constant 0 : i32
    %c0_i32_0 = arith.constant 0 : i32
    %c0_i32_1 = arith.constant 0 : i32
    return %c0_i32, %c0_i32_0 : i32, i32
  }
  func.func @transform_3(%arg0: i32) -> (i32, i32) {
    %c0_i32 = arith.constant 0 : i32
    %c0_i32_0 = arith.constant 0 : i32
    return %arg0, %c0_i32 : i32, i32
  }
  func.func @transform_4(%arg0: i32) -> (i32, i32) {
    %c0_i32 = arith.constant 0 : i32
    %c0_i32_0 = arith.constant 0 : i32
    return %arg0, %c0_i32 : i32, i32
  }
}

module attributes {stable_mosaic.version = 11 : i64} {
  func.func @_avgpool_kernel(%arg0: i32, %arg1: memref<1x1x64xf32, #tpu.memory_space<vmem>>, %arg2: memref<1x1x64xf32, #tpu.memory_space<vmem>>) attributes {dimension_semantics = [#tpu.dimension_semantics<parallel>], iteration_bounds = array<i64: 2>, scalar_prefetch = 0 : i64, scratch_operands = 0 : i64, tpu.core_type = #tpu.core_type<tc>, window_params = [{transform_indices = @transform_0, window_bounds = array<i64: 1, 1, 64>}, {transform_indices = @transform_1, window_bounds = array<i64: 1, 1, 64>}]} {
    %c0 = arith.constant 0 : index
    %c0_0 = arith.constant 0 : index
    %c0_1 = arith.constant 0 : index
    %0 = vector.load %arg1[%c0, %c0_0, %c0_1] : memref<1x1x64xf32, #tpu.memory_space<vmem>>, vector<1x1x64xf32>
    %cst = arith.constant dense<0.000000e+00> : vector<1x64xf32>
    %1 = vector.multi_reduction <add>, %0, %cst [1] : vector<1x1x64xf32> to vector<1x64xf32>
    %2 = vector.shape_cast %1 : vector<1x64xf32> to vector<1x1x64xf32>
    %cst_2 = arith.constant 1.000000e+00 : f32
    %3 = vector.broadcast %cst_2 : f32 to vector<1x1x64xf32>
    %4 = arith.divf %2, %3 : vector<1x1x64xf32>
    %c0_3 = arith.constant 0 : index
    %c0_4 = arith.constant 0 : index
    %c0_5 = arith.constant 0 : index
    %5 = vector.load %arg2[%c0_3, %c0_4, %c0_5] : memref<1x1x64xf32, #tpu.memory_space<vmem>>, vector<1x1x64xf32>
    tpu.vector_store %arg2[%c0_3, %c0_4, %c0_5], %4 {strides = array<i32>} : memref<1x1x64xf32, #tpu.memory_space<vmem>>, vector<1x1x64xf32>,
    return
  }
  func.func @transform_0(%arg0: i32) -> (i32, i32, i32) {
    %c0_i32 = arith.constant 0 : i32
    %c0_i32_0 = arith.constant 0 : i32
    %c0_i32_1 = arith.constant 0 : i32
    return %arg0, %c0_i32, %c0_i32_0 : i32, i32, i32
  }
  func.func @transform_1(%arg0: i32) -> (i32, i32, i32) {
    %c0_i32 = arith.constant 0 : i32
    %c0_i32_0 = arith.constant 0 : i32
    %c0_i32_1 = arith.constant 0 : i32
    return %arg0, %c0_i32, %c0_i32_0 : i32, i32, i32
  }
}

module attributes {stable_mosaic.version = 11 : i64} {
  func.func @_mm_kernel(%arg0: i32, %arg1: memref<2x64xf32, #tpu.memory_space<vmem>>, %arg2: memref<64x10xf32, #tpu.memory_space<vmem>>, %arg3: memref<1x10xf32, #tpu.memory_space<vmem>>, %arg4: memref<1x10xf32, #tpu.memory_space<vmem>>, %arg5: memref<2x10xf32, #tpu.memory_space<vmem>>) attributes {dimension_semantics = [#tpu.dimension_semantics<parallel>], iteration_bounds = array<i64: 1>, scalar_prefetch = 0 : i64, scratch_operands = 0 : i64, tpu.core_type = #tpu.core_type<tc>, window_params = [{transform_indices = @transform_0, window_bounds = array<i64: 2, 64>}, {pipeline_mode = #tpu.pipeline_mode<synchronous>, transform_indices = @transform_1, window_bounds = array<i64: 64, 10>}, {pipeline_mode = #tpu.pipeline_mode<synchronous>, transform_indices = @transform_2, window_bounds = array<i64: 1, 10>}, {pipeline_mode = #tpu.pipeline_mode<synchronous>, transform_indices = @transform_3, window_bounds = array<i64: 1, 10>}, {transform_indices = @transform_4, window_bounds = array<i64: 2, 10>}]} {
    %c0 = arith.constant 0 : index
    %c0_0 = arith.constant 0 : index
    %0 = vector.load %arg1[%c0, %c0_0] : memref<2x64xf32, #tpu.memory_space<vmem>>, vector<2x64xf32>
    %1 = arith.truncf %0 : vector<2x64xf32> to vector<2x64xbf16>
    %c0_1 = arith.constant 0 : index
    %c0_2 = arith.constant 0 : index
    %2 = vector.load %arg2[%c0_1, %c0_2] : memref<64x10xf32, #tpu.memory_space<vmem>>, vector<64x10xf32>
    %3 = arith.truncf %2 : vector<64x10xf32> to vector<64x10xbf16>
    %cst = arith.constant dense<0.000000e+00> : vector<2x10xf32>
    %4 = tpu.matmul %1, %3, %cst {dimension_numbers = #tpu.dot_dimension_numbers<[1], [0], [0], [1], [0, 0, 1, 1], [], []>} : vector<2x64xbf16>, vector<64x10xbf16>, vector<2x10xf32> -> vector<2x10xf32>
    %c0_3 = arith.constant 0 : index
    %c0_4 = arith.constant 0 : index
    %5 = vector.load %arg3[%c0_3, %c0_4] : memref<1x10xf32, #tpu.memory_space<vmem>>, vector<1x10xf32>
    %6 = vector.broadcast %5 : vector<1x10xf32> to vector<2x10xf32>
    %7 = arith.mulf %4, %6 : vector<2x10xf32>
    %c0_5 = arith.constant 0 : index
    %c0_6 = arith.constant 0 : index
    %8 = vector.load %arg4[%c0_5, %c0_6] : memref<1x10xf32, #tpu.memory_space<vmem>>, vector<1x10xf32>
    %9 = vector.broadcast %8 : vector<1x10xf32> to vector<2x10xf32>
    %10 = arith.addf %7, %9 : vector<2x10xf32>
    %c0_7 = arith.constant 0 : index
    %c0_8 = arith.constant 0 : index
    %11 = vector.load %arg5[%c0_7, %c0_8] : memref<2x10xf32, #tpu.memory_space<vmem>>, vector<2x10xf32>
    tpu.vector_store %arg5[%c0_7, %c0_8], %10 {strides = array<i32>} : memref<2x10xf32, #tpu.memory_space<vmem>>, vector<2x10xf32>,
    return
  }
  func.func @transform_0(%arg0: i32) -> (i32, i32) {
    %c0_i32 = arith.constant 0 : i32
    %c0_i32_0 = arith.constant 0 : i32
    return %arg0, %c0_i32 : i32, i32
  }
  func.func @transform_1(%arg0: i32) -> (i32, i32) {
    %c0_i32 = arith.constant 0 : i32
    %c0_i32_0 = arith.constant 0 : i32
    %c0_i32_1 = arith.constant 0 : i32
    return %c0_i32, %c0_i32_0 : i32, i32
  }
  func.func @transform_2(%arg0: i32) -> (i32, i32) {
    %c0_i32 = arith.constant 0 : i32
    %c0_i32_0 = arith.constant 0 : i32
    %c0_i32_1 = arith.constant 0 : i32
    return %c0_i32, %c0_i32_0 : i32, i32
  }
  func.func @transform_3(%arg0: i32) -> (i32, i32) {
    %c0_i32 = arith.constant 0 : i32
    %c0_i32_0 = arith.constant 0 : i32
    %c0_i32_1 = arith.constant 0 : i32
    return %c0_i32, %c0_i32_0 : i32, i32
  }
  func.func @transform_4(%arg0: i32) -> (i32, i32) {
    %c0_i32 = arith.constant 0 : i32
    %c0_i32_0 = arith.constant 0 : i32
    return %arg0, %c0_i32 : i32, i32
  }
}

</mosaic_0001>

<bundles_post_ra>
// kernel: coatnet_forward.31
= control target key start
LH: loop header
LB: loop body
LE: loop exit
PB: predicated region body
PF: predicated region fallthrough
CT: control target
= control target key end

     0   :  { %s1122_s15 = smov 0   ;;  %s1613_s0 = inlined_call_operand.vmem [shape: f32[512,27], index: 0, kind: input, shape index: {}]   ;;  %s1614_s1 = inlined_call_operand.vmem [shape: f32[27,8], index: 1, kind: input, shape index: {}]   ;;  %s1615_s2 = inlined_call_operand.vmem [shape: f32[1,8], index: 2, kind: input, shape index: {}]   ;;  %s1616_s3 = inlined_call_operand.vmem [shape: f32[1,8], index: 3, kind: input, shape index: {}]   ;;  %s1617_s4 = inlined_call_operand.vmem [shape: f32[512,8], index: 4, kind: output, shape index: {}]  }
   0x1 LB: > { %s928_s16 = sadd.s32 4294967295, %s1094_s15   ;;  %p932_p0 = scmp.ge.s32.totalorder %s1094_s15, 1  ;;  %s1094_s15 = sphi %s1122_s15, %s14_s15  }
   0x2   : > { %p163_p1 = scmp.lt.s32.totalorder %s1094_s15, 3 }
   0x4   : > { %p164_p2 = pnand %p932_p0, %p163_p1 }
   0x5   : > { %v250_v0 = vld [vmem:[%s1614_s1] sm:$0xff] (!%p164_p2)  ;;  %v251_v1 = vld [vmem:[%s1614_s1 + $0x8] sm:$0xff] (!%p164_p2)  ;;  %v252_v2 = vld [vmem:[%s1614_s1 + $0x10] sm:$0xff] (!%p164_p2)  ;;  %vm305_vm0 = vcmask (!%p164_p2), 1044480   ;;  %vm306_vm1 = vcmask (!%p164_p2), 1045504   ;;  %v1096_v5 = vmov (!%p164_p2), 65535  }
   0x6   : > { %167 = sbr.rel (%p164_p2) target bundleno = 338 (0x152), region = 36  ;;  %v254_v3 = vpack.c.bf16 (!%p164_p2), %v251_v1, %v250_v0  ;;  %v253_v4 = vld [vmem:[%s1614_s1 + $0x18] sm:$0x7] (!%p164_p2)  ;;  %v307_v6 = vsel (!%p164_p2), %vm305_vm0, 4294967295, %v1096_v5  ;;  %s933_s25 = sshll.u32 (!%p164_p2), %s928_s16, 5  ;;  %vm256_vm2 = vcmask (!%p164_p2), 220160  }
   0x7   : > { %v255_v7 = vpack.c.bf16 (!%p164_p2), %v253_v4, %v252_v2  ;;  %v308_v8 = vsel (!%p164_p2), %vm306_vm1, %v307_v6, 0  ;;  %p190_p3 = scmp.lt.s32.totalorder (!%p164_p2), %s933_s25, 63  ;;  %v1203_v58 = vld [vmem:[%s1615_s2] ss:$0 sm:$0xff] (!%p164_p2)  ;;  %vm839_vm3 = vcmask (!%p164_p2), 64512  }
   0x8   : > { %975 = vmatprep.subr.bf16.mxu0 (!%p164_p2), %v254_v3  ;;  %1011 = vmatprep.subr.bf16.mxu1 (!%p164_p2), %v254_v3  ;;  %v1208_v60 = vld [vmem:[%s1616_s3] ss:$0 sm:$0xff] (!%p164_p2) }
   0x9   : > { %976 = vmatpush3.bf16.msra.mxu0 (!%p164_p2), %v254_v3  ;;  %1013 = vmatpush3.bf16.msra.mxu1 (!%p164_p2), %v254_v3  ;;  %v310_v9 = vand.u32 (!%p164_p2), %v308_v8, %v255_v7 }
   0xb   : > { %977 = vmatprep.subr.bf16.mxu0 (!%p164_p2), %v310_v9  ;;  %1012 = vmatprep.subr.bf16.mxu1 (!%p164_p2), %v310_v9 }
   0xd   : > { %s1619_s25 = smov (!%p190_p3, %s933_s25), 63  ;;  %978 = vmatpush3.bf16.msra.mxu0 %v310_v9  ;;  %1014 = vmatpush3.bf16.msra.mxu1 %v310_v9 }
   0xe   : > { %s934_s26 = sshll.u32 %s1619_s25, 3 }
   0xf   : > { %s1150_s29 = scalar_lea.vmem %s1613_s0, %s934_s26  ;;  %s1344_s10 = scalar_lea.vmem %s1617_s4, %s934_s26 }
  0x10   : > { %v202_v10 = vld [vmem:[%s1150_s29] sm:$0xff]  ;;  %v203_v11 = vld [vmem:[%s1150_s29 + $0x8] sm:$0xff]  ;;  %v204_v15 = vld [vmem:[%s1150_s29 + $0x10] sm:$0xff] }
  0x11   : > { %v218_v12 = vld [vmem:[%s1150_s29 + $0x80] sm:$0xff]  ;;  %v234_v13 = vpack.c.bf16 %v203_v11, %v202_v10  ;;  %v219_v14 = vld [vmem:[%s1150_s29 + $0x88] sm:$0xff]  ;;  %v205_v16 = vld [vmem:[%s1150_s29 + $0x18] sm:$0xff] }
  0x12   : > { %v242_v17 = vpack.c.bf16 %v219_v14, %v218_v12  ;;  %v235_v18 = vpack.c.bf16 %v205_v16, %v204_v15  ;;  %v220_v19 = vld [vmem:[%s1150_s29 + $0x90] sm:$0xff]  ;;  %v221_v20 = vld [vmem:[%s1150_s29 + $0x98] sm:$0xff]  ;;  %v206_v21 = vld [vmem:[%s1150_s29 + $0x20] sm:$0xff] }
  0x13   : > { %979 = vmatprep.mubr.msk.bf16.mxu0 %vm256_vm2, %v234_v13  ;;  %v243_v22 = vpack.c.bf16 %v221_v20, %v220_v19  ;;  %v207_v23 = vld [vmem:[%s1150_s29 + $0x28] sm:$0xff]  ;;  %v222_v24 = vld [vmem:[%s1150_s29 + $0xa0] sm:$0xff]  ;;  %v208_v28 = vld [vmem:[%s1150_s29 + $0x30] sm:$0xff] }
  0x14   : > { %v223_v25 = vld [vmem:[%s1150_s29 + $0xa8] sm:$0xff]  ;;  %995 = vmatprep.mubr.msk.bf16.mxu1 %vm256_vm2, %v242_v17  ;;  %980 = vmatmul.mubr.msk.bf16.vlgmr.msra.gmra.mrb[0].mxu0 %vm256_vm2, %v235_v18  ;;  %v236_v26 = vpack.c.bf16 %v207_v23, %v206_v21  ;;  %v209_v29 = vld [vmem:[%s1150_s29 + $0x38] sm:$0xff]  ;;  %v224_v30 = vld [vmem:[%s1150_s29 + $0xb0] sm:$0xff] }
  0x15   : > { %v244_v27 = vpack.c.bf16 %v223_v25, %v222_v24  ;;  %996 = vmatmul.mubr.msk.bf16.vlgmr.msra.gmra.mrb[0].mxu1 %vm256_vm2, %v243_v22  ;;  %v225_v31 = vld [vmem:[%s1150_s29 + $0xb8] sm:$0xff]  ;;  %v210_v32 = vld [vmem:[%s1150_s29 + $0x40] sm:$0xff]  ;;  %v211_v33 = vld [vmem:[%s1150_s29 + $0x48] sm:$0xff]  ;;  %v237_v36 = vpack.c.bf16 %v209_v29, %v208_v28 }
  0x16   : > { %983 = vmatprep.mubr.msk.bf16.mxu0 %vm256_vm2, %v236_v26  ;;  %v226_v34 = vld [vmem:[%s1150_s29 + $0xc0] sm:$0xff]  ;;  %v227_v35 = vld [vmem:[%s1150_s29 + $0xc8] sm:$0xff]  ;;  %v245_v37 = vpack.c.bf16 %v225_v31, %v224_v30  ;;  %v238_v38 = vpack.c.bf16 %v211_v33, %v210_v32  ;;  %v212_v40 = vld [vmem:[%s1150_s29 + $0x50] sm:$0xff] }
  0x17   : > { %999 = vmatprep.mubr.msk.bf16.mxu1 %vm256_vm2, %v244_v27  ;;  %v246_v39 = vpack.c.bf16 %v227_v35, %v226_v34  ;;  %v213_v41 = vld [vmem:[%s1150_s29 + $0x58] sm:$0xff]  ;;  %v228_v42 = vld [vmem:[%s1150_s29 + $0xd0] sm:$0xff]  ;;  %v214_v44 = vld [vmem:[%s1150_s29 + $0x60] sm:$0xff] }
  0x18   : > { %v229_v43 = vld [vmem:[%s1150_s29 + $0xd8] sm:$0xff]  ;;  %v215_v45 = vld [vmem:[%s1150_s29 + $0x68] sm:$0xff]  ;;  %v230_v46 = vld [vmem:[%s1150_s29 + $0xe0] sm:$0xff]  ;;  %v239_v48 = vpack.c.bf16 %v213_v41, %v212_v40 }
  0x19   : > { %v231_v47 = vld [vmem:[%s1150_s29 + $0xe8] sm:$0xff]  ;;  %v247_v49 = vpack.c.bf16 %v229_v43, %v228_v42  ;;  %v240_v50 = vpack.c.bf16 %v215_v45, %v214_v44  ;;  %v216_v52 = vld [vmem:[%s1150_s29 + $0x70] sm:$0xff]  ;;  %v217_v53 = vld [vmem:[%s1150_s29 + $0x78] sm:$0xff] }
  0x1a   : > { %v248_v51 = vpack.c.bf16 %v231_v47, %v230_v46  ;;  %v232_v54 = vld [vmem:[%s1150_s29 + $0xf0] sm:$0xff]  ;;  %v233_v55 = vld [vmem:[%s1150_s29 + $0xf8] sm:$0xff]  ;;  %v241_v56 = vpack.c.bf16 %v217_v53, %v216_v52 }
  0x1b   : > { %v249_v57 = vpack.c.bf16 %v233_v55, %v232_v54 }
  0x1c   : > { %984 = vmatmul.mubr.msk.bf16.gmra.mrb[4].mxu0 %vm256_vm2, %v237_v36 }
  0x1d   : > { %1000 = vmatmul.mubr.msk.bf16.gmra.mrb[4].mxu1 %vm256_vm2, %v245_v37  ;;  %987 = vmatprep.mubr.msk.bf16.mxu0 %vm256_vm2, %v238_v38 }
  0x1e   : > { %1003 = vmatprep.mubr.msk.bf16.mxu1 %vm256_vm2, %v246_v39 }
  0x24   : > { %988 = vmatmul.mubr.msk.bf16.gmra.mrb[8].mxu0 %vm256_vm2, %v239_v48 }
  0x25   : > { %1004 = vmatmul.mubr.msk.bf16.gmra.mrb[8].mxu1 %vm256_vm2, %v247_v49  ;;  %991 = vmatprep.mubr.msk.bf16.mxu0 %vm256_vm2, %v240_v50 }
  0x26   : > { %1007 = vmatprep.mubr.msk.bf16.mxu1 %vm256_vm2, %v248_v51 }
  0x2c   : > { %992 = vmatmul.mubr.msk.bf16.gmra.mrb[12].mxu0 %vm256_vm2, %v241_v56 }
  0x2d   : > { %1008 = vmatmul.mubr.msk.bf16.gmra.mrb[12].mxu1 %vm256_vm2, %v249_v57 }
  0xe7   : > { %v981_v59 = vpop.f32.mrb[0].mxu0 }
  0xe8   : > { %v482_v61 = vmul.f32 %v981_v59, %v1203_v58  ;;  %v997_v62 = vpop.f32.mrb[0].mxu1  ;;  %v346_v63 = vpop.f32.mrb[1].mxu0 }
  0xe9   : > { %v498_v0 = vmul.f32 %v997_v62, %v1203_v58  ;;  %v480_v1 = vmul.f32 %v1203_v58, %v346_v63  ;;  %v410_v2 = vpop.f32.mrb[1].mxu1  ;;  %v982_v3 = vpop.f32.mrb[2].mxu0 }
  0xea   : > { %v521_v4 = vadd.f32 %v1208_v60, %v482_v61  ;;  %v496_v5 = vmul.f32 %v1203_v58, %v410_v2  ;;  %v483_v6 = vmul.f32 %v982_v3, %v1203_v58  ;;  %v998_v7 = vpop.f32.mrb[2].mxu1  ;;  %v349_v8 = vpop.f32.mrb[3].mxu0 }
  0xeb   : > { %v537_v9 = vadd.f32 %v1208_v60, %v498_v0  ;;  %v1218_v10 = vadd.f32 %v1208_v60, %v480_v1  ;;  %v499_v11 = vmul.f32 %v998_v7, %v1203_v58  ;;  %v413_v12 = vpop.f32.mrb[3].mxu1  ;;  %v481_v16 = vmul.f32 %v1203_v58, %v349_v8 }
  0xec   : > { %v585_v13 = vmul.f32 0.044715, %v521_v4  ;;  %v1222_v14 = vadd.f32 %v1208_v60, %v496_v5  ;;  %v1225_v15 = vadd.f32 %v1208_v60, %v483_v6  ;;  %v497_v29 = vmul.f32 %v1203_v58, %v413_v12 }
  0xed   : > { %v601_v17 = vmul.f32 0.044715, %v537_v9  ;;  %v583_v18 = vmul.f32 0.044715, %v1218_v10  ;;  %v1233_v24 = vadd.f32 %v1208_v60, %v499_v11  ;;  %v1237_v28 = vadd.f32 %v1208_v60, %v481_v16 }
  0xee   : > { %v617_v19 = vmul.f32 %v585_v13, %v521_v4  ;;  %v599_v20 = vmul.f32 0.044715, %v1222_v14  ;;  %v586_v23 = vmul.f32 0.044715, %v1225_v15  ;;  %v1244_v37 = vmul.f32 0.5, %v521_v4 }
  0xef   : > { %v633_v21 = vmul.f32 %v601_v17, %v537_v9  ;;  %v615_v22 = vmul.f32 %v583_v18, %v1218_v10  ;;  %v985_v25 = vpop.f32.mrb[4].mxu0  ;;  %v602_v40 = vmul.f32 0.044715, %v1233_v24  ;;  %v584_v46 = vmul.f32 0.044715, %v1237_v28 }
  0xf0   : > { %v649_v26 = vmul.f32 %v617_v19, %v521_v4  ;;  %v631_v27 = vmul.f32 %v599_v20, %v1222_v14  ;;  %v1001_v30 = vpop.f32.mrb[4].mxu1  ;;  %v362_v31 = vpop.f32.mrb[5].mxu0  ;;  %v618_v34 = vmul.f32 %v586_v23, %v1225_v15  ;;  %v1260_v51 = vadd.f32 %v1208_v60, %v497_v29 }
  0xf1   : > { %v665_v32 = vmul.f32 %v633_v21, %v537_v9  ;;  %v647_v33 = vmul.f32 %v615_v22, %v1218_v10  ;;  %v426_v35 = vpop.f32.mrb[5].mxu1  ;;  %v1242_v36 = vpop.f32.mrb[6].mxu0  ;;  %v634_v50 = vmul.f32 %v602_v40, %v1233_v24  ;;  %v616_v55 = vmul.f32 %v584_v46, %v1237_v28 }
  0xf2   : > { %v681_v38 = vadd.f32 %v649_v26, %v521_v4  ;;  %v663_v39 = vmul.f32 %v631_v27, %v1222_v14  ;;  %v1248_v41 = vpop.f32.mrb[6].mxu1  ;;  %v1250_v42 = vpop.f32.mrb[7].mxu0  ;;  %v650_v45 = vmul.f32 %v618_v34, %v1225_v15  ;;  %v1264_v56 = vmul.f32 0.5, %v537_v9 }
  0xf3   : > { %v697_v43 = vadd.f32 %v665_v32, %v537_v9  ;;  %v679_v44 = vadd.f32 %v647_v33, %v1218_v10  ;;  %v1255_v47 = vpop.f32.mrb[7].mxu1  ;;  %v666_v59 = vmul.f32 %v634_v50, %v1233_v24  ;;  %v648_v62 = vmul.f32 %v616_v55, %v1237_v28 }
  0xf4   : > { %v713_v48 = vmul.f32 0.7978846, %v681_v38  ;;  %v695_v49 = vadd.f32 %v663_v39, %v1222_v14  ;;  %v682_v54 = vadd.f32 %v650_v45, %v1225_v15  ;;  %v600_v63 = vmul.f32 0.044715, %v1260_v51 }
  0xf5   : > { %v729_v52 = vmul.f32 0.7978846, %v697_v43  ;;  %v711_v53 = vmul.f32 0.7978846, %v679_v44  ;;  %v698_v1 = vadd.f32 %v666_v59, %v1233_v24  ;;  %v486_v2 = vmul.f32 %v985_v25, %v1203_v58 }
  0xf6   : > { %1024 = vtanh.f32 %v713_v48  ;;  %v727_v57 = vmul.f32 0.7978846, %v695_v49  ;;  %v714_v61 = vmul.f32 0.7978846, %v682_v54  ;;  %v502_v3 = vmul.f32 %v1001_v30, %v1203_v58 }
  0xf7   : > { %1026 = vtanh.f32 %v729_v52  ;;  %v1269_v0 = vpop.f32.mrb[8].mxu0  ;;  %v680_v6 = vadd.f32 %v648_v62, %v1237_v28  ;;  %v632_v7 = vmul.f32 %v600_v63, %v1260_v51  ;;  %v484_v8 = vmul.f32 %v1203_v58, %v362_v31 }
  0xf8   : > { %1028 = vtanh.f32 %v711_v53  ;;  %v1274_v4 = vpop.f32.mrb[8].mxu1  ;;  %v1276_v5 = vpop.f32.mrb[9].mxu0  ;;  %v730_v12 = vmul.f32 0.7978846, %v698_v1  ;;  %v1286_v13 = vadd.f32 %v1208_v60, %v486_v2  ;;  %v1289_v16 = vadd.f32 %v1208_v60, %v502_v3 }
  0xf9   : > { %1030 = vtanh.f32 %v727_v57  ;;  %v1281_v9 = vpop.f32.mrb[9].mxu1  ;;  %v1283_v11 = vpop.f32.mrb[10].mxu0  ;;  %v712_v19 = vmul.f32 0.7978846, %v680_v6  ;;  %v664_v20 = vmul.f32 %v632_v7, %v1260_v51  ;;  %v1297_v21 = vadd.f32 %v1208_v60, %v484_v8 }
  0xfa   : > { %1032 = vtanh.f32 %v714_v61  ;;  %v1291_v17 = vpop.f32.mrb[10].mxu1  ;;  %v1293_v18 = vpop.f32.mrb[11].mxu0  ;;  %v500_v22 = vmul.f32 %v1203_v58, %v426_v35  ;;  %v551_v25 = vmul.f32 0.5, %v1218_v10  ;;  %v567_v26 = vmul.f32 0.5, %v1222_v14 }
  0xfb   : > { %v1300_v23 = vpop.f32.mrb[11].mxu1  ;;  %1034 = vtanh.f32 %v730_v12  ;;  %v589_v27 = vmul.f32 0.044715, %v1286_v13  ;;  %v554_v29 = vmul.f32 0.5, %v1225_v15  ;;  %v696_v30 = vadd.f32 %v664_v20, %v1260_v51 }
  0xfc   : > { %1036 = vtanh.f32 %v712_v19  ;;  %v605_v31 = vmul.f32 0.044715, %v1289_v16  ;;  %v587_v33 = vmul.f32 0.044715, %v1297_v21  ;;  %v1311_v34 = vadd.f32 %v1208_v60, %v500_v22 }
  0xfd   : > { %v621_v32 = vmul.f32 %v589_v27, %v1286_v13  ;;  %v487_v10 = vmul.f32 %v1242_v36, %v1203_v58  ;;  %v570_v14 = vmul.f32 0.5, %v1233_v24  ;;  %v1317_v35 = vmul.f32 0.5, %v1237_v28 }
  0xfe   : > { %v728_v15 = vmul.f32 0.7978846, %v696_v30  ;;  %v637_v38 = vmul.f32 %v605_v31, %v1289_v16  ;;  %v619_v44 = vmul.f32 %v587_v33, %v1297_v21  ;;  %v603_v45 = vmul.f32 0.044715, %v1311_v34 }
  0xff   : > { %v1320_v39 = vpop.f32.mrb[12].mxu0  ;;  %v653_v43 = vmul.f32 %v621_v32, %v1286_v13  ;;  %v503_v36 = vmul.f32 %v1248_v41, %v1203_v58  ;;  %v1333_v50 = vadd.f32 %v1208_v60, %v487_v10  ;;  %v485_v6 = vmul.f32 %v1203_v58, %v1250_v42 }
 0x100   : > { %v1025_v40 = vpop.eup %1024  ;;  %v1327_v24 = vpop.f32.mrb[12].mxu1  ;;  %1038 = vtanh.f32 %v728_v15  ;;  %v669_v49 = vmul.f32 %v637_v38, %v1289_v16  ;;  %v651_v57 = vmul.f32 %v619_v44, %v1297_v21  ;;  %v635_v59 = vmul.f32 %v603_v45, %v1311_v34 }
 0x101   : > { %v1329_v28 = vpop.f32.mrb[13].mxu0  ;;  %v1027_v46 = vpop.eup %1026  ;;  %v777_v48 = vadd.f32 1.0, %v1025_v40  ;;  %v685_v55 = vadd.f32 %v653_v43, %v1286_v13  ;;  %v590_v33 = vmul.f32 0.044715, %v1333_v50 }
 0x102   : > { %v1335_v52 = vpop.f32.mrb[13].mxu1  ;;  %v1337_v53 = vpop.f32.mrb[14].mxu0  ;;  %v793_v41 = vadd.f32 1.0, %v1027_v46  ;;  %v701_v3 = vadd.f32 %v669_v49, %v1289_v16  ;;  %v683_v22 = vadd.f32 %v651_v57, %v1297_v21  ;;  %v667_v31 = vmul.f32 %v635_v59, %v1311_v34 }
 0x103   : > { %v1029_v54 = vpop.eup %1028  ;;  %v1349_v61 = vpop.f32.mrb[14].mxu1  ;;  %v809_v1 = vmul.f32 %v777_v48, %v1244_v37  ;;  %v717_v20 = vmul.f32 0.7978846, %v685_v55  ;;  %v622_v43 = vmul.f32 %v590_v33, %v1333_v50  ;;  %v501_v46 = vmul.f32 %v1203_v58, %v1255_v47 }
 0x104   : > { %v1351_v62 = vpop.f32.mrb[15].mxu0  ;;  %v1031_v63 = vpop.eup %1030  ;;  %v775_v2 = vadd.f32 1.0, %v1029_v54  ;;  %v825_v12 = vmul.f32 %v793_v41, %v1264_v56  ;;  %v733_v30 = vmul.f32 0.7978846, %v701_v3  ;;  %v715_v56 = vmul.f32 0.7978846, %v683_v22 }
 0x105   : > { %v1357_v7 = vpop.f32.mrb[15].mxu1  ;;  %v1033_v8 = vpop.eup %1032  ;;  %v791_v19 = vadd.f32 1.0, %v1031_v63  ;;  %842 = vst.msk [vmem:[%s1344_s10 + $0x10] sm:$0xff] %vm839_vm3, %v809_v1  ;;  %1040 = vtanh.f32 %v717_v20  ;;  %v568_v49 = vmul.f32 0.5, %v1260_v51  ;;  %v654_v54 = vmul.f32 %v622_v43, %v1333_v50 }
 0x106   : > { %v807_v37 = vmul.f32 %v775_v2, %v551_v25  ;;  %v778_v27 = vadd.f32 1.0, %v1033_v8  ;;  %v1035_v32 = vpop.eup %1034  ;;  %858 = vst.msk [vmem:[%s1344_s10 + $0x90] sm:$0xff] %vm839_vm3, %v825_v12  ;;  %1042 = vtanh.f32 %v733_v30  ;;  %v699_v25 = vadd.f32 %v667_v31, %v1311_v34 }
 0x107   : > { %v823_v42 = vmul.f32 %v791_v19, %v567_v26  ;;  %v1037_v10 = vpop.eup %1036  ;;  %v794_v38 = vadd.f32 1.0, %v1035_v32  ;;  %1044 = vtanh.f32 %v715_v56  ;;  %v1374_v26 = vadd.f32 %v1208_v60, %v503_v36 }
 0x108   : > { %840 = vst.msk [vmem:[%s1344_s10] sm:$0xff] %vm839_vm3, %v807_v37  ;;  %v810_v15 = vmul.f32 %v778_v27, %v554_v29  ;;  %v776_v40 = vadd.f32 1.0, %v1037_v10  ;;  %v731_v45 = vmul.f32 0.7978846, %v699_v25  ;;  %v1379_v29 = vadd.f32 %v1208_v60, %v485_v6 }
 0x109   : > { %856 = vst.msk [vmem:[%s1344_s10 + $0x80] sm:$0xff] %vm839_vm3, %v823_v42  ;;  %v826_v44 = vmul.f32 %v794_v38, %v570_v14  ;;  %v606_v36 = vmul.f32 0.044715, %v1374_v26  ;;  %v557_v14 = vmul.f32 0.5, %v1286_v13  ;;  %v1392_v57 = vadd.f32 %v1208_v60, %v501_v46 }
 0x10a   : > { %843 = vst.msk [vmem:[%s1344_s10 + $0x18] sm:$0xff] %vm839_vm3, %v810_v15  ;;  %v808_v48 = vmul.f32 %v776_v40, %v1317_v35  ;;  %v1039_v41 = vpop.eup %1038  ;;  %1046 = vtanh.f32 %v731_v45  ;;  %v588_v55 = vmul.f32 0.044715, %v1379_v29  ;;  %v686_v51 = vadd.f32 %v654_v54, %v1333_v50 }
 0x10b   : > { %859 = vst.msk [vmem:[%s1344_s10 + $0x98] sm:$0xff] %vm839_vm3, %v826_v44  ;;  %v792_v47 = vadd.f32 1.0, %v1039_v41  ;;  %v638_v35 = vmul.f32 %v606_v36, %v1374_v26  ;;  %v490_v59 = vmul.f32 %v1269_v0, %v1203_v58  ;;  %v573_v63 = vmul.f32 0.5, %v1289_v16 }
 0x10c   : > { %841 = vst.msk [vmem:[%s1344_s10 + $0x8] sm:$0xff] %vm839_vm3, %v808_v48  ;;  %v620_v13 = vmul.f32 %v588_v55, %v1379_v29  ;;  %v604_v1 = vmul.f32 0.044715, %v1392_v57  ;;  %v506_v2 = vmul.f32 %v1274_v4, %v1203_v58  ;;  %v718_v6 = vmul.f32 0.7978846, %v686_v51 }
 0x10d   : > { %v824_v3 = vmul.f32 %v792_v47, %v568_v49  ;;  %v670_v8 = vmul.f32 %v638_v35, %v1374_v26  ;;  %v1407_v12 = vadd.f32 %v1208_v60, %v490_v59  ;;  %v555_v19 = vmul.f32 0.5, %v1297_v21 }
 0x10e   : > { %v652_v0 = vmul.f32 %v620_v13, %v1379_v29  ;;  %v636_v16 = vmul.f32 %v604_v1, %v1392_v57  ;;  %v1413_v20 = vadd.f32 %v1208_v60, %v506_v2  ;;  %v571_v4 = vmul.f32 0.5, %v1311_v34 }
 0x10f   : > { %v1041_v22 = vpop.eup %1040  ;;  %857 = vst.msk [vmem:[%s1344_s10 + $0x88] sm:$0xff] %vm839_vm3, %v824_v3  ;;  %1048 = vtanh.f32 %v718_v6  ;;  %v702_v37 = vadd.f32 %v670_v8, %v1374_v26  ;;  %v593_v27 = vmul.f32 0.044715, %v1407_v12  ;;  %v488_v42 = vmul.f32 %v1203_v58, %v1276_v5 }
 0x110   : > { %v1043_v30 = vpop.eup %1042  ;;  %v781_v31 = vadd.f32 1.0, %v1041_v22  ;;  %v684_v21 = vadd.f32 %v652_v0, %v1379_v29  ;;  %v668_v32 = vmul.f32 %v636_v16, %v1392_v57  ;;  %v609_v15 = vmul.f32 0.044715, %v1413_v20 }
 0x111   : > { %v1045_v56 = vpop.eup %1044  ;;  %v797_v33 = vadd.f32 1.0, %v1043_v30  ;;  %v734_v10 = vmul.f32 0.7978846, %v702_v37  ;;  %v625_v34 = vmul.f32 %v593_v27, %v1407_v12  ;;  %v1432_v54 = vadd.f32 %v1208_v60, %v488_v42 }
 0x112   : > { %v813_v38 = vmul.f32 %v781_v31, %v557_v14  ;;  %v779_v25 = vadd.f32 1.0, %v1045_v56  ;;  %v716_v40 = vmul.f32 0.7978846, %v684_v21  ;;  %v700_v43 = vadd.f32 %v668_v32, %v1392_v57 }
 0x113   : > { %v829_v44 = vmul.f32 %v797_v33, %v573_v63  ;;  %1050 = vtanh.f32 %v734_v10  ;;  %v657_v45 = vmul.f32 %v625_v34, %v1407_v12  ;;  %v641_v5 = vmul.f32 %v609_v15, %v1413_v20 }
 0x114   : > { %v1047_v46 = vpop.eup %1046  ;;  %846 = vst.msk [vmem:[%s1344_s10 + $0x30] sm:$0xff] %vm839_vm3, %v813_v38  ;;  %v811_v48 = vmul.f32 %v779_v25, %v555_v19  ;;  %1052 = vtanh.f32 %v716_v40  ;;  %v732_v49 = vmul.f32 0.7978846, %v700_v43  ;;  %v504_v55 = vmul.f32 %v1203_v58, %v1281_v9 }
 0x115   : > { %862 = vst.msk [vmem:[%s1344_s10 + $0xb0] sm:$0xff] %vm839_vm3, %v829_v44  ;;  %v795_v36 = vadd.f32 1.0, %v1047_v46  ;;  %v689_v41 = vadd.f32 %v657_v45, %v1407_v12  ;;  %v673_v14 = vmul.f32 %v641_v5, %v1413_v20  ;;  %v558_v47 = vmul.f32 0.5, %v1333_v50 }
 0x116   : > { %844 = vst.msk [vmem:[%s1344_s10 + $0x20] sm:$0xff] %vm839_vm3, %v811_v48  ;;  %1054 = vtanh.f32 %v732_v49  ;;  %v591_v51 = vmul.f32 0.044715, %v1432_v54  ;;  %v491_v35 = vmul.f32 %v1283_v11, %v1203_v58  ;;  %v1448_v1 = vadd.f32 %v1208_v60, %v504_v55 }
 0x117   : > { %v827_v59 = vmul.f32 %v795_v36, %v571_v4  ;;  %v721_v63 = vmul.f32 0.7978846, %v689_v41  ;;  %v705_v13 = vadd.f32 %v673_v14, %v1413_v20  ;;  %v507_v50 = vmul.f32 %v1291_v17, %v1203_v58 }
 0x118   : > { %v623_v2 = vmul.f32 %v591_v51, %v1432_v54  ;;  %v1452_v9 = vadd.f32 %v1208_v60, %v491_v35  ;;  %v489_v3 = vmul.f32 %v1203_v58, %v1293_v18  ;;  %v574_v11 = vmul.f32 0.5, %v1374_v26 }
 0x119   : > { %v1049_v6 = vpop.eup %1048  ;;  %860 = vst.msk [vmem:[%s1344_s10 + $0xa0] sm:$0xff] %vm839_vm3, %v827_v59  ;;  %1056 = vtanh.f32 %v721_v63  ;;  %v737_v8 = vmul.f32 0.7978846, %v705_v13  ;;  %v607_v19 = vmul.f32 0.044715, %v1448_v1  ;;  %v556_v16 = vmul.f32 0.5, %v1379_v29 }
 0x11a   : > { %v782_v0 = vadd.f32 1.0, %v1049_v6  ;;  %v655_v22 = vmul.f32 %v623_v2, %v1432_v54  ;;  %v594_v17 = vmul.f32 0.044715, %v1452_v9  ;;  %v1467_v4 = vadd.f32 %v1208_v60, %v507_v50 }
 0x11b   : > { %1058 = vtanh.f32 %v737_v8  ;;  %v639_v18 = vmul.f32 %v607_v19, %v1448_v1  ;;  %v1470_v26 = vadd.f32 %v1208_v60, %v489_v3  ;;  %v505_v29 = vmul.f32 %v1203_v58, %v1300_v23 }
 0x11c   : > { %v814_v37 = vmul.f32 %v782_v0, %v558_v47  ;;  %v687_v27 = vadd.f32 %v655_v22, %v1432_v54  ;;  %v626_v30 = vmul.f32 %v594_v17, %v1452_v9  ;;  %v572_v21 = vmul.f32 0.5, %v1392_v57 }
 0x11d   : > { %v1051_v31 = vpop.eup %1050  ;;  %v561_v32 = vmul.f32 0.5, %v1407_v12  ;;  %v671_v42 = vmul.f32 %v639_v18, %v1448_v1  ;;  %v610_v56 = vmul.f32 0.044715, %v1467_v4  ;;  %v592_v38 = vmul.f32 0.044715, %v1470_v26 }
 0x11e   : > { %v1053_v33 = vpop.eup %1052  ;;  %847 = vst.msk [vmem:[%s1344_s10 + $0x38] sm:$0xff] %vm839_vm3, %v814_v37  ;;  %v798_v10 = vadd.f32 1.0, %v1051_v31  ;;  %v719_v34 = vmul.f32 0.7978846, %v687_v27  ;;  %v658_v15 = vmul.f32 %v626_v30, %v1452_v9  ;;  %v1487_v12 = vadd.f32 %v1208_v60, %v505_v29 }
 0x11f   : > { %v780_v23 = vadd.f32 1.0, %v1053_v33  ;;  %v703_v25 = vadd.f32 %v671_v42, %v1448_v1  ;;  %v642_v57 = vmul.f32 %v610_v56, %v1467_v4  ;;  %v624_v45 = vmul.f32 %v592_v38, %v1470_v26 }
 0x120   : > { %v1055_v40 = vpop.eup %1054  ;;  %v830_v43 = vmul.f32 %v798_v10, %v574_v11  ;;  %1060 = vtanh.f32 %v719_v34  ;;  %v690_v44 = vadd.f32 %v658_v15, %v1452_v9  ;;  %v577_v36 = vmul.f32 0.5, %v1413_v20 }
 0x121   : > { %v812_v5 = vmul.f32 %v780_v23, %v556_v16  ;;  %v796_v46 = vadd.f32 1.0, %v1055_v40  ;;  %v735_v48 = vmul.f32 0.7978846, %v703_v25  ;;  %v674_v49 = vmul.f32 %v642_v57, %v1467_v4 }
 0x122   : > { %863 = vst.msk [vmem:[%s1344_s10 + $0xb8] sm:$0xff] %vm839_vm3, %v830_v43  ;;  %v722_v41 = vmul.f32 0.7978846, %v690_v44  ;;  %v656_v14 = vmul.f32 %v624_v45, %v1470_v26  ;;  %v608_v55 = vmul.f32 0.044715, %v1487_v12  ;;  %v494_v59 = vmul.f32 %v1320_v39, %v1203_v58 }
 0x123   : > { %v1057_v47 = vpop.eup %1056  ;;  %845 = vst.msk [vmem:[%s1344_s10 + $0x28] sm:$0xff] %vm839_vm3, %v812_v5  ;;  %v828_v51 = vmul.f32 %v796_v46, %v572_v21  ;;  %1062 = vtanh.f32 %v735_v48  ;;  %v706_v35 = vadd.f32 %v674_v49, %v1467_v4  ;;  %v510_v6 = vmul.f32 %v1327_v24, %v1203_v58 }
 0x124   : > { %v785_v63 = vadd.f32 1.0, %v1057_v47  ;;  %1064 = vtanh.f32 %v722_v41  ;;  %v688_v20 = vadd.f32 %v656_v14, %v1470_v26  ;;  %v640_v13 = vmul.f32 %v608_v55, %v1487_v12 }
 0x125   : > { %v1059_v2 = vpop.eup %1058  ;;  %861 = vst.msk [vmem:[%s1344_s10 + $0xa8] sm:$0xff] %vm839_vm3, %v828_v51  ;;  %v738_v50 = vmul.f32 0.7978846, %v706_v35  ;;  %v1507_v3 = vadd.f32 %v1208_v60, %v494_v59  ;;  %v492_v39 = vmul.f32 %v1203_v58, %v1329_v28  ;;  %v1516_v22 = vadd.f32 %v1208_v60, %v510_v6 }
 0x126   : > { %v817_v11 = vmul.f32 %v785_v63, %v561_v32  ;;  %v801_v8 = vadd.f32 1.0, %v1059_v2  ;;  %v720_v19 = vmul.f32 0.7978846, %v688_v20  ;;  %v672_v0 = vmul.f32 %v640_v13, %v1487_v12 }
 0x127   : > { %1066 = vtanh.f32 %v738_v50  ;;  %v597_v16 = vmul.f32 0.044715, %v1507_v3  ;;  %v1522_v28 = vadd.f32 %v1208_v60, %v492_v39  ;;  %v559_v18 = vmul.f32 0.5, %v1432_v54 }
 0x128   : > { %850 = vst.msk [vmem:[%s1344_s10 + $0x50] sm:$0xff] %vm839_vm3, %v817_v11  ;;  %v833_v17 = vmul.f32 %v801_v8, %v577_v36  ;;  %1068 = vtanh.f32 %v720_v19  ;;  %v704_v24 = vadd.f32 %v672_v0, %v1487_v12  ;;  %v613_v27 = vmul.f32 0.044715, %v1516_v22 }
 0x129   : > { %v629_v37 = vmul.f32 %v597_v16, %v1507_v3  ;;  %v508_v30 = vmul.f32 %v1203_v58, %v1335_v52  ;;  %v575_v31 = vmul.f32 0.5, %v1448_v1  ;;  %v595_v32 = vmul.f32 0.044715, %v1522_v28 }
 0x12a   : > { %v1061_v29 = vpop.eup %1060  ;;  %866 = vst.msk [vmem:[%s1344_s10 + $0xd0] sm:$0xff] %vm839_vm3, %v833_v17  ;;  %v736_v21 = vmul.f32 0.7978846, %v704_v24  ;;  %v495_v42 = vmul.f32 %v1337_v53, %v1203_v58  ;;  %v645_v33 = vmul.f32 %v613_v27, %v1516_v22  ;;  %v511_v34 = vmul.f32 %v1349_v61, %v1203_v58 }
 0x12b   : > { %v783_v56 = vadd.f32 1.0, %v1061_v29  ;;  %v661_v54 = vmul.f32 %v629_v37, %v1507_v3  ;;  %v1538_v10 = vadd.f32 %v1208_v60, %v508_v30  ;;  %v627_v52 = vmul.f32 %v595_v32, %v1522_v28 }
 0x12c   : > { %1070 = vtanh.f32 %v736_v21  ;;  %v1542_v1 = vadd.f32 %v1208_v60, %v495_v42  ;;  %v562_v38 = vmul.f32 0.5, %v1452_v9  ;;  %v677_v25 = vmul.f32 %v645_v33, %v1516_v22 }
 0x12d   : > { %v1063_v15 = vpop.eup %1062  ;;  %v815_v53 = vmul.f32 %v783_v56, %v559_v18  ;;  %v693_v23 = vadd.f32 %v661_v54, %v1507_v3  ;;  %v578_v43 = vmul.f32 0.5, %v1467_v4  ;;  %v659_v44 = vmul.f32 %v627_v52, %v1522_v28 }
 0x12e   : > { %v1065_v57 = vpop.eup %1064  ;;  %v799_v40 = vadd.f32 1.0, %v1063_v15  ;;  %v611_v45 = vmul.f32 0.044715, %v1538_v10  ;;  %v709_v46 = vadd.f32 %v677_v25, %v1516_v22  ;;  %v598_v9 = vmul.f32 0.044715, %v1542_v1 }
 0x12f   : > { %848 = vst.msk [vmem:[%s1344_s10 + $0x40] sm:$0xff] %vm839_vm3, %v815_v53  ;;  %v786_v61 = vadd.f32 1.0, %v1065_v57  ;;  %v725_v5 = vmul.f32 0.7978846, %v693_v23  ;;  %v691_v49 = vadd.f32 %v659_v44, %v1522_v28  ;;  %v1559_v4 = vadd.f32 %v1208_v60, %v511_v34 }
 0x130   : > { %v831_v48 = vmul.f32 %v799_v40, %v575_v31  ;;  %v643_v36 = vmul.f32 %v611_v45, %v1538_v10  ;;  %v741_v55 = vmul.f32 0.7978846, %v709_v46  ;;  %v630_v47 = vmul.f32 %v598_v9, %v1542_v1 }
 0x131   : > { %v1067_v41 = vpop.eup %1066  ;;  %v818_v14 = vmul.f32 %v786_v61, %v562_v38  ;;  %1072 = vtanh.f32 %v725_v5  ;;  %v560_v59 = vmul.f32 0.5, %v1470_v26  ;;  %v723_v63 = vmul.f32 0.7978846, %v691_v49 }
 0x132   : > { %v1069_v51 = vpop.eup %1068  ;;  %864 = vst.msk [vmem:[%s1344_s10 + $0xc0] sm:$0xff] %vm839_vm3, %v831_v48  ;;  %v802_v35 = vadd.f32 1.0, %v1067_v41  ;;  %v675_v20 = vmul.f32 %v643_v36, %v1538_v10  ;;  %1074 = vtanh.f32 %v741_v55  ;;  %v662_v2 = vmul.f32 %v630_v47, %v1542_v1 }
 0x133   : > { %851 = vst.msk [vmem:[%s1344_s10 + $0x58] sm:$0xff] %vm839_vm3, %v818_v14  ;;  %v784_v13 = vadd.f32 1.0, %v1069_v51  ;;  %v614_v50 = vmul.f32 0.044715, %v1559_v4  ;;  %1076 = vtanh.f32 %v723_v63  ;;  %v493_v26 = vmul.f32 %v1203_v58, %v1351_v62 }
 0x134   : > { %v834_v6 = vmul.f32 %v802_v35, %v578_v43  ;;  %v707_v39 = vadd.f32 %v675_v20, %v1538_v10  ;;  %v694_v8 = vadd.f32 %v662_v2, %v1542_v1  ;;  %v509_v0 = vmul.f32 %v1203_v58, %v1357_v7 }
 0x135   : > { %v816_v11 = vmul.f32 %v784_v13, %v560_v59  ;;  %v646_v19 = vmul.f32 %v614_v50, %v1559_v4  ;;  %v576_v17 = vmul.f32 0.5, %v1487_v12  ;;  %v532_v18 = vadd.f32 %v1208_v60, %v493_v26 }
 0x136   : > { %v1071_v16 = vpop.eup %1070  ;;  %867 = vst.msk [vmem:[%s1344_s10 + $0xd8] sm:$0xff] %vm839_vm3, %v834_v6  ;;  %v739_v24 = vmul.f32 0.7978846, %v707_v39  ;;  %v726_v37 = vmul.f32 0.7978846, %v694_v8  ;;  %v548_v30 = vadd.f32 %v1208_v60, %v509_v0  ;;  %v565_v42 = vmul.f32 0.5, %v1507_v3 }
 0x137   : > { %849 = vst.msk [vmem:[%s1344_s10 + $0x48] sm:$0xff] %vm839_vm3, %v816_v11  ;;  %v800_v62 = vadd.f32 1.0, %v1071_v16  ;;  %v678_v27 = vmul.f32 %v646_v19, %v1559_v4  ;;  %v596_v29 = vmul.f32 0.044715, %v532_v18  ;;  %v581_v60 = vmul.f32 0.5, %v1516_v22 }
 0x138   : > { %1078 = vtanh.f32 %v739_v24  ;;  %v612_v12 = vmul.f32 0.044715, %v548_v30  ;;  %v563_v25 = vmul.f32 0.5, %v1522_v28  ;;  %v579_v28 = vmul.f32 0.5, %v1538_v10 }
 0x139   : > { %v832_v58 = vmul.f32 %v800_v62, %v576_v17  ;;  %1080 = vtanh.f32 %v726_v37  ;;  %v710_v7 = vadd.f32 %v678_v27, %v1559_v4  ;;  %v628_v31 = vmul.f32 %v596_v29, %v532_v18 }
 0x13a   : > { %v644_v33 = vmul.f32 %v612_v12, %v548_v30  ;;  %v566_v46 = vmul.f32 0.5, %v1542_v1  ;;  %v582_v41 = vmul.f32 0.5, %v1559_v4  ;;  %v564_v10 = vmul.f32 0.5, %v532_v18 }
 0x13b   : > { %v1073_v21 = vpop.eup %1072  ;;  %865 = vst.msk [vmem:[%s1344_s10 + $0xc8] sm:$0xff] %vm839_vm3, %v832_v58  ;;  %v742_v32 = vmul.f32 0.7978846, %v710_v7  ;;  %v660_v54 = vmul.f32 %v628_v31, %v532_v18  ;;  %v580_v59 = vmul.f32 0.5, %v548_v30 }
 0x13c   : > { %v789_v56 = vadd.f32 1.0, %v1073_v21  ;;  %v1075_v52 = vpop.eup %1074  ;;  %v676_v23 = vmul.f32 %v644_v33, %v548_v30 }
 0x13d   : > { %1082 = vtanh.f32 %v742_v32  ;;  %v1077_v34 = vpop.eup %1076  ;;  %v805_v53 = vadd.f32 1.0, %v1075_v52  ;;  %v692_v38 = vadd.f32 %v660_v54, %v532_v18 }
 0x13e   : > { %v821_v15 = vmul.f32 %v789_v56, %v565_v42  ;;  %v787_v57 = vadd.f32 1.0, %v1077_v34  ;;  %v708_v43 = vadd.f32 %v676_v23, %v548_v30 }
 0x13f   : > { %v837_v3 = vmul.f32 %v805_v53, %v581_v60  ;;  %v724_v40 = vmul.f32 0.7978846, %v692_v38 }
 0x140   : > { %854 = vst.msk [vmem:[%s1344_s10 + $0x70] sm:$0xff] %vm839_vm3, %v821_v15  ;;  %v819_v44 = vmul.f32 %v787_v57, %v563_v25  ;;  %v740_v22 = vmul.f32 0.7978846, %v708_v43 }
 0x141   : > { %870 = vst.msk [vmem:[%s1344_s10 + $0xf0] sm:$0xff] %vm839_vm3, %v837_v3  ;;  %1084 = vtanh.f32 %v724_v40 }
 0x142   : > { %v1079_v45 = vpop.eup %1078  ;;  %852 = vst.msk [vmem:[%s1344_s10 + $0x60] sm:$0xff] %vm839_vm3, %v819_v44  ;;  %1086 = vtanh.f32 %v740_v22 }
 0x143   : > { %v1081_v61 = vpop.eup %1080  ;;  %v803_v5 = vadd.f32 1.0, %v1079_v45 }
 0x144   : > { %v790_v9 = vadd.f32 1.0, %v1081_v61 }
 0x145   : > { %v835_v48 = vmul.f32 %v803_v5, %v579_v28 }
 0x146   : > { %v822_v49 = vmul.f32 %v790_v9, %v566_v46 }
 0x147   : > { %v1083_v36 = vpop.eup %1082  ;;  %868 = vst.msk [vmem:[%s1344_s10 + $0xe0] sm:$0xff] %vm839_vm3, %v835_v48 }
 0x148   : > { %855 = vst.msk [vmem:[%s1344_s10 + $0x78] sm:$0xff] %vm839_vm3, %v822_v49  ;;  %v806_v14 = vadd.f32 1.0, %v1083_v36 }
 0x14a   : > { %v838_v55 = vmul.f32 %v806_v14, %v582_v41 }
 0x14b   : > { %v1085_v47 = vpop.eup %1084 }
 0x14c   : > { %871 = vst.msk [vmem:[%s1344_s10 + $0xf8] sm:$0xff] %vm839_vm3, %v838_v55  ;;  %v788_v1 = vadd.f32 1.0, %v1085_v47  ;;  %v1087_v51 = vpop.eup %1086 }
 0x14d   : > { %v804_v63 = vadd.f32 1.0, %v1087_v51 }
 0x14e   : > { %v820_v35 = vmul.f32 %v788_v1, %v564_v10 }
 0x14f   : > { %v836_v20 = vmul.f32 %v804_v63, %v580_v59 }
 0x150   : > { %853 = vst.msk [vmem:[%s1344_s10 + $0x68] sm:$0xff] %vm839_vm3, %v820_v35 }
 0x151   : > { %869 = vst.msk [vmem:[%s1344_s10 + $0xe8] sm:$0xff] %vm839_vm3, %v836_v20 }
 0x152 PF: > { %s14_s15 = sadd.s32 1, %s1094_s15  }
 0x153   : > { %p11_p4 = scmp.ge.s32.totalorder %s14_s15, 4  }
 0x155   :  { %13 = sbr.rel (!%p11_p4) target bundleno = 1 (0x1), region = 66 }

// kernel: coatnet_forward.37
= control target key start
LH: loop header
LB: loop body
LE: loop exit
PB: predicated region body
PF: predicated region fallthrough
CT: control target
= control target key end

     0   :  { %vm327_vm0 = vcmask 1043456   ;;  %vm302_vm1 = vcmask 64512   ;;  %vm428_vm2 = vcmask 130048   ;;  %s1138_s1 = inlined_call_operand.vmem [shape: f32[8,16], index: 1, kind: input, shape index: {}]   ;;  %s1139_s0 = inlined_call_operand.vmem [shape: f32[9,128,8], index: 0, kind: input, shape index: {}]   ;;  %s1140_s2 = inlined_call_operand.vmem [shape: f32[128,16], index: 2, kind: output, shape index: {}]  }
   0x1   :  { %v300_v0 = vld [vmem:[%s1138_s1] sm:$0xff]  ;;  %v13_v2 = vld [vmem:[%s1139_s0 + $0x8] sm:$0xff]  ;;  %v14_v50 = vld [vmem:[%s1139_s0 + $0x10] sm:$0xff] }
   0x2   :  { %v12_v1 = vld [vmem:[%s1139_s0] sm:$0xff]  ;;  %v301_v3 = vpack.c.bf16 %v300_v0, %v300_v0  ;;  %v450_v5 = vld [vmem:[%s1139_s0 + $0x88] sm:$0xff]  ;;  %v15_v51 = vld [vmem:[%s1139_s0 + $0x18] sm:$0xff] }
   0x3   :  { %v449_v4 = vld [vmem:[%s1139_s0 + $0x80] sm:$0xff]  ;;  %v46_v8 = vmax.f32 %v13_v2, %v450_v5  ;;  %v466_v9 = vld [vmem:[%s1139_s0 + $0x108] sm:$0xff]  ;;  %v451_v53 = vld [vmem:[%s1139_s0 + $0x90] sm:$0xff] }
   0x4   :  { %v465_v6 = vld [vmem:[%s1139_s0 + $0x100] sm:$0xff]  ;;  %v45_v7 = vmax.f32 %v12_v1, %v449_v4  ;;  %614 = vmatprep.subr.msk.bf16.mxu0 %vm327_vm0, %v301_v3  ;;  %615 = vmatprep.subr.msk.bf16.mxu1 %vm327_vm0, %v301_v3  ;;  %v329_v10 = vsel %vm327_vm0, %v301_v3, 0  ;;  %v482_v12 = vld [vmem:[%s1139_s0 + $0x188] sm:$0xff]  ;;  %v452_v54 = vld [vmem:[%s1139_s0 + $0x98] sm:$0xff]  ;;  %v47_v0 = vmax.f32 %v14_v50, %v451_v53 }
   0x5   :  { %v481_v11 = vld [vmem:[%s1139_s0 + $0x180] sm:$0xff]  ;;  %595 = vmatpush3.bf16.msra.mxu0 %v329_v10  ;;  %613 = vmatpush3.bf16.msra.mxu1 %v329_v10  ;;  %v79_v14 = vmax.f32 %v46_v8, %v466_v9  ;;  %v498_v16 = vld [vmem:[%s1139_s0 + $0x208] sm:$0xff]  ;;  %v467_v59 = vld [vmem:[%s1139_s0 + $0x110] sm:$0xff]  ;;  %v48_v1 = vmax.f32 %v15_v51, %v452_v54 }
   0x6   :  { %v78_v13 = vmax.f32 %v45_v7, %v465_v6  ;;  %v497_v15 = vld [vmem:[%s1139_s0 + $0x200] sm:$0xff]  ;;  %v514_v20 = vld [vmem:[%s1139_s0 + $0x288] sm:$0xff]  ;;  %v468_v60 = vld [vmem:[%s1139_s0 + $0x118] sm:$0xff] }
   0x7   :  { %v513_v17 = vld [vmem:[%s1139_s0 + $0x280] sm:$0xff]  ;;  %v112_v19 = vmax.f32 %v79_v14, %v482_v12  ;;  %v21_v22 = vld [vmem:[%s1139_s0 + $0x48] sm:$0xff]  ;;  %v483_v7 = vld [vmem:[%s1139_s0 + $0x190] sm:$0xff]  ;;  %v81_v12 = vmax.f32 %v48_v1, %v468_v60 }
   0x8   :  { %v111_v18 = vmax.f32 %v78_v13, %v481_v11  ;;  %v20_v21 = vld [vmem:[%s1139_s0 + $0x40] sm:$0xff]  ;;  %v458_v24 = vld [vmem:[%s1139_s0 + $0xc8] sm:$0xff]  ;;  %v484_v8 = vld [vmem:[%s1139_s0 + $0x198] sm:$0xff]  ;;  %v80_v11 = vmax.f32 %v47_v0, %v467_v59 }
   0x9   :  { %v457_v23 = vld [vmem:[%s1139_s0 + $0xc0] sm:$0xff]  ;;  %v145_v27 = vmax.f32 %v112_v19, %v498_v16  ;;  %v54_v30 = vmax.f32 %v21_v22, %v458_v24  ;;  %v474_v31 = vld [vmem:[%s1139_s0 + $0x148] sm:$0xff]  ;;  %v499_v13 = vld [vmem:[%s1139_s0 + $0x210] sm:$0xff] }
   0xa   :  { %v473_v25 = vld [vmem:[%s1139_s0 + $0x140] sm:$0xff]  ;;  %v144_v26 = vmax.f32 %v111_v18, %v497_v15  ;;  %v53_v29 = vmax.f32 %v20_v21, %v457_v23  ;;  %v530_v32 = vld [vmem:[%s1139_s0 + $0x308] sm:$0xff]  ;;  %v22_v18 = vld [vmem:[%s1139_s0 + $0x50] sm:$0xff]  ;;  %v114_v21 = vmax.f32 %v81_v12, %v484_v8 }
   0xb   :  { %v529_v28 = vld [vmem:[%s1139_s0 + $0x300] sm:$0xff]  ;;  %v490_v34 = vld [vmem:[%s1139_s0 + $0x1c8] sm:$0xff]  ;;  %v178_v36 = vmax.f32 %v145_v27, %v514_v20  ;;  %v87_v40 = vmax.f32 %v54_v30, %v474_v31  ;;  %v23_v19 = vld [vmem:[%s1139_s0 + $0x58] sm:$0xff]  ;;  %v113_v20 = vmax.f32 %v80_v11, %v483_v7 }
   0xc   :  { %v489_v33 = vld [vmem:[%s1139_s0 + $0x1c0] sm:$0xff]  ;;  %v177_v35 = vmax.f32 %v144_v26, %v513_v17  ;;  %v546_v38 = vld [vmem:[%s1139_s0 + $0x388] sm:$0xff]  ;;  %v86_v39 = vmax.f32 %v53_v29, %v473_v25  ;;  %v500_v17 = vld [vmem:[%s1139_s0 + $0x218] sm:$0xff] }
   0xd   :  { %v545_v37 = vld [vmem:[%s1139_s0 + $0x380] sm:$0xff]  ;;  %v562_v42 = vld [vmem:[%s1139_s0 + $0x408] sm:$0xff]  ;;  %v211_v46 = vmax.f32 %v178_v36, %v530_v32  ;;  %v120_v48 = vmax.f32 %v87_v40, %v490_v34  ;;  %v459_v22 = vld [vmem:[%s1139_s0 + $0xd0] sm:$0xff]  ;;  %v146_v32 = vmax.f32 %v113_v20, %v499_v13 }
   0xe   :  { %v561_v41 = vld [vmem:[%s1139_s0 + $0x400] sm:$0xff]  ;;  %v506_v44 = vld [vmem:[%s1139_s0 + $0x248] sm:$0xff]  ;;  %v210_v45 = vmax.f32 %v177_v35, %v529_v28  ;;  %v119_v47 = vmax.f32 %v86_v39, %v489_v33  ;;  %v460_v23 = vld [vmem:[%s1139_s0 + $0xd8] sm:$0xff]  ;;  %v55_v29 = vmax.f32 %v22_v18, %v459_v22  ;;  %v147_v33 = vmax.f32 %v114_v21, %v500_v17 }
   0xf   :  { %v505_v43 = vld [vmem:[%s1139_s0 + $0x240] sm:$0xff]  ;;  %v522_v52 = vld [vmem:[%s1139_s0 + $0x2c8] sm:$0xff]  ;;  %v244_v56 = vmax.f32 %v211_v46, %v546_v38  ;;  %v153_v58 = vmax.f32 %v120_v48, %v506_v44  ;;  %v475_v24 = vld [vmem:[%s1139_s0 + $0x150] sm:$0xff]  ;;  %v56_v30 = vmax.f32 %v23_v19, %v460_v23 }
  0x10   :  { %v521_v49 = vld [vmem:[%s1139_s0 + $0x2c0] sm:$0xff]  ;;  %v243_v55 = vmax.f32 %v210_v45, %v545_v37  ;;  %v152_v57 = vmax.f32 %v119_v47, %v505_v43  ;;  %v538_v62 = vld [vmem:[%s1139_s0 + $0x348] sm:$0xff]  ;;  %v515_v27 = vld [vmem:[%s1139_s0 + $0x290] sm:$0xff] }
  0x11   :  { %v537_v61 = vld [vmem:[%s1139_s0 + $0x340] sm:$0xff]  ;;  %v277_v3 = vmax.f32 %v244_v56, %v562_v42  ;;  %v186_v5 = vmax.f32 %v153_v58, %v522_v52  ;;  %v554_v6 = vld [vmem:[%s1139_s0 + $0x3c8] sm:$0xff]  ;;  %v516_v28 = vld [vmem:[%s1139_s0 + $0x298] sm:$0xff]  ;;  %v88_v42 = vmax.f32 %v55_v29, %v475_v24  ;;  %v179_v44 = vmax.f32 %v146_v32, %v515_v27 }
  0x12   :  { %v553_v63 = vld [vmem:[%s1139_s0 + $0x3c0] sm:$0xff]  ;;  %v276_v2 = vmax.f32 %v243_v55, %v561_v41  ;;  %v185_v4 = vmax.f32 %v152_v57, %v521_v49  ;;  %v570_v10 = vld [vmem:[%s1139_s0 + $0x448] sm:$0xff]  ;;  %v476_v31 = vld [vmem:[%s1139_s0 + $0x158] sm:$0xff]  ;;  %v180_v45 = vmax.f32 %v147_v33, %v516_v28 }
  0x13   :  { %v569_v9 = vld [vmem:[%s1139_s0 + $0x440] sm:$0xff]  ;;  %v219_v16 = vmax.f32 %v186_v5, %v538_v62  ;;  %v531_v34 = vld [vmem:[%s1139_s0 + $0x310] sm:$0xff]  ;;  %v492_v36 = vld [vmem:[%s1139_s0 + $0x1d8] sm:$0xff]  ;;  %v89_v43 = vmax.f32 %v56_v30, %v476_v31 }
  0x14   :  { %v292_v14 = vpack.c.bf16 %v277_v3, %v276_v2  ;;  %v218_v15 = vmax.f32 %v185_v4, %v537_v61  ;;  %v491_v35 = vld [vmem:[%s1139_s0 + $0x1d0] sm:$0xff]  ;;  %v532_v39 = vld [vmem:[%s1139_s0 + $0x318] sm:$0xff]  ;;  %v16_v54 = vld [vmem:[%s1139_s0 + $0x20] sm:$0xff]  ;;  %v212_v56 = vmax.f32 %v179_v44, %v531_v34 }
  0x15   :  { %v252_v26 = vmax.f32 %v219_v16, %v554_v6  ;;  %v547_v40 = vld [vmem:[%s1139_s0 + $0x390] sm:$0xff]  ;;  %v548_v41 = vld [vmem:[%s1139_s0 + $0x398] sm:$0xff]  ;;  %v121_v51 = vmax.f32 %v88_v42, %v491_v35  ;;  %v122_v52 = vmax.f32 %v89_v43, %v492_v36  ;;  %v17_v55 = vld [vmem:[%s1139_s0 + $0x28] sm:$0xff]  ;;  %v213_v57 = vmax.f32 %v180_v45, %v532_v39 }
  0x16   :  { %596 = vmatprep.mubr.msk.bf16.mxu0 %vm302_vm1, %v292_v14  ;;  %v251_v25 = vmax.f32 %v218_v15, %v553_v63  ;;  %v507_v46 = vld [vmem:[%s1139_s0 + $0x250] sm:$0xff]  ;;  %v508_v47 = vld [vmem:[%s1139_s0 + $0x258] sm:$0xff]  ;;  %v453_v58 = vld [vmem:[%s1139_s0 + $0xa0] sm:$0xff]  ;;  %v245_v4 = vmax.f32 %v212_v56, %v547_v40 }
  0x17   :  { %v285_v38 = vmax.f32 %v252_v26, %v570_v10  ;;  %v523_v48 = vld [vmem:[%s1139_s0 + $0x2d0] sm:$0xff]  ;;  %v524_v53 = vld [vmem:[%s1139_s0 + $0x2d8] sm:$0xff]  ;;  %v454_v59 = vld [vmem:[%s1139_s0 + $0xa8] sm:$0xff]  ;;  %v154_v62 = vmax.f32 %v121_v51, %v507_v46  ;;  %v155_v63 = vmax.f32 %v122_v52, %v508_v47  ;;  %v49_v1 = vmax.f32 %v16_v54, %v453_v58 }
  0x18   :  { %v284_v37 = vmax.f32 %v251_v25, %v569_v9  ;;  %v563_v50 = vld [vmem:[%s1139_s0 + $0x410] sm:$0xff]  ;;  %v469_v60 = vld [vmem:[%s1139_s0 + $0x120] sm:$0xff]  ;;  %v564_v61 = vld [vmem:[%s1139_s0 + $0x418] sm:$0xff]  ;;  %v50_v2 = vmax.f32 %v17_v55, %v454_v59  ;;  %v246_v5 = vmax.f32 %v213_v57, %v548_v41 }
  0x19   :  { %v539_v0 = vld [vmem:[%s1139_s0 + $0x350] sm:$0xff]  ;;  %v470_v3 = vld [vmem:[%s1139_s0 + $0x128] sm:$0xff]  ;;  %v540_v6 = vld [vmem:[%s1139_s0 + $0x358] sm:$0xff]  ;;  %v187_v9 = vmax.f32 %v154_v62, %v523_v48  ;;  %v188_v10 = vmax.f32 %v155_v63, %v524_v53  ;;  %v82_v13 = vmax.f32 %v49_v1, %v469_v60  ;;  %v278_v15 = vmax.f32 %v245_v4, %v563_v50 }
  0x1a   :  { %v296_v49 = vpack.c.bf16 %v285_v38, %v284_v37  ;;  %v485_v7 = vld [vmem:[%s1139_s0 + $0x1a0] sm:$0xff]  ;;  %v486_v8 = vld [vmem:[%s1139_s0 + $0x1a8] sm:$0xff]  ;;  %v555_v11 = vld [vmem:[%s1139_s0 + $0x3d0] sm:$0xff]  ;;  %v83_v14 = vmax.f32 %v50_v2, %v470_v3  ;;  %v279_v16 = vmax.f32 %v246_v5, %v564_v61 }
  0x1b   :  { %v556_v12 = vld [vmem:[%s1139_s0 + $0x3d8] sm:$0xff]  ;;  %v571_v17 = vld [vmem:[%s1139_s0 + $0x450] sm:$0xff]  ;;  %v501_v19 = vld [vmem:[%s1139_s0 + $0x220] sm:$0xff]  ;;  %v220_v21 = vmax.f32 %v187_v9, %v539_v0  ;;  %v221_v22 = vmax.f32 %v188_v10, %v540_v6  ;;  %v115_v23 = vmax.f32 %v82_v13, %v485_v7 }
  0x1c   :  { %604 = vmatprep.mubr.msk.bf16.mxu1 %vm302_vm1, %v296_v49  ;;  %v572_v18 = vld [vmem:[%s1139_s0 + $0x458] sm:$0xff]  ;;  %v502_v20 = vld [vmem:[%s1139_s0 + $0x228] sm:$0xff]  ;;  %v116_v24 = vmax.f32 %v83_v14, %v486_v8  ;;  %v517_v25 = vld [vmem:[%s1139_s0 + $0x2a0] sm:$0xff]  ;;  %v293_v28 = vpack.c.bf16 %v279_v16, %v278_v15 }
  0x1d   :  { %v24_v26 = vld [vmem:[%s1139_s0 + $0x60] sm:$0xff]  ;;  %v25_v27 = vld [vmem:[%s1139_s0 + $0x68] sm:$0xff]  ;;  %v253_v32 = vmax.f32 %v220_v21, %v555_v11  ;;  %v254_v33 = vmax.f32 %v221_v22, %v556_v12  ;;  %v148_v34 = vmax.f32 %v115_v23, %v501_v19  ;;  %v18_v59 = vld [vmem:[%s1139_s0 + $0x30] sm:$0xff] }
  0x1e   :  { %v518_v29 = vld [vmem:[%s1139_s0 + $0x2a8] sm:$0xff]  ;;  %v461_v30 = vld [vmem:[%s1139_s0 + $0xe0] sm:$0xff]  ;;  %v149_v35 = vmax.f32 %v116_v24, %v502_v20  ;;  %597 = vmatmul.mubr.msk.bf16.vlgmr.msra.gmra.mrb[0].mxu0 %vm302_vm1, %v293_v28  ;;  %v19_v60 = vld [vmem:[%s1139_s0 + $0x38] sm:$0xff] }
  0x1f   :  { %v462_v31 = vld [vmem:[%s1139_s0 + $0xe8] sm:$0xff]  ;;  %v477_v36 = vld [vmem:[%s1139_s0 + $0x160] sm:$0xff]  ;;  %v57_v41 = vmax.f32 %v24_v26, %v461_v30  ;;  %v286_v43 = vmax.f32 %v253_v32, %v571_v17  ;;  %v287_v44 = vmax.f32 %v254_v33, %v572_v18  ;;  %v181_v45 = vmax.f32 %v148_v34, %v517_v25  ;;  %v455_v63 = vld [vmem:[%s1139_s0 + $0xb0] sm:$0xff] }
  0x20   :  { %v478_v37 = vld [vmem:[%s1139_s0 + $0x168] sm:$0xff]  ;;  %v533_v38 = vld [vmem:[%s1139_s0 + $0x320] sm:$0xff]  ;;  %v58_v42 = vmax.f32 %v25_v27, %v462_v31  ;;  %v182_v46 = vmax.f32 %v149_v35, %v518_v29  ;;  %v456_v0 = vld [vmem:[%s1139_s0 + $0xb8] sm:$0xff]  ;;  %v51_v6 = vmax.f32 %v18_v59, %v455_v63 }
  0x21   :  { %v534_v39 = vld [vmem:[%s1139_s0 + $0x328] sm:$0xff]  ;;  %v549_v40 = vld [vmem:[%s1139_s0 + $0x3a0] sm:$0xff]  ;;  %v90_v52 = vmax.f32 %v57_v41, %v477_v36  ;;  %v297_v55 = vpack.c.bf16 %v287_v44, %v286_v43  ;;  %v214_v56 = vmax.f32 %v181_v45, %v533_v38  ;;  %v471_v1 = vld [vmem:[%s1139_s0 + $0x130] sm:$0xff]  ;;  %v52_v7 = vmax.f32 %v19_v60, %v456_v0 }
  0x22   :  { %v550_v47 = vld [vmem:[%s1139_s0 + $0x3a8] sm:$0xff]  ;;  %v493_v48 = vld [vmem:[%s1139_s0 + $0x1e0] sm:$0xff]  ;;  %v91_v53 = vmax.f32 %v58_v42, %v478_v37  ;;  %v215_v57 = vmax.f32 %v182_v46, %v534_v39  ;;  %v472_v8 = vld [vmem:[%s1139_s0 + $0x138] sm:$0xff]  ;;  %v84_v19 = vmax.f32 %v51_v6, %v471_v1 }
  0x23   :  { %v494_v49 = vld [vmem:[%s1139_s0 + $0x1e8] sm:$0xff]  ;;  %v565_v50 = vld [vmem:[%s1139_s0 + $0x420] sm:$0xff]  ;;  %v123_v61 = vmax.f32 %v90_v52, %v493_v48  ;;  %605 = vmatmul.mubr.msk.bf16.vlgmr.msra.gmra.mrb[0].mxu1 %vm302_vm1, %v297_v55  ;;  %v247_v2 = vmax.f32 %v214_v56, %v549_v40  ;;  %v487_v12 = vld [vmem:[%s1139_s0 + $0x1b0] sm:$0xff]  ;;  %v85_v20 = vmax.f32 %v52_v7, %v472_v8 }
  0x24   :  { %v566_v51 = vld [vmem:[%s1139_s0 + $0x428] sm:$0xff]  ;;  %v509_v54 = vld [vmem:[%s1139_s0 + $0x260] sm:$0xff]  ;;  %v124_v62 = vmax.f32 %v91_v53, %v494_v49  ;;  %v248_v3 = vmax.f32 %v215_v57, %v550_v47  ;;  %v488_v13 = vld [vmem:[%s1139_s0 + $0x1b8] sm:$0xff]  ;;  %v117_v28 = vmax.f32 %v84_v19, %v487_v12 }
  0x25   :  { %v510_v58 = vld [vmem:[%s1139_s0 + $0x268] sm:$0xff]  ;;  %v525_v4 = vld [vmem:[%s1139_s0 + $0x2e0] sm:$0xff]  ;;  %v156_v9 = vmax.f32 %v123_v61, %v509_v54  ;;  %v280_v14 = vmax.f32 %v247_v2, %v565_v50  ;;  %v503_v23 = vld [vmem:[%s1139_s0 + $0x230] sm:$0xff]  ;;  %v118_v29 = vmax.f32 %v85_v20, %v488_v13 }
  0x26   :  { %v526_v5 = vld [vmem:[%s1139_s0 + $0x2e8] sm:$0xff]  ;;  %v157_v10 = vmax.f32 %v124_v62, %v510_v58  ;;  %v541_v11 = vld [vmem:[%s1139_s0 + $0x360] sm:$0xff]  ;;  %v281_v15 = vmax.f32 %v248_v3, %v566_v51  ;;  %v504_v24 = vld [vmem:[%s1139_s0 + $0x238] sm:$0xff]  ;;  %v150_v39 = vmax.f32 %v117_v28, %v503_v23 }
  0x27   :  { %v542_v16 = vld [vmem:[%s1139_s0 + $0x368] sm:$0xff]  ;;  %v557_v17 = vld [vmem:[%s1139_s0 + $0x3e0] sm:$0xff]  ;;  %v189_v21 = vmax.f32 %v156_v9, %v525_v4  ;;  %v519_v25 = vld [vmem:[%s1139_s0 + $0x2b0] sm:$0xff]  ;;  %v151_v40 = vmax.f32 %v118_v29, %v504_v24 }
  0x28   :  { %v558_v18 = vld [vmem:[%s1139_s0 + $0x3e8] sm:$0xff]  ;;  %v190_v22 = vmax.f32 %v157_v10, %v526_v5  ;;  %v294_v26 = vpack.c.bf16 %v281_v15, %v280_v14  ;;  %v573_v27 = vld [vmem:[%s1139_s0 + $0x460] sm:$0xff]  ;;  %v520_v30 = vld [vmem:[%s1139_s0 + $0x2b8] sm:$0xff]  ;;  %v183_v50 = vmax.f32 %v150_v39, %v519_v25 }
  0x29   :  { %v26_v31 = vld [vmem:[%s1139_s0 + $0x70] sm:$0xff]  ;;  %v27_v32 = vld [vmem:[%s1139_s0 + $0x78] sm:$0xff]  ;;  %v222_v33 = vmax.f32 %v189_v21, %v541_v11  ;;  %v574_v38 = vld [vmem:[%s1139_s0 + $0x468] sm:$0xff]  ;;  %v184_v51 = vmax.f32 %v151_v40, %v520_v30 }
  0x2a   :  { %v223_v34 = vmax.f32 %v190_v22, %v542_v16  ;;  %v463_v35 = vld [vmem:[%s1139_s0 + $0xf0] sm:$0xff]  ;;  %v464_v36 = vld [vmem:[%s1139_s0 + $0xf8] sm:$0xff]  ;;  %600 = vmatprep.mubr.msk.bf16.mxu0 %vm302_vm1, %v294_v26 }
  0x2b   :  { %v479_v37 = vld [vmem:[%s1139_s0 + $0x170] sm:$0xff]  ;;  %v59_v42 = vmax.f32 %v26_v31, %v463_v35  ;;  %v60_v43 = vmax.f32 %v27_v32, %v464_v36  ;;  %v480_v44 = vld [vmem:[%s1139_s0 + $0x178] sm:$0xff]  ;;  %v255_v45 = vmax.f32 %v222_v33, %v557_v17 }
  0x2c   :  { %v535_v41 = vld [vmem:[%s1139_s0 + $0x330] sm:$0xff]  ;;  %v256_v46 = vmax.f32 %v223_v34, %v558_v18  ;;  %v536_v47 = vld [vmem:[%s1139_s0 + $0x338] sm:$0xff] }
  0x2d   :  { %v495_v48 = vld [vmem:[%s1139_s0 + $0x1f0] sm:$0xff]  ;;  %v496_v49 = vld [vmem:[%s1139_s0 + $0x1f8] sm:$0xff]  ;;  %v92_v53 = vmax.f32 %v59_v42, %v479_v37  ;;  %v93_v54 = vmax.f32 %v60_v43, %v480_v44  ;;  %v288_v55 = vmax.f32 %v255_v45, %v573_v27  ;;  %v216_v60 = vmax.f32 %v183_v50, %v535_v41 }
  0x2e   :  { %v551_v52 = vld [vmem:[%s1139_s0 + $0x3b0] sm:$0xff]  ;;  %v289_v56 = vmax.f32 %v256_v46, %v574_v38  ;;  %v552_v57 = vld [vmem:[%s1139_s0 + $0x3b8] sm:$0xff]  ;;  %v217_v61 = vmax.f32 %v184_v51, %v536_v47 }
  0x2f   :  { %v511_v58 = vld [vmem:[%s1139_s0 + $0x270] sm:$0xff]  ;;  %v512_v59 = vld [vmem:[%s1139_s0 + $0x278] sm:$0xff]  ;;  %v125_v63 = vmax.f32 %v92_v53, %v495_v48  ;;  %v126_v0 = vmax.f32 %v93_v54, %v496_v49  ;;  %v249_v5 = vmax.f32 %v216_v60, %v551_v52 }
  0x30   :  { %v567_v62 = vld [vmem:[%s1139_s0 + $0x430] sm:$0xff]  ;;  %v298_v1 = vpack.c.bf16 %v289_v56, %v288_v55  ;;  %v568_v2 = vld [vmem:[%s1139_s0 + $0x438] sm:$0xff]  ;;  %v250_v6 = vmax.f32 %v217_v61, %v552_v57 }
  0x31   :  { %v527_v3 = vld [vmem:[%s1139_s0 + $0x2f0] sm:$0xff]  ;;  %v528_v4 = vld [vmem:[%s1139_s0 + $0x2f8] sm:$0xff]  ;;  %v158_v7 = vmax.f32 %v125_v63, %v511_v58  ;;  %v159_v8 = vmax.f32 %v126_v0, %v512_v59  ;;  %v282_v11 = vmax.f32 %v249_v5, %v567_v62 }
  0x32   :  { %608 = vmatprep.mubr.msk.bf16.mxu1 %vm302_vm1, %v298_v1  ;;  %v543_v9 = vld [vmem:[%s1139_s0 + $0x370] sm:$0xff]  ;;  %v544_v10 = vld [vmem:[%s1139_s0 + $0x378] sm:$0xff]  ;;  %v283_v12 = vmax.f32 %v250_v6, %v568_v2 }
  0x33   :  { %v191_v13 = vmax.f32 %v158_v7, %v527_v3  ;;  %v192_v14 = vmax.f32 %v159_v8, %v528_v4  ;;  %v559_v15 = vld [vmem:[%s1139_s0 + $0x3f0] sm:$0xff]  ;;  %v560_v16 = vld [vmem:[%s1139_s0 + $0x3f8] sm:$0xff] }
  0x34   :  { %v295_v17 = vpack.c.bf16 %v283_v12, %v282_v11  ;;  %v575_v20 = vld [vmem:[%s1139_s0 + $0x470] sm:$0xff]  ;;  %v576_v21 = vld [vmem:[%s1139_s0 + $0x478] sm:$0xff] }
  0x35   :  { %v224_v18 = vmax.f32 %v191_v13, %v543_v9  ;;  %v225_v19 = vmax.f32 %v192_v14, %v544_v10 }
  0x36   :  { %601 = vmatmul.mubr.msk.bf16.gmra.mrb[4].mxu0 %vm302_vm1, %v295_v17 }
  0x37   :  { %v257_v22 = vmax.f32 %v224_v18, %v559_v15  ;;  %v258_v23 = vmax.f32 %v225_v19, %v560_v16 }
  0x39   :  { %v290_v24 = vmax.f32 %v257_v22, %v575_v20  ;;  %v291_v25 = vmax.f32 %v258_v23, %v576_v21 }
  0x3b   :  { %v299_v26 = vpack.c.bf16 %v291_v25, %v290_v24 }
  0x3d   :  { %609 = vmatmul.mubr.msk.bf16.gmra.mrb[4].mxu1 %vm302_vm1, %v299_v26 }
  0xf1   :  { %v598_v27 = vpop.f32.mrb[0].mxu0 }
  0xf2   :  { %431 = vst.msk [vmem:[%s1140_s2 + $0x10] sm:$0xff] %vm428_vm2, %v598_v27  ;;  %v365_v28 = vpop.f32.mrb[1].mxu0 }
  0xf3   :  { %429 = vst.msk [vmem:[%s1140_s2] sm:$0xff] %vm428_vm2, %v365_v28  ;;  %v599_v29 = vpop.f32.mrb[2].mxu0 }
  0xf4   :  { %432 = vst.msk [vmem:[%s1140_s2 + $0x18] sm:$0xff] %vm428_vm2, %v599_v29  ;;  %v368_v30 = vpop.f32.mrb[3].mxu0 }
  0xf5   :  { %430 = vst.msk [vmem:[%s1140_s2 + $0x8] sm:$0xff] %vm428_vm2, %v368_v30 }
  0xf6   :  { %v606_v31 = vpop.f32.mrb[0].mxu1 }
  0xf7   :  { %439 = vst.msk [vmem:[%s1140_s2 + $0x50] sm:$0xff] %vm428_vm2, %v606_v31  ;;  %v397_v32 = vpop.f32.mrb[1].mxu1 }
  0xf8   :  { %437 = vst.msk [vmem:[%s1140_s2 + $0x40] sm:$0xff] %vm428_vm2, %v397_v32  ;;  %v607_v33 = vpop.f32.mrb[2].mxu1 }
  0xf9   :  { %440 = vst.msk [vmem:[%s1140_s2 + $0x58] sm:$0xff] %vm428_vm2, %v607_v33  ;;  %v400_v34 = vpop.f32.mrb[3].mxu1 }
  0xfa   :  { %438 = vst.msk [vmem:[%s1140_s2 + $0x48] sm:$0xff] %vm428_vm2, %v400_v34 }
 0x109   :  { %v602_v35 = vpop.f32.mrb[4].mxu0 }
 0x10a   :  { %435 = vst.msk [vmem:[%s1140_s2 + $0x30] sm:$0xff] %vm428_vm2, %v602_v35  ;;  %v381_v36 = vpop.f32.mrb[5].mxu0 }
 0x10b   :  { %433 = vst.msk [vmem:[%s1140_s2 + $0x20] sm:$0xff] %vm428_vm2, %v381_v36  ;;  %v603_v37 = vpop.f32.mrb[6].mxu0 }
 0x10c   :  { %436 = vst.msk [vmem:[%s1140_s2 + $0x38] sm:$0xff] %vm428_vm2, %v603_v37  ;;  %v384_v38 = vpop.f32.mrb[7].mxu0 }
 0x10d   :  { %434 = vst.msk [vmem:[%s1140_s2 + $0x28] sm:$0xff] %vm428_vm2, %v384_v38 }
 0x110   :  { %v610_v39 = vpop.f32.mrb[4].mxu1 }
 0x111   :  { %443 = vst.msk [vmem:[%s1140_s2 + $0x70] sm:$0xff] %vm428_vm2, %v610_v39  ;;  %v413_v40 = vpop.f32.mrb[5].mxu1 }
 0x112   :  { %441 = vst.msk [vmem:[%s1140_s2 + $0x60] sm:$0xff] %vm428_vm2, %v413_v40  ;;  %v611_v41 = vpop.f32.mrb[6].mxu1 }
 0x113   :  { %444 = vst.msk [vmem:[%s1140_s2 + $0x78] sm:$0xff] %vm428_vm2, %v611_v41  ;;  %v416_v42 = vpop.f32.mrb[7].mxu1 }
 0x114   :  { %442 = vst.msk [vmem:[%s1140_s2 + $0x68] sm:$0xff] %vm428_vm2, %v416_v42 }

// kernel: coatnet_forward.32
= control target key start
LH: loop header
LB: loop body
LE: loop exit
PB: predicated region body
PF: predicated region fallthrough
CT: control target
= control target key end

     0   :  { %vm69_vm0 = vcmask 1043456   ;;  %vm44_vm1 = vcmask 64512   ;;  %vm360_vm2 = vcmask 261120   ;;  %s751_s1 = inlined_call_operand.vmem [shape: f32[8,32], index: 1, kind: input, shape index: {}]   ;;  %s752_s0 = inlined_call_operand.vmem [shape: f32[128,8], index: 0, kind: input, shape index: {}]   ;;  %s753_s2 = inlined_call_operand.vmem [shape: f32[1,32], index: 2, kind: input, shape index: {}]   ;;  %s754_s3 = inlined_call_operand.vmem [shape: f32[1,32], index: 3, kind: input, shape index: {}]   ;;  %s755_s4 = inlined_call_operand.vmem [shape: f32[128,32], index: 4, kind: output, shape index: {}]  }
   0x1   :  { %v42_v0 = vld [vmem:[%s751_s1] sm:$0xff]  ;;  %v19_v2 = vld [vmem:[%s752_s0 + $0x8] sm:$0xff]  ;;  %v20_v7 = vld [vmem:[%s752_s0 + $0x10] sm:$0xff] }
   0x2   :  { %v18_v1 = vld [vmem:[%s752_s0] sm:$0xff]  ;;  %v43_v3 = vpack.c.bf16 %v42_v0, %v42_v0  ;;  %v27_v6 = vld [vmem:[%s752_s0 + $0x48] sm:$0xff]  ;;  %v21_v9 = vld [vmem:[%s752_s0 + $0x18] sm:$0xff] }
   0x3   :  { %v34_v4 = vpack.c.bf16 %v19_v2, %v18_v1  ;;  %v26_v5 = vld [vmem:[%s752_s0 + $0x40] sm:$0xff]  ;;  %v28_v10 = vld [vmem:[%s752_s0 + $0x50] sm:$0xff]  ;;  %v29_v11 = vld [vmem:[%s752_s0 + $0x58] sm:$0xff]  ;;  %v35_v13 = vpack.c.bf16 %v21_v9, %v20_v7 }
   0x4   :  { %v38_v8 = vpack.c.bf16 %v27_v6, %v26_v5  ;;  %420 = vmatprep.subr.msk.bf16.mxu0 %vm69_vm0, %v43_v3  ;;  %421 = vmatprep.subr.msk.bf16.mxu1 %vm69_vm0, %v43_v3  ;;  %v71_v12 = vsel %vm69_vm0, %v43_v3, 0  ;;  %v39_v14 = vpack.c.bf16 %v29_v11, %v28_v10  ;;  %v22_v15 = vld [vmem:[%s752_s0 + $0x20] sm:$0xff]  ;;  %v23_v16 = vld [vmem:[%s752_s0 + $0x28] sm:$0xff]  ;;  %v24_v21 = vld [vmem:[%s752_s0 + $0x30] sm:$0xff] }
   0x5   :  { %v30_v17 = vld [vmem:[%s752_s0 + $0x60] sm:$0xff]  ;;  %401 = vmatpush3.bf16.msra.mxu0 %v71_v12  ;;  %419 = vmatpush3.bf16.msra.mxu1 %v71_v12  ;;  %v36_v18 = vpack.c.bf16 %v23_v16, %v22_v15  ;;  %v31_v19 = vld [vmem:[%s752_s0 + $0x68] sm:$0xff]  ;;  %v25_v22 = vld [vmem:[%s752_s0 + $0x38] sm:$0xff] }
   0x6   :  { %402 = vmatprep.mubr.msk.bf16.mxu0 %vm44_vm1, %v34_v4  ;;  %410 = vmatprep.mubr.msk.bf16.mxu1 %vm44_vm1, %v38_v8  ;;  %v40_v20 = vpack.c.bf16 %v31_v19, %v30_v17  ;;  %v32_v23 = vld [vmem:[%s752_s0 + $0x70] sm:$0xff]  ;;  %v33_v24 = vld [vmem:[%s752_s0 + $0x78] sm:$0xff]  ;;  %v37_v25 = vpack.c.bf16 %v25_v22, %v24_v21  ;;  %v541_v27 = vld [vmem:[%s753_s2] ss:$0 sm:$0xff] }
   0x7   :  { %v41_v26 = vpack.c.bf16 %v33_v24, %v32_v23  ;;  %v546_v29 = vld [vmem:[%s754_s3] ss:$0 sm:$0xff] }
   0x8   :  { %403 = vmatmul.mubr.msk.bf16.vlgmr.msra.gmra.mrb[0].mxu0 %vm44_vm1, %v35_v13  ;;  %411 = vmatmul.mubr.msk.bf16.vlgmr.msra.gmra.mrb[0].mxu1 %vm44_vm1, %v39_v14 }
   0x9   :  { %406 = vmatprep.mubr.msk.bf16.mxu0 %vm44_vm1, %v36_v18  ;;  %414 = vmatprep.mubr.msk.bf16.mxu1 %vm44_vm1, %v40_v20 }
  0x10   :  { %407 = vmatmul.mubr.msk.bf16.gmra.mrb[4].mxu0 %vm44_vm1, %v37_v25  ;;  %415 = vmatmul.mubr.msk.bf16.gmra.mrb[4].mxu1 %vm44_vm1, %v41_v26 }
  0xdb   :  { %v404_v28 = vpop.f32.mrb[0].mxu0  ;;  %v412_v30 = vpop.f32.mrb[0].mxu1 }
  0xdc   :  { %v179_v31 = vmul.f32 %v404_v28, %v541_v27  ;;  %v187_v32 = vmul.f32 %v412_v30, %v541_v27  ;;  %v107_v33 = vpop.f32.mrb[1].mxu0  ;;  %v139_v34 = vpop.f32.mrb[1].mxu1 }
  0xdd   :  { %v177_v35 = vmul.f32 %v541_v27, %v107_v33  ;;  %v185_v36 = vmul.f32 %v541_v27, %v139_v34  ;;  %v405_v37 = vpop.f32.mrb[2].mxu0  ;;  %v413_v38 = vpop.f32.mrb[2].mxu1 }
  0xde   :  { %v202_v39 = vadd.f32 %v546_v29, %v179_v31  ;;  %v554_v40 = vadd.f32 %v546_v29, %v187_v32  ;;  %v180_v41 = vmul.f32 %v405_v37, %v541_v27  ;;  %v188_v42 = vmul.f32 %v413_v38, %v541_v27  ;;  %v110_v43 = vpop.f32.mrb[3].mxu0  ;;  %v142_v44 = vpop.f32.mrb[3].mxu1 }
  0xdf   :  { %v559_v45 = vadd.f32 %v546_v29, %v177_v35  ;;  %v562_v46 = vadd.f32 %v546_v29, %v185_v36  ;;  %v178_v47 = vmul.f32 %v541_v27, %v110_v43  ;;  %v186_v52 = vmul.f32 %v541_v27, %v142_v44 }
  0xe0   :  { %v234_v48 = vmul.f32 0.044715, %v202_v39  ;;  %v242_v49 = vmul.f32 0.044715, %v554_v40  ;;  %v571_v55 = vadd.f32 %v546_v29, %v180_v41  ;;  %v574_v56 = vadd.f32 %v546_v29, %v188_v42 }
  0xe1   :  { %v232_v50 = vmul.f32 0.044715, %v559_v45  ;;  %v240_v51 = vmul.f32 0.044715, %v562_v46  ;;  %v579_v59 = vadd.f32 %v546_v29, %v178_v47  ;;  %v589_v11 = vadd.f32 %v546_v29, %v186_v52 }
  0xe2   :  { %v250_v53 = vmul.f32 %v234_v48, %v202_v39  ;;  %v258_v54 = vmul.f32 %v242_v49, %v554_v40  ;;  %v235_v0 = vmul.f32 0.044715, %v571_v55  ;;  %v243_v5 = vmul.f32 0.044715, %v574_v56 }
  0xe3   :  { %v248_v57 = vmul.f32 %v232_v50, %v559_v45  ;;  %v256_v58 = vmul.f32 %v240_v51, %v562_v46  ;;  %v408_v60 = vpop.f32.mrb[4].mxu0  ;;  %v416_v61 = vpop.f32.mrb[4].mxu1  ;;  %v233_v17 = vmul.f32 0.044715, %v579_v59  ;;  %v599_v18 = vmul.f32 0.5, %v202_v39 }
  0xe4   :  { %v266_v62 = vmul.f32 %v250_v53, %v202_v39  ;;  %v274_v63 = vmul.f32 %v258_v54, %v554_v40  ;;  %v123_v1 = vpop.f32.mrb[5].mxu0  ;;  %v155_v2 = vpop.f32.mrb[5].mxu1  ;;  %v251_v10 = vmul.f32 %v235_v0, %v571_v55  ;;  %v259_v16 = vmul.f32 %v243_v5, %v574_v56 }
  0xe5   :  { %v264_v3 = vmul.f32 %v248_v57, %v559_v45  ;;  %v272_v4 = vmul.f32 %v256_v58, %v562_v46  ;;  %v409_v6 = vpop.f32.mrb[6].mxu0  ;;  %v417_v7 = vpop.f32.mrb[6].mxu1  ;;  %v249_v25 = vmul.f32 %v233_v17, %v579_v59  ;;  %v241_v28 = vmul.f32 0.044715, %v589_v11 }
  0xe6   :  { %v282_v8 = vadd.f32 %v266_v62, %v202_v39  ;;  %v290_v9 = vadd.f32 %v274_v63, %v554_v40  ;;  %v591_v12 = vpop.f32.mrb[7].mxu0  ;;  %v593_v13 = vpop.f32.mrb[7].mxu1  ;;  %v267_v21 = vmul.f32 %v251_v10, %v571_v55  ;;  %v275_v24 = vmul.f32 %v259_v16, %v574_v56 }
  0xe7   :  { %v280_v14 = vadd.f32 %v264_v3, %v559_v45  ;;  %v288_v15 = vadd.f32 %v272_v4, %v562_v46  ;;  %v183_v30 = vmul.f32 %v408_v60, %v541_v27  ;;  %v265_v32 = vmul.f32 %v249_v25, %v579_v59 }
  0xe8   :  { %v298_v19 = vmul.f32 0.7978846, %v282_v8  ;;  %v306_v20 = vmul.f32 0.7978846, %v290_v9  ;;  %v283_v26 = vadd.f32 %v267_v21, %v571_v55  ;;  %v291_v31 = vadd.f32 %v275_v24, %v574_v56 }
  0xe9   :  { %v296_v22 = vmul.f32 0.7978846, %v280_v14  ;;  %v304_v23 = vmul.f32 0.7978846, %v288_v15  ;;  %v191_v33 = vmul.f32 %v416_v61, %v541_v27  ;;  %v257_v35 = vmul.f32 %v241_v28, %v589_v11 }
  0xea   :  { %422 = vtanh.f32 %v298_v19  ;;  %v299_v34 = vmul.f32 0.7978846, %v283_v26  ;;  %v612_v36 = vadd.f32 %v546_v29, %v183_v30  ;;  %v307_v37 = vmul.f32 0.7978846, %v291_v31 }
  0xeb   :  { %424 = vtanh.f32 %v306_v20  ;;  %v281_v38 = vadd.f32 %v265_v32, %v579_v59  ;;  %v616_v39 = vadd.f32 %v546_v29, %v191_v33  ;;  %v226_v41 = vmul.f32 0.5, %v554_v40 }
  0xec   :  { %426 = vtanh.f32 %v296_v22  ;;  %v273_v42 = vmul.f32 %v257_v35, %v589_v11  ;;  %v238_v43 = vmul.f32 0.044715, %v612_v36  ;;  %v216_v44 = vmul.f32 0.5, %v559_v45 }
  0xed   :  { %428 = vtanh.f32 %v304_v23  ;;  %v297_v47 = vmul.f32 0.7978846, %v281_v38  ;;  %v246_v48 = vmul.f32 0.044715, %v616_v39  ;;  %v181_v51 = vmul.f32 %v541_v27, %v123_v1 }
  0xee   :  { %430 = vtanh.f32 %v299_v34  ;;  %v289_v49 = vadd.f32 %v273_v42, %v589_v11  ;;  %v254_v50 = vmul.f32 %v238_v43, %v612_v36  ;;  %v189_v52 = vmul.f32 %v541_v27, %v155_v2 }
  0xef   :  { %432 = vtanh.f32 %v307_v37  ;;  %v262_v40 = vmul.f32 %v246_v48, %v616_v39  ;;  %v184_v53 = vmul.f32 %v409_v6, %v541_v27  ;;  %v192_v54 = vmul.f32 %v417_v7, %v541_v27 }
  0xf0   :  { %434 = vtanh.f32 %v297_v47  ;;  %v305_v45 = vmul.f32 0.7978846, %v289_v49  ;;  %v270_v57 = vmul.f32 %v254_v50, %v612_v36  ;;  %v632_v58 = vadd.f32 %v546_v29, %v181_v51 }
  0xf1   :  { %v635_v60 = vadd.f32 %v546_v29, %v189_v52  ;;  %v224_v61 = vmul.f32 0.5, %v562_v46  ;;  %v219_v62 = vmul.f32 0.5, %v571_v55  ;;  %v227_v63 = vmul.f32 0.5, %v574_v56 }
  0xf2   :  { %v278_v0 = vmul.f32 %v262_v40, %v616_v39  ;;  %436 = vtanh.f32 %v305_v45  ;;  %v286_v2 = vadd.f32 %v270_v57, %v612_v36  ;;  %v236_v3 = vmul.f32 0.044715, %v632_v58 }
  0xf3   :  { %v644_v4 = vadd.f32 %v546_v29, %v184_v53  ;;  %v244_v46 = vmul.f32 0.044715, %v635_v60  ;;  %v649_v55 = vadd.f32 %v546_v29, %v192_v54  ;;  %v182_v14 = vmul.f32 %v541_v27, %v591_v12 }
  0xf4   :  { %v423_v1 = vpop.eup %422  ;;  %v294_v7 = vadd.f32 %v278_v0, %v616_v39  ;;  %v302_v9 = vmul.f32 0.7978846, %v286_v2  ;;  %v252_v10 = vmul.f32 %v236_v3, %v632_v58  ;;  %v217_v35 = vmul.f32 0.5, %v579_v59 }
  0xf5   :  { %v425_v5 = vpop.eup %424  ;;  %v330_v6 = vadd.f32 1.0, %v423_v1  ;;  %v260_v20 = vmul.f32 %v244_v46, %v635_v60  ;;  %v239_v32 = vmul.f32 0.044715, %v644_v4  ;;  %v247_v38 = vmul.f32 0.044715, %v649_v55 }
  0xf6   :  { %v427_v56 = vpop.eup %426  ;;  %v338_v8 = vadd.f32 1.0, %v425_v5  ;;  %v310_v19 = vmul.f32 0.7978846, %v294_v7  ;;  %438 = vtanh.f32 %v302_v9  ;;  %v268_v24 = vmul.f32 %v252_v10, %v632_v58 }
  0xf7   :  { %v429_v15 = vpop.eup %428  ;;  %v346_v16 = vmul.f32 %v330_v6, %v599_v18  ;;  %v328_v17 = vadd.f32 1.0, %v427_v56  ;;  %v276_v18 = vmul.f32 %v260_v20, %v635_v60  ;;  %v263_v47 = vmul.f32 %v247_v38, %v649_v55 }
  0xf8   :  { %v431_v21 = vpop.eup %430  ;;  %v354_v22 = vmul.f32 %v338_v8, %v226_v41  ;;  %v336_v23 = vadd.f32 1.0, %v429_v15  ;;  %440 = vtanh.f32 %v310_v19  ;;  %v284_v31 = vadd.f32 %v268_v24, %v632_v58 }
  0xf9   :  { %v433_v25 = vpop.eup %432  ;;  %363 = vst.msk [vmem:[%s755_s4 + $0x10] sm:$0xff] %vm360_vm2, %v346_v16  ;;  %v344_v12 = vmul.f32 %v328_v17, %v216_v44  ;;  %v331_v26 = vadd.f32 1.0, %v431_v21  ;;  %v292_v37 = vadd.f32 %v276_v18, %v635_v60  ;;  %v255_v44 = vmul.f32 %v239_v32, %v644_v4 }
  0xfa   :  { %371 = vst.msk [vmem:[%s755_s4 + $0x50] sm:$0xff] %vm360_vm2, %v354_v22  ;;  %v352_v28 = vmul.f32 %v336_v23, %v224_v61  ;;  %v339_v30 = vadd.f32 1.0, %v433_v25  ;;  %v435_v33 = vpop.eup %434  ;;  %v300_v43 = vmul.f32 0.7978846, %v284_v31  ;;  %v686_v48 = vadd.f32 %v546_v29, %v182_v14 }
  0xfb   :  { %361 = vst.msk [vmem:[%s755_s4] sm:$0xff] %vm360_vm2, %v344_v12  ;;  %v347_v34 = vmul.f32 %v331_v26, %v219_v62  ;;  %v329_v42 = vadd.f32 1.0, %v435_v33  ;;  %v308_v59 = vmul.f32 0.7978846, %v292_v37  ;;  %v190_v49 = vmul.f32 %v541_v27, %v593_v13 }
  0xfc   :  { %369 = vst.msk [vmem:[%s755_s4 + $0x40] sm:$0xff] %vm360_vm2, %v352_v28  ;;  %v355_v41 = vmul.f32 %v339_v30, %v227_v63  ;;  %v437_v50 = vpop.eup %436  ;;  %442 = vtanh.f32 %v300_v43  ;;  %v271_v52 = vmul.f32 %v255_v44, %v644_v4  ;;  %v225_v40 = vmul.f32 0.5, %v589_v11 }
  0xfd   :  { %364 = vst.msk [vmem:[%s755_s4 + $0x18] sm:$0xff] %vm360_vm2, %v347_v34  ;;  %v345_v51 = vmul.f32 %v329_v42, %v217_v35  ;;  %v337_v53 = vadd.f32 1.0, %v437_v50  ;;  %444 = vtanh.f32 %v308_v59  ;;  %v279_v54 = vmul.f32 %v263_v47, %v649_v55 }
  0xfe   :  { %372 = vst.msk [vmem:[%s755_s4 + $0x58] sm:$0xff] %vm360_vm2, %v355_v41  ;;  %v287_v27 = vadd.f32 %v271_v52, %v644_v4  ;;  %v237_v13 = vmul.f32 0.044715, %v686_v48  ;;  %v213_v45 = vadd.f32 %v546_v29, %v190_v49  ;;  %v222_v2 = vmul.f32 0.5, %v612_v36 }
  0xff   :  { %362 = vst.msk [vmem:[%s755_s4 + $0x8] sm:$0xff] %vm360_vm2, %v345_v51  ;;  %v353_v57 = vmul.f32 %v337_v53, %v225_v40  ;;  %v295_v61 = vadd.f32 %v279_v54, %v649_v55  ;;  %v230_v5 = vmul.f32 0.5, %v616_v39  ;;  %v220_v16 = vmul.f32 0.5, %v632_v58 }
 0x100   :  { %v439_v62 = vpop.eup %438  ;;  %v303_v11 = vmul.f32 0.7978846, %v287_v27  ;;  %v253_v63 = vmul.f32 %v237_v13, %v686_v48  ;;  %v245_v0 = vmul.f32 0.044715, %v213_v45  ;;  %v228_v19 = vmul.f32 0.5, %v635_v60 }
 0x101   :  { %370 = vst.msk [vmem:[%s755_s4 + $0x48] sm:$0xff] %vm360_vm2, %v353_v57  ;;  %v334_v3 = vadd.f32 1.0, %v439_v62  ;;  %v311_v29 = vmul.f32 0.7978846, %v295_v61  ;;  %v223_v60 = vmul.f32 0.5, %v644_v4  ;;  %v231_v12 = vmul.f32 0.5, %v649_v55 }
 0x102   :  { %v441_v1 = vpop.eup %440  ;;  %446 = vtanh.f32 %v303_v11  ;;  %v269_v7 = vmul.f32 %v253_v63, %v686_v48  ;;  %v261_v46 = vmul.f32 %v245_v0, %v213_v45  ;;  %v221_v31 = vmul.f32 0.5, %v686_v48 }
 0x103   :  { %v342_v6 = vadd.f32 1.0, %v441_v1  ;;  %v350_v56 = vmul.f32 %v334_v3, %v222_v2  ;;  %448 = vtanh.f32 %v311_v29  ;;  %v229_v55 = vmul.f32 0.5, %v213_v45 }
 0x104   :  { %v285_v9 = vadd.f32 %v269_v7, %v686_v48  ;;  %v277_v10 = vmul.f32 %v261_v46, %v213_v45 }
 0x105   :  { %v358_v8 = vmul.f32 %v342_v6, %v230_v5  ;;  %367 = vst.msk [vmem:[%s755_s4 + $0x30] sm:$0xff] %vm360_vm2, %v350_v56 }
 0x106   :  { %v443_v36 = vpop.eup %442  ;;  %v301_v39 = vmul.f32 0.7978846, %v285_v9  ;;  %v293_v14 = vadd.f32 %v277_v10, %v213_v45 }
 0x107   :  { %375 = vst.msk [vmem:[%s755_s4 + $0x70] sm:$0xff] %vm360_vm2, %v358_v8  ;;  %v445_v15 = vpop.eup %444  ;;  %v332_v17 = vadd.f32 1.0, %v443_v36 }
 0x108   :  { %v340_v20 = vadd.f32 1.0, %v445_v15  ;;  %450 = vtanh.f32 %v301_v39  ;;  %v309_v21 = vmul.f32 0.7978846, %v293_v14 }
 0x109   :  { %v348_v22 = vmul.f32 %v332_v17, %v220_v16 }
 0x10a   :  { %v356_v23 = vmul.f32 %v340_v20, %v228_v19  ;;  %452 = vtanh.f32 %v309_v21 }
 0x10b   :  { %365 = vst.msk [vmem:[%s755_s4 + $0x20] sm:$0xff] %vm360_vm2, %v348_v22 }
 0x10c   :  { %v447_v24 = vpop.eup %446  ;;  %373 = vst.msk [vmem:[%s755_s4 + $0x60] sm:$0xff] %vm360_vm2, %v356_v23 }
 0x10d   :  { %v449_v58 = vpop.eup %448  ;;  %v335_v25 = vadd.f32 1.0, %v447_v24 }
 0x10e   :  { %v343_v26 = vadd.f32 1.0, %v449_v58 }
 0x10f   :  { %v351_v18 = vmul.f32 %v335_v25, %v223_v60 }
 0x110   :  { %v359_v28 = vmul.f32 %v343_v26, %v231_v12 }
 0x111   :  { %368 = vst.msk [vmem:[%s755_s4 + $0x38] sm:$0xff] %vm360_vm2, %v351_v18 }
 0x112   :  { %v451_v30 = vpop.eup %450  ;;  %376 = vst.msk [vmem:[%s755_s4 + $0x78] sm:$0xff] %vm360_vm2, %v359_v28 }
 0x113   :  { %v333_v4 = vadd.f32 1.0, %v451_v30 }
 0x114   :  { %v453_v32 = vpop.eup %452 }
 0x115   :  { %v349_v33 = vmul.f32 %v333_v4, %v221_v31  ;;  %v341_v34 = vadd.f32 1.0, %v453_v32 }
 0x117   :  { %366 = vst.msk [vmem:[%s755_s4 + $0x28] sm:$0xff] %vm360_vm2, %v349_v33  ;;  %v357_v35 = vmul.f32 %v341_v34, %v229_v55 }
 0x119   :  { %374 = vst.msk [vmem:[%s755_s4 + $0x68] sm:$0xff] %vm360_vm2, %v357_v35 }

// kernel: coatnet_forward.33
= control target key start
LH: loop header
LB: loop body
LE: loop exit
PB: predicated region body
PF: predicated region fallthrough
CT: control target
= control target key end

     0   :  { %s1001_s15 = smov 0   ;;  %s1428_s0 = inlined_call_operand.vmem [shape: f32[2,10,10,32], index: 0, kind: input, shape index: {}]   ;;  %s1429_s1 = inlined_call_operand.vmem [shape: f32[3,3,1,32], index: 1, kind: input, shape index: {}]   ;;  %s1430_s2 = inlined_call_operand.vmem [shape: f32[1,32], index: 2, kind: input, shape index: {}]   ;;  %s1431_s3 = inlined_call_operand.vmem [shape: f32[1,32], index: 3, kind: input, shape index: {}]   ;;  %s1432_s4 = inlined_call_operand.vmem [shape: f32[2,8,8,32], index: 4, kind: output, shape index: {}]  }
   0x1 LB: > { %s921_s16 = sadd.s32 4294967295, %s974_s15   ;;  %p925_p0 = scmp.ge.s32.totalorder %s974_s15, 1  ;;  %s974_s15 = sphi %s1001_s15, %s14_s15  }
   0x2   : > { %p162_p1 = scmp.lt.s32.totalorder %s974_s15, 3 }
   0x4   : > { %p163_p2 = pnand %p925_p0, %p162_p1 }
   0x5   : > { %p188_p3 = scmp.lt.s32.totalorder (!%p163_p2), %s921_s16, 1  ;;  %v1015_v0 = vld [vmem:[%s1429_s1] ss:$0 sm:$0xff] (!%p163_p2)  ;;  %v1020_v1 = vld [vmem:[%s1429_s1 + $0x1] ss:$0 sm:$0xff] (!%p163_p2)  ;;  %vm279_vm0 = vcmask (!%p163_p2), 1046528  }
   0x6   : > { %166 = sbr.rel (%p163_p2) target bundleno = 153 (0x99), region = 36  ;;  %v1025_v2 = vld [vmem:[%s1429_s1 + $0x2] ss:$0 sm:$0xff] (!%p163_p2)  ;;  %v1035_v3 = vld [vmem:[%s1429_s1 + $0x3] ss:$0 sm:$0xff] (!%p163_p2)  ;;  %vm358_vm1 = vcmask (!%p163_p2), 1045504  }
   0x7   : > { %v1040_v4 = vld [vmem:[%s1429_s1 + $0x4] ss:$0 sm:$0xff] (!%p163_p2)  ;;  %v1047_v7 = vld [vmem:[%s1429_s1 + $0x5] ss:$0 sm:$0xff] (!%p163_p2)  ;;  %v1058_v14 = vld [vmem:[%s1429_s1 + $0x6] ss:$0 sm:$0xff] (!%p163_p2) }
   0x8   : > { %v1063_v15 = vld [vmem:[%s1429_s1 + $0x7] ss:$0 sm:$0xff] (!%p163_p2)  ;;  %v1076_v25 = vld [vmem:[%s1429_s1 + $0x8] ss:$0 sm:$0xff] (!%p163_p2)  ;;  %vm857_vm2 = vcmask (!%p163_p2), 261120  }
   0xd   : > { %s1434_s16 = smov (!%p188_p3, %s921_s16), 1 }
   0xe   : > { %s943_s17 = smul.u32 160, %s1434_s16  ;;  %s942_s19 = sshll.u32 %s1434_s16, 6 }
   0xf   : > { %s1248_s21 = scalar_lea.vmem %s1432_s4, %s942_s19 }
  0x10   : > { %s1030_s26 = scalar_lea.vmem %s1428_s0, %s943_s17 }
  0x11   : > { %v198_v5 = vld [vmem:[%s1030_s26] sm:$0xff]  ;;  %v199_v6 = vld [vmem:[%s1030_s26 + $0x8] sm:$0x3]  ;;  %v200_v8 = vld [vmem:[%s1030_s26 + $0x10] sm:$0xff] }
  0x12   : > { %v201_v9 = vld [vmem:[%s1030_s26 + $0x18] sm:$0x3]  ;;  %v233_v10 = vmul.f32 %v1015_v0, %v198_v5  ;;  %v247_v11 = vmul.f32 %v1020_v1, %v198_v5  ;;  %v248_v12 = vmul.f32 %v1020_v1, %v199_v6  ;;  %v326_v13 = vmul.f32 %v1025_v2, %v198_v5  ;;  %v1071_v24 = vld [vmem:[%s1030_s26 + $0x20] sm:$0xff]  ;;  %v1085_v34 = vld [vmem:[%s1030_s26 + $0x28] sm:$0x3] }
  0x13   : > { %v327_v16 = vmul.f32 %v1025_v2, %v199_v6  ;;  %v405_v17 = vmul.f32 %v1035_v3, %v200_v8  ;;  %v427_v18 = vmul.f32 %v1040_v4, %v200_v8  ;;  %v428_v19 = vmul.f32 %v1040_v4, %v201_v9 }
  0x14   : > { %v280_v20 = vrot.slane %v247_v11, 1  ;;  %v281_v21 = vrot.slane %v248_v12, 1  ;;  %v359_v22 = vrot.slane %v326_v13, 2  ;;  %v505_v23 = vmul.f32 %v1047_v7, %v200_v8 }
  0x15   : > { %v360_v26 = vrot.slane %v327_v16, 2  ;;  %v459_v27 = vrot.slane %v427_v18, 1  ;;  %v460_v28 = vrot.slane %v428_v19, 1  ;;  %v506_v29 = vmul.f32 %v1047_v7, %v201_v9  ;;  %v1119_v16 = vld [vmem:[%s1030_s26 + $0x38] sm:$0x3] }
  0x16   : > { %v282_v30 = vsel %vm279_vm0, %v280_v20, %v281_v21  ;;  %v537_v31 = vrot.slane %v505_v23, 2  ;;  %v583_v32 = vmul.f32 %v1058_v14, %v1071_v24  ;;  %v605_v33 = vmul.f32 %v1063_v15, %v1071_v24 }
  0x17   : > { %v312_v35 = vadd.f32 %v282_v30, %v233_v10  ;;  %v361_v36 = vsel %vm358_vm1, %v359_v22, %v360_v26  ;;  %v461_v37 = vsel %vm279_vm0, %v459_v27, %v460_v28  ;;  %v538_v38 = vrot.slane %v506_v29, 2  ;;  %v1115_v10 = vld [vmem:[%s1030_s26 + $0x30] sm:$0xff] }
  0x18   : > { %v606_v39 = vmul.f32 %v1063_v15, %v1085_v34  ;;  %v637_v40 = vrot.slane %v605_v33, 1  ;;  %v683_v41 = vmul.f32 %v1076_v25, %v1071_v24  ;;  %v684_v42 = vmul.f32 %v1076_v25, %v1085_v34 }
  0x19   : > { %v391_v43 = vadd.f32 %v361_v36, %v312_v35  ;;  %v539_v44 = vsel %vm358_vm1, %v537_v31, %v538_v38  ;;  %v234_v45 = vmul.f32 %v1015_v0, %v200_v8  ;;  %v249_v46 = vmul.f32 %v1020_v1, %v200_v8  ;;  %v1136_v36 = vld [vmem:[%s1430_s2] ss:$0 sm:$0xff] }
  0x1a   : > { %v638_v47 = vrot.slane %v606_v39, 1  ;;  %v715_v48 = vrot.slane %v683_v41, 2  ;;  %v716_v49 = vrot.slane %v684_v42, 2  ;;  %v250_v50 = vmul.f32 %v1020_v1, %v201_v9 }
  0x1b   : > { %v413_v51 = vadd.f32 %v405_v17, %v391_v43  ;;  %v283_v52 = vrot.slane %v249_v46, 1  ;;  %v328_v53 = vmul.f32 %v1025_v2, %v200_v8  ;;  %v329_v54 = vmul.f32 %v1025_v2, %v201_v9 }
  0x1c   : > { %v639_v55 = vsel %vm279_vm0, %v637_v40, %v638_v47  ;;  %v717_v56 = vsel %vm358_vm1, %v715_v48, %v716_v49  ;;  %v284_v57 = vrot.slane %v250_v50, 1  ;;  %v406_v58 = vmul.f32 %v1035_v3, %v1071_v24 }
  0x1d   : > { %v491_v59 = vadd.f32 %v461_v37, %v413_v51  ;;  %v362_v60 = vrot.slane %v328_v53, 2  ;;  %v363_v61 = vrot.slane %v329_v54, 2  ;;  %v429_v62 = vmul.f32 %v1040_v4, %v1071_v24 }
  0x1e   : > { %v285_v63 = vsel %vm279_vm0, %v283_v52, %v284_v57  ;;  %v430_v5 = vmul.f32 %v1040_v4, %v1085_v34  ;;  %v507_v6 = vmul.f32 %v1047_v7, %v1071_v24  ;;  %v508_v8 = vmul.f32 %v1047_v7, %v1085_v34 }
  0x1f   : > { %v569_v9 = vadd.f32 %v539_v44, %v491_v59  ;;  %v313_v11 = vadd.f32 %v285_v63, %v234_v45  ;;  %v364_v12 = vsel %vm358_vm1, %v362_v60, %v363_v61  ;;  %v462_v13 = vrot.slane %v429_v62, 1  ;;  %v1148_v45 = vld [vmem:[%s1431_s3] ss:$0 sm:$0xff] }
  0x20   : > { %v463_v17 = vrot.slane %v430_v5, 1  ;;  %v540_v18 = vrot.slane %v507_v6, 2  ;;  %v541_v19 = vrot.slane %v508_v8, 2  ;;  %v584_v20 = vmul.f32 %v1058_v14, %v1115_v10  ;;  %v1168_v8 = vld [vmem:[%s1030_s26 + $0x40] sm:$0xff] }
  0x21   : > { %v591_v21 = vadd.f32 %v583_v32, %v569_v9  ;;  %v392_v22 = vadd.f32 %v364_v12, %v313_v11  ;;  %v607_v23 = vmul.f32 %v1063_v15, %v1115_v10  ;;  %v608_v26 = vmul.f32 %v1063_v15, %v1119_v16 }
  0x22   : > { %v464_v27 = vsel %vm279_vm0, %v462_v13, %v463_v17  ;;  %v542_v28 = vsel %vm358_vm1, %v540_v18, %v541_v19  ;;  %v685_v29 = vmul.f32 %v1076_v25, %v1115_v10  ;;  %v686_v30 = vmul.f32 %v1076_v25, %v1119_v16 }
  0x23   : > { %v669_v31 = vadd.f32 %v639_v55, %v591_v21  ;;  %v414_v33 = vadd.f32 %v406_v58, %v392_v22  ;;  %v640_v32 = vrot.slane %v607_v23, 1  ;;  %v641_v35 = vrot.slane %v608_v26, 1 }
  0x24   : > { %v718_v37 = vrot.slane %v685_v29, 2  ;;  %v719_v38 = vrot.slane %v686_v30, 2  ;;  %v235_v39 = vmul.f32 %v1015_v0, %v1071_v24  ;;  %v251_v40 = vmul.f32 %v1020_v1, %v1071_v24 }
  0x25   : > { %v747_v41 = vadd.f32 %v717_v56, %v669_v31  ;;  %v492_v42 = vadd.f32 %v464_v27, %v414_v33  ;;  %v642_v43 = vsel %vm279_vm0, %v640_v32, %v641_v35  ;;  %v252_v44 = vmul.f32 %v1020_v1, %v1085_v34 }
  0x26   : > { %v720_v46 = vsel %vm358_vm1, %v718_v37, %v719_v38  ;;  %v286_v47 = vrot.slane %v251_v40, 1  ;;  %v330_v48 = vmul.f32 %v1025_v2, %v1071_v24  ;;  %v331_v49 = vmul.f32 %v1025_v2, %v1085_v34 }
  0x27   : > { %v762_v50 = vmul.f32 %v1136_v36, %v747_v41  ;;  %v570_v51 = vadd.f32 %v542_v28, %v492_v42  ;;  %v287_v52 = vrot.slane %v252_v44, 1  ;;  %v407_v53 = vmul.f32 %v1035_v3, %v1115_v10 }
  0x28   : > { %v365_v54 = vrot.slane %v330_v48, 2  ;;  %v366_v55 = vrot.slane %v331_v49, 2  ;;  %v431_v56 = vmul.f32 %v1040_v4, %v1115_v10  ;;  %v432_v57 = vmul.f32 %v1040_v4, %v1119_v16 }
  0x29   : > { %v777_v24 = vadd.f32 %v1148_v45, %v762_v50  ;;  %v592_v58 = vadd.f32 %v584_v20, %v570_v51  ;;  %v288_v34 = vsel %vm279_vm0, %v286_v47, %v287_v52  ;;  %v509_v59 = vmul.f32 %v1047_v7, %v1115_v10  ;;  %v1176_v20 = vld [vmem:[%s1030_s26 + $0x48] sm:$0x3] }
  0x2a   : > { %v314_v60 = vadd.f32 %v288_v34, %v235_v39  ;;  %v367_v61 = vsel %vm358_vm1, %v365_v54, %v366_v55  ;;  %v465_v62 = vrot.slane %v431_v56, 1  ;;  %v466_v63 = vrot.slane %v432_v57, 1 }
  0x2b   : > { %v793_v5 = vmul.f32 0.044715, %v777_v24  ;;  %v670_v6 = vadd.f32 %v642_v43, %v592_v58  ;;  %v510_v9 = vmul.f32 %v1047_v7, %v1119_v16  ;;  %v543_v13 = vrot.slane %v509_v59, 2 }
  0x2c   : > { %v393_v11 = vadd.f32 %v367_v61, %v314_v60  ;;  %v467_v12 = vsel %vm279_vm0, %v465_v62, %v466_v63  ;;  %v585_v17 = vmul.f32 %v1058_v14, %v1168_v8  ;;  %v609_v22 = vmul.f32 %v1063_v15, %v1168_v8 }
  0x2d   : > { %v801_v18 = vmul.f32 %v793_v5, %v777_v24  ;;  %v748_v19 = vadd.f32 %v720_v46, %v670_v6  ;;  %v544_v21 = vrot.slane %v510_v9, 2  ;;  %v610_v26 = vmul.f32 %v1063_v15, %v1176_v20  ;;  %v1211_v5 = vld [vmem:[%s1030_s26 + $0x50] sm:$0xff] }
  0x2e   : > { %v415_v23 = vadd.f32 %v407_v53, %v393_v11  ;;  %v687_v27 = vmul.f32 %v1076_v25, %v1168_v8  ;;  %v688_v28 = vmul.f32 %v1076_v25, %v1176_v20  ;;  %v643_v33 = vrot.slane %v609_v22, 1 }
  0x2f   : > { %v809_v29 = vmul.f32 %v801_v18, %v777_v24  ;;  %v763_v30 = vmul.f32 %v1136_v36, %v748_v19  ;;  %v545_v31 = vsel %vm358_vm1, %v543_v13, %v544_v21  ;;  %v644_v35 = vrot.slane %v610_v26, 1  ;;  %v1222_v21 = vld [vmem:[%s1030_s26 + $0x58] sm:$0x3] }
  0x30   : > { %v493_v32 = vadd.f32 %v467_v12, %v415_v23  ;;  %v721_v37 = vrot.slane %v687_v27, 2  ;;  %v722_v38 = vrot.slane %v688_v28, 2  ;;  %v1188_v39 = vmul.f32 0.5, %v777_v24 }
  0x31   : > { %v817_v40 = vadd.f32 %v809_v29, %v777_v24  ;;  %v778_v41 = vadd.f32 %v1148_v45, %v763_v30  ;;  %v253_v42 = vmul.f32 %v1020_v1, %v1115_v10  ;;  %v645_v44 = vsel %vm279_vm0, %v643_v33, %v644_v35 }
  0x32   : > { %v571_v43 = vadd.f32 %v545_v31, %v493_v32  ;;  %v236_v46 = vmul.f32 %v1015_v0, %v1115_v10  ;;  %v254_v47 = vmul.f32 %v1020_v1, %v1119_v16  ;;  %v723_v50 = vsel %vm358_vm1, %v721_v37, %v722_v38 }
  0x33   : > { %v825_v48 = vmul.f32 0.7978846, %v817_v40  ;;  %v794_v49 = vmul.f32 0.044715, %v778_v41  ;;  %v289_v51 = vrot.slane %v253_v42, 1  ;;  %v332_v54 = vmul.f32 %v1025_v2, %v1115_v10 }
  0x34   : > { %v593_v52 = vadd.f32 %v585_v17, %v571_v43  ;;  %v290_v53 = vrot.slane %v254_v47, 1  ;;  %v333_v55 = vmul.f32 %v1025_v2, %v1119_v16  ;;  %v408_v57 = vmul.f32 %v1035_v3, %v1168_v8 }
  0x35   : > { %952 = vtanh.f32 %v825_v48  ;;  %v802_v56 = vmul.f32 %v794_v49, %v778_v41  ;;  %v433_v24 = vmul.f32 %v1040_v4, %v1168_v8  ;;  %v368_v59 = vrot.slane %v332_v54, 2 }
  0x36   : > { %v671_v58 = vadd.f32 %v645_v44, %v593_v52  ;;  %v291_v34 = vsel %vm279_vm0, %v289_v51, %v290_v53  ;;  %v369_v60 = vrot.slane %v333_v55, 2  ;;  %v434_v10 = vmul.f32 %v1040_v4, %v1176_v20 }
  0x37   : > { %v810_v61 = vmul.f32 %v802_v56, %v778_v41  ;;  %v315_v62 = vadd.f32 %v291_v34, %v236_v46  ;;  %v468_v16 = vrot.slane %v433_v24, 1  ;;  %v511_v9 = vmul.f32 %v1047_v7, %v1168_v8 }
  0x38   : > { %v749_v63 = vadd.f32 %v723_v50, %v671_v58  ;;  %v370_v6 = vsel %vm358_vm1, %v368_v59, %v369_v60  ;;  %v512_v11 = vmul.f32 %v1047_v7, %v1176_v20  ;;  %v469_v17 = vrot.slane %v434_v10, 1 }
  0x39   : > { %v818_v12 = vadd.f32 %v810_v61, %v778_v41  ;;  %v394_v13 = vadd.f32 %v370_v6, %v315_v62  ;;  %v586_v18 = vmul.f32 %v1058_v14, %v1211_v5  ;;  %v546_v22 = vrot.slane %v511_v9, 2 }
  0x3a   : > { %v764_v19 = vmul.f32 %v1136_v36, %v749_v63  ;;  %v547_v23 = vrot.slane %v512_v11, 2  ;;  %v611_v26 = vmul.f32 %v1063_v15, %v1211_v5  ;;  %v470_v29 = vsel %vm279_vm0, %v468_v16, %v469_v17  ;;  %v1267_v17 = vld [vmem:[%s1030_s26 + $0x60] sm:$0xff] }
  0x3b   : > { %v826_v27 = vmul.f32 0.7978846, %v818_v12  ;;  %v416_v28 = vadd.f32 %v408_v57, %v394_v13  ;;  %v612_v30 = vmul.f32 %v1063_v15, %v1222_v21  ;;  %v689_v35 = vmul.f32 %v1076_v25, %v1211_v5 }
  0x3c   : > { %v779_v31 = vadd.f32 %v1148_v45, %v764_v19  ;;  %v548_v33 = vsel %vm358_vm1, %v546_v22, %v547_v23  ;;  %v646_v32 = vrot.slane %v611_v26, 1  ;;  %v690_v40 = vmul.f32 %v1076_v25, %v1222_v21 }
  0x3d   : > { %954 = vtanh.f32 %v826_v27  ;;  %v494_v37 = vadd.f32 %v470_v29, %v416_v28  ;;  %v647_v38 = vrot.slane %v612_v30, 1  ;;  %v786_v42 = vmul.f32 0.5, %v778_v41 }
  0x3e   : > { %v795_v43 = vmul.f32 0.044715, %v779_v31  ;;  %v724_v44 = vrot.slane %v689_v35, 2  ;;  %v237_v46 = vmul.f32 %v1015_v0, %v1168_v8  ;;  %v725_v50 = vrot.slane %v690_v40, 2 }
  0x3f   : > { %v953_v47 = vpop.eup %952  ;;  %v572_v48 = vadd.f32 %v548_v33, %v494_v37  ;;  %v648_v49 = vsel %vm279_vm0, %v646_v32, %v647_v38  ;;  %v255_v51 = vmul.f32 %v1020_v1, %v1168_v8  ;;  %v256_v54 = vmul.f32 %v1020_v1, %v1176_v20  ;;  %v1275_v33 = vld [vmem:[%s1030_s26 + $0x68] sm:$0x3] }
  0x40   : > { %v841_v52 = vadd.f32 1.0, %v953_v47  ;;  %v803_v53 = vmul.f32 %v795_v43, %v779_v31  ;;  %v334_v41 = vmul.f32 %v1025_v2, %v1168_v8  ;;  %v726_v56 = vsel %vm358_vm1, %v724_v44, %v725_v50 }
  0x41   : > { %v594_v55 = vadd.f32 %v586_v18, %v572_v48  ;;  %v292_v57 = vrot.slane %v255_v51, 1  ;;  %v335_v24 = vmul.f32 %v1025_v2, %v1176_v20  ;;  %v293_v59 = vrot.slane %v256_v54, 1 }
  0x42   : > { %v849_v58 = vmul.f32 %v841_v52, %v1188_v39  ;;  %v811_v34 = vmul.f32 %v803_v53, %v779_v31  ;;  %v371_v60 = vrot.slane %v334_v41, 2  ;;  %v409_v62 = vmul.f32 %v1035_v3, %v1211_v5 }
  0x43   : > { %v672_v8 = vadd.f32 %v648_v49, %v594_v55  ;;  %v372_v61 = vrot.slane %v335_v24, 2  ;;  %v435_v10 = vmul.f32 %v1040_v4, %v1211_v5  ;;  %v294_v63 = vsel %vm279_vm0, %v292_v57, %v293_v59 }
  0x44   : > { %858 = vst.msk [vmem:[%s1248_s21] sm:$0xff] %vm857_vm2, %v849_v58  ;;  %v819_v16 = vadd.f32 %v811_v34, %v779_v31  ;;  %v436_v20 = vmul.f32 %v1040_v4, %v1222_v21  ;;  %v513_v39 = vmul.f32 %v1047_v7, %v1211_v5  ;;  %v316_v9 = vadd.f32 %v294_v63, %v237_v46 }
  0x45   : > { %v750_v6 = vadd.f32 %v726_v56, %v672_v8  ;;  %v373_v11 = vsel %vm358_vm1, %v371_v60, %v372_v61  ;;  %v471_v12 = vrot.slane %v435_v10, 1  ;;  %v514_v19 = vmul.f32 %v1047_v7, %v1222_v21 }
  0x46   : > { %v827_v13 = vmul.f32 0.7978846, %v819_v16  ;;  %v472_v18 = vrot.slane %v436_v20, 1  ;;  %v549_v22 = vrot.slane %v513_v39, 2  ;;  %v787_v26 = vmul.f32 0.5, %v779_v31 }
  0x47   : > { %v955_v23 = vpop.eup %954  ;;  %v765_v27 = vmul.f32 %v1136_v36, %v750_v6  ;;  %v395_v28 = vadd.f32 %v373_v11, %v316_v9  ;;  %v613_v29 = vmul.f32 %v1063_v15, %v1267_v17  ;;  %v550_v35 = vrot.slane %v514_v19, 2 }
  0x48   : > { %v842_v30 = vadd.f32 1.0, %v955_v23  ;;  %956 = vtanh.f32 %v827_v13  ;;  %v473_v32 = vsel %vm279_vm0, %v471_v12, %v472_v18  ;;  %v614_v31 = vmul.f32 %v1063_v15, %v1275_v33 }
  0x49   : > { %v780_v37 = vadd.f32 %v1148_v45, %v765_v27  ;;  %v417_v38 = vadd.f32 %v409_v62, %v395_v28  ;;  %v649_v40 = vrot.slane %v613_v29, 1  ;;  %v551_v44 = vsel %vm358_vm1, %v549_v22, %v550_v35 }
  0x4a   : > { %v850_v43 = vmul.f32 %v842_v30, %v786_v42  ;;  %v691_v46 = vmul.f32 %v1076_v25, %v1267_v17  ;;  %v692_v47 = vmul.f32 %v1076_v25, %v1275_v33  ;;  %v587_v50 = vmul.f32 %v1058_v14, %v1267_v17 }
  0x4b   : > { %v796_v48 = vmul.f32 0.044715, %v780_v37  ;;  %v495_v49 = vadd.f32 %v473_v32, %v417_v38  ;;  %v650_v51 = vrot.slane %v614_v31, 1  ;;  %v238_v42 = vmul.f32 %v1015_v0, %v1211_v5  ;;  %v1317_v31 = vld [vmem:[%s1030_s26 + $0x70] sm:$0xff] }
  0x4c   : > { %859 = vst.msk [vmem:[%s1248_s21 + $0x8] sm:$0xff] %vm857_vm2, %v850_v43  ;;  %v727_v52 = vrot.slane %v691_v46, 2  ;;  %v728_v53 = vrot.slane %v692_v47, 2  ;;  %v257_v54 = vmul.f32 %v1020_v1, %v1211_v5  ;;  %v258_v57 = vmul.f32 %v1020_v1, %v1222_v21 }
  0x4d   : > { %v804_v41 = vmul.f32 %v796_v48, %v780_v37  ;;  %v573_v55 = vadd.f32 %v551_v44, %v495_v49  ;;  %v651_v56 = vsel %vm279_vm0, %v649_v40, %v650_v51  ;;  %v336_v34 = vmul.f32 %v1025_v2, %v1211_v5  ;;  %v1320_v40 = vld [vmem:[%s1030_s26 + $0x78] sm:$0x3] }
  0x4e   : > { %v729_v24 = vsel %vm358_vm1, %v727_v52, %v728_v53  ;;  %v295_v58 = vrot.slane %v257_v54, 1  ;;  %v337_v59 = vmul.f32 %v1025_v2, %v1222_v21  ;;  %v296_v61 = vrot.slane %v258_v57, 1 }
  0x4f   : > { %v812_v60 = vmul.f32 %v804_v41, %v780_v37  ;;  %v595_v8 = vadd.f32 %v587_v50, %v573_v55  ;;  %v410_v62 = vmul.f32 %v1035_v3, %v1267_v17  ;;  %v374_v10 = vrot.slane %v336_v34, 2 }
  0x50   : > { %v375_v16 = vrot.slane %v337_v59, 2  ;;  %v437_v63 = vmul.f32 %v1040_v4, %v1267_v17  ;;  %v438_v20 = vmul.f32 %v1040_v4, %v1275_v33  ;;  %v297_v5 = vsel %vm279_vm0, %v295_v58, %v296_v61 }
  0x51   : > { %v820_v39 = vadd.f32 %v812_v60, %v780_v37  ;;  %v673_v6 = vadd.f32 %v651_v56, %v595_v8  ;;  %v515_v21 = vmul.f32 %v1047_v7, %v1267_v17  ;;  %v317_v11 = vadd.f32 %v297_v5, %v238_v42 }
  0x52   : > { %v957_v9 = vpop.eup %956  ;;  %v376_v12 = vsel %vm358_vm1, %v374_v10, %v375_v16  ;;  %v474_v13 = vrot.slane %v437_v63, 1  ;;  %v475_v18 = vrot.slane %v438_v20, 1  ;;  %v516_v27 = vmul.f32 %v1047_v7, %v1275_v33 }
  0x53   : > { %v843_v19 = vadd.f32 1.0, %v957_v9  ;;  %v828_v22 = vmul.f32 0.7978846, %v820_v39  ;;  %v751_v23 = vadd.f32 %v729_v24, %v673_v6  ;;  %v788_v28 = vmul.f32 0.5, %v780_v37 }
  0x54   : > { %v396_v29 = vadd.f32 %v376_v12, %v317_v11  ;;  %v476_v30 = vsel %vm279_vm0, %v474_v13, %v475_v18  ;;  %v552_v32 = vrot.slane %v515_v21, 2  ;;  %v553_v43 = vrot.slane %v516_v27, 2 }
  0x55   : > { %v851_v35 = vmul.f32 %v843_v19, %v787_v26  ;;  %958 = vtanh.f32 %v828_v22  ;;  %v766_v38 = vmul.f32 %v1136_v36, %v751_v23  ;;  %v615_v46 = vmul.f32 %v1063_v15, %v1317_v31 }
  0x56   : > { %v418_v44 = vadd.f32 %v410_v62, %v396_v29  ;;  %v616_v37 = vmul.f32 %v1063_v15, %v1320_v40  ;;  %v693_v47 = vmul.f32 %v1076_v25, %v1317_v31  ;;  %v554_v48 = vsel %vm358_vm1, %v552_v32, %v553_v43 }
  0x57   : > { %860 = vst.msk [vmem:[%s1248_s21 + $0x10] sm:$0xff] %vm857_vm2, %v851_v35  ;;  %v781_v26 = vadd.f32 %v1148_v45, %v766_v38  ;;  %v588_v49 = vmul.f32 %v1058_v14, %v1317_v31  ;;  %v694_v50 = vmul.f32 %v1076_v25, %v1320_v40  ;;  %v652_v52 = vrot.slane %v615_v46, 1  ;;  %v214_v35 = vld [vmem:[%s1030_s26 + $0x80] sm:$0xff] }
  0x58   : > { %v496_v51 = vadd.f32 %v476_v30, %v418_v44  ;;  %v653_v53 = vrot.slane %v616_v37, 1  ;;  %v730_v42 = vrot.slane %v693_v47, 2  ;;  %v239_v55 = vmul.f32 %v1015_v0, %v1267_v17  ;;  %v215_v37 = vld [vmem:[%s1030_s26 + $0x88] sm:$0x3] }
  0x59   : > { %v797_v54 = vmul.f32 0.044715, %v781_v26  ;;  %v731_v41 = vrot.slane %v694_v50, 2  ;;  %v259_v56 = vmul.f32 %v1020_v1, %v1267_v17  ;;  %v260_v58 = vmul.f32 %v1020_v1, %v1275_v33 }
  0x5a   : > { %v574_v57 = vadd.f32 %v554_v48, %v496_v51  ;;  %v654_v24 = vsel %vm279_vm0, %v652_v52, %v653_v53  ;;  %v338_v34 = vmul.f32 %v1025_v2, %v1267_v17  ;;  %v339_v61 = vmul.f32 %v1025_v2, %v1275_v33 }
  0x5b   : > { %v805_v59 = vmul.f32 %v797_v54, %v781_v26  ;;  %v732_v60 = vsel %vm358_vm1, %v730_v42, %v731_v41  ;;  %v298_v8 = vrot.slane %v259_v56, 1  ;;  %v299_v10 = vrot.slane %v260_v58, 1 }
  0x5c   : > { %v596_v62 = vadd.f32 %v588_v49, %v574_v57  ;;  %v377_v16 = vrot.slane %v338_v34, 2  ;;  %v411_v63 = vmul.f32 %v1035_v3, %v1317_v31  ;;  %v378_v39 = vrot.slane %v339_v61, 2 }
  0x5d   : > { %v813_v20 = vmul.f32 %v805_v59, %v781_v26  ;;  %v439_v6 = vmul.f32 %v1040_v4, %v1317_v31  ;;  %v440_v17 = vmul.f32 %v1040_v4, %v1320_v40  ;;  %v300_v21 = vsel %vm279_vm0, %v298_v8, %v299_v10 }
  0x5e   : > { %v674_v5 = vadd.f32 %v654_v24, %v596_v62  ;;  %v517_v33 = vmul.f32 %v1047_v7, %v1317_v31  ;;  %v518_v9 = vmul.f32 %v1047_v7, %v1320_v40  ;;  %v318_v13 = vadd.f32 %v300_v21, %v239_v55 }
  0x5f   : > { %v959_v11 = vpop.eup %958  ;;  %v821_v12 = vadd.f32 %v813_v20, %v781_v26  ;;  %v379_v18 = vsel %vm358_vm1, %v377_v16, %v378_v39  ;;  %v477_v19 = vrot.slane %v439_v6, 1  ;;  %v478_v27 = vrot.slane %v440_v17, 1 }
  0x60   : > { %v844_v22 = vadd.f32 1.0, %v959_v11  ;;  %v752_v23 = vadd.f32 %v732_v60, %v674_v5  ;;  %v555_v29 = vrot.slane %v517_v33, 2  ;;  %v1360_v30 = vmul.f32 0.5, %v781_v26  ;;  %v217_v11 = vld [vmem:[%s1030_s26 + $0x98] sm:$0x3] }
  0x61   : > { %v829_v32 = vmul.f32 0.7978846, %v821_v12  ;;  %v397_v38 = vadd.f32 %v379_v18, %v318_v13  ;;  %v556_v43 = vrot.slane %v518_v9, 2  ;;  %v479_v47 = vsel %vm279_vm0, %v477_v19, %v478_v27 }
  0x62   : > { %v852_v44 = vmul.f32 %v844_v22, %v788_v28  ;;  %v767_v46 = vmul.f32 %v1136_v36, %v752_v23  ;;  %v617_v48 = vmul.f32 %v1063_v15, %v214_v35  ;;  %v618_v51 = vmul.f32 %v1063_v15, %v215_v37 }
  0x63   : > { %960 = vtanh.f32 %v829_v32  ;;  %v419_v49 = vadd.f32 %v411_v63, %v397_v38  ;;  %v557_v50 = vsel %vm358_vm1, %v555_v29, %v556_v43  ;;  %v695_v28 = vmul.f32 %v1076_v25, %v214_v35 }
  0x64   : > { %861 = vst.msk [vmem:[%s1248_s21 + $0x18] sm:$0xff] %vm857_vm2, %v852_v44  ;;  %v1372_v26 = vadd.f32 %v1148_v45, %v767_v46  ;;  %v655_v52 = vrot.slane %v617_v48, 1  ;;  %v696_v53 = vmul.f32 %v1076_v25, %v215_v37  ;;  %v589_v54 = vmul.f32 %v1058_v14, %v214_v35 }
  0x65   : > { %v497_v42 = vadd.f32 %v479_v47, %v419_v49  ;;  %v656_v41 = vrot.slane %v618_v51, 1  ;;  %v261_v55 = vmul.f32 %v1020_v1, %v1317_v31  ;;  %v733_v57 = vrot.slane %v695_v28, 2 }
  0x66   : > { %v798_v56 = vmul.f32 0.044715, %v1372_v26  ;;  %v734_v24 = vrot.slane %v696_v53, 2  ;;  %v240_v58 = vmul.f32 %v1015_v0, %v1317_v31  ;;  %v262_v60 = vmul.f32 %v1020_v1, %v1320_v40 }
  0x67   : > { %v575_v34 = vadd.f32 %v557_v50, %v497_v42  ;;  %v657_v59 = vsel %vm279_vm0, %v655_v52, %v656_v41  ;;  %v301_v8 = vrot.slane %v261_v55, 1  ;;  %v340_v10 = vmul.f32 %v1025_v2, %v1317_v31 }
  0x68   : > { %v806_v61 = vmul.f32 %v798_v56, %v1372_v26  ;;  %v735_v62 = vsel %vm358_vm1, %v733_v57, %v734_v24  ;;  %v341_v16 = vmul.f32 %v1025_v2, %v1320_v40  ;;  %v302_v63 = vrot.slane %v262_v60, 1  ;;  %v216_v40 = vld [vmem:[%s1030_s26 + $0x90] sm:$0xff] }
  0x69   : > { %v597_v0 = vadd.f32 %v589_v54, %v575_v34  ;;  %v412_v20 = vmul.f32 %v1035_v3, %v214_v35  ;;  %v441_v39 = vmul.f32 %v1040_v4, %v214_v35  ;;  %v380_v6 = vrot.slane %v340_v10, 2 }
  0x6a   : > { %v814_v1 = vmul.f32 %v806_v61, %v1372_v26  ;;  %v381_v17 = vrot.slane %v341_v16, 2  ;;  %v442_v5 = vmul.f32 %v1040_v4, %v215_v37  ;;  %v303_v33 = vsel %vm279_vm0, %v301_v8, %v302_v63 }
  0x6b   : > { %v675_v21 = vadd.f32 %v657_v59, %v597_v0  ;;  %v480_v31 = vrot.slane %v441_v39, 1  ;;  %v519_v9 = vmul.f32 %v1047_v7, %v214_v35  ;;  %v319_v12 = vadd.f32 %v303_v33, %v240_v58 }
  0x6c   : > { %v822_v2 = vadd.f32 %v814_v1, %v1372_v26  ;;  %v382_v3 = vsel %vm358_vm1, %v380_v6, %v381_v17  ;;  %v481_v13 = vrot.slane %v442_v5, 1  ;;  %v520_v22 = vmul.f32 %v1047_v7, %v215_v37 }
  0x6d   : > { %v961_v18 = vpop.eup %960  ;;  %v753_v19 = vadd.f32 %v735_v62, %v675_v21  ;;  %v558_v23 = vrot.slane %v519_v9, 2  ;;  %v398_v29 = vadd.f32 %v382_v3, %v319_v12  ;;  %v619_v43 = vmul.f32 %v1063_v15, %v216_v40 }
  0x6e   : > { %v845_v4 = vadd.f32 1.0, %v961_v18  ;;  %v830_v27 = vmul.f32 0.7978846, %v822_v2  ;;  %v482_v32 = vsel %vm279_vm0, %v480_v31, %v481_v13  ;;  %v559_v38 = vrot.slane %v520_v22, 2 }
  0x6f   : > { %v768_v35 = vmul.f32 %v1136_v36, %v753_v19  ;;  %v620_v44 = vmul.f32 %v1063_v15, %v217_v11  ;;  %v420_v47 = vadd.f32 %v412_v20, %v398_v29  ;;  %v697_v7 = vmul.f32 %v1076_v25, %v216_v40 }
  0x70   : > { %v853_v46 = vmul.f32 %v845_v4, %v1360_v30  ;;  %962 = vtanh.f32 %v830_v27  ;;  %v560_v48 = vsel %vm358_vm1, %v558_v23, %v559_v38  ;;  %v658_v49 = vrot.slane %v619_v43, 1 }
  0x71   : > { %v783_v37 = vadd.f32 %v1148_v45, %v768_v35  ;;  %v659_v50 = vrot.slane %v620_v44, 1  ;;  %v498_v51 = vadd.f32 %v482_v32, %v420_v47  ;;  %v590_v52 = vmul.f32 %v1058_v14, %v216_v40 }
  0x72   : > { %862 = vst.msk [vmem:[%s1248_s21 + $0x20] sm:$0xff] %vm857_vm2, %v853_v46  ;;  %v698_v28 = vmul.f32 %v1076_v25, %v217_v11  ;;  %v736_v53 = vrot.slane %v697_v7, 2  ;;  %v790_v58 = vmul.f32 0.5, %v1372_v26 }
  0x73   : > { %v799_v15 = vmul.f32 0.044715, %v783_v37  ;;  %v576_v30 = vadd.f32 %v560_v48, %v498_v51  ;;  %v660_v41 = vsel %vm279_vm0, %v658_v49, %v659_v50  ;;  %v791_v63 = vmul.f32 0.5, %v783_v37 }
  0x74   : > { %v737_v42 = vrot.slane %v698_v28, 2 }
  0x75   : > { %v807_v54 = vmul.f32 %v799_v15, %v783_v37  ;;  %v598_v55 = vadd.f32 %v590_v52, %v576_v30 }
  0x76   : > { %v738_v57 = vsel %vm358_vm1, %v736_v53, %v737_v42 }
  0x77   : > { %v815_v56 = vmul.f32 %v807_v54, %v783_v37  ;;  %v676_v24 = vadd.f32 %v660_v41, %v598_v55 }
  0x79   : > { %v823_v34 = vadd.f32 %v815_v56, %v783_v37  ;;  %v754_v14 = vadd.f32 %v738_v57, %v676_v24 }
  0x7a   : > { %v963_v59 = vpop.eup %962 }
  0x7b   : > { %v846_v60 = vadd.f32 1.0, %v963_v59  ;;  %v831_v25 = vmul.f32 0.7978846, %v823_v34  ;;  %v769_v8 = vmul.f32 %v1136_v36, %v754_v14 }
  0x7d   : > { %v854_v61 = vmul.f32 %v846_v60, %v790_v58  ;;  %964 = vtanh.f32 %v831_v25  ;;  %v784_v62 = vadd.f32 %v1148_v45, %v769_v8 }
  0x7f   : > { %863 = vst.msk [vmem:[%s1248_s21 + $0x28] sm:$0xff] %vm857_vm2, %v854_v61  ;;  %v800_v10 = vmul.f32 0.044715, %v784_v62  ;;  %v792_v36 = vmul.f32 0.5, %v784_v62 }
  0x81   : > { %v808_v16 = vmul.f32 %v800_v10, %v784_v62 }
  0x83   : > { %v816_v0 = vmul.f32 %v808_v16, %v784_v62 }
  0x85   : > { %v824_v26 = vadd.f32 %v816_v0, %v784_v62 }
  0x87   : > { %v965_v20 = vpop.eup %964  ;;  %v832_v1 = vmul.f32 0.7978846, %v824_v26 }
  0x88   : > { %v847_v39 = vadd.f32 1.0, %v965_v20 }
  0x89   : > { %966 = vtanh.f32 %v832_v1 }
  0x8a   : > { %v855_v6 = vmul.f32 %v847_v39, %v791_v63 }
  0x8c   : > { %864 = vst.msk [vmem:[%s1248_s21 + $0x30] sm:$0xff] %vm857_vm2, %v855_v6 }
  0x93   : > { %v967_v17 = vpop.eup %966 }
  0x94   : > { %v848_v5 = vadd.f32 1.0, %v967_v17 }
  0x96   : > { %v856_v21 = vmul.f32 %v848_v5, %v792_v36 }
  0x98   : > { %865 = vst.msk [vmem:[%s1248_s21 + $0x38] sm:$0xff] %vm857_vm2, %v856_v21 }
  0x99 PF: > { %s14_s15 = sadd.s32 1, %s974_s15  }
  0x9a   : > { %p11_p4 = scmp.ge.s32.totalorder %s14_s15, 4  }
  0x9c   :  { %13 = sbr.rel (!%p11_p4) target bundleno = 1 (0x1), region = 66 }

// kernel: coatnet_forward.34
= control target key start
LH: loop header
LB: loop body
LE: loop exit
PB: predicated region body
PF: predicated region fallthrough
CT: control target
= control target key end

     0   :  { %s230_s6 = smov 0   ;;  %s259_s0 = inlined_call_operand.vmem [shape: f32[2,64,32], index: 0, kind: input, shape index: {}]   ;;  %s260_s1 = inlined_call_operand.vmem [shape: f32[2,1,32], index: 1, kind: output, shape index: {}]  }
   0x1 LB: > { %s194_s7 = sadd.s32 4294967295, %s218_s6   ;;  %p198_p0 = scmp.ge.s32.totalorder %s218_s6, 1  ;;  %s218_s6 = sphi %s230_s6, %s11_s6  }
   0x2   : > { %p87_p1 = scmp.lt.s32.totalorder %s218_s6, 3 }
   0x4   : > { %p88_p2 = pnand %p198_p0, %p87_p1 }
   0x5   : > { %p105_p3 = scmp.lt.s32.totalorder (!%p88_p2), %s194_s7, 1  ;;  %vm121_vm0 = vcmask (!%p88_p2), 261120   ;;  %vm145_vm1 = vcmask (!%p88_p2), 253952  }
   0x6   : > { %91 = sbr.rel (%p88_p2) target bundleno = 47 (0x2f), region = 24 }
   0xd   : > { %s262_s7 = smov (!%p105_p3, %s194_s7), 1 }
   0xe   : > { %s203_s8 = sshll.u32 %s262_s7, 6  ;;  %s112_s14 = scalar_lea.vmem %s260_s1, %s262_s7 }
   0xf   : > { %s109_s11 = scalar_lea.vmem %s259_s0, %s203_s8 }
  0x10   : > { %v113_v0 = vld [vmem:[%s109_s11] sm:$0xff]  ;;  %v114_v1 = vld [vmem:[%s109_s11 + $0x8] sm:$0xff]  ;;  %v115_v2 = vld [vmem:[%s109_s11 + $0x10] sm:$0xff] }
  0x11   : > { %v116_v3 = vld [vmem:[%s109_s11 + $0x18] sm:$0xff]  ;;  %v122_v4 = vsel %vm121_vm0, %v113_v0, 0.0  ;;  %v123_v5 = vsel %vm121_vm0, %v114_v1, 0.0  ;;  %v125_v6 = vsel %vm121_vm0, %v115_v2, 0.0  ;;  %v117_v7 = vld [vmem:[%s109_s11 + $0x20] sm:$0xff]  ;;  %v118_v10 = vld [vmem:[%s109_s11 + $0x28] sm:$0xff] }
  0x12   : > { %v124_v8 = vadd.f32 %v123_v5, %v122_v4  ;;  %v127_v9 = vsel %vm121_vm0, %v116_v3, 0.0  ;;  %v129_v12 = vsel %vm121_vm0, %v117_v7, 0.0  ;;  %v119_v13 = vld [vmem:[%s109_s11 + $0x30] sm:$0xff]  ;;  %v131_v15 = vsel %vm121_vm0, %v118_v10, 0.0  ;;  %v120_v16 = vld [vmem:[%s109_s11 + $0x38] sm:$0xff] }
  0x13   : > { %v133_v18 = vsel %vm121_vm0, %v119_v13, 0.0  ;;  %v135_v20 = vsel %vm121_vm0, %v120_v16, 0.0 }
  0x14   : > { %v126_v11 = vadd.f32 %v125_v6, %v124_v8 }
  0x16   : > { %v128_v14 = vadd.f32 %v127_v9, %v126_v11 }
  0x18   : > { %v130_v17 = vadd.f32 %v129_v12, %v128_v14 }
  0x1a   : > { %v132_v19 = vadd.f32 %v131_v15, %v130_v17 }
  0x1c   : > { %v134_v21 = vadd.f32 %v133_v18, %v132_v19 }
  0x1e   : > { %v136_v22 = vadd.f32 %v135_v20, %v134_v21 }
  0x20   : > { %v137_v23 = vrot.slane %v136_v22, 4 }
  0x22   : > { %v138_v24 = vadd.f32 %v137_v23, %v136_v22 }
  0x24   : > { %v139_v25 = vrot.slane %v138_v24, 2 }
  0x26   : > { %v140_v26 = vadd.f32 %v139_v25, %v138_v24 }
  0x28   : > { %v141_v27 = vrot.slane %v140_v26, 1 }
  0x2a   : > { %v142_v28 = vadd.f32 %v141_v27, %v140_v26 }
  0x2c   : > { %v144_v29 = vmul.f32 0.015625, %v142_v28 }
  0x2e   : > { %146 = vst.msk [vmem:[%s112_s14] sm:$0x1] %vm145_vm1, %v144_v29 }
  0x2f PF: > { %s11_s6 = sadd.s32 1, %s218_s6  }
  0x30   : > { %p8_p4 = scmp.ge.s32.totalorder %s11_s6, 4  }
  0x32   :  { %10 = sbr.rel (!%p8_p4) target bundleno = 1 (0x1), region = 54 }

// kernel: coatnet_forward.36
= control target key start
LH: loop header
LB: loop body
LE: loop exit
PB: predicated region body
PF: predicated region fallthrough
CT: control target
= control target key end

     0   :  { %v115_v0 = vmov 0.0   ;;  %vm26_vm0 = vcmask 1040384   ;;  %vm116_vm1 = vmmov 0   ;;  %vm22_vm2 = vcmask 15360   ;;  %s157_s1 = inlined_call_operand.vmem [shape: f32[2,32], index: 1, kind: input, shape index: {}]   ;;  %s158_s0 = inlined_call_operand.vmem [shape: f32[2,2], index: 0, kind: input, shape index: {}]   ;;  %s159_s2 = inlined_call_operand.vmem [shape: f32[1,32], index: 2, kind: input, shape index: {}]   ;;  %s160_s3 = inlined_call_operand.vmem [shape: f32[1,32], index: 3, kind: input, shape index: {}]   ;;  %s161_s4 = inlined_call_operand.vmem [shape: f32[2,32], index: 4, kind: output, shape index: {}]  }
   0x1   :  { %103 = vmatprep.subr.bf16.mxu0 %v115_v0  ;;  %v20_v1 = vld [vmem:[%s157_s1] sm:$0x3]  ;;  %105 = vmatprep.mubr.msk.bf16.mxu0 %vm116_vm1, %v115_v0  ;;  %vm92_vm3 = vcmask 254976  }
   0x2   :  { %v18_v2 = vld [vmem:[%s158_s0] sm:$0x3]  ;;  %v21_v3 = vpack.c.bf16 %v20_v1, %v20_v1 }
   0x3   :  { %v19_v5 = vpack.c.bf16 %v18_v2, %v18_v2  ;;  %v99_v6 = vld [vmem:[%s159_s2] ss:$0 sm:$0xff] }
   0x4   :  { %v28_v4 = vsel %vm26_vm0, %v21_v3, 0  ;;  %v100_v8 = vld [vmem:[%s160_s3] ss:$0 sm:$0xff] }
   0x5   :  { %104 = vmatpush3.bf16.msra.mxu0 %v28_v4 }
   0x8   :  { %106 = vmatmul.mubr.msk.bf16.vlgmr.msra.gmra.mrb[0].mxu0 %vm22_vm2, %v19_v5 }
  0xdb   :  { %v64_v7 = vpop.f32.mrb[0].mxu0 }
  0xdc   :  { %v77_v9 = vmul.f32 %v99_v6, %v64_v7  ;;  %v107_v10 = vpop.f32.mrb[1].mxu0 }
  0xdd   :  { %v67_v11 = vpop.f32.mrb[2].mxu0 }
  0xde   :  { %v85_v12 = vadd.f32 %v100_v8, %v77_v9  ;;  %v108_v13 = vpop.f32.mrb[3].mxu0 }
  0xe0   :  { %v86_v14 = vsub.f32 0.0, %v85_v12 }
  0xe2   :  { %v87_v15 = vmul.f32 1.442695, %v86_v14 }
  0xe4   :  { %111 = vpow2.f32 %v87_v15 }
  0xee   :  { %v112_v16 = vpop.eup %111 }
  0xef   :  { %v89_v17 = vadd.f32 1.0, %v112_v16 }
  0xf1   :  { %113 = vrcp.f32 %v89_v17 }
  0xfb   :  { %v114_v18 = vpop.eup %113 }
  0xfc   :  { %93 = vst.msk [vmem:[%s161_s4] sm:$0x3] %vm92_vm3, %v114_v18 }

// kernel: coatnet_forward.35
= control target key start
LH: loop header
LB: loop body
LE: loop exit
PB: predicated region body
PF: predicated region fallthrough
CT: control target
= control target key end

     0   :  { %v119_v0 = vmov 0.0   ;;  %vm120_vm0 = vmmov 0   ;;  %vm26_vm1 = vcmask 261120   ;;  %vm95_vm2 = vcmask 9216   ;;  %s170_s1 = inlined_call_operand.vmem [shape: f32[32,2], index: 1, kind: input, shape index: {}]   ;;  %s171_s0 = inlined_call_operand.vmem [shape: f32[2,32], index: 0, kind: input, shape index: {}]   ;;  %s172_s2 = inlined_call_operand.vmem [shape: f32[1,2], index: 2, kind: input, shape index: {}]   ;;  %s173_s3 = inlined_call_operand.vmem [shape: f32[1,2], index: 3, kind: input, shape index: {}]   ;;  %s174_s4 = inlined_call_operand.vmem [shape: f32[2,2], index: 4, kind: output, shape index: {}]  }
   0x1   :  { %107 = vmatprep.subr.bf16.mxu0 %v119_v0  ;;  %v20_v1 = vld [vmem:[%s170_s1] sm:$0xff]  ;;  %v21_v2 = vld [vmem:[%s170_s1 + $0x8] sm:$0xff]  ;;  %v22_v3 = vld [vmem:[%s170_s1 + $0x10] sm:$0xff]  ;;  %111 = vmatprep.mubr.msk.bf16.mxu0 %vm120_vm0, %v119_v0 }
   0x2   :  { %v24_v4 = vpack.c.bf16 %v21_v2, %v20_v1  ;;  %v23_v5 = vld [vmem:[%s170_s1 + $0x18] sm:$0xff]  ;;  %v18_v7 = vld [vmem:[%s171_s0] sm:$0x3] }
   0x3   :  { %v25_v6 = vpack.c.bf16 %v23_v5, %v22_v3  ;;  %v19_v8 = vpack.c.bf16 %v18_v7, %v18_v7  ;;  %v102_v9 = vld [vmem:[%s172_s2] ss:$0 sm:$0xff] }
   0x4   :  { %108 = vmatpush3.bf16.msra.mxu0 %v24_v4  ;;  %v103_v11 = vld [vmem:[%s173_s3] ss:$0 sm:$0xff] }
   0x5   :  { %109 = vmatprep.subr.bf16.mxu0 %v119_v0 }
   0x8   :  { %110 = vmatpush3.bf16.msra.mxu0 %v25_v6 }
   0xb   :  { %112 = vmatmul.mubr.msk.bf16.vlgmr.msra.gmra.mrb[0].mxu0 %vm26_vm1, %v19_v8 }
  0xde   :  { %v64_v10 = vpop.f32.mrb[0].mxu0 }
  0xdf   :  { %v77_v12 = vmul.f32 %v102_v9, %v64_v10  ;;  %v113_v13 = vpop.f32.mrb[1].mxu0 }
  0xe0   :  { %v67_v14 = vpop.f32.mrb[2].mxu0 }
  0xe1   :  { %v85_v15 = vadd.f32 %v103_v11, %v77_v12  ;;  %v114_v16 = vpop.f32.mrb[3].mxu0 }
  0xe3   :  { %v87_v17 = vmul.f32 0.044715, %v85_v15  ;;  %v86_v23 = vmul.f32 0.5, %v85_v15 }
  0xe5   :  { %v88_v18 = vmul.f32 %v87_v17, %v85_v15 }
  0xe7   :  { %v89_v19 = vmul.f32 %v88_v18, %v85_v15 }
  0xe9   :  { %v90_v20 = vadd.f32 %v89_v19, %v85_v15 }
  0xeb   :  { %v91_v21 = vmul.f32 0.7978846, %v90_v20 }
  0xed   :  { %117 = vtanh.f32 %v91_v21 }
  0xf7   :  { %v118_v22 = vpop.eup %117 }
  0xf8   :  { %v93_v24 = vadd.f32 1.0, %v118_v22 }
  0xfa   :  { %v94_v25 = vmul.f32 %v93_v24, %v86_v23 }
  0xfc   :  { %96 = vst.msk [vmem:[%s174_s4] sm:$0x3] %vm95_vm2, %v94_v25 }

// kernel: coatnet_forward.38
= control target key start
LH: loop header
LB: loop body
LE: loop exit
PB: predicated region body
PF: predicated region fallthrough
CT: control target
= control target key end

     0   :  { %s750_s21 = smov 0   ;;  %s752_s22 = smov 0   ;;  %s840_s0 = inlined_call_operand.vmem [shape: f32[2,64,32], index: 0, kind: input, shape index: {}]   ;;  %s841_s1 = inlined_call_operand.vmem [shape: f32[2,1,32], index: 1, kind: input, shape index: {}]   ;;  %s842_s2 = inlined_call_operand.vmem [shape: f32[32,16], index: 2, kind: input, shape index: {}]   ;;  %s843_s3 = inlined_call_operand.vmem [shape: f32[1,16], index: 3, kind: input, shape index: {}]   ;;  %s844_s4 = inlined_call_operand.vmem [shape: f32[1,16], index: 4, kind: input, shape index: {}]   ;;  %s845_s5 = inlined_call_operand.vmem [shape: f32[2,64,16], index: 5, kind: input, shape index: {}]   ;;  %s846_s6 = inlined_call_operand.vmem [shape: f32[2,64,16], index: 6, kind: output, shape index: {}]  }
   0x1   :  { %s754_s23 = smov 0  }
   0x2 LB: > { %s28_s24 = sadd.s32 1, %s709_s22  ;;  %p626_p0 = scmp.ge.s32.totalorder %s713_s23, 1  ;;  %s713_s23 = sphi %s754_s23, %s16_s23   ;;  %s709_s22 = sphi %s752_s22, %s848_s22   ;;  %s705_s21 = sphi %s750_s21, %s847_s21  }
   0x3   : > { %p30_p1 = scmp.ge.s32.totalorder %s28_s24, 2  ;;  %p258_p2 = scmp.lt.s32.totalorder %s713_s23, 3 }
   0x5   : > { %s850_s24 = smov (%p30_p1, %s28_s24), 0  ;;  %p259_p3 = pnand %p626_p0, %p258_p2 }
   0x6   : > { %v369_v0 = vld [vmem:[%s842_s2] sm:$0xff] (!%p259_p3)  ;;  %v370_v1 = vld [vmem:[%s842_s2 + $0x8] sm:$0xff] (!%p259_p3)  ;;  %v371_v2 = vld [vmem:[%s842_s2 + $0x10] sm:$0xff] (!%p259_p3)  ;;  %p309_p4 = scmp.lt.s32.totalorder (!%p259_p3), %s705_s21, 1  ;;  %vm375_vm0 = vcmask (!%p259_p3), 261120   ;;  %vm499_vm1 = vcmask (!%p259_p3), 130048  }
   0x7   : > { %262 = sbr.rel (%p259_p3) target bundleno = 246 (0xf6), region = 44  ;;  %v373_v3 = vpack.c.bf16 (!%p259_p3), %v370_v1, %v369_v0  ;;  %v372_v4 = vld [vmem:[%s842_s2 + $0x18] sm:$0xff] (!%p259_p3)  ;;  %v638_v27 = vld [vmem:[%s843_s3] ss:$0 sm:$0xff] (!%p259_p3) }
   0x8   : > { %v374_v5 = vpack.c.bf16 (!%p259_p3), %v372_v4, %v371_v2  ;;  %v639_v29 = vld [vmem:[%s844_s4] ss:$0 sm:$0xff] (!%p259_p3) }
   0x9   : > { %651 = vmatprep.subr.bf16.mxu0 (!%p259_p3), %v373_v3  ;;  %663 = vmatprep.subr.bf16.mxu1 (!%p259_p3), %v373_v3 }
   0xa   : > { %652 = vmatpush3.bf16.msra.mxu0 (!%p259_p3), %v373_v3  ;;  %665 = vmatpush3.bf16.msra.mxu1 (!%p259_p3), %v373_v3 }
   0xb   : > { %653 = vmatprep.subr.bf16.mxu0 (!%p259_p3), %v374_v5  ;;  %664 = vmatprep.subr.bf16.mxu1 (!%p259_p3), %v374_v5 }
   0xe   : > { %s852_s21 = smov (!%p309_p4, %s705_s21), 1  ;;  %654 = vmatpush3.bf16.msra.mxu0 %v374_v5  ;;  %666 = vmatpush3.bf16.msra.mxu1 %v374_v5 }
   0xf   : > { %s780_s9 = sshll.u32 %s852_s21, 6  ;;  %s320_s12 = scalar_lea.vmem %s841_s1, %s852_s21 }
  0x10   : > { %s316_s15 = scalar_lea.vmem %s840_s0, %s780_s9  ;;  %v633_v6 = vld [vmem:[%s320_s12] ss:$0 sm:$0xff]  ;;  %s796_s20 = scalar_lea.vmem %s845_s5, %s780_s9 }
  0x11   : > { %v342_v7 = vld [vmem:[%s316_s15] sm:$0xff]  ;;  %v343_v8 = vld [vmem:[%s316_s15 + $0x8] sm:$0xff]  ;;  %v344_v14 = vld [vmem:[%s316_s15 + $0x10] sm:$0xff]  ;;  %s808_s28 = scalar_lea.vmem %s846_s6, %s780_s9 }
  0x12   : > { %v346_v9 = vld [vmem:[%s316_s15 + $0x20] sm:$0xff]  ;;  %v357_v10 = vmul.f32 %v633_v6, %v342_v7  ;;  %v358_v11 = vmul.f32 %v633_v6, %v343_v8  ;;  %v347_v12 = vld [vmem:[%s316_s15 + $0x28] sm:$0xff]  ;;  %v345_v15 = vld [vmem:[%s316_s15 + $0x18] sm:$0xff]  ;;  %v359_v17 = vmul.f32 %v633_v6, %v344_v14 }
  0x13   : > { %v361_v13 = vmul.f32 %v633_v6, %v346_v9  ;;  %v362_v16 = vmul.f32 %v633_v6, %v347_v12  ;;  %v360_v18 = vmul.f32 %v633_v6, %v345_v15  ;;  %v348_v19 = vld [vmem:[%s316_s15 + $0x30] sm:$0xff]  ;;  %v349_v20 = vld [vmem:[%s316_s15 + $0x38] sm:$0xff]  ;;  %v483_v40 = vld [vmem:[%s796_s20] sm:$0xff] }
  0x14   : > { %v365_v21 = vpack.c.bf16 %v358_v11, %v357_v10  ;;  %v363_v22 = vmul.f32 %v633_v6, %v348_v19  ;;  %v364_v23 = vmul.f32 %v633_v6, %v349_v20  ;;  %v485_v33 = vld [vmem:[%s796_s20 + $0x10] sm:$0xff]  ;;  %v487_v47 = vld [vmem:[%s796_s20 + $0x20] sm:$0xff]  ;;  %v486_v48 = vld [vmem:[%s796_s20 + $0x18] sm:$0xff] }
  0x15   : > { %v367_v24 = vpack.c.bf16 %v362_v16, %v361_v13  ;;  %v366_v25 = vpack.c.bf16 %v360_v18, %v359_v17  ;;  %v489_v39 = vld [vmem:[%s796_s20 + $0x30] sm:$0xff]  ;;  %v490_v55 = vld [vmem:[%s796_s20 + $0x38] sm:$0xff]  ;;  %v484_v56 = vld [vmem:[%s796_s20 + $0x8] sm:$0xff] }
  0x16   : > { %655 = vmatprep.mubr.msk.bf16.mxu0 %vm375_vm0, %v365_v21  ;;  %v368_v26 = vpack.c.bf16 %v364_v23, %v363_v22  ;;  %v488_v62 = vld [vmem:[%s796_s20 + $0x28] sm:$0xff] }
  0x17   : > { %659 = vmatprep.mubr.msk.bf16.mxu1 %vm375_vm0, %v367_v24  ;;  %656 = vmatmul.mubr.msk.bf16.vlgmr.msra.gmra.mrb[0].mxu0 %vm375_vm0, %v366_v25 }
  0x18   : > { %660 = vmatmul.mubr.msk.bf16.vlgmr.msra.gmra.mrb[0].mxu1 %vm375_vm0, %v368_v26 }
  0xea   : > { %v657_v28 = vpop.f32.mrb[0].mxu0 }
  0xeb   : > { %v462_v30 = vmul.f32 %v657_v28, %v638_v27  ;;  %v661_v31 = vpop.f32.mrb[0].mxu1  ;;  %v422_v32 = vpop.f32.mrb[1].mxu0 }
  0xec   : > { %v466_v34 = vmul.f32 %v661_v31, %v638_v27  ;;  %v460_v35 = vmul.f32 %v638_v27, %v422_v32  ;;  %v438_v36 = vpop.f32.mrb[1].mxu1  ;;  %v658_v37 = vpop.f32.mrb[2].mxu0 }
  0xed   : > { %v477_v38 = vadd.f32 %v639_v29, %v462_v30  ;;  %v464_v41 = vmul.f32 %v638_v27, %v438_v36  ;;  %v463_v42 = vmul.f32 %v658_v37, %v638_v27  ;;  %v662_v43 = vpop.f32.mrb[2].mxu1  ;;  %v425_v44 = vpop.f32.mrb[3].mxu0 }
  0xee   : > { %v481_v45 = vadd.f32 %v639_v29, %v466_v34  ;;  %v475_v46 = vadd.f32 %v639_v29, %v460_v35  ;;  %v467_v49 = vmul.f32 %v662_v43, %v638_v27  ;;  %v461_v50 = vmul.f32 %v638_v27, %v425_v44  ;;  %v441_v51 = vpop.f32.mrb[3].mxu1 }
  0xef   : > { %v493_v52 = vadd.f32 %v485_v33, %v477_v38  ;;  %v479_v53 = vadd.f32 %v639_v29, %v464_v41  ;;  %v478_v54 = vadd.f32 %v639_v29, %v463_v42  ;;  %v465_v57 = vmul.f32 %v638_v27, %v441_v51 }
  0xf0   : > { %v497_v58 = vadd.f32 %v489_v39, %v481_v45  ;;  %v491_v59 = vadd.f32 %v483_v40, %v475_v46  ;;  %v482_v60 = vadd.f32 %v639_v29, %v467_v49  ;;  %v476_v61 = vadd.f32 %v639_v29, %v461_v50 }
  0xf1   : > { %502 = vst.msk [vmem:[%s808_s28 + $0x10] sm:$0xff] %vm499_vm1, %v493_v52  ;;  %v495_v63 = vadd.f32 %v487_v47, %v479_v53  ;;  %v494_v0 = vadd.f32 %v486_v48, %v478_v54  ;;  %v480_v1 = vadd.f32 %v639_v29, %v465_v57 }
  0xf2   : > { %506 = vst.msk [vmem:[%s808_s28 + $0x30] sm:$0xff] %vm499_vm1, %v497_v58  ;;  %500 = vst.msk [vmem:[%s808_s28] sm:$0xff] %vm499_vm1, %v491_v59  ;;  %v498_v2 = vadd.f32 %v490_v55, %v482_v60  ;;  %v492_v3 = vadd.f32 %v484_v56, %v476_v61 }
  0xf3   : > { %504 = vst.msk [vmem:[%s808_s28 + $0x20] sm:$0xff] %vm499_vm1, %v495_v63  ;;  %503 = vst.msk [vmem:[%s808_s28 + $0x18] sm:$0xff] %vm499_vm1, %v494_v0  ;;  %v496_v4 = vadd.f32 %v488_v62, %v480_v1 }
  0xf4   : > { %507 = vst.msk [vmem:[%s808_s28 + $0x38] sm:$0xff] %vm499_vm1, %v498_v2  ;;  %501 = vst.msk [vmem:[%s808_s28 + $0x8] sm:$0xff] %vm499_vm1, %v492_v3 }
  0xf5   : > { %505 = vst.msk [vmem:[%s808_s28 + $0x28] sm:$0xff] %vm499_vm1, %v496_v4 }
  0xf6 PF: > { %s16_s23 = sadd.s32 1, %s713_s23   ;;  %s847_s21 = smov %s709_s22 }
  0xf7   : > { %p13_p5 = scmp.ge.s32.totalorder %s16_s23, 4   ;;  %s848_s22 = smov %s850_s24 }
  0xf9   :  { %15 = sbr.rel (!%p13_p5) target bundleno = 2 (0x2), region = 80 }

// kernel: coatnet_forward.44
= control target key start
LH: loop header
LB: loop body
LE: loop exit
PB: predicated region body
PF: predicated region fallthrough
CT: control target
= control target key end

     0   :  { %vm93_vm0 = vcmask 130048   ;;  %s347_s1 = inlined_call_operand.vmem [shape: f32[16,16], index: 1, kind: input, shape index: {}]   ;;  %s348_s0 = inlined_call_operand.vmem [shape: f32[9,32,16], index: 0, kind: input, shape index: {}]   ;;  %s349_s2 = inlined_call_operand.vmem [shape: f32[32,16], index: 2, kind: output, shape index: {}]  }
   0x1   :  { %v90_v0 = vld [vmem:[%s347_s1] sm:$0xff]  ;;  %v91_v1 = vld [vmem:[%s347_s1 + $0x8] sm:$0xff]  ;;  %v14_v21 = vld [vmem:[%s348_s0 + $0x10] sm:$0xff] }
   0x2   :  { %v12_v2 = vld [vmem:[%s348_s0] sm:$0xff]  ;;  %v92_v3 = vpack.c.bf16 %v91_v1, %v90_v0  ;;  %v13_v4 = vld [vmem:[%s348_s0 + $0x8] sm:$0xff]  ;;  %v15_v22 = vld [vmem:[%s348_s0 + $0x18] sm:$0xff] }
   0x3   :  { %v157_v5 = vld [vmem:[%s348_s0 + $0x20] sm:$0xff]  ;;  %v158_v6 = vld [vmem:[%s348_s0 + $0x28] sm:$0xff]  ;;  %v159_v23 = vld [vmem:[%s348_s0 + $0x30] sm:$0xff] }
   0x4   :  { %v21_v7 = vmax.f32 %v12_v2, %v157_v5  ;;  %v22_v8 = vmax.f32 %v13_v4, %v158_v6  ;;  %v161_v9 = vld [vmem:[%s348_s0 + $0x40] sm:$0xff]  ;;  %v162_v10 = vld [vmem:[%s348_s0 + $0x48] sm:$0xff]  ;;  %194 = vmatprep.subr.bf16.mxu0 %v92_v3  ;;  %v160_v24 = vld [vmem:[%s348_s0 + $0x38] sm:$0xff]  ;;  %v23_v28 = vmax.f32 %v14_v21, %v159_v23 }
   0x5   :  { %v165_v11 = vld [vmem:[%s348_s0 + $0x60] sm:$0xff]  ;;  %v166_v12 = vld [vmem:[%s348_s0 + $0x68] sm:$0xff]  ;;  %195 = vmatpush3.bf16.msra.mxu0 %v92_v3  ;;  %v24_v29 = vmax.f32 %v15_v22, %v160_v24  ;;  %v163_v30 = vld [vmem:[%s348_s0 + $0x50] sm:$0xff] }
   0x6   :  { %v30_v13 = vmax.f32 %v21_v7, %v161_v9  ;;  %v31_v14 = vmax.f32 %v22_v8, %v162_v10  ;;  %v169_v15 = vld [vmem:[%s348_s0 + $0x80] sm:$0xff]  ;;  %v170_v16 = vld [vmem:[%s348_s0 + $0x88] sm:$0xff]  ;;  %v164_v31 = vld [vmem:[%s348_s0 + $0x58] sm:$0xff]  ;;  %v32_v38 = vmax.f32 %v23_v28, %v163_v30 }
   0x7   :  { %v173_v19 = vld [vmem:[%s348_s0 + $0xa0] sm:$0xff]  ;;  %v174_v20 = vld [vmem:[%s348_s0 + $0xa8] sm:$0xff]  ;;  %v167_v33 = vld [vmem:[%s348_s0 + $0x70] sm:$0xff]  ;;  %v33_v39 = vmax.f32 %v24_v29, %v164_v31 }
   0x8   :  { %v39_v17 = vmax.f32 %v30_v13, %v165_v11  ;;  %v40_v18 = vmax.f32 %v31_v14, %v166_v12  ;;  %v177_v27 = vld [vmem:[%s348_s0 + $0xc0] sm:$0xff]  ;;  %v178_v32 = vld [vmem:[%s348_s0 + $0xc8] sm:$0xff]  ;;  %v168_v34 = vld [vmem:[%s348_s0 + $0x78] sm:$0xff]  ;;  %v41_v46 = vmax.f32 %v32_v38, %v167_v33 }
   0x9   :  { %v181_v37 = vld [vmem:[%s348_s0 + $0xe0] sm:$0xff]  ;;  %v182_v40 = vld [vmem:[%s348_s0 + $0xe8] sm:$0xff]  ;;  %v171_v41 = vld [vmem:[%s348_s0 + $0x90] sm:$0xff]  ;;  %v42_v47 = vmax.f32 %v33_v39, %v168_v34 }
   0xa   :  { %v48_v25 = vmax.f32 %v39_v17, %v169_v15  ;;  %v49_v26 = vmax.f32 %v40_v18, %v170_v16  ;;  %v172_v42 = vld [vmem:[%s348_s0 + $0x98] sm:$0xff]  ;;  %v185_v45 = vld [vmem:[%s348_s0 + $0x100] sm:$0xff]  ;;  %v186_v48 = vld [vmem:[%s348_s0 + $0x108] sm:$0xff]  ;;  %v50_v53 = vmax.f32 %v41_v46, %v171_v41 }
   0xb   :  { %v175_v49 = vld [vmem:[%s348_s0 + $0xb0] sm:$0xff]  ;;  %v176_v50 = vld [vmem:[%s348_s0 + $0xb8] sm:$0xff]  ;;  %v51_v54 = vmax.f32 %v42_v47, %v172_v42 }
   0xc   :  { %v57_v35 = vmax.f32 %v48_v25, %v173_v19  ;;  %v58_v36 = vmax.f32 %v49_v26, %v174_v20  ;;  %v179_v55 = vld [vmem:[%s348_s0 + $0xd0] sm:$0xff]  ;;  %v180_v56 = vld [vmem:[%s348_s0 + $0xd8] sm:$0xff]  ;;  %v59_v59 = vmax.f32 %v50_v53, %v175_v49 }
   0xd   :  { %v60_v60 = vmax.f32 %v51_v54, %v176_v50  ;;  %v183_v61 = vld [vmem:[%s348_s0 + $0xf0] sm:$0xff]  ;;  %v184_v62 = vld [vmem:[%s348_s0 + $0xf8] sm:$0xff] }
   0xe   :  { %v66_v43 = vmax.f32 %v57_v35, %v177_v27  ;;  %v67_v44 = vmax.f32 %v58_v36, %v178_v32  ;;  %v68_v0 = vmax.f32 %v59_v59, %v179_v55  ;;  %v187_v2 = vld [vmem:[%s348_s0 + $0x110] sm:$0xff]  ;;  %v188_v3 = vld [vmem:[%s348_s0 + $0x118] sm:$0xff] }
   0xf   :  { %v69_v1 = vmax.f32 %v60_v60, %v180_v56 }
  0x10   :  { %v75_v51 = vmax.f32 %v66_v43, %v181_v37  ;;  %v76_v52 = vmax.f32 %v67_v44, %v182_v40  ;;  %v77_v4 = vmax.f32 %v68_v0, %v183_v61 }
  0x11   :  { %v78_v5 = vmax.f32 %v69_v1, %v184_v62 }
  0x12   :  { %v84_v57 = vmax.f32 %v75_v51, %v185_v45  ;;  %v85_v58 = vmax.f32 %v76_v52, %v186_v48  ;;  %v86_v6 = vmax.f32 %v77_v4, %v187_v2 }
  0x13   :  { %v87_v7 = vmax.f32 %v78_v5, %v188_v3 }
  0x14   :  { %v88_v63 = vpack.c.bf16 %v85_v58, %v84_v57 }
  0x15   :  { %v89_v8 = vpack.c.bf16 %v87_v7, %v86_v6 }
  0x16   :  { %196 = vmatprep.mubr.msk.bf16.mxu0 %vm93_vm0, %v88_v63 }
  0x17   :  { %197 = vmatmul.mubr.msk.bf16.vlgmr.msra.gmra.mrb[0].mxu0 %vm93_vm0, %v89_v8 }
  0xea   :  { %v198_v9 = vpop.f32.mrb[0].mxu0 }
  0xeb   :  { %151 = vst.msk [vmem:[%s349_s2 + $0x10] sm:$0xff] %vm93_vm0, %v198_v9  ;;  %v134_v10 = vpop.f32.mrb[1].mxu0 }
  0xec   :  { %149 = vst.msk [vmem:[%s349_s2] sm:$0xff] %vm93_vm0, %v134_v10  ;;  %v199_v11 = vpop.f32.mrb[2].mxu0 }
  0xed   :  { %152 = vst.msk [vmem:[%s349_s2 + $0x18] sm:$0xff] %vm93_vm0, %v199_v11  ;;  %v137_v12 = vpop.f32.mrb[3].mxu0 }
  0xee   :  { %150 = vst.msk [vmem:[%s349_s2 + $0x8] sm:$0xff] %vm93_vm0, %v137_v12 }

// kernel: coatnet_forward.41
= control target key start
LH: loop header
LB: loop body
LE: loop exit
PB: predicated region body
PF: predicated region fallthrough
CT: control target
= control target key end

     0   :  { %s212_s6 = smov 0   ;;  %s229_s0 = inlined_call_operand.vmem [shape: f32[2,16,64], index: 0, kind: input, shape index: {}]   ;;  %s230_s1 = inlined_call_operand.vmem [shape: f32[2,1,64], index: 1, kind: output, shape index: {}]  }
   0x1 LB: > { %s176_s7 = sadd.s32 4294967295, %s200_s6   ;;  %p180_p0 = scmp.ge.s32.totalorder %s200_s6, 1  ;;  %s200_s6 = sphi %s212_s6, %s11_s6  }
   0x2   : > { %p87_p1 = scmp.lt.s32.totalorder %s200_s6, 3 }
   0x4   : > { %p88_p2 = pnand %p180_p0, %p87_p1 }
   0x5   : > { %p105_p3 = scmp.lt.s32.totalorder (!%p88_p2), %s176_s7, 1  ;;  %vm115_vm0 = vcmask (!%p88_p2), 523264   ;;  %vm127_vm1 = vcmask (!%p88_p2), 516096  }
   0x6   : > { %91 = sbr.rel (%p88_p2) target bundleno = 35 (0x23), region = 24 }
   0xd   : > { %s232_s7 = smov (!%p105_p3, %s176_s7), 1 }
   0xe   : > { %s185_s8 = sshll.u32 %s232_s7, 4  ;;  %s112_s14 = scalar_lea.vmem %s230_s1, %s232_s7 }
   0xf   : > { %s109_s11 = scalar_lea.vmem %s229_s0, %s185_s8 }
  0x10   : > { %v113_v0 = vld [vmem:[%s109_s11] sm:$0xff]  ;;  %v114_v1 = vld [vmem:[%s109_s11 + $0x8] sm:$0xff] }
  0x11   : > { %v116_v2 = vsel %vm115_vm0, %v113_v0, 0.0  ;;  %v117_v3 = vsel %vm115_vm0, %v114_v1, 0.0 }
  0x12   : > { %v118_v4 = vadd.f32 %v117_v3, %v116_v2 }
  0x14   : > { %v119_v5 = vrot.slane %v118_v4, 4 }
  0x16   : > { %v120_v6 = vadd.f32 %v119_v5, %v118_v4 }
  0x18   : > { %v121_v7 = vrot.slane %v120_v6, 2 }
  0x1a   : > { %v122_v8 = vadd.f32 %v121_v7, %v120_v6 }
  0x1c   : > { %v123_v9 = vrot.slane %v122_v8, 1 }
  0x1e   : > { %v124_v10 = vadd.f32 %v123_v9, %v122_v8 }
  0x20   : > { %v126_v11 = vmul.f32 0.0625, %v124_v10 }
  0x22   : > { %128 = vst.msk [vmem:[%s112_s14] sm:$0x1] %vm127_vm1, %v126_v11 }
  0x23 PF: > { %s11_s6 = sadd.s32 1, %s200_s6  }
  0x24   : > { %p8_p4 = scmp.ge.s32.totalorder %s11_s6, 4  }
  0x26   :  { %10 = sbr.rel (!%p8_p4) target bundleno = 1 (0x1), region = 54 }

// kernel: coatnet_forward.39
= control target key start
LH: loop header
LB: loop body
LE: loop exit
PB: predicated region body
PF: predicated region fallthrough
CT: control target
= control target key end

     0   :  { %vm27_vm0 = vcmask 130048   ;;  %vm141_vm1 = vcmask 523264   ;;  %s232_s1 = inlined_call_operand.vmem [shape: f32[16,64], index: 1, kind: input, shape index: {}]   ;;  %s233_s0 = inlined_call_operand.vmem [shape: f32[32,16], index: 0, kind: input, shape index: {}]   ;;  %s234_s2 = inlined_call_operand.vmem [shape: f32[1,64], index: 2, kind: input, shape index: {}]   ;;  %s235_s3 = inlined_call_operand.vmem [shape: f32[1,64], index: 3, kind: input, shape index: {}]   ;;  %s236_s4 = inlined_call_operand.vmem [shape: f32[32,64], index: 4, kind: output, shape index: {}]  }
   0x1   :  { %v24_v0 = vld [vmem:[%s232_s1] sm:$0xff]  ;;  %v25_v1 = vld [vmem:[%s232_s1 + $0x8] sm:$0xff]  ;;  %v20_v5 = vld [vmem:[%s233_s0 + $0x10] sm:$0xff] }
   0x2   :  { %v18_v2 = vld [vmem:[%s233_s0] sm:$0xff]  ;;  %v26_v3 = vpack.c.bf16 %v25_v1, %v24_v0  ;;  %v19_v4 = vld [vmem:[%s233_s0 + $0x8] sm:$0xff]  ;;  %v21_v6 = vld [vmem:[%s233_s0 + $0x18] sm:$0xff] }
   0x3   :  { %v22_v7 = vpack.c.bf16 %v19_v4, %v18_v2  ;;  %v23_v8 = vpack.c.bf16 %v21_v6, %v20_v5  ;;  %v152_v9 = vld [vmem:[%s234_s2] ss:$0 sm:$0xff] }
   0x4   :  { %157 = vmatprep.subr.bf16.mxu0 %v26_v3  ;;  %v153_v11 = vld [vmem:[%s235_s3] ss:$0 sm:$0xff] }
   0x5   :  { %158 = vmatpush3.bf16.msra.mxu0 %v26_v3  ;;  %159 = vmatprep.mubr.msk.bf16.mxu0 %vm27_vm0, %v22_v7 }
   0x8   :  { %160 = vmatmul.mubr.msk.bf16.vlgmr.msra.gmra.mrb[0].mxu0 %vm27_vm0, %v23_v8 }
  0xdb   :  { %v161_v10 = vpop.f32.mrb[0].mxu0 }
  0xdc   :  { %v92_v12 = vmul.f32 %v161_v10, %v152_v9  ;;  %v68_v13 = vpop.f32.mrb[1].mxu0 }
  0xdd   :  { %v90_v14 = vmul.f32 %v152_v9, %v68_v13  ;;  %v162_v15 = vpop.f32.mrb[2].mxu0 }
  0xde   :  { %v103_v16 = vadd.f32 %v153_v11, %v92_v12  ;;  %v93_v17 = vmul.f32 %v162_v15, %v152_v9  ;;  %v71_v18 = vpop.f32.mrb[3].mxu0 }
  0xdf   :  { %v101_v19 = vadd.f32 %v153_v11, %v90_v14  ;;  %v91_v20 = vmul.f32 %v152_v9, %v71_v18 }
  0xe0   :  { %v111_v21 = vmul.f32 0.044715, %v103_v16  ;;  %v104_v22 = vadd.f32 %v153_v11, %v93_v17  ;;  %v107_v45 = vmul.f32 0.5, %v103_v16 }
  0xe1   :  { %v109_v23 = vmul.f32 0.044715, %v101_v19  ;;  %v102_v24 = vadd.f32 %v153_v11, %v91_v20  ;;  %v105_v48 = vmul.f32 0.5, %v101_v19 }
  0xe2   :  { %v115_v25 = vmul.f32 %v111_v21, %v103_v16  ;;  %v112_v26 = vmul.f32 0.044715, %v104_v22  ;;  %v108_v52 = vmul.f32 0.5, %v104_v22 }
  0xe3   :  { %v113_v27 = vmul.f32 %v109_v23, %v101_v19  ;;  %v110_v28 = vmul.f32 0.044715, %v102_v24  ;;  %v106_v55 = vmul.f32 0.5, %v102_v24 }
  0xe4   :  { %v119_v29 = vmul.f32 %v115_v25, %v103_v16  ;;  %v116_v30 = vmul.f32 %v112_v26, %v104_v22 }
  0xe5   :  { %v117_v31 = vmul.f32 %v113_v27, %v101_v19  ;;  %v114_v32 = vmul.f32 %v110_v28, %v102_v24 }
  0xe6   :  { %v123_v33 = vadd.f32 %v119_v29, %v103_v16  ;;  %v120_v34 = vmul.f32 %v116_v30, %v104_v22 }
  0xe7   :  { %v121_v35 = vadd.f32 %v117_v31, %v101_v19  ;;  %v118_v36 = vmul.f32 %v114_v32, %v102_v24 }
  0xe8   :  { %v127_v37 = vmul.f32 0.7978846, %v123_v33  ;;  %v124_v38 = vadd.f32 %v120_v34, %v104_v22 }
  0xe9   :  { %v125_v39 = vmul.f32 0.7978846, %v121_v35  ;;  %v122_v40 = vadd.f32 %v118_v36, %v102_v24 }
  0xea   :  { %163 = vtanh.f32 %v127_v37  ;;  %v128_v41 = vmul.f32 0.7978846, %v124_v38 }
  0xeb   :  { %165 = vtanh.f32 %v125_v39  ;;  %v126_v42 = vmul.f32 0.7978846, %v122_v40 }
  0xec   :  { %167 = vtanh.f32 %v128_v41 }
  0xed   :  { %169 = vtanh.f32 %v126_v42 }
  0xf4   :  { %v164_v43 = vpop.eup %163 }
  0xf5   :  { %v166_v44 = vpop.eup %165  ;;  %v135_v46 = vadd.f32 1.0, %v164_v43 }
  0xf6   :  { %v168_v47 = vpop.eup %167  ;;  %v133_v49 = vadd.f32 1.0, %v166_v44 }
  0xf7   :  { %v170_v50 = vpop.eup %169  ;;  %v139_v51 = vmul.f32 %v135_v46, %v107_v45  ;;  %v136_v53 = vadd.f32 1.0, %v168_v47 }
  0xf8   :  { %v137_v54 = vmul.f32 %v133_v49, %v105_v48  ;;  %v134_v56 = vadd.f32 1.0, %v170_v50 }
  0xf9   :  { %144 = vst.msk [vmem:[%s236_s4 + $0x10] sm:$0xff] %vm141_vm1, %v139_v51  ;;  %v140_v57 = vmul.f32 %v136_v53, %v108_v52 }
  0xfa   :  { %142 = vst.msk [vmem:[%s236_s4] sm:$0xff] %vm141_vm1, %v137_v54  ;;  %v138_v58 = vmul.f32 %v134_v56, %v106_v55 }
  0xfb   :  { %145 = vst.msk [vmem:[%s236_s4 + $0x18] sm:$0xff] %vm141_vm1, %v140_v57 }
  0xfc   :  { %143 = vst.msk [vmem:[%s236_s4 + $0x8] sm:$0xff] %vm141_vm1, %v138_v58 }

// kernel: coatnet_forward.40
= control target key start
LH: loop header
LB: loop body
LE: loop exit
PB: predicated region body
PF: predicated region fallthrough
CT: control target
= control target key end

     0   :  { %s597_s15 = smov 0   ;;  %s689_s0 = inlined_call_operand.vmem [shape: f32[2,6,6,64], index: 0, kind: input, shape index: {}]   ;;  %s690_s1 = inlined_call_operand.vmem [shape: f32[3,3,1,64], index: 1, kind: input, shape index: {}]   ;;  %s691_s2 = inlined_call_operand.vmem [shape: f32[1,64], index: 2, kind: input, shape index: {}]   ;;  %s692_s3 = inlined_call_operand.vmem [shape: f32[1,64], index: 3, kind: input, shape index: {}]   ;;  %s693_s4 = inlined_call_operand.vmem [shape: f32[2,4,4,64], index: 4, kind: output, shape index: {}]  }
   0x1 LB: > { %s525_s16 = sadd.s32 4294967295, %s570_s15   ;;  %p529_p0 = scmp.ge.s32.totalorder %s570_s15, 1  ;;  %s570_s15 = sphi %s597_s15, %s14_s15  }
   0x2   : > { %p162_p1 = scmp.lt.s32.totalorder %s570_s15, 3 }
   0x4   : > { %p163_p2 = pnand %p529_p0, %p162_p1 }
   0x5   : > { %p188_p3 = scmp.lt.s32.totalorder (!%p163_p2), %s525_s16, 1  ;;  %v533_v0 = vld [vmem:[%s690_s1] ss:$0 sm:$0xff] (!%p163_p2)  ;;  %v534_v1 = vld [vmem:[%s690_s1 + $0x1] ss:$0 sm:$0xff] (!%p163_p2)  ;;  %vm465_vm0 = vcmask (!%p163_p2), 519168  }
   0x6   : > { %166 = sbr.rel (%p163_p2) target bundleno = 78 (0x4e), region = 36  ;;  %v535_v2 = vld [vmem:[%s690_s1 + $0x2] ss:$0 sm:$0xff] (!%p163_p2)  ;;  %v536_v19 = vld [vmem:[%s690_s1 + $0x3] ss:$0 sm:$0xff] (!%p163_p2) }
   0x7   : > { %v537_v29 = vld [vmem:[%s690_s1 + $0x4] ss:$0 sm:$0xff] (!%p163_p2)  ;;  %v538_v30 = vld [vmem:[%s690_s1 + $0x5] ss:$0 sm:$0xff] (!%p163_p2)  ;;  %v539_v43 = vld [vmem:[%s690_s1 + $0x6] ss:$0 sm:$0xff] (!%p163_p2) }
   0x8   : > { %v540_v49 = vld [vmem:[%s690_s1 + $0x7] ss:$0 sm:$0xff] (!%p163_p2)  ;;  %v541_v52 = vld [vmem:[%s690_s1 + $0x8] ss:$0 sm:$0xff] (!%p163_p2) }
   0xd   : > { %s695_s16 = smov (!%p188_p3, %s525_s16), 1 }
   0xe   : > { %s547_s17 = smul.u32 48, %s695_s16  ;;  %s546_s19 = sshll.u32 %s695_s16, 4 }
   0xf   : > { %s197_s22 = scalar_lea.vmem %s693_s4, %s546_s19 }
  0x10   : > { %s617_s24 = scalar_lea.vmem %s689_s0, %s547_s17 }
  0x11   : > { %v198_v3 = vld [vmem:[%s617_s24] sm:$0x3f]  ;;  %v199_v4 = vld [vmem:[%s617_s24 + $0x8] sm:$0x3f]  ;;  %v625_v5 = vld [vmem:[%s617_s24 + $0x10] sm:$0x3f] }
  0x12   : > { %v628_v6 = vld [vmem:[%s617_s24 + $0x18] sm:$0x3f]  ;;  %v219_v7 = vmul.f32 %v533_v0, %v198_v3  ;;  %v220_v8 = vmul.f32 %v533_v0, %v199_v4  ;;  %v221_v9 = vmul.f32 %v533_v0, %v625_v5  ;;  %v229_v10 = vmul.f32 %v534_v1, %v198_v3  ;;  %v640_v24 = vld [vmem:[%s617_s24 + $0x20] sm:$0x3f]  ;;  %v203_v48 = vld [vmem:[%s617_s24 + $0x28] sm:$0x3f] }
  0x13   : > { %v222_v11 = vmul.f32 %v533_v0, %v628_v6  ;;  %v230_v12 = vmul.f32 %v534_v1, %v199_v4  ;;  %v231_v13 = vmul.f32 %v534_v1, %v625_v5  ;;  %v232_v14 = vmul.f32 %v534_v1, %v628_v6 }
  0x14   : > { %v237_v15 = vrot.slane %v229_v10, 1  ;;  %v255_v16 = vmul.f32 %v535_v2, %v198_v3  ;;  %v256_v17 = vmul.f32 %v535_v2, %v199_v4  ;;  %v257_v18 = vmul.f32 %v535_v2, %v625_v5 }
  0x15   : > { %v238_v20 = vrot.slane %v230_v12, 1  ;;  %v239_v21 = vrot.slane %v231_v13, 1  ;;  %v240_v22 = vrot.slane %v232_v14, 1  ;;  %v258_v23 = vmul.f32 %v535_v2, %v628_v6 }
  0x16   : > { %v245_v25 = vadd.f32 %v237_v15, %v219_v7  ;;  %v263_v26 = vrot.slane %v255_v16, 2  ;;  %v264_v27 = vrot.slane %v256_v17, 2  ;;  %v265_v28 = vrot.slane %v257_v18, 2 }
  0x17   : > { %v246_v31 = vadd.f32 %v238_v20, %v220_v8  ;;  %v247_v32 = vadd.f32 %v239_v21, %v221_v9  ;;  %v248_v33 = vadd.f32 %v240_v22, %v222_v11  ;;  %v266_v34 = vrot.slane %v258_v23, 2 }
  0x18   : > { %v271_v35 = vadd.f32 %v263_v26, %v245_v25  ;;  %v281_v36 = vmul.f32 %v536_v19, %v199_v4  ;;  %v282_v37 = vmul.f32 %v536_v19, %v625_v5  ;;  %v283_v38 = vmul.f32 %v536_v19, %v628_v6  ;;  %v542_v26 = vld [vmem:[%s691_s2] ss:$0 sm:$0xff] }
  0x19   : > { %v272_v39 = vadd.f32 %v264_v27, %v246_v31  ;;  %v273_v40 = vadd.f32 %v265_v28, %v247_v32  ;;  %v274_v41 = vadd.f32 %v266_v34, %v248_v33  ;;  %v284_v42 = vmul.f32 %v536_v19, %v640_v24 }
  0x1a   : > { %v285_v44 = vadd.f32 %v281_v36, %v271_v35  ;;  %v295_v45 = vmul.f32 %v537_v29, %v199_v4  ;;  %v298_v46 = vmul.f32 %v537_v29, %v640_v24  ;;  %v321_v47 = vmul.f32 %v538_v30, %v199_v4 }
  0x1b   : > { %v288_v50 = vadd.f32 %v284_v42, %v274_v41  ;;  %v324_v51 = vmul.f32 %v538_v30, %v640_v24  ;;  %v286_v53 = vadd.f32 %v282_v37, %v272_v39  ;;  %v287_v57 = vadd.f32 %v283_v38, %v273_v40 }
  0x1c   : > { %v303_v54 = vrot.slane %v295_v45, 1  ;;  %v306_v55 = vrot.slane %v298_v46, 1  ;;  %v329_v56 = vrot.slane %v321_v47, 2  ;;  %v347_v59 = vmul.f32 %v539_v43, %v625_v5 }
  0x1d   : > { %v332_v58 = vrot.slane %v324_v51, 2  ;;  %v348_v60 = vmul.f32 %v539_v43, %v628_v6  ;;  %v350_v63 = vmul.f32 %v539_v43, %v203_v48  ;;  %v361_v0 = vmul.f32 %v540_v49, %v625_v5 }
  0x1e   : > { %v311_v61 = vadd.f32 %v303_v54, %v285_v44  ;;  %v314_v62 = vadd.f32 %v306_v55, %v288_v50  ;;  %v364_v1 = vmul.f32 %v540_v49, %v203_v48  ;;  %v387_v2 = vmul.f32 %v541_v52, %v625_v5 }
  0x1f   : > { %v390_v3 = vmul.f32 %v541_v52, %v203_v48  ;;  %v296_v4 = vmul.f32 %v537_v29, %v625_v5  ;;  %v369_v9 = vrot.slane %v361_v0, 1  ;;  %v322_v10 = vmul.f32 %v538_v30, %v625_v5 }
  0x20   : > { %v337_v7 = vadd.f32 %v329_v56, %v311_v61  ;;  %v340_v8 = vadd.f32 %v332_v58, %v314_v62  ;;  %v372_v11 = vrot.slane %v364_v1, 1  ;;  %v395_v12 = vrot.slane %v387_v2, 2 }
  0x21   : > { %v398_v13 = vrot.slane %v390_v3, 2  ;;  %v304_v14 = vrot.slane %v296_v4, 1  ;;  %v330_v17 = vrot.slane %v322_v10, 2  ;;  %v362_v18 = vmul.f32 %v540_v49, %v628_v6 }
  0x22   : > { %v351_v15 = vadd.f32 %v347_v59, %v337_v7  ;;  %v354_v16 = vadd.f32 %v350_v63, %v340_v8  ;;  %v388_v20 = vmul.f32 %v541_v52, %v628_v6  ;;  %v297_v21 = vmul.f32 %v537_v29, %v628_v6 }
  0x23   : > { %v312_v19 = vadd.f32 %v304_v14, %v286_v53  ;;  %v323_v22 = vmul.f32 %v538_v30, %v628_v6  ;;  %v363_v23 = vmul.f32 %v540_v49, %v640_v24  ;;  %v370_v28 = vrot.slane %v362_v18, 1  ;;  %v543_v6 = vld [vmem:[%s692_s3] ss:$0 sm:$0xff] }
  0x24   : > { %v377_v25 = vadd.f32 %v369_v9, %v351_v15  ;;  %v380_v5 = vadd.f32 %v372_v11, %v354_v16  ;;  %v305_v31 = vrot.slane %v297_v21, 1  ;;  %v349_v33 = vmul.f32 %v539_v43, %v640_v24 }
  0x25   : > { %v338_v27 = vadd.f32 %v330_v17, %v312_v19  ;;  %v331_v32 = vrot.slane %v323_v22, 2  ;;  %v396_v30 = vrot.slane %v388_v20, 2  ;;  %v389_v37 = vmul.f32 %v541_v52, %v640_v24 }
  0x26   : > { %v403_v34 = vadd.f32 %v395_v12, %v377_v25  ;;  %v406_v35 = vadd.f32 %v398_v13, %v380_v5  ;;  %v313_v36 = vadd.f32 %v305_v31, %v287_v57  ;;  %v371_v42 = vrot.slane %v363_v23, 1 }
  0x27   : > { %v352_v29 = vadd.f32 %v348_v60, %v338_v27  ;;  %v397_v47 = vrot.slane %v389_v37, 2 }
  0x28   : > { %v414_v38 = vmul.f32 %v542_v26, %v403_v34  ;;  %v417_v39 = vmul.f32 %v542_v26, %v406_v35  ;;  %v339_v41 = vadd.f32 %v331_v32, %v313_v36 }
  0x29   : > { %v378_v40 = vadd.f32 %v370_v28, %v352_v29 }
  0x2a   : > { %v425_v44 = vadd.f32 %v543_v6, %v414_v38  ;;  %v428_v45 = vadd.f32 %v543_v6, %v417_v39  ;;  %v353_v43 = vadd.f32 %v349_v33, %v339_v41 }
  0x2b   : > { %v404_v46 = vadd.f32 %v396_v30, %v378_v40 }
  0x2c   : > { %v433_v48 = vmul.f32 0.044715, %v425_v44  ;;  %v436_v49 = vmul.f32 0.044715, %v428_v45  ;;  %v379_v51 = vadd.f32 %v371_v42, %v353_v43  ;;  %v429_v11 = vmul.f32 0.5, %v425_v44 }
  0x2d   : > { %v415_v50 = vmul.f32 %v542_v26, %v404_v46  ;;  %v432_v13 = vmul.f32 0.5, %v428_v45 }
  0x2e   : > { %v437_v53 = vmul.f32 %v433_v48, %v425_v44  ;;  %v440_v54 = vmul.f32 %v436_v49, %v428_v45  ;;  %v405_v56 = vadd.f32 %v397_v47, %v379_v51 }
  0x2f   : > { %v426_v55 = vadd.f32 %v543_v6, %v415_v50 }
  0x30   : > { %v441_v57 = vmul.f32 %v437_v53, %v425_v44  ;;  %v444_v24 = vmul.f32 %v440_v54, %v428_v45  ;;  %v416_v58 = vmul.f32 %v542_v26, %v405_v56 }
  0x31   : > { %v434_v52 = vmul.f32 0.044715, %v426_v55  ;;  %v430_v18 = vmul.f32 0.5, %v426_v55 }
  0x32   : > { %v445_v59 = vadd.f32 %v441_v57, %v425_v44  ;;  %v448_v60 = vadd.f32 %v444_v24, %v428_v45  ;;  %v427_v62 = vadd.f32 %v543_v6, %v416_v58 }
  0x33   : > { %v438_v61 = vmul.f32 %v434_v52, %v426_v55 }
  0x34   : > { %v449_v63 = vmul.f32 0.7978846, %v445_v59  ;;  %v452_v0 = vmul.f32 0.7978846, %v448_v60  ;;  %v435_v2 = vmul.f32 0.044715, %v427_v62 }
  0x35   : > { %v442_v1 = vmul.f32 %v438_v61, %v426_v55  ;;  %v431_v23 = vmul.f32 0.5, %v427_v62 }
  0x36   : > { %556 = vtanh.f32 %v449_v63  ;;  %v439_v4 = vmul.f32 %v435_v2, %v427_v62 }
  0x37   : > { %v446_v3 = vadd.f32 %v442_v1, %v426_v55  ;;  %558 = vtanh.f32 %v452_v0 }
  0x38   : > { %v443_v8 = vmul.f32 %v439_v4, %v427_v62 }
  0x39   : > { %v450_v7 = vmul.f32 0.7978846, %v446_v3 }
  0x3a   : > { %v447_v9 = vadd.f32 %v443_v8, %v427_v62 }
  0x3b   : > { %560 = vtanh.f32 %v450_v7 }
  0x3c   : > { %v451_v10 = vmul.f32 0.7978846, %v447_v9 }
  0x3e   : > { %562 = vtanh.f32 %v451_v10 }
  0x40   : > { %v557_v12 = vpop.eup %556 }
  0x41   : > { %v559_v14 = vpop.eup %558  ;;  %v457_v15 = vadd.f32 1.0, %v557_v12 }
  0x42   : > { %v460_v16 = vadd.f32 1.0, %v559_v14 }
  0x43   : > { %v461_v17 = vmul.f32 %v457_v15, %v429_v11 }
  0x44   : > { %v464_v19 = vmul.f32 %v460_v16, %v432_v13 }
  0x45   : > { %v561_v20 = vpop.eup %560  ;;  %466 = vst.msk [vmem:[%s197_s22] sm:$0xf] %vm465_vm0, %v461_v17 }
  0x46   : > { %v458_v21 = vadd.f32 1.0, %v561_v20  ;;  %469 = vst.msk [vmem:[%s197_s22 + $0xc] sm:$0xf] %vm465_vm0, %v464_v19 }
  0x48   : > { %v462_v22 = vmul.f32 %v458_v21, %v430_v18  ;;  %v563_v25 = vpop.eup %562 }
  0x49   : > { %v459_v5 = vadd.f32 1.0, %v563_v25 }
  0x4a   : > { %467 = vst.msk [vmem:[%s197_s22 + $0x4] sm:$0xf] %vm465_vm0, %v462_v22 }
  0x4b   : > { %v463_v26 = vmul.f32 %v459_v5, %v431_v23 }
  0x4d   : > { %468 = vst.msk [vmem:[%s197_s22 + $0x8] sm:$0xf] %vm465_vm0, %v463_v26 }
  0x4e PF: > { %s14_s15 = sadd.s32 1, %s570_s15  }
  0x4f   : > { %p11_p4 = scmp.ge.s32.totalorder %s14_s15, 4  }
  0x51   :  { %13 = sbr.rel (!%p11_p4) target bundleno = 1 (0x1), region = 66 }

// kernel: coatnet_forward.42
= control target key start
LH: loop header
LB: loop body
LE: loop exit
PB: predicated region body
PF: predicated region fallthrough
CT: control target
= control target key end

     0   :  { %v131_v0 = vmov 0.0   ;;  %vm132_vm0 = vmmov 0   ;;  %vm32_vm1 = vcmask 523264   ;;  %vm101_vm2 = vcmask 25600   ;;  %s194_s1 = inlined_call_operand.vmem [shape: f32[64,4], index: 1, kind: input, shape index: {}]   ;;  %s195_s0 = inlined_call_operand.vmem [shape: f32[2,64], index: 0, kind: input, shape index: {}]   ;;  %s196_s2 = inlined_call_operand.vmem [shape: f32[1,4], index: 2, kind: input, shape index: {}]   ;;  %s197_s3 = inlined_call_operand.vmem [shape: f32[1,4], index: 3, kind: input, shape index: {}]   ;;  %s198_s4 = inlined_call_operand.vmem [shape: f32[2,4], index: 4, kind: output, shape index: {}]  }
   0x1   :  { %115 = vmatprep.subr.bf16.mxu0 %v131_v0  ;;  %v20_v1 = vld [vmem:[%s194_s1] sm:$0xff]  ;;  %v21_v2 = vld [vmem:[%s194_s1 + $0x8] sm:$0xff]  ;;  %v22_v3 = vld [vmem:[%s194_s1 + $0x10] sm:$0xff]  ;;  %123 = vmatprep.mubr.msk.bf16.mxu0 %vm132_vm0, %v131_v0 }
   0x2   :  { %v28_v4 = vpack.c.bf16 %v21_v2, %v20_v1  ;;  %v23_v5 = vld [vmem:[%s194_s1 + $0x18] sm:$0xff]  ;;  %v24_v7 = vld [vmem:[%s194_s1 + $0x20] sm:$0xff]  ;;  %v25_v8 = vld [vmem:[%s194_s1 + $0x28] sm:$0xff] }
   0x3   :  { %v29_v6 = vpack.c.bf16 %v23_v5, %v22_v3  ;;  %v30_v9 = vpack.c.bf16 %v25_v8, %v24_v7  ;;  %v26_v10 = vld [vmem:[%s194_s1 + $0x30] sm:$0xff]  ;;  %v27_v11 = vld [vmem:[%s194_s1 + $0x38] sm:$0xff]  ;;  %v18_v13 = vld [vmem:[%s195_s0] sm:$0x3] }
   0x4   :  { %116 = vmatpush3.bf16.msra.mxu0 %v28_v4  ;;  %v31_v12 = vpack.c.bf16 %v27_v11, %v26_v10  ;;  %v19_v14 = vpack.c.bf16 %v18_v13, %v18_v13  ;;  %v108_v15 = vld [vmem:[%s196_s2] ss:$0 sm:$0xff] }
   0x5   :  { %117 = vmatprep.subr.bf16.mxu0 %v131_v0  ;;  %v109_v17 = vld [vmem:[%s197_s3] ss:$0 sm:$0xff] }
   0x8   :  { %118 = vmatpush3.bf16.msra.mxu0 %v29_v6 }
   0x9   :  { %119 = vmatprep.subr.bf16.mxu0 %v131_v0 }
   0xc   :  { %120 = vmatpush3.bf16.msra.mxu0 %v30_v9 }
   0xd   :  { %121 = vmatprep.subr.bf16.mxu0 %v131_v0 }
  0x10   :  { %122 = vmatpush3.bf16.msra.mxu0 %v31_v12 }
  0x13   :  { %124 = vmatmul.mubr.msk.bf16.vlgmr.msra.gmra.mrb[0].mxu0 %vm32_vm1, %v19_v14 }
  0xe6   :  { %v70_v16 = vpop.f32.mrb[0].mxu0 }
  0xe7   :  { %v83_v18 = vmul.f32 %v108_v15, %v70_v16  ;;  %v125_v19 = vpop.f32.mrb[1].mxu0 }
  0xe8   :  { %v73_v20 = vpop.f32.mrb[2].mxu0 }
  0xe9   :  { %v91_v21 = vadd.f32 %v109_v17, %v83_v18  ;;  %v126_v22 = vpop.f32.mrb[3].mxu0 }
  0xeb   :  { %v93_v23 = vmul.f32 0.044715, %v91_v21  ;;  %v92_v29 = vmul.f32 0.5, %v91_v21 }
  0xed   :  { %v94_v24 = vmul.f32 %v93_v23, %v91_v21 }
  0xef   :  { %v95_v25 = vmul.f32 %v94_v24, %v91_v21 }
  0xf1   :  { %v96_v26 = vadd.f32 %v95_v25, %v91_v21 }
  0xf3   :  { %v97_v27 = vmul.f32 0.7978846, %v96_v26 }
  0xf5   :  { %129 = vtanh.f32 %v97_v27 }
  0xff   :  { %v130_v28 = vpop.eup %129 }
 0x100   :  { %v99_v30 = vadd.f32 1.0, %v130_v28 }
 0x102   :  { %v100_v31 = vmul.f32 %v99_v30, %v92_v29 }
 0x104   :  { %102 = vst.msk [vmem:[%s198_s4] sm:$0x3] %vm101_vm2, %v100_v31 }

// kernel: coatnet_forward.43
= control target key start
LH: loop header
LB: loop body
LE: loop exit
PB: predicated region body
PF: predicated region fallthrough
CT: control target
= control target key end

     0   :  { %v115_v0 = vmov 0.0   ;;  %vm26_vm0 = vcmask 1041408   ;;  %vm116_vm1 = vmmov 0   ;;  %vm22_vm2 = vcmask 31744   ;;  %s157_s1 = inlined_call_operand.vmem [shape: f32[4,64], index: 1, kind: input, shape index: {}]   ;;  %s158_s0 = inlined_call_operand.vmem [shape: f32[2,4], index: 0, kind: input, shape index: {}]   ;;  %s159_s2 = inlined_call_operand.vmem [shape: f32[1,64], index: 2, kind: input, shape index: {}]   ;;  %s160_s3 = inlined_call_operand.vmem [shape: f32[1,64], index: 3, kind: input, shape index: {}]   ;;  %s161_s4 = inlined_call_operand.vmem [shape: f32[2,64], index: 4, kind: output, shape index: {}]  }
   0x1   :  { %103 = vmatprep.subr.bf16.mxu0 %v115_v0  ;;  %v20_v1 = vld [vmem:[%s157_s1] sm:$0xf]  ;;  %105 = vmatprep.mubr.msk.bf16.mxu0 %vm116_vm1, %v115_v0  ;;  %vm92_vm3 = vcmask 517120  }
   0x2   :  { %v18_v2 = vld [vmem:[%s158_s0] sm:$0x3]  ;;  %v21_v3 = vpack.c.bf16 %v20_v1, %v20_v1 }
   0x3   :  { %v19_v5 = vpack.c.bf16 %v18_v2, %v18_v2  ;;  %v99_v6 = vld [vmem:[%s159_s2] ss:$0 sm:$0xff] }
   0x4   :  { %v28_v4 = vsel %vm26_vm0, %v21_v3, 0  ;;  %v100_v8 = vld [vmem:[%s160_s3] ss:$0 sm:$0xff] }
   0x5   :  { %104 = vmatpush3.bf16.msra.mxu0 %v28_v4 }
   0x8   :  { %106 = vmatmul.mubr.msk.bf16.vlgmr.msra.gmra.mrb[0].mxu0 %vm22_vm2, %v19_v5 }
  0xdb   :  { %v64_v7 = vpop.f32.mrb[0].mxu0 }
  0xdc   :  { %v77_v9 = vmul.f32 %v99_v6, %v64_v7  ;;  %v107_v10 = vpop.f32.mrb[1].mxu0 }
  0xdd   :  { %v67_v11 = vpop.f32.mrb[2].mxu0 }
  0xde   :  { %v85_v12 = vadd.f32 %v100_v8, %v77_v9  ;;  %v108_v13 = vpop.f32.mrb[3].mxu0 }
  0xe0   :  { %v86_v14 = vsub.f32 0.0, %v85_v12 }
  0xe2   :  { %v87_v15 = vmul.f32 1.442695, %v86_v14 }
  0xe4   :  { %111 = vpow2.f32 %v87_v15 }
  0xee   :  { %v112_v16 = vpop.eup %111 }
  0xef   :  { %v89_v17 = vadd.f32 1.0, %v112_v16 }
  0xf1   :  { %113 = vrcp.f32 %v89_v17 }
  0xfb   :  { %v114_v18 = vpop.eup %113 }
  0xfc   :  { %93 = vst.msk [vmem:[%s161_s4] sm:$0x3] %vm92_vm3, %v114_v18 }

// kernel: coatnet_forward.45
= control target key start
LH: loop header
LB: loop body
LE: loop exit
PB: predicated region body
PF: predicated region fallthrough
CT: control target
= control target key end

     0   :  { %s674_s21 = smov 0   ;;  %s676_s22 = smov 0   ;;  %s748_s0 = inlined_call_operand.vmem [shape: f32[2,16,64], index: 0, kind: input, shape index: {}]   ;;  %s749_s1 = inlined_call_operand.vmem [shape: f32[2,1,64], index: 1, kind: input, shape index: {}]   ;;  %s750_s2 = inlined_call_operand.vmem [shape: f32[64,16], index: 2, kind: input, shape index: {}]   ;;  %s751_s3 = inlined_call_operand.vmem [shape: f32[1,16], index: 3, kind: input, shape index: {}]   ;;  %s752_s4 = inlined_call_operand.vmem [shape: f32[1,16], index: 4, kind: input, shape index: {}]   ;;  %s753_s5 = inlined_call_operand.vmem [shape: f32[2,16,16], index: 5, kind: input, shape index: {}]   ;;  %s754_s6 = inlined_call_operand.vmem [shape: f32[2,16,16], index: 6, kind: output, shape index: {}]  }
   0x1   :  { %s678_s23 = smov 0  }
   0x2 LB: > { %s28_s24 = sadd.s32 1, %s631_s22  ;;  %p554_p0 = scmp.ge.s32.totalorder %s635_s23, 1  ;;  %s635_s23 = sphi %s678_s23, %s16_s23   ;;  %s631_s22 = sphi %s676_s22, %s756_s22   ;;  %s627_s21 = sphi %s674_s21, %s755_s21  }
   0x3   : > { %p30_p1 = scmp.ge.s32.totalorder %s28_s24, 2  ;;  %p258_p2 = scmp.lt.s32.totalorder %s635_s23, 3 }
   0x5   : > { %s758_s24 = smov (%p30_p1, %s28_s24), 0  ;;  %p259_p3 = pnand %p554_p0, %p258_p2 }
   0x6   : > { %v354_v0 = vld [vmem:[%s750_s2] sm:$0xff] (!%p259_p3)  ;;  %v355_v1 = vld [vmem:[%s750_s2 + $0x8] sm:$0xff] (!%p259_p3)  ;;  %v356_v2 = vld [vmem:[%s750_s2 + $0x10] sm:$0xff] (!%p259_p3)  ;;  %p309_p4 = scmp.lt.s32.totalorder (!%p259_p3), %s627_s21, 1  ;;  %v637_v3 = vmov (!%p259_p3), 0.0   ;;  %vm638_vm0 = vmmov (!%p259_p3), 0  }
   0x7   : > { %262 = sbr.rel (%p259_p3) target bundleno = 245 (0xf5), region = 44  ;;  %575 = vmatprep.subr.bf16.mxu0 (!%p259_p3), %v637_v3  ;;  %v362_v4 = vpack.c.bf16 (!%p259_p3), %v355_v1, %v354_v0  ;;  %v357_v5 = vld [vmem:[%s750_s2 + $0x18] sm:$0xff] (!%p259_p3)  ;;  %583 = vmatprep.mubr.msk.bf16.mxu0 (!%p259_p3), %vm638_vm0, %v637_v3  ;;  %v358_v7 = vld [vmem:[%s750_s2 + $0x20] sm:$0xff] (!%p259_p3)  ;;  %v359_v8 = vld [vmem:[%s750_s2 + $0x28] sm:$0xff] (!%p259_p3)  ;;  %vm366_vm1 = vcmask (!%p259_p3), 523264   ;;  %vm433_vm2 = vcmask (!%p259_p3), 130048  }
   0x8   : > { %v363_v6 = vpack.c.bf16 (!%p259_p3), %v357_v5, %v356_v2  ;;  %v364_v9 = vpack.c.bf16 (!%p259_p3), %v359_v8, %v358_v7  ;;  %v360_v13 = vld [vmem:[%s750_s2 + $0x30] sm:$0xff] (!%p259_p3)  ;;  %v361_v14 = vld [vmem:[%s750_s2 + $0x38] sm:$0xff] (!%p259_p3)  ;;  %v563_v19 = vld [vmem:[%s751_s3] ss:$0 sm:$0xff] (!%p259_p3) }
   0x9   : > { %576 = vmatpush3.bf16.msra.mxu0 (!%p259_p3), %v362_v4  ;;  %v365_v17 = vpack.c.bf16 (!%p259_p3), %v361_v14, %v360_v13  ;;  %v564_v21 = vld [vmem:[%s752_s4] ss:$0 sm:$0xff] (!%p259_p3) }
   0xa   : > { %577 = vmatprep.subr.bf16.mxu0 (!%p259_p3), %v637_v3 }
   0xd   : > { %578 = vmatpush3.bf16.msra.mxu0 (!%p259_p3), %v363_v6 }
   0xe   : > { %s760_s21 = smov (!%p309_p4, %s627_s21), 1  ;;  %579 = vmatprep.subr.bf16.mxu0 %v637_v3 }
   0xf   : > { %s710_s13 = sshll.u32 %s760_s21, 4  ;;  %s320_s16 = scalar_lea.vmem %s749_s1, %s760_s21 }
  0x10   : > { %s316_s19 = scalar_lea.vmem %s748_s0, %s710_s13  ;;  %v561_v12 = vld [vmem:[%s320_s16] ss:$0 sm:$0xff]  ;;  %s329_s7 = scalar_lea.vmem %s753_s5, %s710_s13 }
  0x11   : > { %v342_v10 = vld [vmem:[%s316_s19] sm:$0xff]  ;;  %v343_v11 = vld [vmem:[%s316_s19 + $0x8] sm:$0xff]  ;;  %580 = vmatpush3.bf16.msra.mxu0 %v364_v9  ;;  %s339_s12 = scalar_lea.vmem %s754_s6, %s710_s13 }
  0x12   : > { %v351_v15 = vmul.f32 %v561_v12, %v342_v10  ;;  %v352_v16 = vmul.f32 %v561_v12, %v343_v11  ;;  %581 = vmatprep.subr.bf16.mxu0 %v637_v3  ;;  %v429_v24 = vld [vmem:[%s329_s7] sm:$0xff]  ;;  %v430_v29 = vld [vmem:[%s329_s7 + $0x8] sm:$0xff] }
  0x14   : > { %v353_v18 = vpack.c.bf16 %v352_v16, %v351_v15 }
  0x15   : > { %582 = vmatpush3.bf16.msra.mxu0 %v365_v17 }
  0x18   : > { %584 = vmatmul.mubr.msk.bf16.vlgmr.msra.gmra.mrb[0].mxu0 %vm366_vm1, %v353_v18 }
  0xeb   : > { %v404_v20 = vpop.f32.mrb[0].mxu0 }
  0xec   : > { %v418_v22 = vmul.f32 %v563_v19, %v404_v20  ;;  %v585_v23 = vpop.f32.mrb[1].mxu0 }
  0xed   : > { %v407_v25 = vpop.f32.mrb[2].mxu0 }
  0xee   : > { %v427_v26 = vadd.f32 %v564_v21, %v418_v22  ;;  %v419_v27 = vmul.f32 %v563_v19, %v407_v25  ;;  %v586_v28 = vpop.f32.mrb[3].mxu0 }
  0xf0   : > { %v431_v30 = vadd.f32 %v429_v24, %v427_v26  ;;  %v428_v31 = vadd.f32 %v564_v21, %v419_v27 }
  0xf2   : > { %434 = vst.msk [vmem:[%s339_s12] sm:$0xff] %vm433_vm2, %v431_v30  ;;  %v432_v32 = vadd.f32 %v430_v29, %v428_v31 }
  0xf4   : > { %435 = vst.msk [vmem:[%s339_s12 + $0x8] sm:$0xff] %vm433_vm2, %v432_v32 }
  0xf5 PF: > { %s16_s23 = sadd.s32 1, %s635_s23   ;;  %s755_s21 = smov %s631_s22 }
  0xf6   : > { %p13_p5 = scmp.ge.s32.totalorder %s16_s23, 4   ;;  %s756_s22 = smov %s758_s24 }
  0xf8   :  { %15 = sbr.rel (!%p13_p5) target bundleno = 2 (0x2), region = 80 }

// kernel: coatnet_forward.48
= control target key start
LH: loop header
LB: loop body
LE: loop exit
PB: predicated region body
PF: predicated region fallthrough
CT: control target
= control target key end

     0   :  { %s513_s15 = smov 0   ;;  %s515_s16 = smov 0   ;;  %s558_s0 = inlined_call_operand.vmem [shape: f32[8,16], index: 0, kind: input, shape index: {}]   ;;  %s559_s1 = inlined_call_operand.vmem [shape: f32[1,16], index: 1, kind: input, shape index: {}]   ;;  %s560_s2 = inlined_call_operand.vmem [shape: f32[1,16], index: 2, kind: input, shape index: {}]   ;;  %s561_s3 = inlined_call_operand.vmem [shape: f32[24,16,32], index: 3, kind: input, shape index: {}]   ;;  %s562_s4 = inlined_call_operand.vmem [shape: f32[24,8,32], index: 4, kind: output, shape index: {}]  }
   0x1   :  { %s517_s17 = smov 0  }
   0x2 LB: > { %s23_s18 = sadd.s32 1, %s480_s16  ;;  %p415_p0 = scmp.ge.s32.totalorder %s484_s17, 1  ;;  %s484_s17 = sphi %s517_s17, %s14_s17   ;;  %s480_s16 = sphi %s515_s16, %s564_s16   ;;  %s476_s15 = sphi %s513_s15, %s563_s15  }
   0x3   : > { %p24_p1 = scmp.ge.s32.totalorder %s23_s18, 24  ;;  %p185_p2 = scmp.lt.s32.totalorder %s484_s17, 25 }
   0x5   : > { %s566_s18 = smov (%p24_p1, %s23_s18), 0  ;;  %p186_p3 = pnand %p415_p0, %p185_p2 }
   0x6   : > { %p221_p4 = scmp.lt.s32.totalorder (!%p186_p3), %s476_s15, 23  ;;  %p419_p5 = scmp.ne.s32.totalorder (!%p186_p3), %s476_s15, 0 }
   0x7   : > { %189 = sbr.rel (%p186_p3) target bundleno = 554 (0x22a), region = 36 }
   0xe   : > { %s222_s19 = scalar_select %p221_p4, %s476_s15, 23 }
   0xf   : > { %237 = sbr.rel (%p419_p5) target bundleno = 332 (0x14c), region = 40  ;;  %v238_v0 = vld [vmem:[%s558_s0] sm:$0xff] (!%p419_p5)  ;;  %vm239_vm0 = vcmask (!%p419_p5), 130048   ;;  %vm271_vm1 = vcmask (!%p419_p5), 125952  }
  0x10   : > { %s425_s20 = sshll.u32 %s222_s19, 4  ;;  %s418_s21 = sshll.u32 %s222_s19, 3  ;;  %v240_v1 = vsel (!%p419_p5), %vm239_vm0, %v238_v0, 0.0  ;;  %v420_v11 = vld [vmem:[%s559_s1] ss:$0 sm:$0xff] (!%p419_p5) }
  0x11   : > { %s225_s24 = scalar_lea.vmem %s561_s3, %s425_s20  ;;  %s537_s27 = scalar_lea.vmem %s562_s4, %s418_s21  ;;  %241 = vadd.xlane.f32.xlu0 (!%p419_p5), %v240_v1  ;;  %v421_v13 = vld [vmem:[%s560_s2] ss:$0 sm:$0xff] (!%p419_p5) }
  0x9e   : > { %v242_v2 = vpop.xlane.xlu0 %241 }
  0x9f   : > { %v244_v3 = vmul.f32 0.0625, %v242_v2 }
  0xa1   : > { %v245_v4 = vsub.f32 %v238_v0, %v244_v3 }
  0xa3   : > { %v246_v5 = vmul.f32 %v245_v4, %v245_v4 }
  0xa5   : > { %v247_v6 = vsel %vm239_vm0, %v246_v5, 0.0 }
  0xa6   : > { %248 = vadd.xlane.f32.xlu0 %v247_v6 }
 0x133   : > { %v249_v7 = vpop.xlane.xlu0 %248 }
 0x134   : > { %v250_v8 = vmul.f32 0.0625, %v249_v7 }
 0x136   : > { %v251_v9 = vadd.f32 1e-05, %v250_v8 }
 0x138   : > { %460 = vrsqrt.f32 %v251_v9 }
 0x142   : > { %v461_v10 = vpop.eup %460 }
 0x143   : > { %v253_v12 = vmul.f32 %v461_v10, %v245_v4 }
 0x145   : > { %v261_v14 = vmul.f32 %v420_v11, %v253_v12 }
 0x147   : > { %v269_v15 = vadd.f32 %v421_v13, %v261_v14 }
 0x149   : > { %v270_v16 = vpack.c.bf16 %v269_v15, %v269_v15 }
 0x14b   : > { %272 = vst.msk [vmem:[#allocation2] sm:$0xf] %vm271_vm1, %v270_v16 }
 0x14c PF: > { %v274_v17 = vld [vmem:[%s225_s24] sm:$0xff]  ;;  %v275_v18 = vld [vmem:[%s225_s24 + $0x8] sm:$0xff]  ;;  %v486_v19 = vmov 0.0   ;;  %vm487_vm2 = vmmov 0   ;;  %vm277_vm3 = vcmask 130048   ;;  %vm321_vm4 = vcmask 261120  }
 0x14d   : > { %428 = vmatprep.subr.bf16.mxu0 %v486_v19  ;;  %v276_v20 = vpack.c.bf16 %v275_v18, %v274_v17  ;;  %430 = vmatprep.mubr.msk.bf16.mxu0 %vm487_vm2, %v486_v19 }
 0x14f   : > { %429 = vmatpush3.bf16.msra.mxu0 %v276_v20 }
 0x152   : > { %v273_v21 = vld [vmem:[#allocation2] sm:$0xf] }
 0x153   : > { %431 = vmatmul.mubr.msk.bf16.vlgmr.msra.gmra.mrb[0].mxu0 %vm277_vm3, %v273_v21 }
 0x226   : > { %v315_v22 = vpop.f32.mrb[0].mxu0 }
 0x227   : > { %322 = vst.msk [vmem:[%s537_s27] sm:$0xff] %vm321_vm4, %v315_v22  ;;  %v432_v23 = vpop.f32.mrb[1].mxu0 }
 0x228   : > { %v318_v24 = vpop.f32.mrb[2].mxu0 }
 0x229   : > { %v433_v25 = vpop.f32.mrb[3].mxu0 }
 0x22a PF: > { %s14_s17 = sadd.s32 1, %s484_s17   ;;  %s563_s15 = smov %s480_s16 }
 0x22b   : > { %p11_p6 = scmp.ge.s32.totalorder %s14_s17, 26   ;;  %s564_s16 = smov %s566_s18 }
 0x22d   :  { %13 = sbr.rel (!%p11_p6) target bundleno = 2 (0x2), region = 73 }

// kernel: coatnet_forward.46
= control target key start
LH: loop header
LB: loop body
LE: loop exit
PB: predicated region body
PF: predicated region fallthrough
CT: control target
= control target key end

     0   :  { %vm33_vm0 = vcmask 130048   ;;  %s87_s0 = inlined_call_operand.vmem [shape: f32[9,8,16], index: 0, kind: input, shape index: {}]   ;;  %s88_s1 = inlined_call_operand.vmem [shape: f32[8,16], index: 1, kind: output, shape index: {}]  }
   0x1   :  { %v8_v0 = vld [vmem:[%s87_s0] sm:$0xff]  ;;  %v39_v1 = vld [vmem:[%s87_s0 + $0x8] sm:$0xff]  ;;  %v40_v2 = vld [vmem:[%s87_s0 + $0x10] sm:$0xff] }
   0x2   :  { %v11_v3 = vmax.f32 %v8_v0, %v39_v1  ;;  %v41_v4 = vld [vmem:[%s87_s0 + $0x18] sm:$0xff]  ;;  %v42_v6 = vld [vmem:[%s87_s0 + $0x20] sm:$0xff]  ;;  %v43_v8 = vld [vmem:[%s87_s0 + $0x28] sm:$0xff] }
   0x3   :  { %v44_v10 = vld [vmem:[%s87_s0 + $0x30] sm:$0xff]  ;;  %v45_v12 = vld [vmem:[%s87_s0 + $0x38] sm:$0xff]  ;;  %v46_v14 = vld [vmem:[%s87_s0 + $0x40] sm:$0xff] }
   0x4   :  { %v14_v5 = vmax.f32 %v11_v3, %v40_v2 }
   0x6   :  { %v17_v7 = vmax.f32 %v14_v5, %v41_v4 }
   0x8   :  { %v20_v9 = vmax.f32 %v17_v7, %v42_v6 }
   0xa   :  { %v23_v11 = vmax.f32 %v20_v9, %v43_v8 }
   0xc   :  { %v26_v13 = vmax.f32 %v23_v11, %v44_v10 }
   0xe   :  { %v29_v15 = vmax.f32 %v26_v13, %v45_v12 }
  0x10   :  { %v32_v16 = vmax.f32 %v29_v15, %v46_v14 }
  0x12   :  { %34 = vst.msk [vmem:[%s88_s1] sm:$0xff] %vm33_vm0, %v32_v16 }

// kernel: coatnet_forward.47
= control target key start
LH: loop header
LB: loop body
LE: loop exit
PB: predicated region body
PF: predicated region fallthrough
CT: control target
= control target key end

     0   :  { %v102_v0 = vmov 0.0   ;;  %vm103_vm0 = vmmov 0   ;;  %vm23_vm1 = vcmask 130048   ;;  %vm83_vm2 = vcmask 261120   ;;  %s147_s1 = inlined_call_operand.vmem [shape: f32[16,32], index: 1, kind: input, shape index: {}]   ;;  %s148_s0 = inlined_call_operand.vmem [shape: f32[8,16], index: 0, kind: input, shape index: {}]   ;;  %s149_s2 = inlined_call_operand.vmem [shape: f32[1,32], index: 2, kind: input, shape index: {}]   ;;  %s150_s3 = inlined_call_operand.vmem [shape: f32[1,32], index: 3, kind: input, shape index: {}]   ;;  %s151_s4 = inlined_call_operand.vmem [shape: f32[8,32], index: 4, kind: output, shape index: {}]  }
   0x1   :  { %94 = vmatprep.subr.bf16.mxu0 %v102_v0  ;;  %v20_v1 = vld [vmem:[%s147_s1] sm:$0xff]  ;;  %v21_v2 = vld [vmem:[%s147_s1 + $0x8] sm:$0xff]  ;;  %96 = vmatprep.mubr.msk.bf16.mxu0 %vm103_vm0, %v102_v0 }
   0x2   :  { %v18_v3 = vld [vmem:[%s148_s0] sm:$0xff]  ;;  %v22_v4 = vpack.c.bf16 %v21_v2, %v20_v1 }
   0x3   :  { %v19_v5 = vpack.c.bf16 %v18_v3, %v18_v3  ;;  %v90_v6 = vld [vmem:[%s149_s2] ss:$0 sm:$0xff] }
   0x4   :  { %95 = vmatpush3.bf16.msra.mxu0 %v22_v4  ;;  %v91_v8 = vld [vmem:[%s150_s3] ss:$0 sm:$0xff] }
   0x7   :  { %97 = vmatmul.mubr.msk.bf16.vlgmr.msra.gmra.mrb[0].mxu0 %vm23_vm1, %v19_v5 }
  0xda   :  { %v61_v7 = vpop.f32.mrb[0].mxu0 }
  0xdb   :  { %v74_v9 = vmul.f32 %v90_v6, %v61_v7  ;;  %v98_v10 = vpop.f32.mrb[1].mxu0 }
  0xdc   :  { %v64_v11 = vpop.f32.mrb[2].mxu0 }
  0xdd   :  { %v82_v12 = vadd.f32 %v91_v8, %v74_v9  ;;  %v99_v13 = vpop.f32.mrb[3].mxu0 }
  0xdf   :  { %84 = vst.msk [vmem:[%s151_s4] sm:$0xff] %vm83_vm2, %v82_v12 }

// kernel: coatnet_forward.49
= control target key start
LH: loop header
LB: loop body
LE: loop exit
PB: predicated region body
PF: predicated region fallthrough
CT: control target
= control target key end

     0   :  { %s723_s15 = smov 0   ;;  %s725_s16 = smov 0   ;;  %s801_s0 = inlined_call_operand.vmem [shape: f32[24,2,4,32], index: 0, kind: input, shape index: {}, may-alias: {0,1,2}]   ;;  %s802_s1 = inlined_call_operand.vmem [shape: f32[24,2,4,32], index: 1, kind: input, shape index: {}, may-alias: {0,1,2}]   ;;  %s803_s2 = inlined_call_operand.vmem [shape: f32[24,2,4,32], index: 2, kind: input, shape index: {}, may-alias: {0,1,2}]   ;;  %s804_s3 = inlined_call_operand.vmem [shape: f32[8,4,4], index: 3, kind: input, shape index: {}]   ;;  %s805_s4 = inlined_call_operand.vmem [shape: f32[8,2,4,32], index: 4, kind: output, shape index: {}]  }
   0x1   :  { %s727_s17 = smov 0   ;;  %s729_s18 = smov 0  }
   0x2   :  { %s731_s19 = smov 0  }
   0x3 LB: > { %s23_s20 = sadd.s32 1, %s686_s17  ;;  %s26_s21 = sadd.s32 1, %s690_s18  ;;  %s694_s19 = sphi %s731_s19, %s14_s19   ;;  %s690_s18 = sphi %s729_s18, %s809_s18   ;;  %s686_s17 = sphi %s727_s17, %s808_s17   ;;  %s682_s16 = sphi %s725_s16, %s807_s16   ;;  %s678_s15 = sphi %s723_s15, %s806_s15  }
   0x4   : > { %p24_p0 = scmp.ge.s32.totalorder %s23_s20, 8  ;;  %p580_p1 = scmp.ge.s32.totalorder %s694_s19, 1 }
   0x5   : > { %p228_p2 = scmp.lt.s32.totalorder %s694_s19, 17 }
   0x6   : > { %s811_s20 = smov (%p24_p0, %s23_s20), 0  ;;  %s813_s21 = smov (!%p24_p0, %s26_s21), %s690_s18 }
   0x7   : > { %p229_p3 = pnand %p580_p1, %p228_p2  ;;  %p28_p4 = scmp.ge.s32.totalorder %s813_s21, 2 }
   0x8   : > { %p284_p5 = scmp.lt.s32.totalorder (!%p229_p3), %s682_s16, 1  ;;  %s290_s22 = sadd.s32 (!%p229_p3), 8, %s678_s15  ;;  %v696_v0 = vmov (!%p229_p3), 0.0   ;;  %vm697_vm0 = vmmov (!%p229_p3), 0   ;;  %vm330_vm1 = vcmask (!%p229_p3), 261120   ;;  %vm379_vm2 = vcmask (!%p229_p3), 27648  }
   0x9   : > { %s815_s21 = smov (%p28_p4, %s813_s21), 0  ;;  %232 = sbr.rel (%p229_p3) target bundleno = 780 (0x30c), region = 36 }
   0xa   : > { %598 = vmatprep.subr.bf16.mxu0 (!%p229_p3), %v696_v0  ;;  %p291_p6 = scmp.lt.s32.totalorder (!%p229_p3), %s290_s22, 23  ;;  %600 = vmatprep.mubr.msk.bf16.mxu0 (!%p229_p3), %vm697_vm0, %v696_v0  ;;  %p282_p7 = scmp.lt.s32.totalorder (!%p229_p3), %s678_s15, 23  ;;  %vm396_vm3 = vcmask (!%p229_p3), 1041408   ;;  %vm392_vm4 = vcmask (!%p229_p3), 31744   ;;  %vm440_vm5 = vcmask (!%p229_p3), 257024  }
   0xb   : > { %604 = vmatprep.subr.bf16.mxu1 (!%p229_p3), %v696_v0  ;;  %606 = vmatprep.mubr.msk.bf16.mxu1 (!%p229_p3), %vm697_vm0, %v696_v0  ;;  %p310_p8 = scmp.lt.s32.totalorder (!%p229_p3), %s678_s15, 7 }
  0x10   : > { %s817_s16 = smov (!%p284_p5, %s682_s16), 1  ;;  %s819_s22 = smov (!%p291_p6, %s290_s22), 23 }
  0x11   : > { %s283_s23 = scalar_select %p282_p7, %s678_s15, 23 }
  0x12   : > { %s583_s24 = sshll.u32 %s819_s22, 1  ;;  %s300_s22 = sadd.s32 16, %s678_s15 }
  0x13   : > { %s296_s25 = sadd.s32 %s583_s24, %s817_s16  ;;  %s581_s26 = sshll.u32 %s283_s23, 1 }
  0x14   : > { %s584_s27 = sshll.u32 %s296_s25, 2  ;;  %s287_s28 = sadd.s32 %s581_s26, %s817_s16 }
  0x15   : > { %s298_s5 = scalar_lea.vmem %s802_s1, %s584_s27  ;;  %s582_s6 = sshll.u32 %s287_s28, 2 }
  0x16   : > { %v325_v1 = vld [vmem:[%s298_s5] sm:$0xf]  ;;  %s289_s9 = scalar_lea.vmem %s801_s0, %s582_s6  ;;  %p301_p9 = scmp.lt.s32.totalorder %s300_s22, 23 }
  0x17   : > { %v326_v2 = vpack.c.bf16 %v325_v1, %v325_v1  ;;  %v323_v4 = vld [vmem:[%s289_s9] sm:$0xf]  ;;  %s770_s10 = scalar_select %p310_p8, %s678_s15, 7 }
  0x18   : > { %v324_v5 = vpack.c.bf16 %v323_v4, %v323_v4  ;;  %s821_s22 = smov (!%p301_p9, %s300_s22), 23 }
  0x19   : > { %v335_v3 = vsel %vm330_vm1, %v326_v2, 0  ;;  %s587_s11 = sshll.u32 %s770_s10, 2  ;;  %s585_s23 = sshll.u32 %s821_s22, 1 }
  0x1a   : > { %599 = vmatpush3.bf16.xpose.msra.mxu0 %v335_v3  ;;  %s313_s14 = scalar_lea.vmem %s804_s3, %s587_s11  ;;  %s306_s24 = sadd.s32 %s585_s23, %s817_s16 }
  0x1b   : > { %v329_v7 = vld [vmem:[%s313_s14] sm:$0xf]  ;;  %s586_s25 = sshll.u32 %s306_s24, 2  ;;  %s588_s15 = sshll.u32 %s770_s10, 1 }
  0x1c   : > { %s308_s28 = scalar_lea.vmem %s803_s2, %s586_s25  ;;  %s319_s29 = sadd.s32 %s588_s15, %s817_s16 }
  0x1d   : > { %v327_v19 = vld [vmem:[%s308_s28] sm:$0xf]  ;;  %s589_s30 = sshll.u32 %s319_s29, 2 }
  0x1e   : > { %v328_v20 = vpack.c.bf16 %v327_v19, %v327_v19  ;;  %s321_s7 = scalar_lea.vmem %s805_s4, %s589_s30 }
  0x20   : > { %v398_v21 = vsel %vm396_vm3, %v328_v20, 0 }
  0x21   : > { %601 = vmatmul.mubr.msk.bf16.vlgmr.msra.gmra.mrb[0].mxu0 %vm330_vm1, %v324_v5  ;;  %605 = vmatpush3.bf16.msra.mxu1 %v398_v21 }
  0xf4   : > { %v371_v6 = vpop.f32.mrb[0].mxu0 }
  0xf5   : > { %v377_v8 = vmul.f32 0.17677669, %v371_v6  ;;  %v602_v9 = vpop.f32.mrb[1].mxu0 }
  0xf6   : > { %v374_v10 = vpop.f32.mrb[2].mxu0 }
  0xf7   : > { %v603_v11 = vpop.f32.mrb[3].mxu0  ;;  %v378_v12 = vadd.f32 %v377_v8, %v329_v7 }
  0xf9   : > { %v380_v13 = vsel %vm379_vm2, %v378_v12, -inf }
  0xfa   : > { %381 = vmax.xlane.f32.xlu0 %v380_v13 }
 0x187   : > { %v382_v14 = vpop.xlane.xlu0 %381 }
 0x188   : > { %v383_v15 = vsub.f32 %v378_v12, %v382_v14 }
 0x18a   : > { %v384_v16 = vmul.f32 1.442695, %v383_v15 }
 0x18c   : > { %652 = vpow2.f32 %v384_v16 }
 0x196   : > { %v653_v17 = vpop.eup %652 }
 0x197   : > { %v386_v18 = vsel %vm379_vm2, %v653_v17, 0.0 }
 0x198   : > { %387 = vadd.xlane.f32.xlu0 %v386_v18 }
 0x225   : > { %v388_v22 = vpop.xlane.xlu0 %387 }
 0x226   : > { %654 = vrcp.f32 %v388_v22 }
 0x230   : > { %v655_v23 = vpop.eup %654 }
 0x231   : > { %v390_v24 = vmul.f32 %v655_v23, %v653_v17 }
 0x233   : > { %v391_v25 = vpack.c.bf16 %v390_v24, %v390_v24 }
 0x235   : > { %607 = vmatmul.mubr.msk.bf16.vlgmr.msra.gmra.mrb[0].mxu1 %vm392_vm4, %v391_v25 }
 0x308   : > { %v434_v26 = vpop.f32.mrb[0].mxu1 }
 0x309   : > { %441 = vst.msk [vmem:[%s321_s7] sm:$0xf] %vm440_vm5, %v434_v26  ;;  %v608_v27 = vpop.f32.mrb[1].mxu1 }
 0x30a   : > { %v437_v28 = vpop.f32.mrb[2].mxu1 }
 0x30b   : > { %v609_v29 = vpop.f32.mrb[3].mxu1 }
 0x30c PF: > { %s14_s19 = sadd.s32 1, %s694_s19   ;;  %s806_s15 = smov %s686_s17 }
 0x30d   : > { %p11_p10 = scmp.ge.s32.totalorder %s14_s19, 18   ;;  %s807_s16 = smov %s690_s18 }
 0x30e   : > { %s808_s17 = smov %s811_s20  ;;  %s809_s18 = smov %s815_s21 }
 0x30f   :  { %13 = sbr.rel (!%p11_p10) target bundleno = 3 (0x3), region = 75 }

// kernel: coatnet_forward.50
= control target key start
LH: loop header
LB: loop body
LE: loop exit
PB: predicated region body
PF: predicated region fallthrough
CT: control target
= control target key end

     0   :  { %s526_s15 = smov 0   ;;  %s528_s16 = smov 0   ;;  %s577_s0 = inlined_call_operand.vmem [shape: f32[8,8,32], index: 0, kind: input, shape index: {}]   ;;  %s578_s1 = inlined_call_operand.vmem [shape: f32[8,32,32], index: 1, kind: input, shape index: {}]   ;;  %s579_s2 = inlined_call_operand.vmem [shape: f32[1,32], index: 2, kind: input, shape index: {}]   ;;  %s580_s3 = inlined_call_operand.vmem [shape: f32[8,32], index: 3, kind: input, shape index: {}]   ;;  %s581_s4 = inlined_call_operand.vmem [shape: f32[8,32], index: 4, kind: output, shape index: {}]  }
   0x1   :  { %s530_s17 = smov 0  }
   0x2 LB: > { %s23_s18 = sadd.s32 1, %s492_s16  ;;  %p424_p0 = scmp.ge.s32.totalorder %s496_s17, 1  ;;  %s496_s17 = sphi %s530_s17, %s14_s17   ;;  %s492_s16 = sphi %s528_s16, %s583_s16   ;;  %s488_s15 = sphi %s526_s15, %s582_s15  }
   0x3   : > { %p24_p1 = scmp.ge.s32.totalorder %s23_s18, 8  ;;  %p197_p2 = scmp.lt.s32.totalorder %s496_s17, 9 }
   0x5   : > { %s585_s18 = smov (%p24_p1, %s23_s18), 0  ;;  %p198_p3 = pnand %p424_p0, %p197_p2 }
   0x6   : > { %p233_p4 = scmp.lt.s32.totalorder (!%p198_p3), %s488_s15, 7  ;;  %p428_p5 = scmp.ne.s32.totalorder (!%p198_p3), %s488_s15, 0 }
   0x7   : > { %201 = sbr.rel (%p198_p3) target bundleno = 259 (0x103), region = 36 }
   0xe   : > { %s234_s19 = scalar_select %p233_p4, %s488_s15, 7 }
   0xf   : > { %257 = sbr.rel (%p428_p5) target bundleno = 22 (0x16), region = 40  ;;  %vm258_vm0 = vcmask (!%p428_p5), 261120   ;;  %v498_v0 = vmov (!%p428_p5), 0.0  }
  0x10   : > { %s425_s20 = sshll.u32 %s234_s19, 3  ;;  %s435_s21 = sshll.u32 %s234_s19, 5  ;;  %259 = vst.msk [vmem:[#allocation2] sm:$0xff] (!%p428_p5), %vm258_vm0, %v498_v0 }
  0x11   : > { %s239_s24 = scalar_lea.vmem %s577_s0, %s425_s20  ;;  %s244_s27 = scalar_lea.vmem %s578_s1, %s435_s21 }
  0x16 PF: > { %v263_v1 = vld [vmem:[%s244_s27] sm:$0xff]  ;;  %v264_v2 = vld [vmem:[%s244_s27 + $0x8] sm:$0xff]  ;;  %v265_v3 = vld [vmem:[%s244_s27 + $0x10] sm:$0xff]  ;;  %v499_v4 = vmov 0.0   ;;  %vm500_vm1 = vmmov 0   ;;  %vm269_vm2 = vcmask 261120  }
  0x17   : > { %439 = vmatprep.subr.bf16.mxu0 %v499_v4  ;;  %v267_v5 = vpack.c.bf16 %v264_v2, %v263_v1  ;;  %v266_v6 = vld [vmem:[%s244_s27 + $0x18] sm:$0xff]  ;;  %443 = vmatprep.mubr.msk.bf16.mxu0 %vm500_vm1, %v499_v4  ;;  %v261_v8 = vld [vmem:[%s239_s24] sm:$0xff]  ;;  %p430_p6 = scmp.ne.s32.totalorder %s488_s15, 7 }
  0x18   : > { %v268_v7 = vpack.c.bf16 %v266_v6, %v265_v3  ;;  %v262_v9 = vpack.c.bf16 %v261_v8, %v261_v8  ;;  %v260_v10 = vld [vmem:[#allocation2] sm:$0xff] }
  0x19   : > { %440 = vmatpush3.bf16.msra.mxu0 %v267_v5  ;;  %v431_v17 = vld [vmem:[%s579_s2] ss:$0 sm:$0xff] (!%p430_p6) }
  0x1a   : > { %441 = vmatprep.subr.bf16.mxu0 %v499_v4  ;;  %v328_v18 = vld [vmem:[%s580_s3] sm:$0xff] (!%p430_p6) }
  0x1d   : > { %442 = vmatpush3.bf16.msra.mxu0 %v268_v7 }
  0x20   : > { %444 = vmatmul.mubr.msk.bf16.vlgmr.msra.gmra.mrb[0].mxu0 %vm269_vm2, %v262_v9 }
  0xf0   : > { %318 = sbr.rel (%p430_p6) target bundleno = 259 (0x103), region = 44 }
  0xf3   : > { %v307_v11 = vpop.f32.mrb[0].mxu0 }
  0xf4   : > { %v313_v12 = vadd.f32 %v307_v11, %v260_v10  ;;  %v445_v13 = vpop.f32.mrb[1].mxu0 }
  0xf5   : > { %v310_v14 = vpop.f32.mrb[2].mxu0 }
  0xf6   : > { %314 = vst.msk [vmem:[#allocation2] sm:$0xff] %vm269_vm2, %v313_v12  ;;  %v446_v15 = vpop.f32.mrb[3].mxu0 }
  0xfd   : > { %v319_v16 = vld [vmem:[#allocation2] sm:$0xff] }
  0xfe   : > { %v327_v19 = vadd.f32 %v431_v17, %v319_v16 }
 0x100   : > { %v329_v20 = vadd.f32 %v328_v18, %v327_v19 }
 0x102   : > { %330 = vst.msk [vmem:[%s581_s4] sm:$0xff] %vm269_vm2, %v329_v20 }
 0x103 PF: > { %s14_s17 = sadd.s32 1, %s496_s17   ;;  %s582_s15 = smov %s492_s16 }
 0x104   : > { %p11_p7 = scmp.ge.s32.totalorder %s14_s17, 10   ;;  %s583_s16 = smov %s585_s18 }
 0x106   :  { %13 = sbr.rel (!%p11_p7) target bundleno = 2 (0x2), region = 80 }

// kernel: coatnet_forward.51
= control target key start
LH: loop header
LB: loop body
LE: loop exit
PB: predicated region body
PF: predicated region fallthrough
CT: control target
= control target key end

     0   :  { %vm22_vm0 = vcmask 261120   ;;  %v146_v10 = vmov 0.0   ;;  %vm147_vm1 = vmmov 0   ;;  %vm119_vm2 = vcmask 523264   ;;  %s208_s0 = inlined_call_operand.vmem [shape: f32[8,32], index: 0, kind: input, shape index: {}]   ;;  %s209_s3 = inlined_call_operand.vmem [shape: f32[32,64], index: 3, kind: input, shape index: {}]   ;;  %s210_s1 = inlined_call_operand.vmem [shape: f32[1,32], index: 1, kind: input, shape index: {}]   ;;  %s211_s2 = inlined_call_operand.vmem [shape: f32[1,32], index: 2, kind: input, shape index: {}]   ;;  %s212_s4 = inlined_call_operand.vmem [shape: f32[1,64], index: 4, kind: input, shape index: {}]   ;;  %s213_s5 = inlined_call_operand.vmem [shape: f32[8,64], index: 5, kind: output, shape index: {}]  }
   0x1   :  { %v21_v0 = vld [vmem:[%s208_s0] sm:$0xff]  ;;  %v55_v8 = vld [vmem:[%s209_s3 + $0x8] sm:$0xff]  ;;  %132 = vmatprep.subr.bf16.mxu0 %v146_v10  ;;  %v56_v11 = vld [vmem:[%s209_s3 + $0x10] sm:$0xff]  ;;  %136 = vmatprep.mubr.msk.bf16.mxu0 %vm147_vm1, %v146_v10 }
   0x2   :  { %v23_v1 = vsel %vm22_vm0, %v21_v0, 0.0  ;;  %v54_v7 = vld [vmem:[%s209_s3] sm:$0xff]  ;;  %v57_v12 = vld [vmem:[%s209_s3 + $0x18] sm:$0xff] }
   0x3   :  { %24 = vadd.xlane.f32.xlu0 %v23_v1  ;;  %v58_v9 = vpack.c.bf16 %v55_v8, %v54_v7  ;;  %v59_v13 = vpack.c.bf16 %v57_v12, %v56_v11  ;;  %v125_v18 = vld [vmem:[%s210_s1] ss:$0 sm:$0xff] }
   0x4   :  { %v126_v20 = vld [vmem:[%s211_s2] ss:$0 sm:$0xff] }
   0x5   :  { %133 = vmatpush3.bf16.msra.mxu0 %v58_v9  ;;  %v127_v24 = vld [vmem:[%s212_s4] ss:$0 sm:$0xff] }
   0x6   :  { %134 = vmatprep.subr.bf16.mxu0 %v146_v10 }
   0x9   :  { %135 = vmatpush3.bf16.msra.mxu0 %v59_v13 }
  0x90   :  { %v25_v2 = vpop.xlane.xlu0 %24 }
  0x91   :  { %v27_v3 = vmul.f32 0.03125, %v25_v2 }
  0x93   :  { %v28_v4 = vsub.f32 %v21_v0, %v27_v3 }
  0x95   :  { %v29_v5 = vmul.f32 %v28_v4, %v28_v4 }
  0x97   :  { %v30_v6 = vsel %vm22_vm0, %v29_v5, 0.0 }
  0x98   :  { %31 = vadd.xlane.f32.xlu0 %v30_v6 }
 0x125   :  { %v32_v14 = vpop.xlane.xlu0 %31 }
 0x126   :  { %v33_v15 = vmul.f32 0.03125, %v32_v14 }
 0x128   :  { %v34_v16 = vadd.f32 1e-05, %v33_v15 }
 0x12a   :  { %142 = vrsqrt.f32 %v34_v16 }
 0x134   :  { %v143_v17 = vpop.eup %142 }
 0x135   :  { %v36_v19 = vmul.f32 %v143_v17, %v28_v4 }
 0x137   :  { %v44_v21 = vmul.f32 %v125_v18, %v36_v19 }
 0x139   :  { %v52_v22 = vadd.f32 %v126_v20, %v44_v21 }
 0x13b   :  { %v53_v23 = vpack.c.bf16 %v52_v22, %v52_v22 }
 0x13d   :  { %137 = vmatmul.mubr.msk.bf16.vlgmr.msra.gmra.mrb[0].mxu0 %vm22_vm0, %v53_v23 }
 0x210   :  { %v104_v25 = vpop.f32.mrb[0].mxu0 }
 0x211   :  { %v105_v26 = vadd.f32 %v127_v24, %v104_v25  ;;  %v138_v27 = vpop.f32.mrb[1].mxu0 }
 0x212   :  { %v107_v28 = vpop.f32.mrb[2].mxu0 }
 0x213   :  { %v111_v29 = vmul.f32 0.044715, %v105_v26  ;;  %v139_v30 = vpop.f32.mrb[3].mxu0  ;;  %v110_v36 = vmul.f32 0.5, %v105_v26 }
 0x215   :  { %v112_v31 = vmul.f32 %v111_v29, %v105_v26 }
 0x217   :  { %v113_v32 = vmul.f32 %v112_v31, %v105_v26 }
 0x219   :  { %v114_v33 = vadd.f32 %v113_v32, %v105_v26 }
 0x21b   :  { %v115_v34 = vmul.f32 0.7978846, %v114_v33 }
 0x21d   :  { %144 = vtanh.f32 %v115_v34 }
 0x227   :  { %v145_v35 = vpop.eup %144 }
 0x228   :  { %v117_v37 = vadd.f32 1.0, %v145_v35 }
 0x22a   :  { %v118_v38 = vmul.f32 %v117_v37, %v110_v36 }
 0x22c   :  { %120 = vst.msk [vmem:[%s213_s5] sm:$0xff] %vm119_vm2, %v118_v38 }

// kernel: coatnet_forward.52
= control target key start
LH: loop header
LB: loop body
LE: loop exit
PB: predicated region body
PF: predicated region fallthrough
CT: control target
= control target key end

     0   :  { %v112_v0 = vmov 0.0   ;;  %vm113_vm0 = vmmov 0   ;;  %vm39_vm1 = vcmask 523264   ;;  %vm85_vm2 = vcmask 261120   ;;  %s175_s1 = inlined_call_operand.vmem [shape: f32[64,32], index: 1, kind: input, shape index: {}]   ;;  %s176_s0 = inlined_call_operand.vmem [shape: f32[8,64], index: 0, kind: input, shape index: {}]   ;;  %s177_s2 = inlined_call_operand.vmem [shape: f32[1,32], index: 2, kind: input, shape index: {}]   ;;  %s178_s3 = inlined_call_operand.vmem [shape: f32[8,32], index: 3, kind: input, shape index: {}]   ;;  %s179_s4 = inlined_call_operand.vmem [shape: f32[8,32], index: 4, kind: output, shape index: {}]  }
   0x1   :  { %98 = vmatprep.subr.bf16.mxu0 %v112_v0  ;;  %v20_v1 = vld [vmem:[%s175_s1] sm:$0xff]  ;;  %v21_v2 = vld [vmem:[%s175_s1 + $0x8] sm:$0xff]  ;;  %v22_v3 = vld [vmem:[%s175_s1 + $0x10] sm:$0xff]  ;;  %106 = vmatprep.mubr.msk.bf16.mxu0 %vm113_vm0, %v112_v0 }
   0x2   :  { %v28_v4 = vpack.c.bf16 %v21_v2, %v20_v1  ;;  %v23_v5 = vld [vmem:[%s175_s1 + $0x18] sm:$0xff]  ;;  %v24_v7 = vld [vmem:[%s175_s1 + $0x20] sm:$0xff]  ;;  %v25_v8 = vld [vmem:[%s175_s1 + $0x28] sm:$0xff] }
   0x3   :  { %v29_v6 = vpack.c.bf16 %v23_v5, %v22_v3  ;;  %v30_v9 = vpack.c.bf16 %v25_v8, %v24_v7  ;;  %v26_v10 = vld [vmem:[%s175_s1 + $0x30] sm:$0xff]  ;;  %v27_v11 = vld [vmem:[%s175_s1 + $0x38] sm:$0xff]  ;;  %v18_v13 = vld [vmem:[%s176_s0] sm:$0xff] }
   0x4   :  { %99 = vmatpush3.bf16.msra.mxu0 %v28_v4  ;;  %v31_v12 = vpack.c.bf16 %v27_v11, %v26_v10  ;;  %v19_v14 = vpack.c.bf16 %v18_v13, %v18_v13  ;;  %v91_v15 = vld [vmem:[%s177_s2] ss:$0 sm:$0xff] }
   0x5   :  { %100 = vmatprep.subr.bf16.mxu0 %v112_v0  ;;  %v83_v17 = vld [vmem:[%s178_s3] sm:$0xff] }
   0x8   :  { %101 = vmatpush3.bf16.msra.mxu0 %v29_v6 }
   0x9   :  { %102 = vmatprep.subr.bf16.mxu0 %v112_v0 }
   0xc   :  { %103 = vmatpush3.bf16.msra.mxu0 %v30_v9 }
   0xd   :  { %104 = vmatprep.subr.bf16.mxu0 %v112_v0 }
  0x10   :  { %105 = vmatpush3.bf16.msra.mxu0 %v31_v12 }
  0x13   :  { %107 = vmatmul.mubr.msk.bf16.vlgmr.msra.gmra.mrb[0].mxu0 %vm39_vm1, %v19_v14 }
  0xe6   :  { %v77_v16 = vpop.f32.mrb[0].mxu0 }
  0xe7   :  { %v78_v18 = vadd.f32 %v91_v15, %v77_v16  ;;  %v108_v19 = vpop.f32.mrb[1].mxu0 }
  0xe8   :  { %v80_v20 = vpop.f32.mrb[2].mxu0 }
  0xe9   :  { %v84_v21 = vadd.f32 %v83_v17, %v78_v18  ;;  %v109_v22 = vpop.f32.mrb[3].mxu0 }
  0xeb   :  { %86 = vst.msk [vmem:[%s179_s4] sm:$0xff] %vm85_vm2, %v84_v21 }

// kernel: coatnet_forward.53
= control target key start
LH: loop header
LB: loop body
LE: loop exit
PB: predicated region body
PF: predicated region fallthrough
CT: control target
= control target key end

     0   :  { %vm33_vm0 = vcmask 254976   ;;  %s87_s0 = inlined_call_operand.vmem [shape: f32[9,2,32], index: 0, kind: input, shape index: {}]   ;;  %s88_s1 = inlined_call_operand.vmem [shape: f32[2,32], index: 1, kind: output, shape index: {}]  }
   0x1   :  { %v8_v0 = vld [vmem:[%s87_s0] sm:$0x3]  ;;  %v39_v1 = vld [vmem:[%s87_s0 + $0x2] sm:$0x3]  ;;  %v40_v2 = vld [vmem:[%s87_s0 + $0x4] sm:$0x3] }
   0x2   :  { %v11_v3 = vmax.f32 %v8_v0, %v39_v1  ;;  %v41_v4 = vld [vmem:[%s87_s0 + $0x6] sm:$0x3]  ;;  %v42_v6 = vld [vmem:[%s87_s0 + $0x8] sm:$0x3]  ;;  %v43_v8 = vld [vmem:[%s87_s0 + $0xa] sm:$0x3] }
   0x3   :  { %v44_v10 = vld [vmem:[%s87_s0 + $0xc] sm:$0x3]  ;;  %v45_v12 = vld [vmem:[%s87_s0 + $0xe] sm:$0x3]  ;;  %v46_v14 = vld [vmem:[%s87_s0 + $0x10] sm:$0x3] }
   0x4   :  { %v14_v5 = vmax.f32 %v11_v3, %v40_v2 }
   0x6   :  { %v17_v7 = vmax.f32 %v14_v5, %v41_v4 }
   0x8   :  { %v20_v9 = vmax.f32 %v17_v7, %v42_v6 }
   0xa   :  { %v23_v11 = vmax.f32 %v20_v9, %v43_v8 }
   0xc   :  { %v26_v13 = vmax.f32 %v23_v11, %v44_v10 }
   0xe   :  { %v29_v15 = vmax.f32 %v26_v13, %v45_v12 }
  0x10   :  { %v32_v16 = vmax.f32 %v29_v15, %v46_v14 }
  0x12   :  { %34 = vst.msk [vmem:[%s88_s1] sm:$0x3] %vm33_vm0, %v32_v16 }

// kernel: coatnet_forward.55
= control target key start
LH: loop header
LB: loop body
LE: loop exit
PB: predicated region body
PF: predicated region fallthrough
CT: control target
= control target key end

     0   :  { %s519_s15 = smov 0   ;;  %s521_s16 = smov 0   ;;  %s570_s0 = inlined_call_operand.vmem [shape: f32[2,32], index: 0, kind: input, shape index: {}]   ;;  %s571_s1 = inlined_call_operand.vmem [shape: f32[1,32], index: 1, kind: input, shape index: {}]   ;;  %s572_s2 = inlined_call_operand.vmem [shape: f32[1,32], index: 2, kind: input, shape index: {}]   ;;  %s573_s3 = inlined_call_operand.vmem [shape: f32[24,32,32], index: 3, kind: input, shape index: {}]   ;;  %s574_s4 = inlined_call_operand.vmem [shape: f32[24,2,32], index: 4, kind: output, shape index: {}]  }
   0x1   :  { %s523_s17 = smov 0  }
   0x2 LB: > { %s23_s18 = sadd.s32 1, %s486_s16  ;;  %p418_p0 = scmp.ge.s32.totalorder %s490_s17, 1  ;;  %s490_s17 = sphi %s523_s17, %s14_s17   ;;  %s486_s16 = sphi %s521_s16, %s576_s16   ;;  %s482_s15 = sphi %s519_s15, %s575_s15  }
   0x3   : > { %p24_p1 = scmp.ge.s32.totalorder %s23_s18, 24  ;;  %p185_p2 = scmp.lt.s32.totalorder %s490_s17, 25 }
   0x5   : > { %s578_s18 = smov (%p24_p1, %s23_s18), 0  ;;  %p186_p3 = pnand %p418_p0, %p185_p2 }
   0x6   : > { %p221_p4 = scmp.lt.s32.totalorder (!%p186_p3), %s482_s15, 23  ;;  %p422_p5 = scmp.ne.s32.totalorder (!%p186_p3), %s482_s15, 0 }
   0x7   : > { %189 = sbr.rel (%p186_p3) target bundleno = 557 (0x22d), region = 36 }
   0xe   : > { %s222_s19 = scalar_select %p221_p4, %s482_s15, 23 }
   0xf   : > { %237 = sbr.rel (%p422_p5) target bundleno = 332 (0x14c), region = 40  ;;  %v238_v0 = vld [vmem:[%s570_s0] sm:$0x3] (!%p422_p5)  ;;  %vm239_vm0 = vcmask (!%p422_p5), 254976   ;;  %vm271_vm1 = vcmask (!%p422_p5), 253952  }
  0x10   : > { %s428_s20 = sshll.u32 %s222_s19, 5  ;;  %s421_s21 = sshll.u32 %s222_s19, 1  ;;  %v240_v1 = vsel (!%p422_p5), %vm239_vm0, %v238_v0, 0.0  ;;  %v423_v11 = vld [vmem:[%s571_s1] ss:$0 sm:$0xff] (!%p422_p5) }
  0x11   : > { %s540_s24 = scalar_lea.vmem %s573_s3, %s428_s20  ;;  %s545_s27 = scalar_lea.vmem %s574_s4, %s421_s21  ;;  %241 = vadd.xlane.f32.xlu0 (!%p422_p5), %v240_v1  ;;  %v424_v13 = vld [vmem:[%s572_s2] ss:$0 sm:$0xff] (!%p422_p5) }
  0x9e   : > { %v242_v2 = vpop.xlane.xlu0 %241 }
  0x9f   : > { %v244_v3 = vmul.f32 0.03125, %v242_v2 }
  0xa1   : > { %v245_v4 = vsub.f32 %v238_v0, %v244_v3 }
  0xa3   : > { %v246_v5 = vmul.f32 %v245_v4, %v245_v4 }
  0xa5   : > { %v247_v6 = vsel %vm239_vm0, %v246_v5, 0.0 }
  0xa6   : > { %248 = vadd.xlane.f32.xlu0 %v247_v6 }
 0x133   : > { %v249_v7 = vpop.xlane.xlu0 %248 }
 0x134   : > { %v250_v8 = vmul.f32 0.03125, %v249_v7 }
 0x136   : > { %v251_v9 = vadd.f32 1e-05, %v250_v8 }
 0x138   : > { %466 = vrsqrt.f32 %v251_v9 }
 0x142   : > { %v467_v10 = vpop.eup %466 }
 0x143   : > { %v253_v12 = vmul.f32 %v467_v10, %v245_v4 }
 0x145   : > { %v261_v14 = vmul.f32 %v423_v11, %v253_v12 }
 0x147   : > { %v269_v15 = vadd.f32 %v424_v13, %v261_v14 }
 0x149   : > { %v270_v16 = vpack.c.bf16 %v269_v15, %v269_v15 }
 0x14b   : > { %272 = vst.msk [vmem:[#allocation2] sm:$0x1] %vm271_vm1, %v270_v16 }
 0x14c PF: > { %v274_v17 = vld [vmem:[%s540_s24] sm:$0xff]  ;;  %v275_v18 = vld [vmem:[%s540_s24 + $0x8] sm:$0xff]  ;;  %v276_v19 = vld [vmem:[%s540_s24 + $0x10] sm:$0xff]  ;;  %v492_v20 = vmov 0.0   ;;  %vm493_vm2 = vmmov 0   ;;  %vm280_vm3 = vcmask 261120  }
 0x14d   : > { %432 = vmatprep.subr.bf16.mxu0 %v492_v20  ;;  %v278_v21 = vpack.c.bf16 %v275_v18, %v274_v17  ;;  %v277_v22 = vld [vmem:[%s540_s24 + $0x18] sm:$0xff]  ;;  %436 = vmatprep.mubr.msk.bf16.mxu0 %vm493_vm2, %v492_v20  ;;  %vm324_vm4 = vcmask 254976  }
 0x14e   : > { %v279_v23 = vpack.c.bf16 %v277_v22, %v276_v19 }
 0x14f   : > { %433 = vmatpush3.bf16.msra.mxu0 %v278_v21 }
 0x150   : > { %434 = vmatprep.subr.bf16.mxu0 %v492_v20 }
 0x152   : > { %v273_v24 = vld [vmem:[#allocation2] sm:$0x1] }
 0x153   : > { %435 = vmatpush3.bf16.msra.mxu0 %v279_v23 }
 0x156   : > { %437 = vmatmul.mubr.msk.bf16.vlgmr.msra.gmra.mrb[0].mxu0 %vm280_vm3, %v273_v24 }
 0x229   : > { %v318_v25 = vpop.f32.mrb[0].mxu0 }
 0x22a   : > { %325 = vst.msk [vmem:[%s545_s27] sm:$0x3] %vm324_vm4, %v318_v25  ;;  %v438_v26 = vpop.f32.mrb[1].mxu0 }
 0x22b   : > { %v321_v27 = vpop.f32.mrb[2].mxu0 }
 0x22c   : > { %v439_v28 = vpop.f32.mrb[3].mxu0 }
 0x22d PF: > { %s14_s17 = sadd.s32 1, %s490_s17   ;;  %s575_s15 = smov %s486_s16 }
 0x22e   : > { %p11_p6 = scmp.ge.s32.totalorder %s14_s17, 26   ;;  %s576_s16 = smov %s578_s18 }
 0x230   :  { %13 = sbr.rel (!%p11_p6) target bundleno = 2 (0x2), region = 73 }

// kernel: coatnet_forward.57
= control target key start
LH: loop header
LB: loop body
LE: loop exit
PB: predicated region body
PF: predicated region fallthrough
CT: control target
= control target key end

     0   :  { %s527_s15 = smov 0   ;;  %s529_s16 = smov 0   ;;  %s575_s0 = inlined_call_operand.vmem [shape: f32[8,2,32], index: 0, kind: input, shape index: {}]   ;;  %s576_s1 = inlined_call_operand.vmem [shape: f32[8,32,64], index: 1, kind: input, shape index: {}]   ;;  %s577_s2 = inlined_call_operand.vmem [shape: f32[1,64], index: 2, kind: input, shape index: {}]   ;;  %s578_s3 = inlined_call_operand.vmem [shape: f32[2,64], index: 3, kind: input, shape index: {}]   ;;  %s579_s4 = inlined_call_operand.vmem [shape: f32[2,64], index: 4, kind: output, shape index: {}]  }
   0x1   :  { %s531_s17 = smov 0  }
   0x2 LB: > { %s23_s18 = sadd.s32 1, %s493_s16  ;;  %p425_p0 = scmp.ge.s32.totalorder %s497_s17, 1  ;;  %s497_s17 = sphi %s531_s17, %s14_s17   ;;  %s493_s16 = sphi %s529_s16, %s581_s16   ;;  %s489_s15 = sphi %s527_s15, %s580_s15  }
   0x3   : > { %p24_p1 = scmp.ge.s32.totalorder %s23_s18, 8  ;;  %p197_p2 = scmp.lt.s32.totalorder %s497_s17, 9 }
   0x5   : > { %s583_s18 = smov (%p24_p1, %s23_s18), 0  ;;  %p198_p3 = pnand %p425_p0, %p197_p2 }
   0x6   : > { %p233_p4 = scmp.lt.s32.totalorder (!%p198_p3), %s489_s15, 7  ;;  %p429_p5 = scmp.ne.s32.totalorder (!%p198_p3), %s489_s15, 0 }
   0x7   : > { %201 = sbr.rel (%p198_p3) target bundleno = 259 (0x103), region = 36 }
   0xe   : > { %s234_s19 = scalar_select %p233_p4, %s489_s15, 7 }
   0xf   : > { %257 = sbr.rel (%p429_p5) target bundleno = 22 (0x16), region = 40  ;;  %vm258_vm0 = vcmask (!%p429_p5), 517120   ;;  %v499_v0 = vmov (!%p429_p5), 0.0  }
  0x10   : > { %s426_s20 = sshll.u32 %s234_s19, 1  ;;  %s436_s21 = sshll.u32 %s234_s19, 5  ;;  %259 = vst.msk [vmem:[#allocation2] sm:$0x3] (!%p429_p5), %vm258_vm0, %v499_v0 }
  0x11   : > { %s239_s24 = scalar_lea.vmem %s575_s0, %s426_s20  ;;  %s244_s27 = scalar_lea.vmem %s576_s1, %s436_s21 }
  0x16 PF: > { %v263_v1 = vld [vmem:[%s244_s27] sm:$0xff]  ;;  %v264_v2 = vld [vmem:[%s244_s27 + $0x8] sm:$0xff]  ;;  %v265_v3 = vld [vmem:[%s244_s27 + $0x10] sm:$0xff]  ;;  %v500_v4 = vmov 0.0   ;;  %vm501_vm1 = vmmov 0   ;;  %vm269_vm2 = vcmask 261120  }
  0x17   : > { %440 = vmatprep.subr.bf16.mxu0 %v500_v4  ;;  %v267_v5 = vpack.c.bf16 %v264_v2, %v263_v1  ;;  %v266_v6 = vld [vmem:[%s244_s27 + $0x18] sm:$0xff]  ;;  %444 = vmatprep.mubr.msk.bf16.mxu0 %vm501_vm1, %v500_v4  ;;  %v261_v8 = vld [vmem:[%s239_s24] sm:$0x3]  ;;  %vm314_vm3 = vcmask 517120   ;;  %p431_p6 = scmp.ne.s32.totalorder %s489_s15, 7 }
  0x18   : > { %v268_v7 = vpack.c.bf16 %v266_v6, %v265_v3  ;;  %v262_v9 = vpack.c.bf16 %v261_v8, %v261_v8  ;;  %v260_v10 = vld [vmem:[#allocation2] sm:$0x3] }
  0x19   : > { %441 = vmatpush3.bf16.msra.mxu0 %v267_v5  ;;  %v432_v17 = vld [vmem:[%s577_s2] ss:$0 sm:$0xff] (!%p431_p6) }
  0x1a   : > { %442 = vmatprep.subr.bf16.mxu0 %v500_v4  ;;  %v329_v18 = vld [vmem:[%s578_s3] sm:$0x3] (!%p431_p6) }
  0x1d   : > { %443 = vmatpush3.bf16.msra.mxu0 %v268_v7 }
  0x20   : > { %445 = vmatmul.mubr.msk.bf16.vlgmr.msra.gmra.mrb[0].mxu0 %vm269_vm2, %v262_v9 }
  0xf0   : > { %319 = sbr.rel (%p431_p6) target bundleno = 259 (0x103), region = 44 }
  0xf3   : > { %v307_v11 = vpop.f32.mrb[0].mxu0 }
  0xf4   : > { %v313_v12 = vadd.f32 %v307_v11, %v260_v10  ;;  %v446_v13 = vpop.f32.mrb[1].mxu0 }
  0xf5   : > { %v310_v14 = vpop.f32.mrb[2].mxu0 }
  0xf6   : > { %315 = vst.msk [vmem:[#allocation2] sm:$0x3] %vm314_vm3, %v313_v12  ;;  %v447_v15 = vpop.f32.mrb[3].mxu0 }
  0xfd   : > { %v320_v16 = vld [vmem:[#allocation2] sm:$0x3] }
  0xfe   : > { %v328_v19 = vadd.f32 %v432_v17, %v320_v16 }
 0x100   : > { %v330_v20 = vadd.f32 %v329_v18, %v328_v19 }
 0x102   : > { %331 = vst.msk [vmem:[%s579_s4] sm:$0x3] %vm314_vm3, %v330_v20 }
 0x103 PF: > { %s14_s17 = sadd.s32 1, %s497_s17   ;;  %s580_s15 = smov %s493_s16 }
 0x104   : > { %p11_p7 = scmp.ge.s32.totalorder %s14_s17, 10   ;;  %s581_s16 = smov %s583_s18 }
 0x106   :  { %13 = sbr.rel (!%p11_p7) target bundleno = 2 (0x2), region = 80 }

// kernel: coatnet_forward.54
= control target key start
LH: loop header
LB: loop body
LE: loop exit
PB: predicated region body
PF: predicated region fallthrough
CT: control target
= control target key end

     0   :  { %v108_v0 = vmov 0.0   ;;  %vm109_vm0 = vmmov 0   ;;  %vm26_vm1 = vcmask 261120   ;;  %vm86_vm2 = vcmask 517120   ;;  %s159_s1 = inlined_call_operand.vmem [shape: f32[32,64], index: 1, kind: input, shape index: {}]   ;;  %s160_s0 = inlined_call_operand.vmem [shape: f32[2,32], index: 0, kind: input, shape index: {}]   ;;  %s161_s2 = inlined_call_operand.vmem [shape: f32[1,64], index: 2, kind: input, shape index: {}]   ;;  %s162_s3 = inlined_call_operand.vmem [shape: f32[1,64], index: 3, kind: input, shape index: {}]   ;;  %s163_s4 = inlined_call_operand.vmem [shape: f32[2,64], index: 4, kind: output, shape index: {}]  }
   0x1   :  { %98 = vmatprep.subr.bf16.mxu0 %v108_v0  ;;  %v20_v1 = vld [vmem:[%s159_s1] sm:$0xff]  ;;  %v21_v2 = vld [vmem:[%s159_s1 + $0x8] sm:$0xff]  ;;  %v22_v3 = vld [vmem:[%s159_s1 + $0x10] sm:$0xff]  ;;  %102 = vmatprep.mubr.msk.bf16.mxu0 %vm109_vm0, %v108_v0 }
   0x2   :  { %v24_v4 = vpack.c.bf16 %v21_v2, %v20_v1  ;;  %v23_v5 = vld [vmem:[%s159_s1 + $0x18] sm:$0xff]  ;;  %v18_v7 = vld [vmem:[%s160_s0] sm:$0x3] }
   0x3   :  { %v25_v6 = vpack.c.bf16 %v23_v5, %v22_v3  ;;  %v19_v8 = vpack.c.bf16 %v18_v7, %v18_v7  ;;  %v93_v9 = vld [vmem:[%s161_s2] ss:$0 sm:$0xff] }
   0x4   :  { %99 = vmatpush3.bf16.msra.mxu0 %v24_v4  ;;  %v94_v11 = vld [vmem:[%s162_s3] ss:$0 sm:$0xff] }
   0x5   :  { %100 = vmatprep.subr.bf16.mxu0 %v108_v0 }
   0x8   :  { %101 = vmatpush3.bf16.msra.mxu0 %v25_v6 }
   0xb   :  { %103 = vmatmul.mubr.msk.bf16.vlgmr.msra.gmra.mrb[0].mxu0 %vm26_vm1, %v19_v8 }
  0xde   :  { %v64_v10 = vpop.f32.mrb[0].mxu0 }
  0xdf   :  { %v77_v12 = vmul.f32 %v93_v9, %v64_v10  ;;  %v104_v13 = vpop.f32.mrb[1].mxu0 }
  0xe0   :  { %v67_v14 = vpop.f32.mrb[2].mxu0 }
  0xe1   :  { %v85_v15 = vadd.f32 %v94_v11, %v77_v12  ;;  %v105_v16 = vpop.f32.mrb[3].mxu0 }
  0xe3   :  { %87 = vst.msk [vmem:[%s163_s4] sm:$0x3] %vm86_vm2, %v85_v15 }

// kernel: coatnet_forward.56
= control target key start
LH: loop header
LB: loop body
LE: loop exit
PB: predicated region body
PF: predicated region fallthrough
CT: control target
= control target key end

     0   :  { %s634_s15 = smov 0   ;;  %s636_s16 = smov 0   ;;  %s710_s0 = inlined_call_operand.vmem [shape: f32[24,2,1,32], index: 0, kind: input, shape index: {}, may-alias: {0,1,2}]   ;;  %s711_s1 = inlined_call_operand.vmem [shape: f32[24,2,1,32], index: 1, kind: input, shape index: {}, may-alias: {0,1,2}]   ;;  %s712_s2 = inlined_call_operand.vmem [shape: f32[24,2,1,32], index: 2, kind: input, shape index: {}, may-alias: {0,1,2}]   ;;  %s713_s3 = inlined_call_operand.vmem [shape: f32[8,1,1], index: 3, kind: input, shape index: {}]   ;;  %s714_s4 = inlined_call_operand.vmem [shape: f32[8,2,1,32], index: 4, kind: output, shape index: {}]  }
   0x1   :  { %s638_s17 = smov 0   ;;  %s640_s18 = smov 0  }
   0x2   :  { %s642_s19 = smov 0  }
   0x3 LB: > { %s23_s20 = sadd.s32 1, %s596_s17  ;;  %s26_s21 = sadd.s32 1, %s600_s18  ;;  %s604_s19 = sphi %s642_s19, %s14_s19   ;;  %s600_s18 = sphi %s640_s18, %s718_s18   ;;  %s596_s17 = sphi %s638_s17, %s717_s17   ;;  %s592_s16 = sphi %s636_s16, %s716_s16   ;;  %s588_s15 = sphi %s634_s15, %s715_s15  }
   0x4   : > { %p24_p0 = scmp.ge.s32.totalorder %s23_s20, 8  ;;  %p503_p1 = scmp.ge.s32.totalorder %s604_s19, 1 }
   0x5   : > { %p224_p2 = scmp.lt.s32.totalorder %s604_s19, 17 }
   0x6   : > { %s720_s20 = smov (%p24_p0, %s23_s20), 0  ;;  %s722_s21 = smov (!%p24_p0, %s26_s21), %s600_s18 }
   0x7   : > { %p225_p3 = pnand %p503_p1, %p224_p2  ;;  %p28_p4 = scmp.ge.s32.totalorder %s722_s21, 2 }
   0x8   : > { %p273_p5 = scmp.lt.s32.totalorder (!%p225_p3), %s588_s15, 23  ;;  %p275_p6 = scmp.lt.s32.totalorder (!%p225_p3), %s592_s16, 1  ;;  %vm319_vm0 = vcmask (!%p225_p3), 253952   ;;  %v606_v8 = vmov (!%p225_p3), 0.0   ;;  %vm607_vm1 = vmmov (!%p225_p3), 0   ;;  %vm336_vm2 = vcmask (!%p225_p3), 1040384  }
   0x9   : > { %s724_s21 = smov (%p28_p4, %s722_s21), 0  ;;  %228 = sbr.rel (%p225_p3) target bundleno = 421 (0x1a5), region = 36 }
   0xa   : > { %s280_s22 = sadd.s32 (!%p225_p3), 8, %s588_s15  ;;  %s289_s8 = sadd.s32 (!%p225_p3), 16, %s588_s15  ;;  %513 = vmatprep.subr.bf16.mxu0 (!%p225_p3), %v606_v8  ;;  %515 = vmatprep.mubr.msk.bf16.mxu0 (!%p225_p3), %vm607_vm1, %v606_v8  ;;  %v608_v10 = vmov (!%p225_p3), 0   ;;  %vm332_vm3 = vcmask (!%p225_p3), 7168  }
   0xb   : > { %p281_p7 = scmp.lt.s32.totalorder (!%p225_p3), %s280_s22, 23  ;;  %p290_p8 = scmp.lt.s32.totalorder (!%p225_p3), %s289_s8, 23  ;;  %v338_v11 = vsel (!%p225_p3), %vm336_vm2, 65535, %v608_v10 }
   0xc   : > { %p298_p9 = scmp.lt.s32.totalorder (!%p225_p3), %s588_s15, 7 }
  0x10   : > { %s274_s23 = scalar_select %p273_p5, %s588_s15, 23 }
  0x11   : > { %s726_s16 = smov (!%p275_p6, %s592_s16), 1  ;;  %s728_s22 = smov (!%p281_p7, %s280_s22), 23 }
  0x12   : > { %s504_s24 = sshll.u32 %s274_s23, 1  ;;  %s505_s29 = sshll.u32 %s728_s22, 1 }
  0x13   : > { %s278_s25 = sadd.s32 %s504_s24, %s726_s16  ;;  %s286_s30 = sadd.s32 %s505_s29, %s726_s16 }
  0x14   : > { %s279_s28 = scalar_lea.vmem %s710_s0, %s278_s25  ;;  %s287_s7 = scalar_lea.vmem %s711_s1, %s286_s30 }
  0x15   : > { %v309_v0 = vld [vmem:[%s279_s28] sm:$0x1]  ;;  %s730_s8 = smov (!%p290_p8, %s289_s8), 23  ;;  %s732_s15 = smov (!%p298_p9, %s588_s15), 7 }
  0x16   : > { %v310_v1 = vpack.c.bf16 %v309_v0, %v309_v0  ;;  %v311_v2 = vld [vmem:[%s287_s7] sm:$0x1]  ;;  %s506_s9 = sshll.u32 %s730_s8, 1  ;;  %s507_s14 = sshll.u32 %s732_s15, 1 }
  0x17   : > { %v312_v3 = vpack.c.bf16 %v311_v2, %v311_v2  ;;  %s295_s10 = sadd.s32 %s506_s9, %s726_s16  ;;  %s306_s22 = sadd.s32 %s507_s14, %s726_s16 }
  0x18   : > { %v316_v4 = vunpack.c.l.bf16 %v310_v1  ;;  %s296_s13 = scalar_lea.vmem %s712_s2, %s295_s10  ;;  %s300_s25 = scalar_lea.vmem %s713_s3, %s732_s15 }
  0x19   : > { %v317_v5 = vunpack.c.l.bf16 %v312_v3  ;;  %v313_v9 = vld [vmem:[%s296_s13] sm:$0x1]  ;;  %s307_s27 = scalar_lea.vmem %s714_s4, %s306_s22 }
  0x1a   : > { %v314_v12 = vpack.c.bf16 %v313_v9, %v313_v9  ;;  %v315_v14 = vld [vmem:[%s300_s25] sm:$0x1] }
  0x1b   : > { %v318_v6 = vmul.f32 %v317_v5, %v316_v4 }
  0x1c   : > { %v340_v13 = vand.u32 %v338_v11, %v314_v12 }
  0x1d   : > { %v320_v7 = vsel %vm319_vm0, %v318_v6, 0.0 }
  0x1e   : > { %321 = vadd.xlane.f32.xlu0 %v320_v7  ;;  %514 = vmatpush3.bf16.msra.mxu0 %v340_v13 }
  0xab   : > { %v322_v15 = vpop.xlane.xlu0 %321 }
  0xac   : > { %v323_v16 = vmul.f32 0.17677669, %v322_v15 }
  0xae   : > { %v324_v17 = vadd.f32 %v323_v16, %v315_v14 }
  0xb0   : > { %v325_v18 = vsub.f32 %v324_v17, %v324_v17 }
  0xb2   : > { %v326_v19 = vmul.f32 1.442695, %v325_v18 }
  0xb4   : > { %562 = vpow2.f32 %v326_v19 }
  0xbe   : > { %v563_v20 = vpop.eup %562 }
  0xbf   : > { %564 = vrcp.f32 %v563_v20 }
  0xc9   : > { %v565_v21 = vpop.eup %564 }
  0xca   : > { %v330_v22 = vmul.f32 %v565_v21, %v563_v20 }
  0xcc   : > { %v331_v23 = vpack.c.bf16 %v330_v22, %v330_v22 }
  0xce   : > { %516 = vmatmul.mubr.msk.bf16.vlgmr.msra.gmra.mrb[0].mxu0 %vm332_vm3, %v331_v23 }
 0x1a1   : > { %v376_v24 = vpop.f32.mrb[0].mxu0 }
 0x1a2   : > { %382 = vst.msk [vmem:[%s307_s27] sm:$0x1] %vm319_vm0, %v376_v24  ;;  %v517_v25 = vpop.f32.mrb[1].mxu0 }
 0x1a3   : > { %v379_v26 = vpop.f32.mrb[2].mxu0 }
 0x1a4   : > { %v518_v27 = vpop.f32.mrb[3].mxu0 }
 0x1a5 PF: > { %s14_s19 = sadd.s32 1, %s604_s19   ;;  %s715_s15 = smov %s596_s17 }
 0x1a6   : > { %p11_p10 = scmp.ge.s32.totalorder %s14_s19, 18   ;;  %s716_s16 = smov %s600_s18 }
 0x1a7   : > { %s717_s17 = smov %s720_s20  ;;  %s718_s18 = smov %s724_s21 }
 0x1a8   :  { %13 = sbr.rel (!%p11_p10) target bundleno = 3 (0x3), region = 75 }

// kernel: coatnet_forward.59
= control target key start
LH: loop header
LB: loop body
LE: loop exit
PB: predicated region body
PF: predicated region fallthrough
CT: control target
= control target key end

     0   :  { %v131_v0 = vmov 0.0   ;;  %vm132_vm0 = vmmov 0   ;;  %vm93_vm1 = vcmask 517120   ;;  %s218_s1 = inlined_call_operand.vmem [shape: f32[128,64], index: 1, kind: input, shape index: {}]   ;;  %s219_s0 = inlined_call_operand.vmem [shape: f32[2,128], index: 0, kind: input, shape index: {}]   ;;  %s220_s2 = inlined_call_operand.vmem [shape: f32[1,64], index: 2, kind: input, shape index: {}]   ;;  %s221_s3 = inlined_call_operand.vmem [shape: f32[2,64], index: 3, kind: input, shape index: {}]   ;;  %s222_s4 = inlined_call_operand.vmem [shape: f32[2,64], index: 4, kind: output, shape index: {}]  }
   0x1   :  { %109 = vmatprep.subr.bf16.mxu0 %v131_v0  ;;  %v20_v1 = vld [vmem:[%s218_s1] sm:$0xff]  ;;  %v21_v2 = vld [vmem:[%s218_s1 + $0x8] sm:$0xff]  ;;  %v22_v3 = vld [vmem:[%s218_s1 + $0x10] sm:$0xff]  ;;  %125 = vmatprep.mubr.msk.bf16.mxu0 %vm132_vm0, %v131_v0 }
   0x2   :  { %v36_v4 = vpack.c.bf16 %v21_v2, %v20_v1  ;;  %v23_v5 = vld [vmem:[%s218_s1 + $0x18] sm:$0xff]  ;;  %v24_v7 = vld [vmem:[%s218_s1 + $0x20] sm:$0xff]  ;;  %v25_v8 = vld [vmem:[%s218_s1 + $0x28] sm:$0xff] }
   0x3   :  { %v37_v6 = vpack.c.bf16 %v23_v5, %v22_v3  ;;  %v38_v9 = vpack.c.bf16 %v25_v8, %v24_v7  ;;  %v26_v10 = vld [vmem:[%s218_s1 + $0x30] sm:$0xff]  ;;  %v27_v11 = vld [vmem:[%s218_s1 + $0x38] sm:$0xff]  ;;  %v28_v13 = vld [vmem:[%s218_s1 + $0x40] sm:$0xff] }
   0x4   :  { %110 = vmatpush3.bf16.msra.mxu0 %v36_v4  ;;  %v39_v12 = vpack.c.bf16 %v27_v11, %v26_v10  ;;  %v29_v14 = vld [vmem:[%s218_s1 + $0x48] sm:$0xff]  ;;  %v30_v16 = vld [vmem:[%s218_s1 + $0x50] sm:$0xff]  ;;  %v31_v17 = vld [vmem:[%s218_s1 + $0x58] sm:$0xff] }
   0x5   :  { %111 = vmatprep.subr.bf16.mxu0 %v131_v0  ;;  %v40_v15 = vpack.c.bf16 %v29_v14, %v28_v13  ;;  %v41_v18 = vpack.c.bf16 %v31_v17, %v30_v16  ;;  %v32_v19 = vld [vmem:[%s218_s1 + $0x60] sm:$0xff]  ;;  %v33_v20 = vld [vmem:[%s218_s1 + $0x68] sm:$0xff]  ;;  %v34_v22 = vld [vmem:[%s218_s1 + $0x70] sm:$0xff] }
   0x6   :  { %v42_v21 = vpack.c.bf16 %v33_v20, %v32_v19  ;;  %v35_v23 = vld [vmem:[%s218_s1 + $0x78] sm:$0xff]  ;;  %v18_v25 = vld [vmem:[%s219_s0] sm:$0x3] }
   0x7   :  { %v43_v24 = vpack.c.bf16 %v35_v23, %v34_v22  ;;  %v19_v26 = vpack.c.bf16 %v18_v25, %v18_v25  ;;  %v99_v27 = vld [vmem:[%s220_s2] ss:$0 sm:$0xff] }
   0x8   :  { %112 = vmatpush3.bf16.msra.mxu0 %v37_v6  ;;  %v91_v29 = vld [vmem:[%s221_s3] sm:$0x3] }
   0x9   :  { %113 = vmatprep.subr.bf16.mxu0 %v131_v0 }
   0xc   :  { %114 = vmatpush3.bf16.msra.mxu0 %v38_v9 }
   0xd   :  { %115 = vmatprep.subr.bf16.mxu0 %v131_v0 }
  0x10   :  { %116 = vmatpush3.bf16.msra.mxu0 %v39_v12 }
  0x11   :  { %117 = vmatprep.subr.bf16.mxu0 %v131_v0 }
  0x14   :  { %118 = vmatpush3.bf16.msra.mxu0 %v40_v15 }
  0x15   :  { %119 = vmatprep.subr.bf16.mxu0 %v131_v0 }
  0x18   :  { %120 = vmatpush3.bf16.msra.mxu0 %v41_v18 }
  0x19   :  { %121 = vmatprep.subr.bf16.mxu0 %v131_v0 }
  0x1c   :  { %122 = vmatpush3.bf16.msra.mxu0 %v42_v21 }
  0x1d   :  { %123 = vmatprep.subr.bf16.mxu0 %v131_v0 }
  0x20   :  { %124 = vmatpush3.bf16.msra.mxu0 %v43_v24 }
  0x23   :  { %126 = vmatmul.mubr.bf16.vlgmr.msra.gmra.mrb[0].mxu0 %v19_v26 }
  0xf6   :  { %v85_v28 = vpop.f32.mrb[0].mxu0 }
  0xf7   :  { %v86_v30 = vadd.f32 %v99_v27, %v85_v28  ;;  %v127_v31 = vpop.f32.mrb[1].mxu0 }
  0xf8   :  { %v88_v32 = vpop.f32.mrb[2].mxu0 }
  0xf9   :  { %v92_v33 = vadd.f32 %v91_v29, %v86_v30  ;;  %v128_v34 = vpop.f32.mrb[3].mxu0 }
  0xfb   :  { %94 = vst.msk [vmem:[%s222_s4] sm:$0x3] %vm93_vm1, %v92_v33 }

// kernel: coatnet_forward.58
= control target key start
LH: loop header
LB: loop body
LE: loop exit
PB: predicated region body
PF: predicated region fallthrough
CT: control target
= control target key end

     0   :  { %vm22_vm0 = vcmask 517120   ;;  %v158_v10 = vmov 0.0   ;;  %vm159_vm1 = vmmov 0   ;;  %vm73_vm2 = vcmask 523264   ;;  %s229_s0 = inlined_call_operand.vmem [shape: f32[2,64], index: 0, kind: input, shape index: {}]   ;;  %s230_s3 = inlined_call_operand.vmem [shape: f32[64,128], index: 3, kind: input, shape index: {}]   ;;  %s231_s1 = inlined_call_operand.vmem [shape: f32[1,64], index: 1, kind: input, shape index: {}]   ;;  %s232_s2 = inlined_call_operand.vmem [shape: f32[1,64], index: 2, kind: input, shape index: {}]   ;;  %s233_s4 = inlined_call_operand.vmem [shape: f32[1,128], index: 4, kind: input, shape index: {}]   ;;  %s234_s5 = inlined_call_operand.vmem [shape: f32[2,128], index: 5, kind: output, shape index: {}]  }
   0x1   :  { %v21_v0 = vld [vmem:[%s229_s0] sm:$0x3]  ;;  %v55_v8 = vld [vmem:[%s230_s3 + $0x8] sm:$0xff]  ;;  %140 = vmatprep.subr.bf16.mxu0 %v158_v10  ;;  %v56_v11 = vld [vmem:[%s230_s3 + $0x10] sm:$0xff]  ;;  %148 = vmatprep.mubr.msk.bf16.mxu0 %vm159_vm1, %v158_v10 }
   0x2   :  { %v23_v1 = vsel %vm22_vm0, %v21_v0, 0.0  ;;  %v54_v7 = vld [vmem:[%s230_s3] sm:$0xff]  ;;  %v57_v12 = vld [vmem:[%s230_s3 + $0x18] sm:$0xff]  ;;  %v59_v15 = vld [vmem:[%s230_s3 + $0x28] sm:$0xff] }
   0x3   :  { %24 = vadd.xlane.f32.xlu0 %v23_v1  ;;  %v62_v9 = vpack.c.bf16 %v55_v8, %v54_v7  ;;  %v63_v13 = vpack.c.bf16 %v57_v12, %v56_v11  ;;  %v58_v14 = vld [vmem:[%s230_s3 + $0x20] sm:$0xff]  ;;  %v60_v17 = vld [vmem:[%s230_s3 + $0x30] sm:$0xff]  ;;  %v61_v18 = vld [vmem:[%s230_s3 + $0x38] sm:$0xff] }
   0x4   :  { %v64_v16 = vpack.c.bf16 %v59_v15, %v58_v14  ;;  %v65_v19 = vpack.c.bf16 %v61_v18, %v60_v17  ;;  %v131_v24 = vld [vmem:[%s231_s1] ss:$0 sm:$0xff] }
   0x5   :  { %141 = vmatpush3.bf16.msra.mxu0 %v62_v9  ;;  %v132_v26 = vld [vmem:[%s232_s2] ss:$0 sm:$0xff] }
   0x6   :  { %142 = vmatprep.subr.bf16.mxu0 %v158_v10  ;;  %v133_v30 = vld [vmem:[%s233_s4] ss:$0 sm:$0xff] }
   0x9   :  { %143 = vmatpush3.bf16.msra.mxu0 %v63_v13 }
   0xa   :  { %144 = vmatprep.subr.bf16.mxu0 %v158_v10 }
   0xd   :  { %145 = vmatpush3.bf16.msra.mxu0 %v64_v16 }
   0xe   :  { %146 = vmatprep.subr.bf16.mxu0 %v158_v10 }
  0x11   :  { %147 = vmatpush3.bf16.msra.mxu0 %v65_v19 }
  0x90   :  { %v25_v2 = vpop.xlane.xlu0 %24 }
  0x91   :  { %v27_v3 = vmul.f32 0.015625, %v25_v2 }
  0x93   :  { %v28_v4 = vsub.f32 %v21_v0, %v27_v3 }
  0x95   :  { %v29_v5 = vmul.f32 %v28_v4, %v28_v4 }
  0x97   :  { %v30_v6 = vsel %vm22_vm0, %v29_v5, 0.0 }
  0x98   :  { %31 = vadd.xlane.f32.xlu0 %v30_v6 }
 0x125   :  { %v32_v20 = vpop.xlane.xlu0 %31 }
 0x126   :  { %v33_v21 = vmul.f32 0.015625, %v32_v20 }
 0x128   :  { %v34_v22 = vadd.f32 1e-05, %v33_v21 }
 0x12a   :  { %154 = vrsqrt.f32 %v34_v22 }
 0x134   :  { %v155_v23 = vpop.eup %154 }
 0x135   :  { %v36_v25 = vmul.f32 %v155_v23, %v28_v4 }
 0x137   :  { %v44_v27 = vmul.f32 %v131_v24, %v36_v25 }
 0x139   :  { %v52_v28 = vadd.f32 %v132_v26, %v44_v27 }
 0x13b   :  { %v53_v29 = vpack.c.bf16 %v52_v28, %v52_v28 }
 0x13d   :  { %149 = vmatmul.mubr.msk.bf16.vlgmr.msra.gmra.mrb[0].mxu0 %vm73_vm2, %v53_v29 }
 0x210   :  { %v111_v31 = vpop.f32.mrb[0].mxu0 }
 0x211   :  { %v112_v32 = vadd.f32 %v133_v30, %v111_v31  ;;  %v150_v33 = vpop.f32.mrb[1].mxu0 }
 0x212   :  { %v114_v34 = vpop.f32.mrb[2].mxu0 }
 0x213   :  { %v118_v35 = vmul.f32 0.044715, %v112_v32  ;;  %v151_v36 = vpop.f32.mrb[3].mxu0  ;;  %v117_v42 = vmul.f32 0.5, %v112_v32 }
 0x215   :  { %v119_v37 = vmul.f32 %v118_v35, %v112_v32 }
 0x217   :  { %v120_v38 = vmul.f32 %v119_v37, %v112_v32 }
 0x219   :  { %v121_v39 = vadd.f32 %v120_v38, %v112_v32 }
 0x21b   :  { %v122_v40 = vmul.f32 0.7978846, %v121_v39 }
 0x21d   :  { %156 = vtanh.f32 %v122_v40 }
 0x227   :  { %v157_v41 = vpop.eup %156 }
 0x228   :  { %v124_v43 = vadd.f32 1.0, %v157_v41 }
 0x22a   :  { %v125_v44 = vmul.f32 %v124_v43, %v117_v42 }
 0x22c   :  { %126 = vst [vmem:[%s234_s5] sm:$0x3] %v125_v44 }

// kernel: coatnet_forward.60
= control target key start
LH: loop header
LB: loop body
LE: loop exit
PB: predicated region body
PF: predicated region fallthrough
CT: control target
= control target key end

     0   :  { %s174_s6 = smov 0   ;;  %s194_s0 = inlined_call_operand.vmem [shape: f32[2,1,64], index: 0, kind: input, shape index: {}]   ;;  %s195_s1 = inlined_call_operand.vmem [shape: f32[2,1,64], index: 1, kind: output, shape index: {}]  }
   0x1 LB: > { %s155_s7 = sadd.s32 4294967295, %s176_s6   ;;  %p159_p0 = scmp.ge.s32.totalorder %s176_s6, 1  ;;  %s176_s6 = sphi %s174_s6, %s11_s6  }
   0x2   : > { %p85_p1 = scmp.lt.s32.totalorder %s176_s6, 3 }
   0x4   : > { %p86_p2 = pnand %p159_p0, %p85_p1 }
   0x5   : > { %p101_p3 = scmp.lt.s32.totalorder (!%p86_p2), %s155_s7, 1  ;;  %vm109_vm0 = vcmask (!%p86_p2), 516096  }
   0x6   : > { %89 = sbr.rel (%p86_p2) target bundleno = 17 (0x11), region = 24 }
   0xd   : > { %s197_s7 = smov (!%p101_p3, %s155_s7), 1 }
   0xe   : > { %s103_s10 = scalar_lea.vmem %s194_s0, %s197_s7  ;;  %s106_s13 = scalar_lea.vmem %s195_s1, %s197_s7 }
   0xf   : > { %v107_v0 = vld [vmem:[%s103_s10] sm:$0x1] }
  0x10   : > { %110 = vst.msk [vmem:[%s106_s13] sm:$0x1] %vm109_vm0, %v107_v0 }
  0x11 PF: > { %s11_s6 = sadd.s32 1, %s176_s6  }
  0x12   : > { %p8_p4 = scmp.ge.s32.totalorder %s11_s6, 4  }
  0x14   :  { %10 = sbr.rel (!%p8_p4) target bundleno = 1 (0x1), region = 54 }

// kernel: coatnet_forward.61
= control target key start
LH: loop header
LB: loop body
LE: loop exit
PB: predicated region body
PF: predicated region fallthrough
CT: control target
= control target key end

     0   :  { %v156_v3 = vmov 0.0   ;;  %vm157_vm0 = vmmov 0   ;;  %s229_s0 = inlined_call_operand.vmem [shape: f32[2,64], index: 0, kind: input, shape index: {}]   ;;  %s230_s1 = inlined_call_operand.vmem [shape: f32[64,10], index: 1, kind: input, shape index: {}]   ;;  %s231_s2 = inlined_call_operand.vmem [shape: f32[1,10], index: 2, kind: input, shape index: {}]   ;;  %s232_s3 = inlined_call_operand.vmem [shape: f32[1,10], index: 3, kind: input, shape index: {}]   ;;  %s233_s4 = inlined_call_operand.hbm [shape: f32[2,10], index: 4, kind: output, shape index: {}]  }
   0x1   :  { %v21_v0 = vld [vmem:[%s230_s1] sm:$0xff]  ;;  %v22_v1 = vld [vmem:[%s230_s1 + $0x8] sm:$0xff]  ;;  %v23_v2 = vld [vmem:[%s230_s1 + $0x10] sm:$0xff]  ;;  %117 = vmatprep.subr.bf16.mxu0 %v156_v3  ;;  %125 = vmatprep.mubr.msk.bf16.mxu0 %vm157_vm0, %v156_v3 }
   0x2   :  { %v29_v4 = vpack.c.bf16 %v22_v1, %v21_v0  ;;  %v24_v5 = vld [vmem:[%s230_s1 + $0x18] sm:$0xff] }
   0x3   :  { %v30_v6 = vpack.c.bf16 %v24_v5, %v23_v2 }
   0x4   :  { %118 = vmatpush3.bf16.msra.mxu0 %v29_v4 }
   0x5   :  { %9 = vsyncpa [#allocation3], 0  ;;  %119 = vmatprep.subr.bf16.mxu0 %v156_v3  ;;  %v25_v7 = vld [vmem:[%s230_s1 + $0x20] sm:$0xff]  ;;  %v26_v8 = vld [vmem:[%s230_s1 + $0x28] sm:$0xff]  ;;  %vm33_vm1 = vcmask 523264   ;;  %vm93_vm2 = vcmask 74752  }
   0x6   :  { %v31_v9 = vpack.c.bf16 %v26_v8, %v25_v7  ;;  %v27_v10 = vld [vmem:[%s230_s1 + $0x30] sm:$0xff]  ;;  %v28_v11 = vld [vmem:[%s230_s1 + $0x38] sm:$0xff]  ;;  %v19_v13 = vld [vmem:[%s229_s0] sm:$0x3]  ;;  %s158_s1 = smov [#allocation2]  }
   0x7   :  { %v32_v12 = vpack.c.bf16 %v28_v11, %v27_v10  ;;  %v20_v14 = vpack.c.bf16 %v19_v13, %v19_v13  ;;  %v110_v15 = vld [vmem:[%s231_s2] ss:$0 sm:$0xff]  ;;  %s101_s11 = sshll.u32 %s158_s1, 4  ;;  %s102_s11 = int_to_ptr.vmem [resolvable:$true] %s101_s11 }
   0x8   :  { %120 = vmatpush3.bf16.msra.mxu0 %v30_v6  ;;  %v111_v17 = vld [vmem:[%s232_s3] ss:$0 sm:$0xff]  ;;  %s132_s0 = scalar_lea.vmem %s102_s11, 32  ;;  %p137_p1 = scmp.lt.s32.totalorder %s102_s11, %s102_s11 }
   0x9   :  { %121 = vmatprep.subr.bf16.mxu0 %v156_v3  ;;  %p133_p0 = scmp.ne.s32.totalorder %s102_s11, %s132_s0  ;;  %p138_p2 = scmp.lt.s32.totalorder %s132_s0, %s132_s0 }
   0xb   :  { %p139_p3 = por %p138_p2, %p137_p1 }
   0xc   :  { %122 = vmatpush3.bf16.msra.mxu0 %v31_v9 }
   0xd   :  { %123 = vmatprep.subr.bf16.mxu0 %v156_v3  ;;  %p140_p4 = pnand %p139_p3, %p133_p0 }
  0x10   :  { %124 = vmatpush3.bf16.msra.mxu0 %v32_v12 }
  0x13   :  { %126 = vmatmul.mubr.msk.bf16.vlgmr.msra.gmra.mrb[0].mxu0 %vm33_vm1, %v20_v14 }
  0xe6   :  { %v71_v16 = vpop.f32.mrb[0].mxu0 }
  0xe7   :  { %v84_v18 = vmul.f32 %v110_v15, %v71_v16  ;;  %v127_v19 = vpop.f32.mrb[1].mxu0 }
  0xe8   :  { %v74_v20 = vpop.f32.mrb[2].mxu0 }
  0xe9   :  { %v92_v21 = vadd.f32 %v111_v17, %v84_v18  ;;  %v128_v22 = vpop.f32.mrb[3].mxu0 }
  0xeb   :  { %94 = vst.msk [vmem:[#allocation2] sm:$0x3] %vm93_vm2, %v92_v21 }
  0xec   :  { %143 = shalt.err (!%p140_p4)
}
  0xed   :  { %s144_s3 = scalar_lea.hbm %s233_s4, 32 }
  0xee   :  { %p145_p5 = scmp.ne.s32.totalorder %s233_s4, %s144_s3  ;;  %p148_p6 = scmp.lt.u32.totalorder %s144_s3, %s233_s4 }
  0xf0   :  { %p150_p7 = pnand %p148_p6, %p145_p5 }
  0xf2   :  { %153 = shalt.err (!%p150_p7)
}
  0xf3   :  { %104 = dma.vmem_to_hbm [thread:$0]  %s102_s11, 32, %s233_s4, [#allocation3]  }
  0xf4   :  { %154 = dma.done.wait [#allocation3], 32  }
  0xf5   :  { %155 = vsyncadd [#allocation3], 4294967264 }
  0xf6   :  { %108 = vsyncpa [#allocation3], 1 }

</bundles_post_ra>
